<compile_context>
chip_gen: v7x
topology: tpu7x:2x2x1
jax: 0.10.0
libtpu: 0.0.40
codegen_flags: <defaults>
</compile_context>

<pallas_src>
import jax
import jax.numpy as jnp
from jax.experimental import pallas as pl
from jax.experimental.pallas import tpu as pltpu

LANE = 128
_EPS = 1e-5


def _round_up(x, m):
    return (x + m - 1) // m * m


def _vmem_limit():
    """Scoped-VMEM budget derived from the actual chip (<=48MiB on v7x, ~64MiB otherwise)."""
    try:
        cap = int(pltpu.get_tpu_info().vmem_capacity_bytes)
    except Exception:
        cap = 64 * 1024 * 1024
    return max(32 * 1024 * 1024, min(3 * cap // 4, 64 * 1024 * 1024))


def _pick_th(H, target=16):
    """Largest divisor of H that is <= target (row-block height)."""
    for t in range(min(target, H), 0, -1):
        if H % t == 0:
            return t
    return 1


# ---------------------------------------------------------------------------
# Kernel 1: tiled matmul + bias (used for ConvTranspose2d(k=2, s=2))
# ---------------------------------------------------------------------------
def _matmul_bias_kernel(a_ref, b_ref, bias_ref, o_ref, acc_ref):
    k = pl.program_id(2)

    @pl.when(k == 0)
    def _():
        acc_ref[...] = jnp.zeros_like(acc_ref)

    acc_ref[...] += jnp.dot(a_ref[...], b_ref[...],
                            preferred_element_type=jnp.float32)

    @pl.when(k == pl.num_programs(2) - 1)
    def _():
        o_ref[...] = (acc_ref[...] + bias_ref[...]).astype(o_ref.dtype)


def matmul_bias(a, b, bias, *, tm=256, tn=512, tk=1024, out_dtype=jnp.float32):
    """(M,K) @ (K,N) + (N,) with K-accumulation in VMEM, bf16 MXU inputs, f32 acc."""
    M, K = a.shape
    K2, N = b.shape
    assert K == K2
    tm = min(tm, _round_up(M, 8))
    tn = min(tn, _round_up(N, LANE))
    tk = min(tk, _round_up(K, LANE))
    Mp, Kp, Np = _round_up(M, tm), _round_up(K, tk), _round_up(N, tn)
    a_p = jnp.pad(a, ((0, Mp - M), (0, Kp - K))).astype(jnp.bfloat16)
    b_p = jnp.pad(b, ((0, Kp - K), (0, Np - N))).astype(jnp.bfloat16)
    bias_p = jnp.pad(bias.astype(jnp.float32), (0, Np - N)).reshape(1, Np)
    out = pl.pallas_call(
        _matmul_bias_kernel,
        out_shape=jax.ShapeDtypeStruct((Mp, Np), out_dtype),
        grid=(Mp // tm, Np // tn, Kp // tk),
        in_specs=[
            pl.BlockSpec((tm, tk), lambda i, j, k: (i, k)),
            pl.BlockSpec((tk, tn), lambda i, j, k: (k, j)),
            pl.BlockSpec((1, tn), lambda i, j, k: (0, j)),
        ],
        out_specs=pl.BlockSpec((tm, tn), lambda i, j, k: (i, j)),
        scratch_shapes=[pltpu.VMEM((tm, tn), jnp.float32)],
        compiler_params=pltpu.CompilerParams(
            dimension_semantics=("parallel", "parallel", "arbitrary"),
            vmem_limit_bytes=_vmem_limit()),
    )(a_p, b_p, bias_p)
    return out[:M, :N]


# ---------------------------------------------------------------------------
# Kernel 2: fused row-blocked 3x3 conv (+optional BN/ReLU on inputs) + bias
#           + BN batch statistics
# ---------------------------------------------------------------------------
def _make_conv_kernel(n_in, act, th, HB):
    """n_in channel-split inputs, optional per-input (scale, shift, relu) applied to the
    loaded rows, zero halo built in VMEM, 3 matmuls per row block (K = 3*sum(cin_pad)),
    bf16 store + per-row-block BN stats from the f32 accumulator."""

    def kernel(*refs):
        idx = 0
        x_refs, ss_refs = [], []
        for t in range(n_in):
            x_refs.append(refs[idx]); idx += 1
            if act[t]:
                ss_refs.append((refs[idx], refs[idx + 1])); idx += 2
            else:
                ss_refs.append(None)
        w_ref = refs[idx]; idx += 1          # (3, Ktot, cout_pad) bf16  (di, [in, dj, cin])
        b_ref = refs[idx]; idx += 1          # (1, cout_pad) f32
        y_ref = refs[idx]; idx += 1          # (H, W, cout_pad)
        st_ref = refs[idx]; idx += 1         # (HB, 2, cout_pad) f32
        acc_ref = refs[idx]                  # (th*W, cout_pad) f32 VMEM scratch

        H, W, _ = x_refs[0].shape
        cout = y_ref.shape[-1]
        ktot = w_ref.shape[1]

        for rb in range(HB):
            r_lo, r_hi = rb * th - 1, rb * th + th + 1         # halo row window
            lo, hi = max(r_lo, 0), min(r_hi, H)
            pt, pb = lo - r_lo, r_hi - hi                      # static zero-halo amounts

            pieces = []
            for t in range(n_in):
                x_ref = x_refs[t]
                cin = x_ref.shape[-1]
                rows = x_ref[lo:hi, :, :]
                if act[t]:
                    s_ref, sh_ref = ss_refs[t]
                    rows = jnp.maximum(
                        rows.astype(jnp.float32) * s_ref[...] + sh_ref[...], 0.0)
                rows = rows.astype(jnp.bfloat16)
                # Zero halo added AFTER the fused activation -> padding=1 border stays 0.
                parts = []
                if pt:
                    parts.append(jnp.zeros((pt, W, cin), jnp.bfloat16))
                parts.append(rows)
                if pb:
                    parts.append(jnp.zeros((pb, W, cin), jnp.bfloat16))
                blk = parts[0] if len(parts) == 1 else jnp.concatenate(parts, axis=0)
                zc = jnp.zeros((th + 2, 1, cin), jnp.bfloat16)
                blk = jnp.concatenate([zc, blk, zc], axis=1)   # (th+2, W+2, cin)
                # dj-shifted copies concatenated along K (3x contraction depth).
                pieces.append(jnp.concatenate(
                    [blk[:, 0:W, :], blk[:, 1:W + 1, :], blk[:, 2:W + 2, :]], axis=-1))
            xc = pieces[0] if n_in == 1 else jnp.concatenate(pieces, axis=-1)  # (th+2, W, Ktot)

            acc_ref[...] = jnp.zeros_like(acc_ref)
            for di in range(3):                                # 3 matmuls, K = Ktot
                lhs = xc[di:di + th, :, :].reshape(th * W, ktot)
                acc_ref[...] += jnp.dot(lhs, w_ref[di, :, :],
                                        preferred_element_type=jnp.float32)
            y_blk = acc_ref[...] + b_ref[...]
            y_ref[rb * th:(rb + 1) * th, :, :] = (
                y_blk.reshape(th, W, cout).astype(y_ref.dtype))
            # One (2, cout_pad) stats write per row block (Chan-combinable, equal counts).
            mu = jnp.mean(y_blk, axis=0, keepdims=True)
            m2 = jnp.sum(jnp.square(y_blk - mu), axis=0, keepdims=True)
            st_ref[rb, :, :] = jnp.concatenate([mu, m2], axis=0)

    return kernel


def conv3x3_fused(xs, scale_shifts, w_cat, bias, *, th, out_dtype=jnp.bfloat16):
    """xs: list of (Nb,H,W,cin_pad_i) bf16 inputs (unpadded spatially).
       scale_shifts: per input, None or (scale, shift) (cin_pad_i,)-f32 to fuse BN+ReLU.
       w_cat: (3, sum_i 3*cin_pad_i, cout_pad) bf16.  bias: (1, cout_pad) f32.
       Returns y (Nb,H,W,cout_pad) out_dtype and stats (Nb,H//th,2,cout_pad) f32."""
    n_in = len(xs)
    Nb, H, W, _ = xs[0].shape
    assert H % th == 0
    HB = H // th
    cout_pad = w_cat.shape[-1]
    act = tuple(ss is not None for ss in scale_shifts)

    in_specs, args = [], []
    for t, x in enumerate(xs):
        cpad = x.shape[-1]
        in_specs.append(pl.BlockSpec((None, H, W, cpad), lambda b: (b, 0, 0, 0)))
        args.append(x)
        if act[t]:
            for v in scale_shifts[t]:
                in_specs.append(pl.BlockSpec((1, cpad), lambda b: (0, 0)))
                args.append(v.astype(jnp.float32).reshape(1, cpad))
    in_specs.append(pl.BlockSpec(w_cat.shape, lambda b: (0, 0, 0)))
    args.append(w_cat)
    in_specs.append(pl.BlockSpec((1, cout_pad), lambda b: (0, 0)))
    args.append(bias)

    y, stats = pl.pallas_call(
        _make_conv_kernel(n_in, act, th, HB),
        out_shape=(jax.ShapeDtypeStruct((Nb, H, W, cout_pad), out_dtype),
                   jax.ShapeDtypeStruct((Nb, HB, 2, cout_pad), jnp.float32)),
        grid=(Nb,),
        in_specs=in_specs,
        out_specs=(pl.BlockSpec((None, H, W, cout_pad), lambda b: (b, 0, 0, 0)),
                   pl.BlockSpec((None, HB, 2, cout_pad), lambda b: (b, 0, 0, 0))),
        scratch_shapes=[pltpu.VMEM((th * W, cout_pad), jnp.float32)],
        compiler_params=pltpu.CompilerParams(
            dimension_semantics=("parallel",),
            vmem_limit_bytes=_vmem_limit()),
    )(*args)
    return y, stats


# ---------------------------------------------------------------------------
# Kernel 3: lane-dense BN-normalize + ReLU over the flattened activation
# ---------------------------------------------------------------------------
def _bn_relu_kernel(y_ref, scale_ref, shift_ref, o_ref):
    o_ref[...] = jnp.maximum(
        y_ref[...].astype(jnp.float32) * scale_ref[...] + shift_ref[...],
        0.0).astype(o_ref.dtype)


def bn_relu_flat(y, scale_pad, shift_pad, *, out_dtype):
    """y: (M, C) with C a multiple of 128; big row blocks, 1-D grid."""
    M, C = y.shape
    rows = 256 if M <= 4096 else 1024
    Mp = _round_up(M, rows)
    if Mp != M:
        y = jnp.pad(y, ((0, Mp - M), (0, 0)))
    out = pl.pallas_call(
        _bn_relu_kernel,
        out_shape=jax.ShapeDtypeStruct((Mp, C), out_dtype),
        grid=(Mp // rows,),
        in_specs=[pl.BlockSpec((rows, C), lambda i: (i, 0)),
                  pl.BlockSpec((1, C), lambda i: (0, 0)),
                  pl.BlockSpec((1, C), lambda i: (0, 0))],
        out_specs=pl.BlockSpec((rows, C), lambda i: (i, 0)),
        compiler_params=pltpu.CompilerParams(
            dimension_semantics=("parallel",),
            vmem_limit_bytes=_vmem_limit()),
    )(y, scale_pad.reshape(1, C), shift_pad.reshape(1, C))
    return out[:M]


# ---------------------------------------------------------------------------
# JAX glue: weight prep, BN statistic combination, module forward
# ---------------------------------------------------------------------------
def _prep_conv_weight(w_oihw, cin_pad, cout_pad):
    """(Cout, Cin, 3, 3) torch layout -> (3[di], 3*cin_pad [dj-major, then cin], cout_pad)."""
    cout, cin = w_oihw.shape[0], w_oihw.shape[1]
    w = jnp.transpose(w_oihw, (2, 3, 1, 0))                    # (di, dj, cin, cout)
    w = jnp.pad(w, ((0, 0), (0, 0), (0, cin_pad - cin), (0, cout_pad - cout)))
    return w.reshape(3, 3 * cin_pad, cout_pad).astype(jnp.bfloat16)


def _bn_stats_combine(stats, gamma, beta, count_per_chunk, cout, eps=_EPS):
    """Exact within/between-chunk variance combination (equal-count chunks)."""
    means = stats[:, :, 0, :cout].reshape(-1, cout)
    m2s = stats[:, :, 1, :cout].reshape(-1, cout)
    n_chunks = means.shape[0]
    mean = jnp.mean(means, axis=0)
    m2 = jnp.sum(m2s, axis=0) + count_per_chunk * jnp.sum(jnp.square(means - mean), axis=0)
    var = m2 / (n_chunks * count_per_chunk)                    # biased variance (BN training)
    scale = gamma / jnp.sqrt(var + eps)
    shift = beta - mean * scale
    return scale, shift


def unet_block_up(x_nchw, skip_nchw, params):
    f32 = jnp.float32
    x = jnp.transpose(x_nchw, (0, 2, 3, 1))                    # NHWC
    skip = jnp.transpose(skip_nchw, (0, 2, 3, 1))              # NHWC

    Nb, Hin, Win, Cin = x.shape
    up_w = params["up_w"]                  # torch ConvTranspose2d layout (Cin, Cout, 2, 2)
    Cout = up_w.shape[1]
    Cskip = skip.shape[-1]
    cout_pad = _round_up(Cout, LANE)
    cskip_pad = _round_up(Cskip, LANE)

    # --- ConvTranspose2d(k=2, s=2): lane-dense tiled matmul; columns = (di, dj, cout_pad).
    bmat = jnp.transpose(up_w, (0, 2, 3, 1))                               # (Cin, 2, 2, Cout)
    bmat = jnp.pad(bmat, ((0, 0), (0, 0), (0, 0), (0, cout_pad - Cout)))
    bmat = bmat.reshape(Cin, 4 * cout_pad)
    bias_up = jnp.tile(jnp.pad(params["up_b"], (0, cout_pad - Cout)), 4)
    y_up = matmul_bias(x.reshape(Nb * Hin * Win, Cin), bmat, bias_up,
                       out_dtype=jnp.bfloat16)                             # (M, 4*cout_pad)
    H, W = 2 * Hin, 2 * Win
    y_up = (y_up.reshape(Nb, Hin, Win, 2, 2, cout_pad)                     # 2x2 deinterleave
                 .transpose(0, 1, 3, 2, 4, 5)
                 .reshape(Nb, H, W, cout_pad))

    # --- Center-crop skip if spatial dims differ (static shapes), pad channels to lanes.
    sh, sw = skip.shape[1], skip.shape[2]
    if (sh, sw) != (H, W):
        dy, dx = sh - H, sw - W
        skip = skip[:, dy // 2: dy // 2 + H, dx // 2: dx // 2 + W, :]
    skip = jnp.pad(skip.astype(jnp.bfloat16),
                   ((0, 0), (0, 0), (0, 0), (0, cskip_pad - Cskip)))

    th = _pick_th(H)
    count = th * W                                                         # elements per stats chunk

    # --- conv1 over [upconv_out, skip] (no HBM concat, no XLA spatial pad) + bias + bn1 stats
    c1_w = params["c1_w"]                                                  # (Cout, Cout+Cskip, 3, 3)
    w1_cat = jnp.concatenate(
        [_prep_conv_weight(c1_w[:, :Cout], cout_pad, cout_pad),
         _prep_conv_weight(c1_w[:, Cout:], cskip_pad, cout_pad)], axis=1)
    b1 = jnp.pad(params["c1_b"], (0, cout_pad - Cout)).astype(f32).reshape(1, cout_pad)
    y1, st1 = conv3x3_fused([y_up, skip], [None, None], w1_cat, b1, th=th)
    scale1, shift1 = _bn_stats_combine(st1, params["bn1_g"], params["bn1_b"], count, Cout)
    scale1 = jnp.pad(scale1, (0, cout_pad - Cout))
    shift1 = jnp.pad(shift1, (0, cout_pad - Cout))

    # --- conv2 with bn1+ReLU fused into its input load (no bn_relu pass / pad / re-read of h1)
    w2_cat = _prep_conv_weight(params["c2_w"], cout_pad, cout_pad)
    b2 = jnp.pad(params["c2_b"], (0, cout_pad - Cout)).astype(f32).reshape(1, cout_pad)
    y2, st2 = conv3x3_fused([y1], [(scale1, shift1)], w2_cat, b2, th=th)
    scale2, shift2 = _bn_stats_combine(st2, params["bn2_g"], params["bn2_b"], count, Cout)
    scale2 = jnp.pad(scale2, (0, cout_pad - Cout))
    shift2 = jnp.pad(shift2, (0, cout_pad - Cout))

    # --- final bn2 + ReLU over the flattened activation (lane-dense, big blocks)
    h2 = bn_relu_flat(y2.reshape(Nb * H * W, cout_pad), scale2, shift2, out_dtype=f32)
    h2 = h2.reshape(Nb, H, W, cout_pad)[:, :, :, :Cout]
    return jnp.transpose(h2, (0, 3, 1, 2))                                 # NCHW, real channels


# ---------------------------------------------------------------------------
# Deterministic parameters + driver
# ---------------------------------------------------------------------------
def make_params(in_channels, skip_channels, out_channels, key):
    ks = jax.random.split(key, 6)
    c1_in = out_channels + skip_channels
    return {
        "up_w": 0.1 * jax.random.normal(ks[0], (in_channels, out_channels, 2, 2), jnp.float32),
        "up_b": 0.1 * jax.random.normal(ks[1], (out_channels,), jnp.float32),
        "c1_w": 0.1 * jax.random.normal(ks[2], (out_channels, c1_in, 3, 3), jnp.float32),
        "c1_b": 0.1 * jax.random.normal(ks[3], (out_channels,), jnp.float32),
        "c2_w": 0.1 * jax.random.normal(ks[4], (out_channels, out_channels, 3, 3), jnp.float32),
        "c2_b": 0.1 * jax.random.normal(ks[5], (out_channels,), jnp.float32),
        "bn1_g": jnp.ones((out_channels,), jnp.float32),
        "bn1_b": jnp.zeros((out_channels,), jnp.float32),
        "bn2_g": jnp.ones((out_channels,), jnp.float32),
        "bn2_b": jnp.zeros((out_channels,), jnp.float32),
    }


if __name__ == "__main__":
    in_channels, skip_channels, out_channels = 8, 4, 4
    N, Hin, Win = 2, 8, 8
    Hs, Ws = 2 * Hin, 2 * Win

    key = jax.random.PRNGKey(0)
    kx, kskip, kp = jax.random.split(key, 3)
    x = jax.random.normal(kx, (N, in_channels, Hin, Win), jnp.float32)        # NCHW
    skip = jax.random.normal(kskip, (N, skip_channels, Hs, Ws), jnp.float32)  # NCHW
    params = make_params(in_channels, skip_channels, out_channels, kp)

    fwd = jax.jit(unet_block_up)
    out = jax.block_until_ready(fwd(x, skip, params))

    assert out.shape == (N, out_channels, Hs, Ws), out.shape
    assert bool(jnp.all(jnp.isfinite(out)))
    assert bool(jnp.all(out >= 0.0))  # ReLU output
    print("KERNEL_OK")
</pallas_src>

<mosaic_0001>
module attributes {stable_mosaic.version = 11 : i64} {
  func.func @_matmul_bias_kernel(%arg0: i32, %arg1: i32, %arg2: i32, %arg3: memref<128x128xbf16, #tpu.memory_space<vmem>>, %arg4: memref<128x512xbf16, #tpu.memory_space<vmem>>, %arg5: memref<1x512xf32, #tpu.memory_space<vmem>>, %arg6: memref<128x512xbf16, #tpu.memory_space<vmem>>, %arg7: memref<128x512xf32, #tpu.memory_space<vmem>>) attributes {dimension_semantics = [#tpu.dimension_semantics<parallel>, #tpu.dimension_semantics<parallel>, #tpu.dimension_semantics<arbitrary>], iteration_bounds = array<i64: 1, 1, 1>, scalar_prefetch = 0 : i64, scratch_operands = 1 : i64, tpu.core_type = #tpu.core_type<tc>, window_params = [{transform_indices = @transform_0, window_bounds = array<i64: 128, 128>}, {transform_indices = @transform_1, window_bounds = array<i64: 128, 512>}, {transform_indices = @transform_2, window_bounds = array<i64: 1, 512>}, {transform_indices = @transform_3, window_bounds = array<i64: 128, 512>}]} {
    %c0_i32 = arith.constant 0 : i32
    %0 = arith.cmpi eq, %arg2, %c0_i32 : i32
    %1 = arith.extui %0 : i1 to i32
    %c0_i32_0 = arith.constant 0 : i32
    %2 = arith.cmpi ne, %1, %c0_i32_0 : i32
    scf.if %2 {
      %cst_10 = arith.constant 0.000000e+00 : f32
      %12 = vector.broadcast %cst_10 : f32 to vector<128x512xf32>
      %c0_11 = arith.constant 0 : index
      %c0_12 = arith.constant 0 : index
      %13 = vector.load %arg7[%c0_11, %c0_12] : memref<128x512xf32, #tpu.memory_space<vmem>>, vector<128x512xf32>
      tpu.vector_store %arg7[%c0_11, %c0_12], %12 {strides = array<i32>} : memref<128x512xf32, #tpu.memory_space<vmem>>, vector<128x512xf32>,
    } else {
    }
    %c0 = arith.constant 0 : index
    %c0_1 = arith.constant 0 : index
    %3 = vector.load %arg7[%c0, %c0_1] : memref<128x512xf32, #tpu.memory_space<vmem>>, vector<128x512xf32>
    %c0_2 = arith.constant 0 : index
    %c0_3 = arith.constant 0 : index
    %4 = vector.load %arg3[%c0_2, %c0_3] : memref<128x128xbf16, #tpu.memory_space<vmem>>, vector<128x128xbf16>
    %c0_4 = arith.constant 0 : index
    %c0_5 = arith.constant 0 : index
    %5 = vector.load %arg4[%c0_4, %c0_5] : memref<128x512xbf16, #tpu.memory_space<vmem>>, vector<128x512xbf16>
    %cst = arith.constant dense<0.000000e+00> : vector<128x512xf32>
    %6 = tpu.matmul %4, %5, %cst {dimension_numbers = #tpu.dot_dimension_numbers<[1], [0], [0], [1], [0, 0, 1, 1], [], []>} : vector<128x128xbf16>, vector<128x512xbf16>, vector<128x512xf32> -> vector<128x512xf32>
    %7 = arith.addf %3, %6 : vector<128x512xf32>
    %c0_6 = arith.constant 0 : index
    %c0_7 = arith.constant 0 : index
    %8 = vector.load %arg7[%c0_6, %c0_7] : memref<128x512xf32, #tpu.memory_space<vmem>>, vector<128x512xf32>
    tpu.vector_store %arg7[%c0_6, %c0_7], %7 {strides = array<i32>} : memref<128x512xf32, #tpu.memory_space<vmem>>, vector<128x512xf32>,
    %c0_i32_8 = arith.constant 0 : i32
    %9 = arith.cmpi eq, %arg2, %c0_i32_8 : i32
    %10 = arith.extui %9 : i1 to i32
    %c0_i32_9 = arith.constant 0 : i32
    %11 = arith.cmpi ne, %10, %c0_i32_9 : i32
    scf.if %11 {
      %c0_10 = arith.constant 0 : index
      %c0_11 = arith.constant 0 : index
      %12 = vector.load %arg7[%c0_10, %c0_11] : memref<128x512xf32, #tpu.memory_space<vmem>>, vector<128x512xf32>
      %c0_12 = arith.constant 0 : index
      %c0_13 = arith.constant 0 : index
      %13 = vector.load %arg5[%c0_12, %c0_13] : memref<1x512xf32, #tpu.memory_space<vmem>>, vector<1x512xf32>
      %14 = vector.broadcast %13 : vector<1x512xf32> to vector<128x512xf32>
      %15 = arith.addf %12, %14 : vector<128x512xf32>
      %16 = arith.truncf %15 : vector<128x512xf32> to vector<128x512xbf16>
      %c0_14 = arith.constant 0 : index
      %c0_15 = arith.constant 0 : index
      %17 = vector.load %arg6[%c0_14, %c0_15] : memref<128x512xbf16, #tpu.memory_space<vmem>>, vector<128x512xbf16>
      tpu.vector_store %arg6[%c0_14, %c0_15], %16 {strides = array<i32>} : memref<128x512xbf16, #tpu.memory_space<vmem>>, vector<128x512xbf16>,
    } else {
    }
    return
  }
  func.func @transform_0(%arg0: i32, %arg1: i32, %arg2: i32) -> (i32, i32) {
    %c0_i32 = arith.constant 0 : i32
    return %arg0, %arg2 : i32, i32
  }
  func.func @transform_1(%arg0: i32, %arg1: i32, %arg2: i32) -> (i32, i32) {
    %c0_i32 = arith.constant 0 : i32
    return %arg2, %arg1 : i32, i32
  }
  func.func @transform_2(%arg0: i32, %arg1: i32, %arg2: i32) -> (i32, i32) {
    %c0_i32 = arith.constant 0 : i32
    %c0_i32_0 = arith.constant 0 : i32
    return %c0_i32, %arg1 : i32, i32
  }
  func.func @transform_3(%arg0: i32, %arg1: i32, %arg2: i32) -> (i32, i32) {
    %c0_i32 = arith.constant 0 : i32
    return %arg0, %arg1 : i32, i32
  }
}

module attributes {stable_mosaic.version = 11 : i64} {
  func.func @kernel(%arg0: i32, %arg1: memref<1x16x16x128xbf16, #tpu.memory_space<vmem>>, %arg2: memref<1x16x16x128xbf16, #tpu.memory_space<vmem>>, %arg3: memref<3x768x128xbf16, #tpu.memory_space<vmem>>, %arg4: memref<1x128xf32, #tpu.memory_space<vmem>>, %arg5: memref<1x16x16x128xbf16, #tpu.memory_space<vmem>>, %arg6: memref<1x1x2x128xf32, #tpu.memory_space<vmem>>, %arg7: memref<256x128xf32, #tpu.memory_space<vmem>>) attributes {dimension_semantics = [#tpu.dimension_semantics<parallel>], iteration_bounds = array<i64: 2>, scalar_prefetch = 0 : i64, scratch_operands = 1 : i64, tpu.core_type = #tpu.core_type<tc>, window_params = [{transform_indices = @transform_0, window_bounds = array<i64: 1, 16, 16, 128>}, {transform_indices = @transform_1, window_bounds = array<i64: 1, 16, 16, 128>}, {pipeline_mode = #tpu.pipeline_mode<synchronous>, transform_indices = @transform_2, window_bounds = array<i64: 3, 768, 128>}, {pipeline_mode = #tpu.pipeline_mode<synchronous>, transform_indices = @transform_3, window_bounds = array<i64: 1, 128>}, {transform_indices = @transform_4, window_bounds = array<i64: 1, 16, 16, 128>}, {transform_indices = @transform_5, window_bounds = array<i64: 1, 1, 2, 128>}]} {
    %c0 = arith.constant 0 : index
    %c0_0 = arith.constant 0 : index
    %c0_1 = arith.constant 0 : index
    %c0_2 = arith.constant 0 : index
    %0 = vector.load %arg1[%c0, %c0_0, %c0_1, %c0_2] : memref<1x16x16x128xbf16, #tpu.memory_space<vmem>>, vector<1x16x16x128xbf16>
    %1 = vector.shape_cast %0 : vector<1x16x16x128xbf16> to vector<16x16x128xbf16>
    %cst = arith.constant 0.000000e+00 : bf16
    %2 = vector.broadcast %cst : bf16 to vector<1x16x128xbf16>
    %cst_3 = arith.constant 0.000000e+00 : bf16
    %3 = vector.broadcast %cst_3 : bf16 to vector<1x16x128xbf16>
    %4 = tpu.concatenate %2, %1, %3 in 0 : vector<1x16x128xbf16>, vector<16x16x128xbf16>, vector<1x16x128xbf16> -> vector<18x16x128xbf16>
    %cst_4 = arith.constant 0.000000e+00 : bf16
    %5 = vector.broadcast %cst_4 : bf16 to vector<18x1x128xbf16>
    %6 = tpu.concatenate %5, %4, %5 in 1 : vector<18x1x128xbf16>, vector<18x16x128xbf16>, vector<18x1x128xbf16> -> vector<18x18x128xbf16>
    %7 = vector.extract_strided_slice %6 {offsets = [0, 0, 0], sizes = [18, 16, 128], strides = [1, 1, 1]} : vector<18x18x128xbf16> to vector<18x16x128xbf16>
    %8 = vector.extract_strided_slice %6 {offsets = [0, 1, 0], sizes = [18, 16, 128], strides = [1, 1, 1]} : vector<18x18x128xbf16> to vector<18x16x128xbf16>
    %9 = vector.extract_strided_slice %6 {offsets = [0, 2, 0], sizes = [18, 16, 128], strides = [1, 1, 1]} : vector<18x18x128xbf16> to vector<18x16x128xbf16>
    %10 = tpu.concatenate %7, %8, %9 in 2 : vector<18x16x128xbf16>, vector<18x16x128xbf16>, vector<18x16x128xbf16> -> vector<18x16x384xbf16>
    %c0_5 = arith.constant 0 : index
    %c0_6 = arith.constant 0 : index
    %c0_7 = arith.constant 0 : index
    %c0_8 = arith.constant 0 : index
    %11 = vector.load %arg2[%c0_5, %c0_6, %c0_7, %c0_8] : memref<1x16x16x128xbf16, #tpu.memory_space<vmem>>, vector<1x16x16x128xbf16>
    %12 = vector.shape_cast %11 : vector<1x16x16x128xbf16> to vector<16x16x128xbf16>
    %cst_9 = arith.constant 0.000000e+00 : bf16
    %13 = vector.broadcast %cst_9 : bf16 to vector<1x16x128xbf16>
    %cst_10 = arith.constant 0.000000e+00 : bf16
    %14 = vector.broadcast %cst_10 : bf16 to vector<1x16x128xbf16>
    %15 = tpu.concatenate %13, %12, %14 in 0 : vector<1x16x128xbf16>, vector<16x16x128xbf16>, vector<1x16x128xbf16> -> vector<18x16x128xbf16>
    %cst_11 = arith.constant 0.000000e+00 : bf16
    %16 = vector.broadcast %cst_11 : bf16 to vector<18x1x128xbf16>
    %17 = tpu.concatenate %16, %15, %16 in 1 : vector<18x1x128xbf16>, vector<18x16x128xbf16>, vector<18x1x128xbf16> -> vector<18x18x128xbf16>
    %18 = vector.extract_strided_slice %17 {offsets = [0, 0, 0], sizes = [18, 16, 128], strides = [1, 1, 1]} : vector<18x18x128xbf16> to vector<18x16x128xbf16>
    %19 = vector.extract_strided_slice %17 {offsets = [0, 1, 0], sizes = [18, 16, 128], strides = [1, 1, 1]} : vector<18x18x128xbf16> to vector<18x16x128xbf16>
    %20 = vector.extract_strided_slice %17 {offsets = [0, 2, 0], sizes = [18, 16, 128], strides = [1, 1, 1]} : vector<18x18x128xbf16> to vector<18x16x128xbf16>
    %21 = tpu.concatenate %18, %19, %20 in 2 : vector<18x16x128xbf16>, vector<18x16x128xbf16>, vector<18x16x128xbf16> -> vector<18x16x384xbf16>
    %22 = tpu.concatenate %10, %21 in 2 : vector<18x16x384xbf16>, vector<18x16x384xbf16> -> vector<18x16x768xbf16>
    %cst_12 = arith.constant 0.000000e+00 : f32
    %23 = vector.broadcast %cst_12 : f32 to vector<256x128xf32>
    %c0_13 = arith.constant 0 : index
    %c0_14 = arith.constant 0 : index
    %24 = vector.load %arg7[%c0_13, %c0_14] : memref<256x128xf32, #tpu.memory_space<vmem>>, vector<256x128xf32>
    tpu.vector_store %arg7[%c0_13, %c0_14], %23 {strides = array<i32>} : memref<256x128xf32, #tpu.memory_space<vmem>>, vector<256x128xf32>,
    %25 = vector.extract_strided_slice %22 {offsets = [0, 0, 0], sizes = [16, 16, 768], strides = [1, 1, 1]} : vector<18x16x768xbf16> to vector<16x16x768xbf16>
    %26 = vector.shape_cast %25 : vector<16x16x768xbf16> to vector<256x768xbf16>
    %c0_15 = arith.constant 0 : index
    %c0_16 = arith.constant 0 : index
    %27 = vector.load %arg7[%c0_15, %c0_16] : memref<256x128xf32, #tpu.memory_space<vmem>>, vector<256x128xf32>
    %c0_17 = arith.constant 0 : index
    %c0_18 = arith.constant 0 : index
    %c0_19 = arith.constant 0 : index
    %28 = vector.load %arg3[%c0_17, %c0_18, %c0_19] : memref<3x768x128xbf16, #tpu.memory_space<vmem>>, vector<1x768x128xbf16>
    %29 = vector.shape_cast %28 : vector<1x768x128xbf16> to vector<768x128xbf16>
    %cst_20 = arith.constant dense<0.000000e+00> : vector<256x128xf32>
    %30 = tpu.matmul %26, %29, %cst_20 {dimension_numbers = #tpu.dot_dimension_numbers<[1], [0], [0], [1], [0, 0, 1, 1], [], []>} : vector<256x768xbf16>, vector<768x128xbf16>, vector<256x128xf32> -> vector<256x128xf32>
    %31 = arith.addf %27, %30 : vector<256x128xf32>
    %c0_21 = arith.constant 0 : index
    %c0_22 = arith.constant 0 : index
    %32 = vector.load %arg7[%c0_21, %c0_22] : memref<256x128xf32, #tpu.memory_space<vmem>>, vector<256x128xf32>
    tpu.vector_store %arg7[%c0_21, %c0_22], %31 {strides = array<i32>} : memref<256x128xf32, #tpu.memory_space<vmem>>, vector<256x128xf32>,
    %33 = vector.extract_strided_slice %22 {offsets = [1, 0, 0], sizes = [16, 16, 768], strides = [1, 1, 1]} : vector<18x16x768xbf16> to vector<16x16x768xbf16>
    %34 = vector.shape_cast %33 : vector<16x16x768xbf16> to vector<256x768xbf16>
    %c0_23 = arith.constant 0 : index
    %c0_24 = arith.constant 0 : index
    %35 = vector.load %arg7[%c0_23, %c0_24] : memref<256x128xf32, #tpu.memory_space<vmem>>, vector<256x128xf32>
    %c1 = arith.constant 1 : index
    %c0_25 = arith.constant 0 : index
    %c0_26 = arith.constant 0 : index
    %36 = vector.load %arg3[%c1, %c0_25, %c0_26] : memref<3x768x128xbf16, #tpu.memory_space<vmem>>, vector<1x768x128xbf16>
    %37 = vector.shape_cast %36 : vector<1x768x128xbf16> to vector<768x128xbf16>
    %cst_27 = arith.constant dense<0.000000e+00> : vector<256x128xf32>
    %38 = tpu.matmul %34, %37, %cst_27 {dimension_numbers = #tpu.dot_dimension_numbers<[1], [0], [0], [1], [0, 0, 1, 1], [], []>} : vector<256x768xbf16>, vector<768x128xbf16>, vector<256x128xf32> -> vector<256x128xf32>
    %39 = arith.addf %35, %38 : vector<256x128xf32>
    %c0_28 = arith.constant 0 : index
    %c0_29 = arith.constant 0 : index
    %40 = vector.load %arg7[%c0_28, %c0_29] : memref<256x128xf32, #tpu.memory_space<vmem>>, vector<256x128xf32>
    tpu.vector_store %arg7[%c0_28, %c0_29], %39 {strides = array<i32>} : memref<256x128xf32, #tpu.memory_space<vmem>>, vector<256x128xf32>,
    %41 = vector.extract_strided_slice %22 {offsets = [2, 0, 0], sizes = [16, 16, 768], strides = [1, 1, 1]} : vector<18x16x768xbf16> to vector<16x16x768xbf16>
    %42 = vector.shape_cast %41 : vector<16x16x768xbf16> to vector<256x768xbf16>
    %c0_30 = arith.constant 0 : index
    %c0_31 = arith.constant 0 : index
    %43 = vector.load %arg7[%c0_30, %c0_31] : memref<256x128xf32, #tpu.memory_space<vmem>>, vector<256x128xf32>
    %c2 = arith.constant 2 : index
    %c0_32 = arith.constant 0 : index
    %c0_33 = arith.constant 0 : index
    %44 = vector.load %arg3[%c2, %c0_32, %c0_33] : memref<3x768x128xbf16, #tpu.memory_space<vmem>>, vector<1x768x128xbf16>
    %45 = vector.shape_cast %44 : vector<1x768x128xbf16> to vector<768x128xbf16>
    %cst_34 = arith.constant dense<0.000000e+00> : vector<256x128xf32>
    %46 = tpu.matmul %42, %45, %cst_34 {dimension_numbers = #tpu.dot_dimension_numbers<[1], [0], [0], [1], [0, 0, 1, 1], [], []>} : vector<256x768xbf16>, vector<768x128xbf16>, vector<256x128xf32> -> vector<256x128xf32>
    %47 = arith.addf %43, %46 : vector<256x128xf32>
    %c0_35 = arith.constant 0 : index
    %c0_36 = arith.constant 0 : index
    %48 = vector.load %arg7[%c0_35, %c0_36] : memref<256x128xf32, #tpu.memory_space<vmem>>, vector<256x128xf32>
    tpu.vector_store %arg7[%c0_35, %c0_36], %47 {strides = array<i32>} : memref<256x128xf32, #tpu.memory_space<vmem>>, vector<256x128xf32>,
    %c0_37 = arith.constant 0 : index
    %c0_38 = arith.constant 0 : index
    %49 = vector.load %arg7[%c0_37, %c0_38] : memref<256x128xf32, #tpu.memory_space<vmem>>, vector<256x128xf32>
    %c0_39 = arith.constant 0 : index
    %c0_40 = arith.constant 0 : index
    %50 = vector.load %arg4[%c0_39, %c0_40] : memref<1x128xf32, #tpu.memory_space<vmem>>, vector<1x128xf32>
    %51 = vector.broadcast %50 : vector<1x128xf32> to vector<256x128xf32>
    %52 = arith.addf %49, %51 : vector<256x128xf32>
    %53 = vector.shape_cast %52 : vector<256x128xf32> to vector<16x16x128xf32>
    %54 = arith.truncf %53 : vector<16x16x128xf32> to vector<16x16x128xbf16>
    %c0_41 = arith.constant 0 : index
    %c0_42 = arith.constant 0 : index
    %c0_43 = arith.constant 0 : index
    %c0_44 = arith.constant 0 : index
    %55 = vector.load %arg5[%c0_41, %c0_42, %c0_43, %c0_44] : memref<1x16x16x128xbf16, #tpu.memory_space<vmem>>, vector<1x16x16x128xbf16>
    %56 = vector.shape_cast %55 : vector<1x16x16x128xbf16> to vector<16x16x128xbf16>
    %57 = vector.shape_cast %54 : vector<16x16x128xbf16> to vector<1x16x16x128xbf16>
    tpu.vector_store %arg5[%c0_41, %c0_42, %c0_43, %c0_44], %57 {strides = array<i32>} : memref<1x16x16x128xbf16, #tpu.memory_space<vmem>>, vector<1x16x16x128xbf16>,
    %cst_45 = arith.constant dense<0.000000e+00> : vector<128xf32>
    %58 = vector.multi_reduction <add>, %52, %cst_45 [0] : vector<256x128xf32> to vector<128xf32>
    %59 = vector.shape_cast %58 : vector<128xf32> to vector<1x128xf32>
    %cst_46 = arith.constant 2.560000e+02 : f32
    %60 = vector.broadcast %cst_46 : f32 to vector<1x128xf32>
    %61 = arith.divf %59, %60 : vector<1x128xf32>
    %62 = vector.broadcast %61 : vector<1x128xf32> to vector<256x128xf32>
    %63 = arith.subf %52, %62 : vector<256x128xf32>
    %64 = arith.mulf %63, %63 : vector<256x128xf32>
    %cst_47 = arith.constant dense<0.000000e+00> : vector<128xf32>
    %65 = vector.multi_reduction <add>, %64, %cst_47 [0] : vector<256x128xf32> to vector<128xf32>
    %66 = vector.shape_cast %65 : vector<128xf32> to vector<1x128xf32>
    %67 = tpu.concatenate %61, %66 in 0 : vector<1x128xf32>, vector<1x128xf32> -> vector<2x128xf32>
    %c0_48 = arith.constant 0 : index
    %c0_49 = arith.constant 0 : index
    %c0_50 = arith.constant 0 : index
    %c0_51 = arith.constant 0 : index
    %68 = vector.load %arg6[%c0_48, %c0_49, %c0_50, %c0_51] : memref<1x1x2x128xf32, #tpu.memory_space<vmem>>, vector<1x1x2x128xf32>
    %69 = vector.shape_cast %68 : vector<1x1x2x128xf32> to vector<2x128xf32>
    %70 = vector.shape_cast %67 : vector<2x128xf32> to vector<1x1x2x128xf32>
    tpu.vector_store %arg6[%c0_48, %c0_49, %c0_50, %c0_51], %70 {strides = array<i32>} : memref<1x1x2x128xf32, #tpu.memory_space<vmem>>, vector<1x1x2x128xf32>,
    return
  }
  func.func @transform_0(%arg0: i32) -> (i32, i32, i32, i32) {
    %c0_i32 = arith.constant 0 : i32
    %c0_i32_0 = arith.constant 0 : i32
    %c0_i32_1 = arith.constant 0 : i32
    %c0_i32_2 = arith.constant 0 : i32
    return %arg0, %c0_i32, %c0_i32_0, %c0_i32_1 : i32, i32, i32, i32
  }
  func.func @transform_1(%arg0: i32) -> (i32, i32, i32, i32) {
    %c0_i32 = arith.constant 0 : i32
    %c0_i32_0 = arith.constant 0 : i32
    %c0_i32_1 = arith.constant 0 : i32
    %c0_i32_2 = arith.constant 0 : i32
    return %arg0, %c0_i32, %c0_i32_0, %c0_i32_1 : i32, i32, i32, i32
  }
  func.func @transform_2(%arg0: i32) -> (i32, i32, i32) {
    %c0_i32 = arith.constant 0 : i32
    %c0_i32_0 = arith.constant 0 : i32
    %c0_i32_1 = arith.constant 0 : i32
    %c0_i32_2 = arith.constant 0 : i32
    return %c0_i32, %c0_i32_0, %c0_i32_1 : i32, i32, i32
  }
  func.func @transform_3(%arg0: i32) -> (i32, i32) {
    %c0_i32 = arith.constant 0 : i32
    %c0_i32_0 = arith.constant 0 : i32
    %c0_i32_1 = arith.constant 0 : i32
    return %c0_i32, %c0_i32_0 : i32, i32
  }
  func.func @transform_4(%arg0: i32) -> (i32, i32, i32, i32) {
    %c0_i32 = arith.constant 0 : i32
    %c0_i32_0 = arith.constant 0 : i32
    %c0_i32_1 = arith.constant 0 : i32
    %c0_i32_2 = arith.constant 0 : i32
    return %arg0, %c0_i32, %c0_i32_0, %c0_i32_1 : i32, i32, i32, i32
  }
  func.func @transform_5(%arg0: i32) -> (i32, i32, i32, i32) {
    %c0_i32 = arith.constant 0 : i32
    %c0_i32_0 = arith.constant 0 : i32
    %c0_i32_1 = arith.constant 0 : i32
    %c0_i32_2 = arith.constant 0 : i32
    return %arg0, %c0_i32, %c0_i32_0, %c0_i32_1 : i32, i32, i32, i32
  }
}

module attributes {stable_mosaic.version = 11 : i64} {
  func.func @_bn_relu_kernel(%arg0: i32, %arg1: memref<256x128xbf16, #tpu.memory_space<vmem>>, %arg2: memref<1x128xf32, #tpu.memory_space<vmem>>, %arg3: memref<1x128xf32, #tpu.memory_space<vmem>>, %arg4: memref<256x128xf32, #tpu.memory_space<vmem>>) attributes {dimension_semantics = [#tpu.dimension_semantics<parallel>], iteration_bounds = array<i64: 2>, scalar_prefetch = 0 : i64, scratch_operands = 0 : i64, tpu.core_type = #tpu.core_type<tc>, window_params = [{transform_indices = @transform_0, window_bounds = array<i64: 256, 128>}, {pipeline_mode = #tpu.pipeline_mode<synchronous>, transform_indices = @transform_1, window_bounds = array<i64: 1, 128>}, {pipeline_mode = #tpu.pipeline_mode<synchronous>, transform_indices = @transform_2, window_bounds = array<i64: 1, 128>}, {transform_indices = @transform_3, window_bounds = array<i64: 256, 128>}]} {
    %c0 = arith.constant 0 : index
    %c0_0 = arith.constant 0 : index
    %0 = vector.load %arg1[%c0, %c0_0] : memref<256x128xbf16, #tpu.memory_space<vmem>>, vector<256x128xbf16>
    %1 = arith.extf %0 : vector<256x128xbf16> to vector<256x128xf32>
    %c0_1 = arith.constant 0 : index
    %c0_2 = arith.constant 0 : index
    %2 = vector.load %arg2[%c0_1, %c0_2] : memref<1x128xf32, #tpu.memory_space<vmem>>, vector<1x128xf32>
    %3 = vector.broadcast %2 : vector<1x128xf32> to vector<256x128xf32>
    %4 = arith.mulf %1, %3 : vector<256x128xf32>
    %c0_3 = arith.constant 0 : index
    %c0_4 = arith.constant 0 : index
    %5 = vector.load %arg3[%c0_3, %c0_4] : memref<1x128xf32, #tpu.memory_space<vmem>>, vector<1x128xf32>
    %6 = vector.broadcast %5 : vector<1x128xf32> to vector<256x128xf32>
    %7 = arith.addf %4, %6 : vector<256x128xf32>
    %cst = arith.constant 0.000000e+00 : f32
    %8 = vector.broadcast %cst : f32 to vector<256x128xf32>
    %9 = arith.maximumf %7, %8 : vector<256x128xf32>
    %c0_5 = arith.constant 0 : index
    %c0_6 = arith.constant 0 : index
    %10 = vector.load %arg4[%c0_5, %c0_6] : memref<256x128xf32, #tpu.memory_space<vmem>>, vector<256x128xf32>
    tpu.vector_store %arg4[%c0_5, %c0_6], %9 {strides = array<i32>} : memref<256x128xf32, #tpu.memory_space<vmem>>, vector<256x128xf32>,
    return
  }
  func.func @transform_0(%arg0: i32) -> (i32, i32) {
    %c0_i32 = arith.constant 0 : i32
    %c0_i32_0 = arith.constant 0 : i32
    return %arg0, %c0_i32 : i32, i32
  }
  func.func @transform_1(%arg0: i32) -> (i32, i32) {
    %c0_i32 = arith.constant 0 : i32
    %c0_i32_0 = arith.constant 0 : i32
    %c0_i32_1 = arith.constant 0 : i32
    return %c0_i32, %c0_i32_0 : i32, i32
  }
  func.func @transform_2(%arg0: i32) -> (i32, i32) {
    %c0_i32 = arith.constant 0 : i32
    %c0_i32_0 = arith.constant 0 : i32
    %c0_i32_1 = arith.constant 0 : i32
    return %c0_i32, %c0_i32_0 : i32, i32
  }
  func.func @transform_3(%arg0: i32) -> (i32, i32) {
    %c0_i32 = arith.constant 0 : i32
    %c0_i32_0 = arith.constant 0 : i32
    return %arg0, %c0_i32 : i32, i32
  }
}

module attributes {stable_mosaic.version = 11 : i64} {
  func.func @kernel(%arg0: i32, %arg1: memref<1x16x16x128xbf16, #tpu.memory_space<vmem>>, %arg2: memref<1x128xf32, #tpu.memory_space<vmem>>, %arg3: memref<1x128xf32, #tpu.memory_space<vmem>>, %arg4: memref<3x384x128xbf16, #tpu.memory_space<vmem>>, %arg5: memref<1x128xf32, #tpu.memory_space<vmem>>, %arg6: memref<1x16x16x128xbf16, #tpu.memory_space<vmem>>, %arg7: memref<1x1x2x128xf32, #tpu.memory_space<vmem>>, %arg8: memref<256x128xf32, #tpu.memory_space<vmem>>) attributes {dimension_semantics = [#tpu.dimension_semantics<parallel>], iteration_bounds = array<i64: 2>, scalar_prefetch = 0 : i64, scratch_operands = 1 : i64, tpu.core_type = #tpu.core_type<tc>, window_params = [{transform_indices = @transform_0, window_bounds = array<i64: 1, 16, 16, 128>}, {pipeline_mode = #tpu.pipeline_mode<synchronous>, transform_indices = @transform_1, window_bounds = array<i64: 1, 128>}, {pipeline_mode = #tpu.pipeline_mode<synchronous>, transform_indices = @transform_2, window_bounds = array<i64: 1, 128>}, {pipeline_mode = #tpu.pipeline_mode<synchronous>, transform_indices = @transform_3, window_bounds = array<i64: 3, 384, 128>}, {pipeline_mode = #tpu.pipeline_mode<synchronous>, transform_indices = @transform_4, window_bounds = array<i64: 1, 128>}, {transform_indices = @transform_5, window_bounds = array<i64: 1, 16, 16, 128>}, {transform_indices = @transform_6, window_bounds = array<i64: 1, 1, 2, 128>}]} {
    %c0 = arith.constant 0 : index
    %c0_0 = arith.constant 0 : index
    %c0_1 = arith.constant 0 : index
    %c0_2 = arith.constant 0 : index
    %0 = vector.load %arg1[%c0, %c0_0, %c0_1, %c0_2] : memref<1x16x16x128xbf16, #tpu.memory_space<vmem>>, vector<1x16x16x128xbf16>
    %1 = vector.shape_cast %0 : vector<1x16x16x128xbf16> to vector<16x16x128xbf16>
    %2 = arith.extf %1 : vector<16x16x128xbf16> to vector<16x16x128xf32>
    %c0_3 = arith.constant 0 : index
    %c0_4 = arith.constant 0 : index
    %3 = vector.load %arg2[%c0_3, %c0_4] : memref<1x128xf32, #tpu.memory_space<vmem>>, vector<1x128xf32>
    %4 = vector.shape_cast %3 : vector<1x128xf32> to vector<1x1x128xf32>
    %5 = vector.broadcast %4 : vector<1x1x128xf32> to vector<16x16x128xf32>
    %6 = arith.mulf %2, %5 : vector<16x16x128xf32>
    %c0_5 = arith.constant 0 : index
    %c0_6 = arith.constant 0 : index
    %7 = vector.load %arg3[%c0_5, %c0_6] : memref<1x128xf32, #tpu.memory_space<vmem>>, vector<1x128xf32>
    %8 = vector.shape_cast %7 : vector<1x128xf32> to vector<1x1x128xf32>
    %9 = vector.broadcast %8 : vector<1x1x128xf32> to vector<16x16x128xf32>
    %10 = arith.addf %6, %9 : vector<16x16x128xf32>
    %cst = arith.constant 0.000000e+00 : f32
    %11 = vector.broadcast %cst : f32 to vector<16x16x128xf32>
    %12 = arith.maximumf %10, %11 : vector<16x16x128xf32>
    %13 = arith.truncf %12 : vector<16x16x128xf32> to vector<16x16x128xbf16>
    %cst_7 = arith.constant 0.000000e+00 : bf16
    %14 = vector.broadcast %cst_7 : bf16 to vector<1x16x128xbf16>
    %cst_8 = arith.constant 0.000000e+00 : bf16
    %15 = vector.broadcast %cst_8 : bf16 to vector<1x16x128xbf16>
    %16 = tpu.concatenate %14, %13, %15 in 0 : vector<1x16x128xbf16>, vector<16x16x128xbf16>, vector<1x16x128xbf16> -> vector<18x16x128xbf16>
    %cst_9 = arith.constant 0.000000e+00 : bf16
    %17 = vector.broadcast %cst_9 : bf16 to vector<18x1x128xbf16>
    %18 = tpu.concatenate %17, %16, %17 in 1 : vector<18x1x128xbf16>, vector<18x16x128xbf16>, vector<18x1x128xbf16> -> vector<18x18x128xbf16>
    %19 = vector.extract_strided_slice %18 {offsets = [0, 0, 0], sizes = [18, 16, 128], strides = [1, 1, 1]} : vector<18x18x128xbf16> to vector<18x16x128xbf16>
    %20 = vector.extract_strided_slice %18 {offsets = [0, 1, 0], sizes = [18, 16, 128], strides = [1, 1, 1]} : vector<18x18x128xbf16> to vector<18x16x128xbf16>
    %21 = vector.extract_strided_slice %18 {offsets = [0, 2, 0], sizes = [18, 16, 128], strides = [1, 1, 1]} : vector<18x18x128xbf16> to vector<18x16x128xbf16>
    %22 = tpu.concatenate %19, %20, %21 in 2 : vector<18x16x128xbf16>, vector<18x16x128xbf16>, vector<18x16x128xbf16> -> vector<18x16x384xbf16>
    %cst_10 = arith.constant 0.000000e+00 : f32
    %23 = vector.broadcast %cst_10 : f32 to vector<256x128xf32>
    %c0_11 = arith.constant 0 : index
    %c0_12 = arith.constant 0 : index
    %24 = vector.load %arg8[%c0_11, %c0_12] : memref<256x128xf32, #tpu.memory_space<vmem>>, vector<256x128xf32>
    tpu.vector_store %arg8[%c0_11, %c0_12], %23 {strides = array<i32>} : memref<256x128xf32, #tpu.memory_space<vmem>>, vector<256x128xf32>,
    %25 = vector.extract_strided_slice %22 {offsets = [0, 0, 0], sizes = [16, 16, 384], strides = [1, 1, 1]} : vector<18x16x384xbf16> to vector<16x16x384xbf16>
    %26 = vector.shape_cast %25 : vector<16x16x384xbf16> to vector<256x384xbf16>
    %c0_13 = arith.constant 0 : index
    %c0_14 = arith.constant 0 : index
    %27 = vector.load %arg8[%c0_13, %c0_14] : memref<256x128xf32, #tpu.memory_space<vmem>>, vector<256x128xf32>
    %c0_15 = arith.constant 0 : index
    %c0_16 = arith.constant 0 : index
    %c0_17 = arith.constant 0 : index
    %28 = vector.load %arg4[%c0_15, %c0_16, %c0_17] : memref<3x384x128xbf16, #tpu.memory_space<vmem>>, vector<1x384x128xbf16>
    %29 = vector.shape_cast %28 : vector<1x384x128xbf16> to vector<384x128xbf16>
    %cst_18 = arith.constant dense<0.000000e+00> : vector<256x128xf32>
    %30 = tpu.matmul %26, %29, %cst_18 {dimension_numbers = #tpu.dot_dimension_numbers<[1], [0], [0], [1], [0, 0, 1, 1], [], []>} : vector<256x384xbf16>, vector<384x128xbf16>, vector<256x128xf32> -> vector<256x128xf32>
    %31 = arith.addf %27, %30 : vector<256x128xf32>
    %c0_19 = arith.constant 0 : index
    %c0_20 = arith.constant 0 : index
    %32 = vector.load %arg8[%c0_19, %c0_20] : memref<256x128xf32, #tpu.memory_space<vmem>>, vector<256x128xf32>
    tpu.vector_store %arg8[%c0_19, %c0_20], %31 {strides = array<i32>} : memref<256x128xf32, #tpu.memory_space<vmem>>, vector<256x128xf32>,
    %33 = vector.extract_strided_slice %22 {offsets = [1, 0, 0], sizes = [16, 16, 384], strides = [1, 1, 1]} : vector<18x16x384xbf16> to vector<16x16x384xbf16>
    %34 = vector.shape_cast %33 : vector<16x16x384xbf16> to vector<256x384xbf16>
    %c0_21 = arith.constant 0 : index
    %c0_22 = arith.constant 0 : index
    %35 = vector.load %arg8[%c0_21, %c0_22] : memref<256x128xf32, #tpu.memory_space<vmem>>, vector<256x128xf32>
    %c1 = arith.constant 1 : index
    %c0_23 = arith.constant 0 : index
    %c0_24 = arith.constant 0 : index
    %36 = vector.load %arg4[%c1, %c0_23, %c0_24] : memref<3x384x128xbf16, #tpu.memory_space<vmem>>, vector<1x384x128xbf16>
    %37 = vector.shape_cast %36 : vector<1x384x128xbf16> to vector<384x128xbf16>
    %cst_25 = arith.constant dense<0.000000e+00> : vector<256x128xf32>
    %38 = tpu.matmul %34, %37, %cst_25 {dimension_numbers = #tpu.dot_dimension_numbers<[1], [0], [0], [1], [0, 0, 1, 1], [], []>} : vector<256x384xbf16>, vector<384x128xbf16>, vector<256x128xf32> -> vector<256x128xf32>
    %39 = arith.addf %35, %38 : vector<256x128xf32>
    %c0_26 = arith.constant 0 : index
    %c0_27 = arith.constant 0 : index
    %40 = vector.load %arg8[%c0_26, %c0_27] : memref<256x128xf32, #tpu.memory_space<vmem>>, vector<256x128xf32>
    tpu.vector_store %arg8[%c0_26, %c0_27], %39 {strides = array<i32>} : memref<256x128xf32, #tpu.memory_space<vmem>>, vector<256x128xf32>,
    %41 = vector.extract_strided_slice %22 {offsets = [2, 0, 0], sizes = [16, 16, 384], strides = [1, 1, 1]} : vector<18x16x384xbf16> to vector<16x16x384xbf16>
    %42 = vector.shape_cast %41 : vector<16x16x384xbf16> to vector<256x384xbf16>
    %c0_28 = arith.constant 0 : index
    %c0_29 = arith.constant 0 : index
    %43 = vector.load %arg8[%c0_28, %c0_29] : memref<256x128xf32, #tpu.memory_space<vmem>>, vector<256x128xf32>
    %c2 = arith.constant 2 : index
    %c0_30 = arith.constant 0 : index
    %c0_31 = arith.constant 0 : index
    %44 = vector.load %arg4[%c2, %c0_30, %c0_31] : memref<3x384x128xbf16, #tpu.memory_space<vmem>>, vector<1x384x128xbf16>
    %45 = vector.shape_cast %44 : vector<1x384x128xbf16> to vector<384x128xbf16>
    %cst_32 = arith.constant dense<0.000000e+00> : vector<256x128xf32>
    %46 = tpu.matmul %42, %45, %cst_32 {dimension_numbers = #tpu.dot_dimension_numbers<[1], [0], [0], [1], [0, 0, 1, 1], [], []>} : vector<256x384xbf16>, vector<384x128xbf16>, vector<256x128xf32> -> vector<256x128xf32>
    %47 = arith.addf %43, %46 : vector<256x128xf32>
    %c0_33 = arith.constant 0 : index
    %c0_34 = arith.constant 0 : index
    %48 = vector.load %arg8[%c0_33, %c0_34] : memref<256x128xf32, #tpu.memory_space<vmem>>, vector<256x128xf32>
    tpu.vector_store %arg8[%c0_33, %c0_34], %47 {strides = array<i32>} : memref<256x128xf32, #tpu.memory_space<vmem>>, vector<256x128xf32>,
    %c0_35 = arith.constant 0 : index
    %c0_36 = arith.constant 0 : index
    %49 = vector.load %arg8[%c0_35, %c0_36] : memref<256x128xf32, #tpu.memory_space<vmem>>, vector<256x128xf32>
    %c0_37 = arith.constant 0 : index
    %c0_38 = arith.constant 0 : index
    %50 = vector.load %arg5[%c0_37, %c0_38] : memref<1x128xf32, #tpu.memory_space<vmem>>, vector<1x128xf32>
    %51 = vector.broadcast %50 : vector<1x128xf32> to vector<256x128xf32>
    %52 = arith.addf %49, %51 : vector<256x128xf32>
    %53 = vector.shape_cast %52 : vector<256x128xf32> to vector<16x16x128xf32>
    %54 = arith.truncf %53 : vector<16x16x128xf32> to vector<16x16x128xbf16>
    %c0_39 = arith.constant 0 : index
    %c0_40 = arith.constant 0 : index
    %c0_41 = arith.constant 0 : index
    %c0_42 = arith.constant 0 : index
    %55 = vector.load %arg6[%c0_39, %c0_40, %c0_41, %c0_42] : memref<1x16x16x128xbf16, #tpu.memory_space<vmem>>, vector<1x16x16x128xbf16>
    %56 = vector.shape_cast %55 : vector<1x16x16x128xbf16> to vector<16x16x128xbf16>
    %57 = vector.shape_cast %54 : vector<16x16x128xbf16> to vector<1x16x16x128xbf16>
    tpu.vector_store %arg6[%c0_39, %c0_40, %c0_41, %c0_42], %57 {strides = array<i32>} : memref<1x16x16x128xbf16, #tpu.memory_space<vmem>>, vector<1x16x16x128xbf16>,
    %cst_43 = arith.constant dense<0.000000e+00> : vector<128xf32>
    %58 = vector.multi_reduction <add>, %52, %cst_43 [0] : vector<256x128xf32> to vector<128xf32>
    %59 = vector.shape_cast %58 : vector<128xf32> to vector<1x128xf32>
    %cst_44 = arith.constant 2.560000e+02 : f32
    %60 = vector.broadcast %cst_44 : f32 to vector<1x128xf32>
    %61 = arith.divf %59, %60 : vector<1x128xf32>
    %62 = vector.broadcast %61 : vector<1x128xf32> to vector<256x128xf32>
    %63 = arith.subf %52, %62 : vector<256x128xf32>
    %64 = arith.mulf %63, %63 : vector<256x128xf32>
    %cst_45 = arith.constant dense<0.000000e+00> : vector<128xf32>
    %65 = vector.multi_reduction <add>, %64, %cst_45 [0] : vector<256x128xf32> to vector<128xf32>
    %66 = vector.shape_cast %65 : vector<128xf32> to vector<1x128xf32>
    %67 = tpu.concatenate %61, %66 in 0 : vector<1x128xf32>, vector<1x128xf32> -> vector<2x128xf32>
    %c0_46 = arith.constant 0 : index
    %c0_47 = arith.constant 0 : index
    %c0_48 = arith.constant 0 : index
    %c0_49 = arith.constant 0 : index
    %68 = vector.load %arg7[%c0_46, %c0_47, %c0_48, %c0_49] : memref<1x1x2x128xf32, #tpu.memory_space<vmem>>, vector<1x1x2x128xf32>
    %69 = vector.shape_cast %68 : vector<1x1x2x128xf32> to vector<2x128xf32>
    %70 = vector.shape_cast %67 : vector<2x128xf32> to vector<1x1x2x128xf32>
    tpu.vector_store %arg7[%c0_46, %c0_47, %c0_48, %c0_49], %70 {strides = array<i32>} : memref<1x1x2x128xf32, #tpu.memory_space<vmem>>, vector<1x1x2x128xf32>,
    return
  }
  func.func @transform_0(%arg0: i32) -> (i32, i32, i32, i32) {
    %c0_i32 = arith.constant 0 : i32
    %c0_i32_0 = arith.constant 0 : i32
    %c0_i32_1 = arith.constant 0 : i32
    %c0_i32_2 = arith.constant 0 : i32
    return %arg0, %c0_i32, %c0_i32_0, %c0_i32_1 : i32, i32, i32, i32
  }
  func.func @transform_1(%arg0: i32) -> (i32, i32) {
    %c0_i32 = arith.constant 0 : i32
    %c0_i32_0 = arith.constant 0 : i32
    %c0_i32_1 = arith.constant 0 : i32
    return %c0_i32, %c0_i32_0 : i32, i32
  }
  func.func @transform_2(%arg0: i32) -> (i32, i32) {
    %c0_i32 = arith.constant 0 : i32
    %c0_i32_0 = arith.constant 0 : i32
    %c0_i32_1 = arith.constant 0 : i32
    return %c0_i32, %c0_i32_0 : i32, i32
  }
  func.func @transform_3(%arg0: i32) -> (i32, i32, i32) {
    %c0_i32 = arith.constant 0 : i32
    %c0_i32_0 = arith.constant 0 : i32
    %c0_i32_1 = arith.constant 0 : i32
    %c0_i32_2 = arith.constant 0 : i32
    return %c0_i32, %c0_i32_0, %c0_i32_1 : i32, i32, i32
  }
  func.func @transform_4(%arg0: i32) -> (i32, i32) {
    %c0_i32 = arith.constant 0 : i32
    %c0_i32_0 = arith.constant 0 : i32
    %c0_i32_1 = arith.constant 0 : i32
    return %c0_i32, %c0_i32_0 : i32, i32
  }
  func.func @transform_5(%arg0: i32) -> (i32, i32, i32, i32) {
    %c0_i32 = arith.constant 0 : i32
    %c0_i32_0 = arith.constant 0 : i32
    %c0_i32_1 = arith.constant 0 : i32
    %c0_i32_2 = arith.constant 0 : i32
    return %arg0, %c0_i32, %c0_i32_0, %c0_i32_1 : i32, i32, i32, i32
  }
  func.func @transform_6(%arg0: i32) -> (i32, i32, i32, i32) {
    %c0_i32 = arith.constant 0 : i32
    %c0_i32_0 = arith.constant 0 : i32
    %c0_i32_1 = arith.constant 0 : i32
    %c0_i32_2 = arith.constant 0 : i32
    return %arg0, %c0_i32, %c0_i32_0, %c0_i32_1 : i32, i32, i32, i32
  }
}

</mosaic_0001>

<bundles_post_ra>
// kernel: tile.8
= control target key start
LH: loop header
LB: loop body
LE: loop exit
PB: predicated region body
PF: predicated region fallthrough
CT: control target
= control target key end

     0   :  { %s22_s0 = inlined_call_operand.vmem [shape: f32[128], index: 0, kind: input, shape index: {}]   ;;  %s23_s1 = inlined_call_operand.vmem [shape: f32[4,128], index: 1, kind: output, shape index: {}]  }
   0x1   :  { %v4_v0 = vld [vmem:[%s22_s0] ss:$0 sm:$0xff] }
   0x2   :  { %5 = vst [vmem:[%s23_s1] sm:$0xf] %v4_v0 }

// kernel: unet_block_up.7
= control target key start
LH: loop header
LB: loop body
LE: loop exit
PB: predicated region body
PF: predicated region fallthrough
CT: control target
= control target key end

     0   :  { %s564_s12 = smov 0   ;;  %s711_s0 = inlined_call_operand.vmem [shape: bf16[512,128], index: 0, kind: input, shape index: {}]   ;;  %s712_s1 = inlined_call_operand.vmem [shape: f32[1,128], index: 1, kind: input, shape index: {}]   ;;  %s713_s2 = inlined_call_operand.vmem [shape: f32[1,128], index: 2, kind: input, shape index: {}]   ;;  %s714_s3 = inlined_call_operand.vmem [shape: f32[512,128], index: 3, kind: output, shape index: {}]  }
   0x1 LB: > { %s436_s13 = sadd.s32 4294967295, %s542_s12   ;;  %p440_p0 = scmp.ge.s32.totalorder %s542_s12, 1  ;;  %s542_s12 = sphi %s564_s12, %s13_s12  }
   0x2   : > { %p138_p1 = scmp.lt.s32.totalorder %s542_s12, 3 }
   0x4   : > { %p139_p2 = pnand %p440_p0, %p138_p1 }
   0x5   : > { %s441_s14 = sshll.u32 (!%p139_p2), %s436_s13, 5  ;;  %v583_v0 = vld [vmem:[%s712_s1] ss:$0 sm:$0xff] (!%p139_p2) }
   0x6   : > { %142 = sbr.rel (%p139_p2) target bundleno = 53 (0x35), region = 32  ;;  %p163_p3 = scmp.lt.s32.totalorder (!%p139_p2), %s441_s14, 63  ;;  %v592_v9 = vld [vmem:[%s713_s2] ss:$0 sm:$0xff] (!%p139_p2) }
   0xd   : > { %s716_s14 = smov (!%p163_p3, %s441_s14), 63 }
   0xe   : > { %s442_s15 = sshll.u32 %s716_s14, 2  ;;  %s444_s23 = sshll.u32 %s716_s14, 3 }
   0xf   : > { %s578_s18 = scalar_lea.vmem %s711_s0, %s442_s15  ;;  %s610_s26 = scalar_lea.vmem %s714_s3, %s444_s23 }
  0x10   : > { %v450_v1 = vld [vmem:[%s578_s18] sm:$0xff]   ;;  %v513_v2 = vld [vmem:[%s578_s18 + $0x8] sm:$0xff]   ;;  %v514_v3 = vld [vmem:[%s578_s18 + $0x10] sm:$0xff]  }
  0x11   : > { %v451_v4 = vunpack.c.l.bf16 %v450_v1  ;;  %v452_v5 = vunpack.c.h.bf16 %v450_v1  ;;  %v455_v6 = vunpack.c.l.bf16 %v513_v2  ;;  %v456_v7 = vunpack.c.h.bf16 %v513_v2  ;;  %v515_v8 = vld [vmem:[%s578_s18 + $0x18] sm:$0xff]   ;;  %v516_v30 = vld [vmem:[%s578_s18 + $0x20] sm:$0xff]   ;;  %v517_v31 = vld [vmem:[%s578_s18 + $0x28] sm:$0xff]  }
  0x12   : > { %v459_v10 = vunpack.c.l.bf16 %v514_v3  ;;  %v460_v11 = vunpack.c.h.bf16 %v514_v3  ;;  %v463_v12 = vunpack.c.l.bf16 %v515_v8  ;;  %v464_v13 = vunpack.c.h.bf16 %v515_v8  ;;  %v518_v36 = vld [vmem:[%s578_s18 + $0x30] sm:$0xff]   ;;  %v519_v37 = vld [vmem:[%s578_s18 + $0x38] sm:$0xff]   ;;  %v520_v3 = vld [vmem:[%s578_s18 + $0x40] sm:$0xff]  }
  0x13   : > { %v245_v14 = vmul.f32 %v451_v4, %v583_v0  ;;  %v246_v15 = vmul.f32 %v452_v5, %v583_v0  ;;  %v247_v16 = vmul.f32 %v455_v6, %v583_v0  ;;  %v248_v17 = vmul.f32 %v456_v7, %v583_v0  ;;  %v521_v4 = vld [vmem:[%s578_s18 + $0x48] sm:$0xff]  }
  0x14   : > { %v249_v18 = vmul.f32 %v459_v10, %v583_v0  ;;  %v250_v19 = vmul.f32 %v460_v11, %v583_v0  ;;  %v251_v20 = vmul.f32 %v463_v12, %v583_v0  ;;  %v252_v21 = vmul.f32 %v464_v13, %v583_v0  ;;  %v522_v10 = vld [vmem:[%s578_s18 + $0x50] sm:$0xff]   ;;  %v523_v11 = vld [vmem:[%s578_s18 + $0x58] sm:$0xff]  }
  0x15   : > { %v284_v22 = vadd.f32 %v592_v9, %v245_v14  ;;  %v285_v23 = vadd.f32 %v592_v9, %v246_v15  ;;  %v286_v24 = vadd.f32 %v592_v9, %v247_v16  ;;  %v287_v25 = vadd.f32 %v592_v9, %v248_v17 }
  0x16   : > { %v288_v26 = vadd.f32 %v592_v9, %v249_v18  ;;  %v289_v27 = vadd.f32 %v592_v9, %v250_v19  ;;  %v290_v28 = vadd.f32 %v592_v9, %v251_v20  ;;  %v291_v29 = vadd.f32 %v592_v9, %v252_v21 }
  0x17   : > { %v316_v32 = vmax.f32 %v284_v22, 0.0  ;;  %v317_v33 = vmax.f32 %v285_v23, 0.0  ;;  %v318_v34 = vmax.f32 %v286_v24, 0.0  ;;  %v319_v35 = vmax.f32 %v287_v25, 0.0 }
  0x18   : > { %v320_v38 = vmax.f32 %v288_v26, 0.0  ;;  %v321_v39 = vmax.f32 %v289_v27, 0.0  ;;  %v322_v40 = vmax.f32 %v290_v28, 0.0  ;;  %v323_v41 = vmax.f32 %v291_v29, 0.0 }
  0x19   : > { %348 = vst [vmem:[%s610_s26] sm:$0xff] %v316_v32  ;;  %349 = vst [vmem:[%s610_s26 + $0x8] sm:$0xff] %v317_v33  ;;  %v467_v42 = vunpack.c.l.bf16 %v516_v30  ;;  %v468_v43 = vunpack.c.h.bf16 %v516_v30  ;;  %v471_v44 = vunpack.c.l.bf16 %v517_v31  ;;  %v472_v45 = vunpack.c.h.bf16 %v517_v31 }
  0x1a   : > { %350 = vst [vmem:[%s610_s26 + $0x10] sm:$0xff] %v318_v34  ;;  %351 = vst [vmem:[%s610_s26 + $0x18] sm:$0xff] %v319_v35  ;;  %v475_v46 = vunpack.c.l.bf16 %v518_v36  ;;  %v476_v47 = vunpack.c.h.bf16 %v518_v36  ;;  %v479_v48 = vunpack.c.l.bf16 %v519_v37  ;;  %v480_v49 = vunpack.c.h.bf16 %v519_v37 }
  0x1b   : > { %352 = vst [vmem:[%s610_s26 + $0x20] sm:$0xff] %v320_v38  ;;  %353 = vst [vmem:[%s610_s26 + $0x28] sm:$0xff] %v321_v39  ;;  %v253_v50 = vmul.f32 %v467_v42, %v583_v0  ;;  %v254_v51 = vmul.f32 %v468_v43, %v583_v0  ;;  %v255_v52 = vmul.f32 %v471_v44, %v583_v0  ;;  %v483_v16 = vunpack.c.l.bf16 %v520_v3 }
  0x1c   : > { %354 = vst [vmem:[%s610_s26 + $0x30] sm:$0xff] %v322_v40  ;;  %355 = vst [vmem:[%s610_s26 + $0x38] sm:$0xff] %v323_v41  ;;  %v256_v53 = vmul.f32 %v472_v45, %v583_v0  ;;  %v257_v54 = vmul.f32 %v475_v46, %v583_v0  ;;  %v258_v55 = vmul.f32 %v476_v47, %v583_v0  ;;  %v484_v17 = vunpack.c.h.bf16 %v520_v3  ;;  %v524_v40 = vld [vmem:[%s578_s18 + $0x60] sm:$0xff]   ;;  %v525_v41 = vld [vmem:[%s578_s18 + $0x68] sm:$0xff]  }
  0x1d   : > { %v259_v56 = vmul.f32 %v479_v48, %v583_v0  ;;  %v260_v57 = vmul.f32 %v480_v49, %v583_v0  ;;  %v292_v58 = vadd.f32 %v592_v9, %v253_v50  ;;  %v293_v59 = vadd.f32 %v592_v9, %v254_v51  ;;  %v526_v46 = vld [vmem:[%s578_s18 + $0x70] sm:$0xff]   ;;  %v527_v47 = vld [vmem:[%s578_s18 + $0x78] sm:$0xff]  }
  0x1e   : > { %v294_v60 = vadd.f32 %v592_v9, %v255_v52  ;;  %v295_v61 = vadd.f32 %v592_v9, %v256_v53  ;;  %v296_v62 = vadd.f32 %v592_v9, %v257_v54  ;;  %v297_v63 = vadd.f32 %v592_v9, %v258_v55 }
  0x1f   : > { %v298_v1 = vadd.f32 %v592_v9, %v259_v56  ;;  %v299_v2 = vadd.f32 %v592_v9, %v260_v57  ;;  %v324_v5 = vmax.f32 %v292_v58, 0.0  ;;  %v325_v6 = vmax.f32 %v293_v59, 0.0 }
  0x20   : > { %v326_v7 = vmax.f32 %v294_v60, 0.0  ;;  %v327_v8 = vmax.f32 %v295_v61, 0.0  ;;  %v328_v12 = vmax.f32 %v296_v62, 0.0  ;;  %v329_v13 = vmax.f32 %v297_v63, 0.0 }
  0x21   : > { %v330_v14 = vmax.f32 %v298_v1, 0.0  ;;  %v331_v15 = vmax.f32 %v299_v2, 0.0  ;;  %356 = vst [vmem:[%s610_s26 + $0x40] sm:$0xff] %v324_v5  ;;  %357 = vst [vmem:[%s610_s26 + $0x48] sm:$0xff] %v325_v6  ;;  %v487_v18 = vunpack.c.l.bf16 %v521_v4  ;;  %v488_v19 = vunpack.c.h.bf16 %v521_v4 }
  0x22   : > { %358 = vst [vmem:[%s610_s26 + $0x50] sm:$0xff] %v326_v7  ;;  %359 = vst [vmem:[%s610_s26 + $0x58] sm:$0xff] %v327_v8  ;;  %v491_v20 = vunpack.c.l.bf16 %v522_v10  ;;  %v492_v21 = vunpack.c.h.bf16 %v522_v10  ;;  %v495_v22 = vunpack.c.l.bf16 %v523_v11  ;;  %v496_v23 = vunpack.c.h.bf16 %v523_v11 }
  0x23   : > { %360 = vst [vmem:[%s610_s26 + $0x60] sm:$0xff] %v328_v12  ;;  %361 = vst [vmem:[%s610_s26 + $0x68] sm:$0xff] %v329_v13  ;;  %v261_v24 = vmul.f32 %v483_v16, %v583_v0  ;;  %v262_v25 = vmul.f32 %v484_v17, %v583_v0  ;;  %v263_v26 = vmul.f32 %v487_v18, %v583_v0  ;;  %v499_v52 = vunpack.c.l.bf16 %v524_v40 }
  0x24   : > { %362 = vst [vmem:[%s610_s26 + $0x70] sm:$0xff] %v330_v14  ;;  %363 = vst [vmem:[%s610_s26 + $0x78] sm:$0xff] %v331_v15  ;;  %v264_v27 = vmul.f32 %v488_v19, %v583_v0  ;;  %v265_v28 = vmul.f32 %v491_v20, %v583_v0  ;;  %v266_v29 = vmul.f32 %v492_v21, %v583_v0  ;;  %v500_v53 = vunpack.c.h.bf16 %v524_v40 }
  0x25   : > { %v267_v30 = vmul.f32 %v495_v22, %v583_v0  ;;  %v268_v31 = vmul.f32 %v496_v23, %v583_v0  ;;  %v300_v32 = vadd.f32 %v592_v9, %v261_v24  ;;  %v301_v33 = vadd.f32 %v592_v9, %v262_v25 }
  0x26   : > { %v302_v34 = vadd.f32 %v592_v9, %v263_v26  ;;  %v303_v35 = vadd.f32 %v592_v9, %v264_v27  ;;  %v304_v36 = vadd.f32 %v592_v9, %v265_v28  ;;  %v305_v37 = vadd.f32 %v592_v9, %v266_v29 }
  0x27   : > { %v306_v38 = vadd.f32 %v592_v9, %v267_v30  ;;  %v307_v39 = vadd.f32 %v592_v9, %v268_v31  ;;  %v332_v42 = vmax.f32 %v300_v32, 0.0  ;;  %v333_v43 = vmax.f32 %v301_v33, 0.0 }
  0x28   : > { %v334_v44 = vmax.f32 %v302_v34, 0.0  ;;  %v335_v45 = vmax.f32 %v303_v35, 0.0  ;;  %v336_v48 = vmax.f32 %v304_v36, 0.0  ;;  %v337_v49 = vmax.f32 %v305_v37, 0.0 }
  0x29   : > { %v338_v50 = vmax.f32 %v306_v38, 0.0  ;;  %v339_v51 = vmax.f32 %v307_v39, 0.0  ;;  %364 = vst [vmem:[%s610_s26 + $0x80] sm:$0xff] %v332_v42  ;;  %365 = vst [vmem:[%s610_s26 + $0x88] sm:$0xff] %v333_v43  ;;  %v503_v54 = vunpack.c.l.bf16 %v525_v41  ;;  %v504_v55 = vunpack.c.h.bf16 %v525_v41 }
  0x2a   : > { %366 = vst [vmem:[%s610_s26 + $0x90] sm:$0xff] %v334_v44  ;;  %367 = vst [vmem:[%s610_s26 + $0x98] sm:$0xff] %v335_v45  ;;  %v507_v56 = vunpack.c.l.bf16 %v526_v46  ;;  %v508_v57 = vunpack.c.h.bf16 %v526_v46  ;;  %v511_v58 = vunpack.c.l.bf16 %v527_v47  ;;  %v512_v59 = vunpack.c.h.bf16 %v527_v47 }
  0x2b   : > { %368 = vst [vmem:[%s610_s26 + $0xa0] sm:$0xff] %v336_v48  ;;  %369 = vst [vmem:[%s610_s26 + $0xa8] sm:$0xff] %v337_v49  ;;  %v269_v60 = vmul.f32 %v499_v52, %v583_v0  ;;  %v270_v61 = vmul.f32 %v500_v53, %v583_v0  ;;  %v271_v62 = vmul.f32 %v503_v54, %v583_v0 }
  0x2c   : > { %370 = vst [vmem:[%s610_s26 + $0xb0] sm:$0xff] %v338_v50  ;;  %371 = vst [vmem:[%s610_s26 + $0xb8] sm:$0xff] %v339_v51  ;;  %v272_v63 = vmul.f32 %v504_v55, %v583_v0  ;;  %v273_v1 = vmul.f32 %v507_v56, %v583_v0  ;;  %v274_v2 = vmul.f32 %v508_v57, %v583_v0 }
  0x2d   : > { %v275_v3 = vmul.f32 %v511_v58, %v583_v0  ;;  %v276_v4 = vmul.f32 %v512_v59, %v583_v0  ;;  %v308_v5 = vadd.f32 %v592_v9, %v269_v60  ;;  %v309_v6 = vadd.f32 %v592_v9, %v270_v61 }
  0x2e   : > { %v310_v7 = vadd.f32 %v592_v9, %v271_v62  ;;  %v311_v8 = vadd.f32 %v592_v9, %v272_v63  ;;  %v312_v10 = vadd.f32 %v592_v9, %v273_v1  ;;  %v313_v11 = vadd.f32 %v592_v9, %v274_v2 }
  0x2f   : > { %v314_v0 = vadd.f32 %v592_v9, %v275_v3  ;;  %v315_v12 = vadd.f32 %v592_v9, %v276_v4  ;;  %v340_v13 = vmax.f32 %v308_v5, 0.0  ;;  %v341_v14 = vmax.f32 %v309_v6, 0.0 }
  0x30   : > { %v342_v15 = vmax.f32 %v310_v7, 0.0  ;;  %v343_v16 = vmax.f32 %v311_v8, 0.0  ;;  %v344_v17 = vmax.f32 %v312_v10, 0.0  ;;  %v345_v18 = vmax.f32 %v313_v11, 0.0 }
  0x31   : > { %v346_v19 = vmax.f32 %v314_v0, 0.0  ;;  %v347_v20 = vmax.f32 %v315_v12, 0.0  ;;  %372 = vst [vmem:[%s610_s26 + $0xc0] sm:$0xff] %v340_v13  ;;  %373 = vst [vmem:[%s610_s26 + $0xc8] sm:$0xff] %v341_v14 }
  0x32   : > { %374 = vst [vmem:[%s610_s26 + $0xd0] sm:$0xff] %v342_v15  ;;  %375 = vst [vmem:[%s610_s26 + $0xd8] sm:$0xff] %v343_v16 }
  0x33   : > { %376 = vst [vmem:[%s610_s26 + $0xe0] sm:$0xff] %v344_v17  ;;  %377 = vst [vmem:[%s610_s26 + $0xe8] sm:$0xff] %v345_v18 }
  0x34   : > { %378 = vst [vmem:[%s610_s26 + $0xf0] sm:$0xff] %v346_v19  ;;  %379 = vst [vmem:[%s610_s26 + $0xf8] sm:$0xff] %v347_v20 }
  0x35 PF: > { %s13_s12 = sadd.s32 1, %s542_s12  }
  0x36   : > { %p10_p4 = scmp.ge.s32.totalorder %s13_s12, 4  }
  0x38   :  { %12 = sbr.rel (!%p10_p4) target bundleno = 1 (0x1), region = 62 }

// kernel: unet_block_up.4
= control target key start
LH: loop header
LB: loop body
LE: loop exit
PB: predicated region body
PF: predicated region fallthrough
CT: control target
= control target key end

     0   :  { %v1299_v1 = vmov 0   ;;  %v826_v41 = vlaneseq  ;;  %s1627_s1 = inlined_call_operand.vmem [shape: bf16[128,512], index: 1, kind: input, shape index: {}]   ;;  %s1628_s0 = inlined_call_operand.vmem [shape: bf16[128,128], index: 0, kind: input, shape index: {}]   ;;  %s1629_s2 = inlined_call_operand.vmem [shape: f32[1,512], index: 2, kind: input, shape index: {}]   ;;  %s1630_s3 = inlined_call_operand.vmem [shape: bf16[128,512], index: 3, kind: output, shape index: {}]  }
   0x1   :  { %v1243_v0 = vld [vmem:[%s1627_s1 + $0x4] ss:$16 sps:$4 sm:$0xff]   ;;  %435 = vmatprep.mubr.bf16.mxu0 %v1299_v1  ;;  %548 = vmatprep.mubr.bf16.mxu1 %v1299_v1  ;;  %v1245_v2 = vld [vmem:[%s1627_s1 + $0xc] ss:$16 sps:$4 sm:$0xff]   ;;  %v1247_v3 = vld [vmem:[%s1627_s1] ss:$16 sps:$4 sm:$0xff]  }
   0x2   :  { %403 = vmatprep.subr.bf16.mxu0 %v1243_v0  ;;  %v1248_v4 = vld [vmem:[%s1627_s1 + $0x8] ss:$16 sps:$4 sm:$0xff]   ;;  %516 = vmatprep.subr.bf16.mxu1 %v1245_v2  ;;  %v1249_v5 = vld [vmem:[%s1627_s1 + $0x24] ss:$16 sps:$4 sm:$0xff]   ;;  %v1251_v6 = vld [vmem:[%s1627_s1 + $0x2c] ss:$16 sps:$4 sm:$0xff]  }
   0x3   :  { %404 = vmatpush1.bf16.msra.mxu0 %v1247_v3  ;;  %517 = vmatpush1.bf16.msra.mxu1 %v1248_v4  ;;  %v1253_v7 = vld [vmem:[%s1627_s1 + $0x20] ss:$16 sps:$4 sm:$0xff]   ;;  %v1254_v8 = vld [vmem:[%s1627_s1 + $0x28] ss:$16 sps:$4 sm:$0xff]   ;;  %v1255_v9 = vld [vmem:[%s1627_s1 + $0x44] ss:$16 sps:$4 sm:$0xff]  }
   0x4   :  { %405 = vmatprep.subr.bf16.mxu0 %v1249_v5  ;;  %518 = vmatprep.subr.bf16.mxu1 %v1251_v6  ;;  %v1257_v10 = vld [vmem:[%s1627_s1 + $0x4c] ss:$16 sps:$4 sm:$0xff]   ;;  %v1259_v11 = vld [vmem:[%s1627_s1 + $0x40] ss:$16 sps:$4 sm:$0xff]   ;;  %v1260_v12 = vld [vmem:[%s1627_s1 + $0x48] ss:$16 sps:$4 sm:$0xff]  }
   0x5   :  { %v1261_v13 = vld [vmem:[%s1627_s1 + $0x64] ss:$16 sps:$4 sm:$0xff]   ;;  %v1263_v14 = vld [vmem:[%s1627_s1 + $0x6c] ss:$16 sps:$4 sm:$0xff]   ;;  %v1265_v15 = vld [vmem:[%s1627_s1 + $0x60] ss:$16 sps:$4 sm:$0xff]  }
   0x6   :  { %v1266_v16 = vld [vmem:[%s1627_s1 + $0x68] ss:$16 sps:$4 sm:$0xff]   ;;  %v1267_v17 = vld [vmem:[%s1627_s1 + $0x84] ss:$16 sps:$4 sm:$0xff]   ;;  %v1269_v18 = vld [vmem:[%s1627_s1 + $0x8c] ss:$16 sps:$4 sm:$0xff]  }
   0x7   :  { %406 = vmatpush1.bf16.msra.mxu0 %v1253_v7  ;;  %519 = vmatpush1.bf16.msra.mxu1 %v1254_v8  ;;  %v1271_v19 = vld [vmem:[%s1627_s1 + $0x80] ss:$16 sps:$4 sm:$0xff]   ;;  %v1272_v20 = vld [vmem:[%s1627_s1 + $0x88] ss:$16 sps:$4 sm:$0xff]   ;;  %v1273_v21 = vld [vmem:[%s1627_s1 + $0xa4] ss:$16 sps:$4 sm:$0xff]  }
   0x8   :  { %407 = vmatprep.subr.bf16.mxu0 %v1255_v9  ;;  %520 = vmatprep.subr.bf16.mxu1 %v1257_v10  ;;  %v1275_v22 = vld [vmem:[%s1627_s1 + $0xac] ss:$16 sps:$4 sm:$0xff]   ;;  %v1277_v23 = vld [vmem:[%s1627_s1 + $0xa0] ss:$16 sps:$4 sm:$0xff]   ;;  %v1278_v24 = vld [vmem:[%s1627_s1 + $0xa8] ss:$16 sps:$4 sm:$0xff]  }
   0x9   :  { %v1279_v25 = vld [vmem:[%s1627_s1 + $0xc4] ss:$16 sps:$4 sm:$0xff]   ;;  %v1281_v26 = vld [vmem:[%s1627_s1 + $0xcc] ss:$16 sps:$4 sm:$0xff]   ;;  %v1283_v27 = vld [vmem:[%s1627_s1 + $0xc0] ss:$16 sps:$4 sm:$0xff]  }
   0xa   :  { %v1284_v28 = vld [vmem:[%s1627_s1 + $0xc8] ss:$16 sps:$4 sm:$0xff]   ;;  %v1285_v29 = vld [vmem:[%s1627_s1 + $0xe4] ss:$16 sps:$4 sm:$0xff]   ;;  %v1287_v30 = vld [vmem:[%s1627_s1 + $0xec] ss:$16 sps:$4 sm:$0xff]  }
   0xb   :  { %408 = vmatpush1.bf16.msra.mxu0 %v1259_v11  ;;  %521 = vmatpush1.bf16.msra.mxu1 %v1260_v12  ;;  %v1289_v31 = vld [vmem:[%s1627_s1 + $0xe0] ss:$16 sps:$4 sm:$0xff]   ;;  %v1290_v32 = vld [vmem:[%s1627_s1 + $0xe8] ss:$16 sps:$4 sm:$0xff]   ;;  %v827_v42 = vshrl.u32 %v826_v41, 7 }
   0xc   :  { %409 = vmatprep.subr.bf16.mxu0 %v1261_v13  ;;  %522 = vmatprep.subr.bf16.mxu1 %v1263_v14  ;;  %v1291_v33 = vld [vmem:[%s1628_s0] sm:$0xff]   ;;  %v1292_v34 = vld [vmem:[%s1628_s0 + $0x8] sm:$0xff]   ;;  %v1293_v35 = vld [vmem:[%s1628_s0 + $0x10] sm:$0xff]  }
   0xd   :  { %v1294_v36 = vld [vmem:[%s1628_s0 + $0x18] sm:$0xff]   ;;  %v1295_v37 = vld [vmem:[%s1628_s0 + $0x20] sm:$0xff]   ;;  %v1296_v38 = vld [vmem:[%s1628_s0 + $0x28] sm:$0xff]   ;;  %v828_v43 = vsub.s32 0, %v827_v42  ;;  %v836_v44 = vsub.s32 2, %v827_v42  ;;  %v832_v46 = vsub.s32 1, %v827_v42 }
   0xe   :  { %v1297_v39 = vld [vmem:[%s1628_s0 + $0x30] sm:$0xff]   ;;  %v1298_v40 = vld [vmem:[%s1628_s0 + $0x38] sm:$0xff]   ;;  %v824_v45 = vld [vmem:[%s1629_s2] sm:$0xf]  ;;  %v840_v47 = vsub.s32 3, %v827_v42 }
   0xf   :  { %410 = vmatpush1.bf16.msra.mxu0 %v1265_v15  ;;  %523 = vmatpush1.bf16.msra.mxu1 %v1266_v16  ;;  %v1459_v48 = vrot.slane %v824_v45, %v828_v43  ;;  %v1461_v49 = vrot.slane %v824_v45, %v836_v44  ;;  %v1463_v50 = vrot.slane %v824_v45, %v832_v46 }
  0x10   :  { %411 = vmatprep.subr.bf16.mxu0 %v1267_v17  ;;  %524 = vmatprep.subr.bf16.mxu1 %v1269_v18  ;;  %v1465_v51 = vrot.slane %v824_v45, %v840_v47 }
  0x13   :  { %412 = vmatpush1.bf16.msra.mxu0 %v1271_v19  ;;  %525 = vmatpush1.bf16.msra.mxu1 %v1272_v20 }
  0x14   :  { %413 = vmatprep.subr.bf16.mxu0 %v1273_v21  ;;  %526 = vmatprep.subr.bf16.mxu1 %v1275_v22 }
  0x17   :  { %414 = vmatpush1.bf16.msra.mxu0 %v1277_v23  ;;  %527 = vmatpush1.bf16.msra.mxu1 %v1278_v24 }
  0x18   :  { %415 = vmatprep.subr.bf16.mxu0 %v1279_v25  ;;  %528 = vmatprep.subr.bf16.mxu1 %v1281_v26 }
  0x1b   :  { %416 = vmatpush1.bf16.msra.mxu0 %v1283_v27  ;;  %529 = vmatpush1.bf16.msra.mxu1 %v1284_v28 }
  0x1c   :  { %417 = vmatprep.subr.bf16.mxu0 %v1285_v29  ;;  %530 = vmatprep.subr.bf16.mxu1 %v1287_v30 }
  0x1f   :  { %418 = vmatpush1.bf16.msra.mxu0 %v1289_v31  ;;  %531 = vmatpush1.bf16.msra.mxu1 %v1290_v32 }
  0x22   :  { %436 = vmatmul.mubr.bf16.vlgmr.msra.gmra.mrb[0].mxu0 %v1291_v33  ;;  %549 = vmatmul.mubr.bf16.vlgmr.msra.gmra.mrb[0].mxu1 %v1291_v33 }
  0x23   :  { %445 = vmatprep.mubr.bf16.mxu0 %v1299_v1  ;;  %558 = vmatprep.mubr.bf16.mxu1 %v1299_v1 }
  0x2a   :  { %446 = vmatmul.mubr.bf16.gmra.mrb[4].mxu0 %v1292_v34  ;;  %559 = vmatmul.mubr.bf16.gmra.mrb[4].mxu1 %v1292_v34 }
  0x2b   :  { %455 = vmatprep.mubr.bf16.mxu0 %v1299_v1  ;;  %568 = vmatprep.mubr.bf16.mxu1 %v1299_v1 }
  0x32   :  { %456 = vmatmul.mubr.bf16.gmra.mrb[8].mxu0 %v1293_v35  ;;  %569 = vmatmul.mubr.bf16.gmra.mrb[8].mxu1 %v1293_v35 }
  0x33   :  { %465 = vmatprep.mubr.bf16.mxu0 %v1299_v1  ;;  %578 = vmatprep.mubr.bf16.mxu1 %v1299_v1 }
  0x3a   :  { %466 = vmatmul.mubr.bf16.gmra.mrb[12].mxu0 %v1294_v36  ;;  %579 = vmatmul.mubr.bf16.gmra.mrb[12].mxu1 %v1294_v36 }
  0x3b   :  { %475 = vmatprep.mubr.bf16.mxu0 %v1299_v1  ;;  %588 = vmatprep.mubr.bf16.mxu1 %v1299_v1 }
  0x42   :  { %476 = vmatmul.mubr.bf16.gmra.mrb[16].mxu0 %v1295_v37  ;;  %589 = vmatmul.mubr.bf16.gmra.mrb[16].mxu1 %v1295_v37 }
  0x43   :  { %485 = vmatprep.mubr.bf16.mxu0 %v1299_v1  ;;  %598 = vmatprep.mubr.bf16.mxu1 %v1299_v1 }
  0x4a   :  { %486 = vmatmul.mubr.bf16.gmra.mrb[20].mxu0 %v1296_v38  ;;  %599 = vmatmul.mubr.bf16.gmra.mrb[20].mxu1 %v1296_v38 }
  0x4b   :  { %495 = vmatprep.mubr.bf16.mxu0 %v1299_v1  ;;  %608 = vmatprep.mubr.bf16.mxu1 %v1299_v1 }
  0x52   :  { %496 = vmatmul.mubr.bf16.gmra.mrb[24].mxu0 %v1297_v39  ;;  %609 = vmatmul.mubr.bf16.gmra.mrb[24].mxu1 %v1297_v39 }
  0x53   :  { %505 = vmatprep.mubr.bf16.mxu0 %v1299_v1  ;;  %618 = vmatprep.mubr.bf16.mxu1 %v1299_v1 }
  0x5a   :  { %506 = vmatmul.mubr.bf16.gmra.mrb[28].mxu0 %v1298_v40  ;;  %619 = vmatmul.mubr.bf16.gmra.mrb[28].mxu1 %v1298_v40 }
  0xf5   :  { %v437_v52 = vpop.f32.mrb[0].mxu0  ;;  %v550_v53 = vpop.f32.mrb[0].mxu1 }
  0xf6   :  { %v846_v54 = vadd.f32 %v1459_v48, %v437_v52  ;;  %v848_v55 = vadd.f32 %v1461_v49, %v550_v53  ;;  %v439_v56 = vpop.f32.mrb[1].mxu0  ;;  %v552_v57 = vpop.f32.mrb[1].mxu1 }
  0xf7   :  { %v847_v58 = vadd.f32 %v1463_v50, %v439_v56  ;;  %v849_v59 = vadd.f32 %v1465_v51, %v552_v57  ;;  %v441_v60 = vpop.f32.mrb[2].mxu0  ;;  %v554_v61 = vpop.f32.mrb[2].mxu1 }
  0xf8   :  { %v850_v62 = vadd.f32 %v1459_v48, %v441_v60  ;;  %v852_v63 = vadd.f32 %v1461_v49, %v554_v61  ;;  %v443_v0 = vpop.f32.mrb[3].mxu0  ;;  %v556_v1 = vpop.f32.mrb[3].mxu1 }
  0xf9   :  { %v1210_v2 = vpack.c.bf16 %v847_v58, %v846_v54  ;;  %v1211_v3 = vpack.c.bf16 %v849_v59, %v848_v55  ;;  %v851_v4 = vadd.f32 %v1463_v50, %v443_v0  ;;  %v853_v5 = vadd.f32 %v1465_v51, %v556_v1 }
  0xfb   :  { %1102 = vst [vmem:[%s1630_s3] sm:$0xff] %v1210_v2  ;;  %1103 = vst [vmem:[%s1630_s3 + $0x8] sm:$0xff] %v1211_v3  ;;  %v1212_v6 = vpack.c.bf16 %v851_v4, %v850_v62  ;;  %v1213_v7 = vpack.c.bf16 %v853_v5, %v852_v63 }
  0xfd   :  { %1104 = vst [vmem:[%s1630_s3 + $0x10] sm:$0xff] %v1212_v6  ;;  %1105 = vst [vmem:[%s1630_s3 + $0x18] sm:$0xff] %v1213_v7  ;;  %v447_v8 = vpop.f32.mrb[4].mxu0  ;;  %v560_v9 = vpop.f32.mrb[4].mxu1 }
  0xfe   :  { %v854_v10 = vadd.f32 %v1459_v48, %v447_v8  ;;  %v856_v11 = vadd.f32 %v1461_v49, %v560_v9  ;;  %v449_v12 = vpop.f32.mrb[5].mxu0  ;;  %v562_v13 = vpop.f32.mrb[5].mxu1 }
  0xff   :  { %v855_v14 = vadd.f32 %v1463_v50, %v449_v12  ;;  %v857_v15 = vadd.f32 %v1465_v51, %v562_v13  ;;  %v451_v16 = vpop.f32.mrb[6].mxu0  ;;  %v564_v17 = vpop.f32.mrb[6].mxu1 }
 0x100   :  { %v858_v18 = vadd.f32 %v1459_v48, %v451_v16  ;;  %v860_v19 = vadd.f32 %v1461_v49, %v564_v17  ;;  %v453_v20 = vpop.f32.mrb[7].mxu0  ;;  %v566_v21 = vpop.f32.mrb[7].mxu1 }
 0x101   :  { %v1214_v22 = vpack.c.bf16 %v855_v14, %v854_v10  ;;  %v1215_v23 = vpack.c.bf16 %v857_v15, %v856_v11  ;;  %v859_v24 = vadd.f32 %v1463_v50, %v453_v20  ;;  %v861_v25 = vadd.f32 %v1465_v51, %v566_v21 }
 0x103   :  { %1106 = vst [vmem:[%s1630_s3 + $0x20] sm:$0xff] %v1214_v22  ;;  %1107 = vst [vmem:[%s1630_s3 + $0x28] sm:$0xff] %v1215_v23  ;;  %v1216_v26 = vpack.c.bf16 %v859_v24, %v858_v18  ;;  %v1217_v27 = vpack.c.bf16 %v861_v25, %v860_v19 }
 0x105   :  { %1108 = vst [vmem:[%s1630_s3 + $0x30] sm:$0xff] %v1216_v26  ;;  %1109 = vst [vmem:[%s1630_s3 + $0x38] sm:$0xff] %v1217_v27  ;;  %v457_v28 = vpop.f32.mrb[8].mxu0  ;;  %v570_v29 = vpop.f32.mrb[8].mxu1 }
 0x106   :  { %v862_v30 = vadd.f32 %v1459_v48, %v457_v28  ;;  %v864_v31 = vadd.f32 %v1461_v49, %v570_v29  ;;  %v459_v32 = vpop.f32.mrb[9].mxu0  ;;  %v572_v33 = vpop.f32.mrb[9].mxu1 }
 0x107   :  { %v863_v34 = vadd.f32 %v1463_v50, %v459_v32  ;;  %v865_v35 = vadd.f32 %v1465_v51, %v572_v33  ;;  %v461_v36 = vpop.f32.mrb[10].mxu0  ;;  %v574_v37 = vpop.f32.mrb[10].mxu1 }
 0x108   :  { %v866_v38 = vadd.f32 %v1459_v48, %v461_v36  ;;  %v868_v39 = vadd.f32 %v1461_v49, %v574_v37  ;;  %v463_v40 = vpop.f32.mrb[11].mxu0  ;;  %v576_v41 = vpop.f32.mrb[11].mxu1 }
 0x109   :  { %v1218_v42 = vpack.c.bf16 %v863_v34, %v862_v30  ;;  %v1219_v43 = vpack.c.bf16 %v865_v35, %v864_v31  ;;  %v867_v44 = vadd.f32 %v1463_v50, %v463_v40  ;;  %v869_v45 = vadd.f32 %v1465_v51, %v576_v41 }
 0x10b   :  { %1110 = vst [vmem:[%s1630_s3 + $0x40] sm:$0xff] %v1218_v42  ;;  %1111 = vst [vmem:[%s1630_s3 + $0x48] sm:$0xff] %v1219_v43  ;;  %v1220_v46 = vpack.c.bf16 %v867_v44, %v866_v38  ;;  %v1221_v47 = vpack.c.bf16 %v869_v45, %v868_v39 }
 0x10d   :  { %1112 = vst [vmem:[%s1630_s3 + $0x50] sm:$0xff] %v1220_v46  ;;  %1113 = vst [vmem:[%s1630_s3 + $0x58] sm:$0xff] %v1221_v47  ;;  %v467_v52 = vpop.f32.mrb[12].mxu0  ;;  %v580_v53 = vpop.f32.mrb[12].mxu1 }
 0x10e   :  { %v870_v54 = vadd.f32 %v1459_v48, %v467_v52  ;;  %v872_v55 = vadd.f32 %v1461_v49, %v580_v53  ;;  %v469_v56 = vpop.f32.mrb[13].mxu0  ;;  %v582_v57 = vpop.f32.mrb[13].mxu1 }
 0x10f   :  { %v871_v58 = vadd.f32 %v1463_v50, %v469_v56  ;;  %v873_v59 = vadd.f32 %v1465_v51, %v582_v57  ;;  %v471_v60 = vpop.f32.mrb[14].mxu0  ;;  %v584_v61 = vpop.f32.mrb[14].mxu1 }
 0x110   :  { %v874_v62 = vadd.f32 %v1459_v48, %v471_v60  ;;  %v876_v63 = vadd.f32 %v1461_v49, %v584_v61  ;;  %v473_v0 = vpop.f32.mrb[15].mxu0  ;;  %v586_v1 = vpop.f32.mrb[15].mxu1 }
 0x111   :  { %v1222_v2 = vpack.c.bf16 %v871_v58, %v870_v54  ;;  %v1223_v3 = vpack.c.bf16 %v873_v59, %v872_v55  ;;  %v875_v4 = vadd.f32 %v1463_v50, %v473_v0  ;;  %v877_v5 = vadd.f32 %v1465_v51, %v586_v1 }
 0x113   :  { %1114 = vst [vmem:[%s1630_s3 + $0x60] sm:$0xff] %v1222_v2  ;;  %1115 = vst [vmem:[%s1630_s3 + $0x68] sm:$0xff] %v1223_v3  ;;  %v1224_v6 = vpack.c.bf16 %v875_v4, %v874_v62  ;;  %v1225_v7 = vpack.c.bf16 %v877_v5, %v876_v63 }
 0x115   :  { %1116 = vst [vmem:[%s1630_s3 + $0x70] sm:$0xff] %v1224_v6  ;;  %1117 = vst [vmem:[%s1630_s3 + $0x78] sm:$0xff] %v1225_v7  ;;  %v477_v8 = vpop.f32.mrb[16].mxu0  ;;  %v590_v9 = vpop.f32.mrb[16].mxu1 }
 0x116   :  { %v878_v10 = vadd.f32 %v1459_v48, %v477_v8  ;;  %v880_v11 = vadd.f32 %v1461_v49, %v590_v9  ;;  %v479_v12 = vpop.f32.mrb[17].mxu0  ;;  %v592_v13 = vpop.f32.mrb[17].mxu1 }
 0x117   :  { %v879_v14 = vadd.f32 %v1463_v50, %v479_v12  ;;  %v881_v15 = vadd.f32 %v1465_v51, %v592_v13  ;;  %v481_v16 = vpop.f32.mrb[18].mxu0  ;;  %v594_v17 = vpop.f32.mrb[18].mxu1 }
 0x118   :  { %v882_v18 = vadd.f32 %v1459_v48, %v481_v16  ;;  %v884_v19 = vadd.f32 %v1461_v49, %v594_v17  ;;  %v483_v20 = vpop.f32.mrb[19].mxu0  ;;  %v596_v21 = vpop.f32.mrb[19].mxu1 }
 0x119   :  { %v1226_v22 = vpack.c.bf16 %v879_v14, %v878_v10  ;;  %v1227_v23 = vpack.c.bf16 %v881_v15, %v880_v11  ;;  %v883_v24 = vadd.f32 %v1463_v50, %v483_v20  ;;  %v885_v25 = vadd.f32 %v1465_v51, %v596_v21 }
 0x11b   :  { %1118 = vst [vmem:[%s1630_s3 + $0x80] sm:$0xff] %v1226_v22  ;;  %1119 = vst [vmem:[%s1630_s3 + $0x88] sm:$0xff] %v1227_v23  ;;  %v1228_v26 = vpack.c.bf16 %v883_v24, %v882_v18  ;;  %v1229_v27 = vpack.c.bf16 %v885_v25, %v884_v19 }
 0x11d   :  { %1120 = vst [vmem:[%s1630_s3 + $0x90] sm:$0xff] %v1228_v26  ;;  %1121 = vst [vmem:[%s1630_s3 + $0x98] sm:$0xff] %v1229_v27  ;;  %v487_v28 = vpop.f32.mrb[20].mxu0  ;;  %v600_v29 = vpop.f32.mrb[20].mxu1 }
 0x11e   :  { %v886_v30 = vadd.f32 %v1459_v48, %v487_v28  ;;  %v888_v31 = vadd.f32 %v1461_v49, %v600_v29  ;;  %v489_v32 = vpop.f32.mrb[21].mxu0  ;;  %v602_v33 = vpop.f32.mrb[21].mxu1 }
 0x11f   :  { %v887_v34 = vadd.f32 %v1463_v50, %v489_v32  ;;  %v889_v35 = vadd.f32 %v1465_v51, %v602_v33  ;;  %v491_v36 = vpop.f32.mrb[22].mxu0  ;;  %v604_v37 = vpop.f32.mrb[22].mxu1 }
 0x120   :  { %v890_v38 = vadd.f32 %v1459_v48, %v491_v36  ;;  %v892_v39 = vadd.f32 %v1461_v49, %v604_v37  ;;  %v493_v40 = vpop.f32.mrb[23].mxu0  ;;  %v606_v41 = vpop.f32.mrb[23].mxu1 }
 0x121   :  { %v1230_v42 = vpack.c.bf16 %v887_v34, %v886_v30  ;;  %v1231_v43 = vpack.c.bf16 %v889_v35, %v888_v31  ;;  %v891_v44 = vadd.f32 %v1463_v50, %v493_v40  ;;  %v893_v45 = vadd.f32 %v1465_v51, %v606_v41 }
 0x123   :  { %1122 = vst [vmem:[%s1630_s3 + $0xa0] sm:$0xff] %v1230_v42  ;;  %1123 = vst [vmem:[%s1630_s3 + $0xa8] sm:$0xff] %v1231_v43  ;;  %v1232_v46 = vpack.c.bf16 %v891_v44, %v890_v38  ;;  %v1233_v47 = vpack.c.bf16 %v893_v45, %v892_v39 }
 0x125   :  { %1124 = vst [vmem:[%s1630_s3 + $0xb0] sm:$0xff] %v1232_v46  ;;  %1125 = vst [vmem:[%s1630_s3 + $0xb8] sm:$0xff] %v1233_v47  ;;  %v497_v52 = vpop.f32.mrb[24].mxu0  ;;  %v610_v53 = vpop.f32.mrb[24].mxu1 }
 0x126   :  { %v894_v54 = vadd.f32 %v1459_v48, %v497_v52  ;;  %v896_v55 = vadd.f32 %v1461_v49, %v610_v53  ;;  %v499_v56 = vpop.f32.mrb[25].mxu0  ;;  %v612_v57 = vpop.f32.mrb[25].mxu1 }
 0x127   :  { %v895_v58 = vadd.f32 %v1463_v50, %v499_v56  ;;  %v897_v59 = vadd.f32 %v1465_v51, %v612_v57  ;;  %v501_v60 = vpop.f32.mrb[26].mxu0  ;;  %v614_v61 = vpop.f32.mrb[26].mxu1 }
 0x128   :  { %v898_v62 = vadd.f32 %v1459_v48, %v501_v60  ;;  %v900_v63 = vadd.f32 %v1461_v49, %v614_v61  ;;  %v503_v0 = vpop.f32.mrb[27].mxu0  ;;  %v616_v1 = vpop.f32.mrb[27].mxu1 }
 0x129   :  { %v1234_v2 = vpack.c.bf16 %v895_v58, %v894_v54  ;;  %v1235_v3 = vpack.c.bf16 %v897_v59, %v896_v55  ;;  %v899_v4 = vadd.f32 %v1463_v50, %v503_v0  ;;  %v901_v5 = vadd.f32 %v1465_v51, %v616_v1 }
 0x12b   :  { %1126 = vst [vmem:[%s1630_s3 + $0xc0] sm:$0xff] %v1234_v2  ;;  %1127 = vst [vmem:[%s1630_s3 + $0xc8] sm:$0xff] %v1235_v3  ;;  %v1236_v6 = vpack.c.bf16 %v899_v4, %v898_v62  ;;  %v1237_v7 = vpack.c.bf16 %v901_v5, %v900_v63 }
 0x12d   :  { %1128 = vst [vmem:[%s1630_s3 + $0xd0] sm:$0xff] %v1236_v6  ;;  %1129 = vst [vmem:[%s1630_s3 + $0xd8] sm:$0xff] %v1237_v7  ;;  %v507_v8 = vpop.f32.mrb[28].mxu0  ;;  %v620_v9 = vpop.f32.mrb[28].mxu1 }
 0x12e   :  { %v902_v10 = vadd.f32 %v1459_v48, %v507_v8  ;;  %v904_v11 = vadd.f32 %v1461_v49, %v620_v9  ;;  %v509_v12 = vpop.f32.mrb[29].mxu0  ;;  %v622_v13 = vpop.f32.mrb[29].mxu1 }
 0x12f   :  { %v903_v14 = vadd.f32 %v1463_v50, %v509_v12  ;;  %v905_v15 = vadd.f32 %v1465_v51, %v622_v13  ;;  %v511_v16 = vpop.f32.mrb[30].mxu0  ;;  %v624_v17 = vpop.f32.mrb[30].mxu1 }
 0x130   :  { %v906_v18 = vadd.f32 %v1459_v48, %v511_v16  ;;  %v908_v19 = vadd.f32 %v1461_v49, %v624_v17  ;;  %v513_v20 = vpop.f32.mrb[31].mxu0  ;;  %v626_v21 = vpop.f32.mrb[31].mxu1 }
 0x131   :  { %v1238_v22 = vpack.c.bf16 %v903_v14, %v902_v10  ;;  %v1239_v23 = vpack.c.bf16 %v905_v15, %v904_v11  ;;  %v907_v24 = vadd.f32 %v1463_v50, %v513_v20  ;;  %v909_v25 = vadd.f32 %v1465_v51, %v626_v21 }
 0x133   :  { %1130 = vst [vmem:[%s1630_s3 + $0xe0] sm:$0xff] %v1238_v22  ;;  %1131 = vst [vmem:[%s1630_s3 + $0xe8] sm:$0xff] %v1239_v23  ;;  %v1240_v26 = vpack.c.bf16 %v907_v24, %v906_v18  ;;  %v1241_v48 = vpack.c.bf16 %v909_v25, %v908_v19 }
 0x135   :  { %1132 = vst [vmem:[%s1630_s3 + $0xf0] sm:$0xff] %v1240_v26  ;;  %1133 = vst [vmem:[%s1630_s3 + $0xf8] sm:$0xff] %v1241_v48 }

// kernel: unet_block_up.6
= control target key start
LH: loop header
LB: loop body
LE: loop exit
PB: predicated region body
PF: predicated region fallthrough
CT: control target
= control target key end

     0   :  { %s4571_s21 = smov 0   ;;  %s5976_s0 = inlined_call_operand.vmem [shape: bf16[2,16,16,128], index: 0, kind: input, shape index: {}]   ;;  %s5977_s1 = inlined_call_operand.vmem [shape: f32[1,128], index: 1, kind: input, shape index: {}]   ;;  %s5978_s2 = inlined_call_operand.vmem [shape: f32[1,128], index: 2, kind: input, shape index: {}]   ;;  %s5979_s3 = inlined_call_operand.vmem [shape: bf16[3,384,128], index: 3, kind: input, shape index: {}]   ;;  %s5980_s4 = inlined_call_operand.vmem [shape: f32[1,128], index: 4, kind: input, shape index: {}]   ;;  %s5981_s5 = inlined_call_operand.vmem [shape: bf16[2,16,16,128], index: 5, kind: output, shape index: {0}]   ;;  %s5982_s6 = inlined_call_operand.vmem [shape: f32[2,1,2,128], index: 6, kind: output, shape index: {1}]  }
   0x1 LB: > { %s3293_s22 = sadd.s32 4294967295, %s4533_s21   ;;  %p3297_p0 = scmp.ge.s32.totalorder %s4533_s21, 1  ;;  %s4533_s21 = sphi %s4571_s21, %s17_s21  }
   0x2   : > { %p215_p1 = scmp.lt.s32.totalorder %s4533_s21, 3 }
   0x4   : > { %p216_p2 = pnand %p3297_p0, %p215_p1 }
   0x5   : > { %v4453_v0 = vld [vmem:[%s5979_s3 + $0x40] sm:$0xff] (!%p216_p2)   ;;  %v4456_v3 = vld [vmem:[%s5979_s3 + $0x48] sm:$0xff] (!%p216_p2)   ;;  %v4459_v6 = vld [vmem:[%s5979_s3 + $0x50] sm:$0xff] (!%p216_p2)   ;;  %p249_p3 = scmp.lt.s32.totalorder (!%p216_p2), %s3293_s22, 1  ;;  %v4535_v20 = vmov (!%p216_p2), 0   ;;  %vm607_vm0 = vcmask (!%p216_p2), 1040384  }
   0x6   : > { %219 = sbr.rel (%p216_p2) target bundleno = 664 (0x298), region = 40  ;;  %v4585_v1 = vld [vmem:[%s5979_s3 + $0x80] sm:$0xff] (!%p216_p2)   ;;  %3716 = vmatprep.subr.bf16.mxu0 (!%p216_p2), %v4453_v0  ;;  %v4598_v4 = vld [vmem:[%s5979_s3 + $0x88] sm:$0xff] (!%p216_p2)   ;;  %v4610_v7 = vld [vmem:[%s5979_s3 + $0x90] sm:$0xff] (!%p216_p2)   ;;  %v457_v21 = vrot.slane (!%p216_p2), %v4535_v20, 7  ;;  %vm900_vm4 = vcmask (!%p216_p2), 1046528  }
   0x7   : > { %v4455_v2 = vld [vmem:[%s5979_s3] sm:$0xff] (!%p216_p2)   ;;  %4268 = vmatprep.subr.bf16.mxu1 (!%p216_p2), %v4585_v1  ;;  %v4458_v5 = vld [vmem:[%s5979_s3 + $0x8] sm:$0xff] (!%p216_p2)   ;;  %v4461_v8 = vld [vmem:[%s5979_s3 + $0x10] sm:$0xff] (!%p216_p2)   ;;  %vm608_vm1 = vsmask.f32 (!%p216_p2), 256 }
   0x8   : > { %3717 = vmatpush3.bf16.msra.mxu0 (!%p216_p2), %v4455_v2  ;;  %4276 = vmatpush3.bf16.msra.mxu1 (!%p216_p2), %v4585_v1  ;;  %v4462_v9 = vld [vmem:[%s5979_s3 + $0x58] sm:$0xff] (!%p216_p2)   ;;  %v4465_v12 = vld [vmem:[%s5979_s3 + $0x60] sm:$0xff] (!%p216_p2)   ;;  %v4468_v15 = vld [vmem:[%s5979_s3 + $0x68] sm:$0xff] (!%p216_p2)   ;;  %vm644_vm3 = vsmask.f32 (!%p216_p2), 7424 }
   0x9   : > { %3718 = vmatprep.subr.bf16.mxu0 (!%p216_p2), %v4456_v3  ;;  %4269 = vmatprep.subr.bf16.mxu1 (!%p216_p2), %v4598_v4  ;;  %v4623_v10 = vld [vmem:[%s5979_s3 + $0x98] sm:$0xff] (!%p216_p2)   ;;  %v4638_v13 = vld [vmem:[%s5979_s3 + $0xa0] sm:$0xff] (!%p216_p2)   ;;  %v4655_v16 = vld [vmem:[%s5979_s3 + $0xa8] sm:$0xff] (!%p216_p2)  }
   0xa   : > { %v4464_v11 = vld [vmem:[%s5979_s3 + $0x18] sm:$0xff] (!%p216_p2)   ;;  %v4467_v14 = vld [vmem:[%s5979_s3 + $0x20] sm:$0xff] (!%p216_p2)   ;;  %v4470_v17 = vld [vmem:[%s5979_s3 + $0x28] sm:$0xff] (!%p216_p2)  }
   0xb   : > { %v4471_v18 = vld [vmem:[%s5979_s3 + $0x70] sm:$0xff] (!%p216_p2)   ;;  %v4474_v23 = vld [vmem:[%s5979_s3 + $0x78] sm:$0xff] (!%p216_p2)   ;;  %vm4694_vm2 = vmand (!%p216_p2), %vm607_vm0, %vm608_vm1 }
   0xc   : > { %3719 = vmatpush3.bf16.msra.mxu0 (!%p216_p2), %v4458_v5  ;;  %4277 = vmatpush3.bf16.msra.mxu1 (!%p216_p2), %v4598_v4  ;;  %v4669_v19 = vld [vmem:[%s5979_s3 + $0xb0] sm:$0xff] (!%p216_p2)   ;;  %v4688_v24 = vld [vmem:[%s5979_s3 + $0xb8] sm:$0xff] (!%p216_p2)   ;;  %v4701_v30 = vld [vmem:[%s5977_s1] ss:$0 sm:$0xff] (!%p216_p2)  ;;  %v4710_v34 = vsel (!%p216_p2), %vm4694_vm2, 0, %v457_v21  ;;  %v4714_v35 = vsel (!%p216_p2), %vm4694_vm2, %v457_v21, 0 }
   0xd   : > { %3720 = vmatprep.subr.bf16.mxu0 %v4459_v6  ;;  %4270 = vmatprep.subr.bf16.mxu1 %v4610_v7  ;;  %s5986_s22 = smov (!%p249_p3, %s3293_s22), 1  ;;  %v4473_v22 = vld [vmem:[%s5979_s3 + $0x30] sm:$0xff]   ;;  %v4706_v31 = vld [vmem:[%s5978_s2] ss:$0 sm:$0xff]  ;;  %v4476_v36 = vld [vmem:[%s5979_s3 + $0x38] sm:$0xff]   ;;  %v646_v37 = vshrl.u32 %v4710_v34, 16 }
   0xe   : > { %s3508_s11 = sshll.u32 %s5986_s22, 7  ;;  %v648_v38 = vshll.u32 %v4710_v34, 16  ;;  %v653_v39 = vshll.u32 %v4714_v35, 16  ;;  %v4477_v47 = vld [vmem:[%s5979_s3 + $0x100] sm:$0xff]  }
   0xf   : > { %s4676_s20 = scalar_lea.vmem %s5976_s0, %s3508_s11  ;;  %s5692_s13 = scalar_lea.vmem %s5981_s5, %s3508_s11 }
  0x10   : > { %3721 = vmatpush3.bf16.msra.mxu0 %v4461_v8  ;;  %4278 = vmatpush3.bf16.msra.mxu1 %v4610_v7  ;;  %v3692_v25 = vld [vmem:[%s4676_s20 + $0x38] sm:$0xff]   ;;  %v3693_v26 = vld [vmem:[%s4676_s20 + $0x40] sm:$0xff]   ;;  %v650_v44 = vrot.slane %v648_v38, 1  ;;  %v655_v45 = vrot.slane %v653_v39, 1  ;;  %v3694_v56 = vld [vmem:[%s4676_s20 + $0x48] sm:$0xff]   ;;  %s3302_s11 = sshll.u32 %s5986_s22, 1 }
  0x11   : > { %3722 = vmatprep.subr.bf16.mxu0 %v4462_v9  ;;  %4271 = vmatprep.subr.bf16.mxu1 %v4623_v10  ;;  %v3572_v28 = vunpack.c.l.bf16 %v3692_v25  ;;  %v3573_v29 = vunpack.c.h.bf16 %v3692_v25  ;;  %v3576_v32 = vunpack.c.l.bf16 %v3693_v26  ;;  %v3577_v33 = vunpack.c.h.bf16 %v3693_v26  ;;  %v3543_v51 = vld [vmem:[%s4676_s20] sm:$0xff]   ;;  %v3695_v57 = vld [vmem:[%s4676_s20 + $0x50] sm:$0xff]   ;;  %v3686_v21 = vld [vmem:[%s4676_s20 + $0x8] sm:$0xff]   ;;  %s262_s16 = scalar_lea.vmem %s5982_s6, %s3302_s11 }
  0x12   : > { %v651_v52 = vor.u32 %v650_v44, %v646_v37  ;;  %v3544_v54 = vunpack.c.l.bf16 %v3543_v51  ;;  %v3545_v55 = vunpack.c.h.bf16 %v3543_v51  ;;  %v3580_v61 = vunpack.c.l.bf16 %v3694_v56 }
  0x13   : > { %v349_v40 = vmul.f32 %v3572_v28, %v4701_v30  ;;  %v350_v41 = vmul.f32 %v3573_v29, %v4701_v30  ;;  %v351_v42 = vmul.f32 %v3576_v32, %v4701_v30  ;;  %v352_v43 = vmul.f32 %v3577_v33, %v4701_v30 }
  0x14   : > { %3723 = vmatpush3.bf16.msra.mxu0 %v4464_v11  ;;  %4279 = vmatpush3.bf16.msra.mxu1 %v4623_v10  ;;  %v4740_v62 = vsel %vm644_vm3, %v651_v52, %v655_v45  ;;  %v335_v63 = vmul.f32 %v3544_v54, %v4701_v30  ;;  %v336_v0 = vmul.f32 %v3545_v55, %v4701_v30  ;;  %v3581_v2 = vunpack.c.h.bf16 %v3694_v56  ;;  %v4478_v52 = vld [vmem:[%s5979_s3 + $0xc0] sm:$0xff]  }
  0x15   : > { %3724 = vmatprep.subr.bf16.mxu0 %v4465_v12  ;;  %4272 = vmatprep.subr.bf16.mxu1 %v4638_v13  ;;  %v388_v46 = vadd.f32 %v4706_v31, %v349_v40  ;;  %v389_v48 = vadd.f32 %v4706_v31, %v350_v41  ;;  %v390_v49 = vadd.f32 %v4706_v31, %v351_v42  ;;  %v3584_v8 = vunpack.c.l.bf16 %v3695_v57 }
  0x16   : > { %v391_v50 = vadd.f32 %v4706_v31, %v352_v43  ;;  %1257 = vmatprep.mubr.bf16.mxu0 %v4740_v62  ;;  %v353_v6 = vmul.f32 %v3580_v61, %v4701_v30  ;;  %v374_v9 = vadd.f32 %v4706_v31, %v335_v63  ;;  %v375_v11 = vadd.f32 %v4706_v31, %v336_v0  ;;  %v4479_v63 = vld [vmem:[%s5979_s3 + $0x108] sm:$0xff]  }
  0x17   : > { %v420_v53 = vmax.f32 %v388_v46, 0.0  ;;  %v421_v58 = vmax.f32 %v389_v48, 0.0  ;;  %v422_v59 = vmax.f32 %v390_v49, 0.0  ;;  %v354_v12 = vmul.f32 %v3581_v2, %v4701_v30 }
  0x18   : > { %3725 = vmatpush3.bf16.msra.mxu0 %v4467_v14  ;;  %4280 = vmatpush3.bf16.msra.mxu1 %v4638_v13  ;;  %v423_v60 = vmax.f32 %v391_v50, 0.0  ;;  %v3585_v14 = vunpack.c.h.bf16 %v3695_v57  ;;  %v392_v25 = vadd.f32 %v4706_v31, %v353_v6  ;;  %v355_v32 = vmul.f32 %v3584_v8, %v4701_v30 }
  0x19   : > { %3726 = vmatprep.subr.bf16.mxu0 %v4468_v15  ;;  %4273 = vmatprep.subr.bf16.mxu1 %v4655_v16  ;;  %v445_v3 = vpack.c.bf16 %v421_v58, %v420_v53  ;;  %v393_v26 = vadd.f32 %v4706_v31, %v354_v12  ;;  %v3548_v39 = vunpack.c.l.bf16 %v3686_v21  ;;  %v3549_v58 = vunpack.c.h.bf16 %v3686_v21  ;;  %v4480_v12 = vld [vmem:[%s5979_s3 + $0xc8] sm:$0xff]  }
  0x1a   : > { %v446_v5 = vpack.c.bf16 %v423_v60, %v422_v59  ;;  %v356_v33 = vmul.f32 %v3585_v14, %v4701_v30  ;;  %v424_v37 = vmax.f32 %v392_v25, 0.0  ;;  %v3696_v59 = vld [vmem:[%s4676_s20 + $0x58] sm:$0xff]  }
  0x1b   : > { %v511_v15 = vshrl.u32 %v445_v3, 16  ;;  %v425_v38 = vmax.f32 %v393_v26, 0.0  ;;  %v337_v8 = vmul.f32 %v3548_v39, %v4701_v30 }
  0x1c   : > { %3727 = vmatpush3.bf16.msra.mxu0 %v4470_v17  ;;  %4281 = vmatpush3.bf16.msra.mxu1 %v4655_v16  ;;  %v514_v17 = vshll.u32 %v445_v3, 16  ;;  %v521_v20 = vshll.u32 %v446_v5, 16  ;;  %v395_v54 = vadd.f32 %v4706_v31, %v356_v33 }
  0x1d   : > { %3728 = vmatprep.subr.bf16.mxu0 %v4471_v18  ;;  %4274 = vmatprep.subr.bf16.mxu1 %v4669_v19  ;;  %v518_v18 = vshrl.u32 %v446_v5, 16  ;;  %v513_v28 = vrot.slane %v511_v15, 7  ;;  %v447_v49 = vpack.c.bf16 %v425_v38, %v424_v37 }
  0x1e   : > { %v427_v5 = vmax.f32 %v395_v54, 0.0 }
  0x1f   : > { %v520_v29 = vrot.slane %v518_v18, 7  ;;  %v4760_v40 = vsel %vm4694_vm2, %v513_v28, 0  ;;  %v525_v55 = vshrl.u32 %v447_v49, 16  ;;  %v528_v56 = vshll.u32 %v447_v49, 16  ;;  %v4483_v49 = vld [vmem:[%s5979_s3 + $0x118] sm:$0xff]  }
  0x20   : > { %3729 = vmatpush3.bf16.msra.mxu0 %v4473_v22  ;;  %4282 = vmatpush3.bf16.msra.mxu1 %v4669_v19  ;;  %v406_v22 = vmax.f32 %v374_v9, 0.0  ;;  %v926_v43 = vrot.slane %v4760_v40, 1  ;;  %v338_v9 = vmul.f32 %v3549_v58, %v4701_v30 }
  0x21   : > { %3730 = vmatprep.subr.bf16.mxu0 %v4474_v23  ;;  %4275 = vmatprep.subr.bf16.mxu1 %v4688_v24  ;;  %v407_v23 = vmax.f32 %v375_v11, 0.0  ;;  %v523_v41 = vor.u32 %v521_v20, %v520_v29  ;;  %v4764_v42 = vsel %vm4694_vm2, %v520_v29, 0  ;;  %v527_v3 = vrot.slane %v525_v55, 7  ;;  %v3687_v55 = vld [vmem:[%s4676_s20 + $0x10] sm:$0xff]  }
  0x22   : > { %v929_v44 = vrot.slane %v4764_v42, 1  ;;  %v3588_v11 = vunpack.c.l.bf16 %v3696_v59  ;;  %v377_v25 = vadd.f32 %v4706_v31, %v338_v9  ;;  %v3589_v29 = vunpack.c.h.bf16 %v3696_v59 }
  0x23   : > { %v4776_v48 = vsel %vm4694_vm2, 0, %v523_v41  ;;  %v530_v18 = vor.u32 %v528_v56, %v527_v3  ;;  %v4818_v20 = vsel %vm4694_vm2, %v527_v3, 0 }
  0x24   : > { %3731 = vmatpush3.bf16.msra.mxu0 %v4476_v36  ;;  %4283 = vmatpush3.bf16.msra.mxu1 %v4688_v24  ;;  %v438_v36 = vpack.c.bf16 %v407_v23, %v406_v22  ;;  %v928_v51 = vrot.slane %v4776_v48, 1  ;;  %v4481_v22 = vld [vmem:[%s5979_s3 + $0x110] sm:$0xff]   ;;  %v376_v23 = vadd.f32 %v4706_v31, %v337_v8  ;;  %v409_v41 = vmax.f32 %v377_v25, 0.0 }
  0x25   : > { %4124 = vmatprep.subr.bf16.mxu0 %v4585_v1  ;;  %3852 = vmatprep.subr.bf16.mxu1 %v4477_v47 }
  0x26   : > { %v462_v45 = vshrl.u32 %v438_v36, 16  ;;  %v465_v46 = vshll.u32 %v438_v36, 16  ;;  %v4791_v61 = vsel %vm900_vm4, %v928_v51, %v929_v44  ;;  %v408_v38 = vmax.f32 %v376_v23, 0.0 }
  0x27   : > { %1258 = vmatmul.mubr.bf16.vlgmr.msra.gmra.mrb[0].mxu0 %v4710_v34  ;;  %v358_v44 = vmul.f32 %v3589_v29, %v4701_v30 }
  0x28   : > { %4125 = vmatpush3.bf16.msra.mxu0 %v4585_v1  ;;  %v516_v1 = vor.u32 %v514_v17, %v513_v28  ;;  %v464_v53 = vrot.slane %v462_v45, 7  ;;  %v932_v28 = vrot.slane %v4818_v20, 1 }
  0x29   : > { %4126 = vmatprep.subr.bf16.mxu0 %v4598_v4  ;;  %v397_v54 = vadd.f32 %v4706_v31, %v358_v44 }
  0x2a   : > { %v4772_v47 = vsel %vm4694_vm2, 0, %v516_v1  ;;  %v467_v0 = vor.u32 %v465_v46, %v464_v53  ;;  %v4798_v2 = vsel %vm4694_vm2, %v464_v53, 0  ;;  %v4482_v1 = vld [vmem:[%s5979_s3 + $0xd0] sm:$0xff]  }
  0x2b   : > { %v925_v50 = vrot.slane %v4772_v47, 1  ;;  %v429_v9 = vmax.f32 %v397_v54, 0.0 }
  0x2c   : > { %4127 = vmatpush3.bf16.msra.mxu0 %v4598_v4  ;;  %v394_v4 = vadd.f32 %v4706_v31, %v355_v32  ;;  %v4806_v6 = vsel %vm4694_vm2, 0, %v467_v0  ;;  %v3697_v32 = vld [vmem:[%s4676_s20 + $0x60] sm:$0xff]  }
  0x2d   : > { %4128 = vmatprep.subr.bf16.mxu0 %v4610_v7  ;;  %v4788_v60 = vsel %vm900_vm4, %v925_v50, %v926_v43  ;;  %v658_v14 = vshrl.u32 %v4806_v6, 16  ;;  %v660_v15 = vshll.u32 %v4806_v6, 16  ;;  %v357_v43 = vmul.f32 %v3588_v11, %v4701_v30 }
  0x2e   : > { %v426_v57 = vmax.f32 %v394_v4, 0.0  ;;  %4156 = vmatprep.mubr.bf16.mxu1 %v4788_v60  ;;  %v3592_v4 = vunpack.c.l.bf16 %v3697_v32  ;;  %v3593_v50 = vunpack.c.h.bf16 %v3697_v32  ;;  %v4486_v32 = vld [vmem:[%s5979_s3 + $0xe0] sm:$0xff]  }
  0x2f   : > { %4157 = vmatmul.mubr.bf16.vlgmr.msra.gmra.mrb[0].mxu1 %v4791_v61  ;;  %v662_v26 = vrot.slane %v660_v15, 1  ;;  %v396_v53 = vadd.f32 %v4706_v31, %v357_v43  ;;  %v4488_v43 = vld [vmem:[%s5979_s3 + $0xe8] sm:$0xff]  }
  0x30   : > { %4129 = vmatpush3.bf16.msra.mxu0 %v4610_v7  ;;  %v665_v7 = vshll.u32 %v4798_v2, 16  ;;  %3853 = vmatpush3.bf16.msra.mxu1 %v4478_v52  ;;  %v448_v21 = vpack.c.bf16 %v427_v5, %v426_v57  ;;  %v439_v52 = vpack.c.bf16 %v409_v41, %v408_v38  ;;  %v359_v58 = vmul.f32 %v3592_v4, %v4701_v30  ;;  %v4908_v4 = vld [vmem:[%s4676_s20 + $0x70] sm:$0xff]  }
  0x31   : > { %4130 = vmatprep.subr.bf16.mxu0 %v4623_v10  ;;  %3854 = vmatprep.subr.bf16.mxu1 %v4479_v63  ;;  %v663_v39 = vor.u32 %v662_v26, %v658_v14  ;;  %v360_v59 = vmul.f32 %v3593_v50, %v4701_v30  ;;  %v4864_v63 = vld [vmem:[%s4676_s20 + $0x68] sm:$0xff]   ;;  %v428_v5 = vmax.f32 %v396_v53, 0.0  ;;  %v4485_v14 = vld [vmem:[%s5979_s3 + $0x120] sm:$0xff]  }
  0x32   : > { %v667_v17 = vrot.slane %v665_v7, 1  ;;  %v532_v36 = vshrl.u32 %v448_v21, 16  ;;  %v535_v37 = vshll.u32 %v448_v21, 16  ;;  %v469_v7 = vshrl.u32 %v439_v52, 16 }
  0x33   : > { %v472_v3 = vshll.u32 %v439_v52, 16  ;;  %v398_v11 = vadd.f32 %v4706_v31, %v359_v58  ;;  %v3553_v21 = vunpack.c.h.bf16 %v3687_v55  ;;  %v3596_v26 = vunpack.c.l.bf16 %v4864_v63 }
  0x34   : > { %4131 = vmatpush3.bf16.msra.mxu0 %v4623_v10  ;;  %v4828_v10 = vsel %vm4694_vm2, 0, %v530_v18  ;;  %3855 = vmatpush3.bf16.msra.mxu1 %v4480_v12  ;;  %v534_v46 = vrot.slane %v532_v36, 7  ;;  %v4847_v51 = vsel %vm644_vm3, %v663_v39, %v667_v17  ;;  %v399_v12 = vadd.f32 %v4706_v31, %v360_v59  ;;  %v4489_v59 = vld [vmem:[%s5979_s3 + $0x130] sm:$0xff]  }
  0x35   : > { %4132 = vmatprep.subr.bf16.mxu0 %v4638_v13  ;;  %v931_v33 = vrot.slane %v4828_v10, 1  ;;  %3856 = vmatprep.subr.bf16.mxu1 %v4481_v22  ;;  %v471_v17 = vrot.slane %v469_v7, 7  ;;  %v3552_v18 = vunpack.c.l.bf16 %v3687_v55  ;;  %v449_v22 = vpack.c.bf16 %v429_v9, %v428_v5 }
  0x36   : > { %1265 = vmatprep.mubr.bf16.mxu0 %v4847_v51  ;;  %v537_v56 = vor.u32 %v535_v37, %v534_v46  ;;  %v4859_v57 = vsel %vm4694_vm2, %v534_v46, 0  ;;  %v430_v23 = vmax.f32 %v398_v11, 0.0  ;;  %v431_v25 = vmax.f32 %v399_v12, 0.0  ;;  %v4500_v12 = vld [vmem:[%s5979_s3 + $0x1c0] sm:$0xff]  }
  0x37   : > { %v4840_v45 = vsel %vm900_vm4, %v931_v33, %v932_v28  ;;  %1266 = vmatmul.mubr.bf16.gmra.mrb[4].mxu0 %v4806_v6  ;;  %v935_v0 = vrot.slane %v4859_v57, 1  ;;  %v474_v29 = vor.u32 %v472_v3, %v471_v17  ;;  %v339_v33 = vmul.f32 %v3552_v18, %v4701_v30 }
  0x38   : > { %4133 = vmatpush3.bf16.msra.mxu0 %v4638_v13  ;;  %4160 = vmatprep.mubr.bf16.mxu1 %v4840_v45  ;;  %v4484_v13 = vld [vmem:[%s5979_s3 + $0xd8] sm:$0xff]   ;;  %v4870_v8 = vsel %vm4694_vm2, 0, %v537_v56  ;;  %v539_v37 = vshrl.u32 %v449_v22, 16  ;;  %v542_v38 = vshll.u32 %v449_v22, 16  ;;  %v450_v39 = vpack.c.bf16 %v431_v25, %v430_v23 }
  0x39   : > { %4134 = vmatprep.subr.bf16.mxu0 %v4655_v16  ;;  %3857 = vmatpush3.bf16.msra.mxu1 %v4482_v1  ;;  %v934_v15 = vrot.slane %v4870_v8, 1  ;;  %v4487_v1 = vld [vmem:[%s5979_s3 + $0x128] sm:$0xff]   ;;  %v4899_v41 = vsel %vm4694_vm2, 0, %v474_v29  ;;  %v340_v44 = vmul.f32 %v3553_v21, %v4701_v30  ;;  %v378_v46 = vadd.f32 %v4706_v31, %v339_v33  ;;  %v4490_v21 = vld [vmem:[%s5979_s3 + $0xf0] sm:$0xff]   ;;  %v3688_v29 = vld [vmem:[%s4676_s20 + $0x18] sm:$0xff]  }
  0x3a   : > { %3858 = vmatprep.subr.bf16.mxu1 %v4483_v49  ;;  %v3597_v49 = vunpack.c.h.bf16 %v4864_v63  ;;  %v670_v50 = vshrl.u32 %v4899_v41, 16  ;;  %v541_v53 = vrot.slane %v539_v37, 7  ;;  %v546_v54 = vshrl.u32 %v450_v39, 16 }
  0x3b   : > { %v4882_v28 = vsel %vm900_vm4, %v934_v15, %v935_v0  ;;  %v549_v55 = vshll.u32 %v450_v39, 16  ;;  %v379_v56 = vadd.f32 %v4706_v31, %v340_v44  ;;  %v410_v58 = vmax.f32 %v378_v46, 0.0  ;;  %v4492_v46 = vld [vmem:[%s5979_s3 + $0xf8] sm:$0xff]  }
  0x3c   : > { %4135 = vmatpush3.bf16.msra.mxu0 %v4655_v16  ;;  %v4886_v16 = vsel %vm4694_vm2, %v471_v17, 0  ;;  %4161 = vmatmul.mubr.bf16.gmra.mrb[4].mxu1 %v4882_v28  ;;  %v4920_v0 = vsel %vm4694_vm2, %v541_v53, 0  ;;  %v361_v7 = vmul.f32 %v3596_v26, %v4701_v30  ;;  %v548_v5 = vrot.slane %v546_v54, 7  ;;  %v4491_v26 = vld [vmem:[%s5979_s3 + $0x138] sm:$0xff]  }
  0x3d   : > { %4136 = vmatprep.subr.bf16.mxu0 %v4669_v19  ;;  %3859 = vmatpush3.bf16.msra.mxu1 %v4484_v13  ;;  %v677_v36 = vshll.u32 %v4886_v16, 16  ;;  %v672_v13 = vshll.u32 %v4899_v41, 16  ;;  %v938_v3 = vrot.slane %v4920_v0, 1  ;;  %v411_v9 = vmax.f32 %v379_v56, 0.0  ;;  %v4972_v56 = vld [vmem:[%s5979_s3 + $0x140] sm:$0xff]  }
  0x3e   : > { %3860 = vmatprep.subr.bf16.mxu1 %v4485_v14  ;;  %v362_v11 = vmul.f32 %v3597_v49, %v4701_v30  ;;  %v400_v17 = vadd.f32 %v4706_v31, %v361_v7  ;;  %v3600_v18 = vunpack.c.l.bf16 %v4908_v4  ;;  %v4941_v23 = vsel %vm4694_vm2, %v548_v5, 0 }
  0x3f   : > { %v679_v52 = vrot.slane %v677_v36, 1  ;;  %v674_v63 = vrot.slane %v672_v13, 1  ;;  %v440_v25 = vpack.c.bf16 %v411_v9, %v410_v58  ;;  %v941_v36 = vrot.slane %v4941_v23, 1 }
  0x40   : > { %4137 = vmatpush3.bf16.msra.mxu0 %v4669_v19  ;;  %v544_v19 = vor.u32 %v542_v38, %v541_v53  ;;  %v401_v37 = vadd.f32 %v4706_v31, %v362_v11  ;;  %v432_v38 = vmax.f32 %v400_v17, 0.0  ;;  %v3601_v13 = vunpack.c.h.bf16 %v4908_v4 }
  0x41   : > { %4138 = vmatprep.subr.bf16.mxu0 %v4688_v24  ;;  %3861 = vmatpush3.bf16.msra.mxu1 %v4486_v32  ;;  %v675_v14 = vor.u32 %v674_v63, %v670_v50  ;;  %v3689_v32 = vld [vmem:[%s4676_s20 + $0x20] sm:$0xff]   ;;  %v479_v44 = vshll.u32 %v440_v25, 16  ;;  %v3556_v54 = vunpack.c.l.bf16 %v3688_v29 }
  0x42   : > { %3862 = vmatprep.subr.bf16.mxu1 %v4487_v1  ;;  %v4931_v15 = vsel %vm4694_vm2, 0, %v544_v19  ;;  %v433_v50 = vmax.f32 %v401_v37, 0.0  ;;  %v3560_v58 = vunpack.c.l.bf16 %v3689_v32  ;;  %v364_v19 = vmul.f32 %v3601_v13, %v4701_v30 }
  0x43   : > { %v937_v22 = vrot.slane %v4931_v15, 1  ;;  %v4949_v33 = vsel %vm644_vm3, %v675_v14, %v679_v52  ;;  %v363_v52 = vmul.f32 %v3600_v18, %v4701_v30 }
  0x44   : > { %4139 = vmatpush3.bf16.msra.mxu0 %v4688_v24  ;;  %v551_v24 = vor.u32 %v549_v55, %v548_v5  ;;  %1273 = vmatprep.mubr.bf16.mxu0 %v4949_v33  ;;  %v3557_v55 = vunpack.c.h.bf16 %v3688_v29  ;;  %v451_v63 = vpack.c.bf16 %v433_v50, %v432_v38  ;;  %v341_v5 = vmul.f32 %v3556_v54, %v4701_v30 }
  0x45   : > { %3863 = vmatpush3.bf16.msra.mxu1 %v4488_v43  ;;  %3988 = vmatprep.subr.bf16.mxu0 %v4500_v12  ;;  %v4955_v39 = vsel %vm900_vm4, %v937_v22, %v938_v3  ;;  %v476_v43 = vshrl.u32 %v440_v25, 16  ;;  %v402_v4 = vadd.f32 %v4706_v31, %v363_v52  ;;  %v403_v17 = vadd.f32 %v4706_v31, %v364_v19 }
  0x46   : > { %3864 = vmatprep.subr.bf16.mxu1 %v4489_v59  ;;  %v4959_v1 = vsel %vm4694_vm2, 0, %v551_v24  ;;  %4164 = vmatprep.mubr.bf16.mxu1 %v4955_v39  ;;  %v342_v9 = vmul.f32 %v3557_v55, %v4701_v30  ;;  %v553_v12 = vshrl.u32 %v451_v63, 16  ;;  %v556_v14 = vshll.u32 %v451_v63, 16 }
  0x47   : > { %1274 = vmatmul.mubr.bf16.gmra.mrb[8].mxu0 %v4899_v41  ;;  %v940_v49 = vrot.slane %v4959_v1, 1  ;;  %v478_v53 = vrot.slane %v476_v43, 7  ;;  %v380_v22 = vadd.f32 %v4706_v31, %v341_v5  ;;  %v435_v37 = vmax.f32 %v403_v17, 0.0 }
  0x48   : > { %v381_v24 = vadd.f32 %v4706_v31, %v342_v9  ;;  %v343_v52 = vmul.f32 %v3560_v58, %v4701_v30  ;;  %v3691_v58 = vld [vmem:[%s4676_s20 + $0x30] sm:$0xff]  }
  0x49   : > { %3865 = vmatpush3.bf16.msra.mxu1 %v4490_v21  ;;  %v4975_v59 = vsel %vm900_vm4, %v940_v49, %v941_v36  ;;  %v481_v7 = vor.u32 %v479_v44, %v478_v53  ;;  %v4982_v3 = vsel %vm4694_vm2, %v478_v53, 0  ;;  %v434_v21 = vmax.f32 %v402_v4, 0.0  ;;  %v3690_v49 = vld [vmem:[%s4676_s20 + $0x28] sm:$0xff]  }
  0x4a   : > { %3866 = vmatprep.subr.bf16.mxu1 %v4491_v26  ;;  %4165 = vmatmul.mubr.bf16.gmra.mrb[8].mxu1 %v4975_v59  ;;  %v689_v11 = vshll.u32 %v4982_v3, 16  ;;  %v555_v36 = vrot.slane %v553_v12, 7  ;;  %v412_v38 = vmax.f32 %v380_v22, 0.0  ;;  %v413_v43 = vmax.f32 %v381_v24, 0.0 }
  0x4b   : > { %v4990_v18 = vsel %vm4694_vm2, 0, %v481_v7  ;;  %v3561_v44 = vunpack.c.h.bf16 %v3689_v32  ;;  %v452_v54 = vpack.c.bf16 %v435_v37, %v434_v21  ;;  %v382_v4 = vadd.f32 %v4706_v31, %v343_v52 }
  0x4c   : > { %v682_v25 = vshrl.u32 %v4990_v18, 16  ;;  %v684_v26 = vshll.u32 %v4990_v18, 16  ;;  %v691_v29 = vrot.slane %v689_v11, 1  ;;  %v5000_v13 = vsel %vm4694_vm2, %v555_v36, 0 }
  0x4d   : > { %3867 = vmatpush3.bf16.msra.mxu1 %v4492_v46  ;;  %v558_v46 = vor.u32 %v556_v14, %v555_v36  ;;  %v944_v53 = vrot.slane %v5000_v13, 1  ;;  %v441_v55 = vpack.c.bf16 %v413_v43, %v412_v38  ;;  %v344_v63 = vmul.f32 %v3561_v44, %v4701_v30 }
  0x4e   : > { %4172 = vmatprep.subr.bf16.mxu1 %v4972_v56  ;;  %v686_v50 = vrot.slane %v684_v26, 1  ;;  %v3564_v7 = vunpack.c.l.bf16 %v3690_v49  ;;  %v560_v9 = vshrl.u32 %v452_v54, 16  ;;  %v563_v11 = vshll.u32 %v452_v54, 16 }
  0x4f   : > { %v5007_v32 = vsel %vm4694_vm2, 0, %v558_v46  ;;  %v483_v12 = vshrl.u32 %v441_v55, 16  ;;  %v486_v17 = vshll.u32 %v441_v55, 16  ;;  %v383_v21 = vadd.f32 %v4706_v31, %v344_v63 }
  0x50   : > { %v687_v19 = vor.u32 %v686_v50, %v682_v25  ;;  %v943_v5 = vrot.slane %v5007_v32, 1  ;;  %v414_v22 = vmax.f32 %v382_v4, 0.0  ;;  %v562_v25 = vrot.slane %v560_v9, 7 }
  0x51   : > { %v485_v26 = vrot.slane %v483_v12, 7  ;;  %v3565_v36 = vunpack.c.h.bf16 %v3690_v49  ;;  %v415_v37 = vmax.f32 %v383_v21, 0.0  ;;  %v3568_v38 = vunpack.c.l.bf16 %v3691_v58 }
  0x52   : > { %v5013_v14 = vsel %vm644_vm3, %v687_v19, %v691_v29  ;;  %v5018_v24 = vsel %vm900_vm4, %v943_v5, %v944_v53  ;;  %v345_v29 = vmul.f32 %v3564_v7, %v4701_v30  ;;  %v3569_v43 = vunpack.c.h.bf16 %v3691_v58 }
  0x53   : > { %1281 = vmatprep.mubr.bf16.mxu0 %v5013_v14  ;;  %4168 = vmatprep.mubr.bf16.mxu1 %v5018_v24  ;;  %v565_v44 = vor.u32 %v563_v11, %v562_v25  ;;  %v5025_v50 = vsel %vm4694_vm2, %v562_v25, 0  ;;  %v488_v46 = vor.u32 %v486_v17, %v485_v26  ;;  %v5029_v52 = vsel %vm4694_vm2, %v485_v26, 0 }
  0x54   : > { %1282 = vmatmul.mubr.bf16.gmra.mrb[12].mxu0 %v4990_v18  ;;  %v947_v49 = vrot.slane %v5025_v50, 1  ;;  %v701_v53 = vshll.u32 %v5029_v52, 16  ;;  %v442_v54 = vpack.c.bf16 %v415_v37, %v414_v22  ;;  %v346_v55 = vmul.f32 %v3565_v36, %v4701_v30 }
  0x55   : > { %v5036_v63 = vsel %vm4694_vm2, 0, %v565_v44  ;;  %v5040_v19 = vsel %vm4694_vm2, 0, %v488_v46  ;;  %v384_v4 = vadd.f32 %v4706_v31, %v345_v29  ;;  %v347_v7 = vmul.f32 %v3568_v38, %v4701_v30 }
  0x56   : > { %v946_v5 = vrot.slane %v5036_v63, 1  ;;  %v694_v9 = vshrl.u32 %v5040_v19, 16  ;;  %v696_v11 = vshll.u32 %v5040_v19, 16  ;;  %v703_v12 = vrot.slane %v701_v53, 1 }
  0x57   : > { %v490_v58 = vshrl.u32 %v442_v54, 16  ;;  %v493_v17 = vshll.u32 %v442_v54, 16  ;;  %v385_v21 = vadd.f32 %v4706_v31, %v346_v55  ;;  %v416_v22 = vmax.f32 %v384_v4, 0.0 }
  0x58   : > { %v5049_v25 = vsel %vm900_vm4, %v946_v5, %v947_v49  ;;  %v698_v26 = vrot.slane %v696_v11, 1  ;;  %v348_v36 = vmul.f32 %v3569_v43, %v4701_v30  ;;  %v386_v37 = vadd.f32 %v4706_v31, %v347_v7 }
  0x59   : > { %4169 = vmatmul.mubr.bf16.gmra.mrb[12].mxu1 %v5049_v25  ;;  %v492_v29 = vrot.slane %v490_v58, 7  ;;  %v417_v38 = vmax.f32 %v385_v21, 0.0  ;;  %v4494_v58 = vld [vmem:[%s5979_s3 + $0x148] sm:$0xff]  }
  0x5a   : > { %v699_v44 = vor.u32 %v698_v26, %v694_v9  ;;  %1868 = vmatprep.mubr.bf16.mxu1 %v4847_v51  ;;  %v387_v46 = vadd.f32 %v4706_v31, %v348_v36  ;;  %v418_v53 = vmax.f32 %v386_v37, 0.0 }
  0x5b   : > { %v495_v54 = vor.u32 %v493_v17, %v492_v29  ;;  %v5058_v49 = vsel %vm4694_vm2, %v492_v29, 0  ;;  %v443_v55 = vpack.c.bf16 %v417_v38, %v416_v22 }
  0x5c   : > { %v5061_v30 = vsel %vm644_vm3, %v699_v44, %v703_v12  ;;  %v713_v43 = vshll.u32 %v5058_v49, 16  ;;  %v419_v4 = vmax.f32 %v387_v46, 0.0 }
  0x5d   : > { %1289 = vmatprep.mubr.bf16.mxu0 %v5061_v30  ;;  %v5067_v51 = vsel %vm4694_vm2, 0, %v495_v54  ;;  %v497_v31 = vshrl.u32 %v443_v55, 16  ;;  %v500_v7 = vshll.u32 %v443_v55, 16 }
  0x5e   : > { %1290 = vmatmul.mubr.bf16.gmra.mrb[16].mxu0 %v5040_v19  ;;  %v706_v5 = vshrl.u32 %v5067_v51, 16  ;;  %v708_v9 = vshll.u32 %v5067_v51, 16  ;;  %v444_v11 = vpack.c.bf16 %v419_v4, %v418_v53  ;;  %v715_v21 = vrot.slane %v713_v43, 1  ;;  %v4495_v53 = vld [vmem:[%s5979_s3 + $0x150] sm:$0xff]  }
  0x5f   : > { %v499_v12 = vrot.slane %v497_v31, 7 }
  0x60   : > { %v710_v17 = vrot.slane %v708_v9, 1  ;;  %v504_v22 = vshrl.u32 %v444_v11, 16  ;;  %v507_v37 = vshll.u32 %v444_v11, 16  ;;  %v4496_v11 = vld [vmem:[%s5979_s3 + $0x158] sm:$0xff]  }
  0x61   : > { %1869 = vmatmul.mubr.bf16.vlgmr.msra.gmra.mrb[16].mxu1 %v4806_v6  ;;  %v502_v26 = vor.u32 %v500_v7, %v499_v12  ;;  %v5078_v36 = vsel %vm4694_vm2, %v499_v12, 0 }
  0x62   : > { %4173 = vmatpush3.bf16.msra.mxu1 %v4972_v56  ;;  %v711_v29 = vor.u32 %v710_v17, %v706_v5  ;;  %1876 = vmatprep.mubr.bf16.mxu1 %v4949_v33  ;;  %v725_v38 = vshll.u32 %v5078_v36, 16  ;;  %v506_v44 = vrot.slane %v504_v22, 7  ;;  %v744_v22 = vshll.u32 %v4772_v47, 16 }
  0x63   : > { %v5085_v46 = vsel %vm4694_vm2, 0, %v502_v26  ;;  %4174 = vmatprep.subr.bf16.mxu1 %v4494_v58 }
  0x64   : > { %v5091_v54 = vsel %vm644_vm3, %v711_v29, %v715_v21  ;;  %v718_v56 = vshrl.u32 %v5085_v46, 16  ;;  %v720_v55 = vshll.u32 %v5085_v46, 16  ;;  %v509_v43 = vor.u32 %v507_v37, %v506_v44  ;;  %v4497_v29 = vld [vmem:[%s5979_s3 + $0x160] sm:$0xff]  }
  0x65   : > { %1297 = vmatprep.mubr.bf16.mxu0 %v5091_v54  ;;  %v5098_v4 = vsel %vm4694_vm2, %v506_v44, 0  ;;  %v727_v7 = vrot.slane %v725_v38, 1  ;;  %v742_v44 = vshrl.u32 %v4772_v47, 16 }
  0x66   : > { %1298 = vmatmul.mubr.bf16.gmra.mrb[20].mxu0 %v5067_v51  ;;  %v722_v31 = vrot.slane %v720_v55, 1  ;;  %4175 = vmatpush3.bf16.msra.mxu1 %v4494_v58  ;;  %v737_v5 = vshll.u32 %v5098_v4, 16  ;;  %v5104_v9 = vsel %vm4694_vm2, 0, %v509_v43  ;;  %v749_v55 = vshll.u32 %v4760_v40, 16  ;;  %v4499_v40 = vld [vmem:[%s5979_s3 + $0x170] sm:$0xff]  }
  0x67   : > { %4176 = vmatprep.subr.bf16.mxu1 %v4495_v53  ;;  %v730_v17 = vshrl.u32 %v5104_v9, 16  ;;  %v732_v21 = vshll.u32 %v5104_v9, 16 }
  0x68   : > { %v723_v12 = vor.u32 %v722_v31, %v718_v56  ;;  %v739_v37 = vrot.slane %v737_v5, 1  ;;  %v746_v56 = vrot.slane %v744_v22, 1  ;;  %v756_v5 = vshll.u32 %v4776_v48, 16  ;;  %v4508_v22 = vld [vmem:[%s5979_s3 + $0x178] sm:$0xff]  }
  0x69   : > { %1877 = vmatmul.mubr.bf16.gmra.mrb[20].mxu1 %v4899_v41  ;;  %v734_v26 = vrot.slane %v732_v21, 1  ;;  %v761_v21 = vshll.u32 %v4764_v42, 16  ;;  %v5153_v42 = vld [vmem:[%s5979_s3 + $0x200] sm:$0xff]  }
  0x6a   : > { %v5114_v58 = vsel %vm644_vm3, %v723_v12, %v727_v7  ;;  %1884 = vmatprep.mubr.bf16.mxu1 %v5013_v14  ;;  %4177 = vmatpush3.bf16.msra.mxu1 %v4495_v53  ;;  %v4498_v53 = vld [vmem:[%s5979_s3 + $0x168] sm:$0xff]   ;;  %v747_v31 = vor.u32 %v746_v56, %v742_v44  ;;  %v751_v7 = vrot.slane %v749_v55, 1  ;;  %v754_v12 = vshrl.u32 %v4776_v48, 16 }
  0x6b   : > { %1305 = vmatprep.mubr.bf16.mxu0 %v5114_v58  ;;  %4178 = vmatprep.subr.bf16.mxu1 %v4496_v11  ;;  %v735_v38 = vor.u32 %v734_v26, %v730_v17  ;;  %v758_v17 = vrot.slane %v756_v5, 1  ;;  %v766_v44 = vshrl.u32 %v4828_v10, 16  ;;  %v773_v55 = vshll.u32 %v4818_v20, 16 }
  0x6c   : > { %v778_v20 = vshrl.u32 %v4870_v8, 16 }
  0x6d   : > { %v5125_v43 = vsel %vm644_vm3, %v735_v38, %v739_v37  ;;  %v759_v26 = vor.u32 %v758_v17, %v754_v12  ;;  %v763_v37 = vrot.slane %v761_v21, 1  ;;  %v785_v12 = vshll.u32 %v4859_v57, 16 }
  0x6e   : > { %1306 = vmatmul.mubr.bf16.gmra.mrb[24].mxu0 %v5085_v46  ;;  %4179 = vmatpush3.bf16.msra.mxu1 %v4496_v11  ;;  %v5138_v11 = vsel %vm644_vm3, %v747_v31, %v751_v7  ;;  %v775_v31 = vrot.slane %v773_v55, 1  ;;  %v780_v7 = vshll.u32 %v4870_v8, 16  ;;  %v797_v57 = vshll.u32 %v4920_v0, 16 }
  0x6f   : > { %1313 = vmatprep.mubr.bf16.mxu0 %v5125_v43  ;;  %4180 = vmatprep.subr.bf16.mxu1 %v4497_v29  ;;  %v5156_v38 = vsel %vm644_vm3, %v759_v26, %v763_v37  ;;  %v787_v21 = vrot.slane %v785_v12, 1  ;;  %v790_v37 = vshrl.u32 %v4931_v15, 16  ;;  %v804_v55 = vshll.u32 %v4959_v1, 16 }
  0x70   : > { %v809_v0 = vshll.u32 %v4941_v23, 16  ;;  %v816_v12 = vshll.u32 %v5007_v32, 16  ;;  %v821_v23 = vshll.u32 %v5000_v13, 16 }
  0x71   : > { %1885 = vmatmul.mubr.bf16.gmra.mrb[24].mxu1 %v4990_v18 }
  0x72   : > { %1892 = vmatprep.mubr.bf16.mxu1 %v5061_v30  ;;  %4181 = vmatpush3.bf16.msra.mxu1 %v4497_v29  ;;  %v768_v29 = vshll.u32 %v4828_v10, 16 }
  0x73   : > { %4182 = vmatprep.subr.bf16.mxu1 %v4498_v53 }
  0x74   : > { %v770_v56 = vrot.slane %v768_v29, 1 }
  0x76   : > { %1314 = vmatmul.mubr.bf16.gmra.mrb[28].mxu0 %v5104_v9  ;;  %4183 = vmatpush3.bf16.msra.mxu1 %v4498_v53  ;;  %v771_v53 = vor.u32 %v770_v56, %v766_v44  ;;  %v799_v56 = vrot.slane %v797_v57, 1 }
  0x77   : > { %1321 = vmatprep.mubr.bf16.mxu0 %v5138_v11  ;;  %4184 = vmatprep.subr.bf16.mxu1 %v4499_v40 }
  0x78   : > { %v5167_v5 = vsel %vm644_vm3, %v771_v53, %v775_v31  ;;  %v802_v31 = vshrl.u32 %v4959_v1, 16 }
  0x79   : > { %1893 = vmatmul.mubr.bf16.gmra.mrb[28].mxu1 %v5040_v19 }
  0x7a   : > { %1900 = vmatprep.mubr.bf16.mxu1 %v5091_v54  ;;  %4185 = vmatpush3.bf16.msra.mxu1 %v4499_v40  ;;  %v782_v40 = vrot.slane %v780_v7, 1  ;;  %v806_v7 = vrot.slane %v804_v55, 1 }
  0x7b   : > { %4186 = vmatprep.subr.bf16.mxu1 %v4508_v22 }
  0x7c   : > { %v783_v17 = vor.u32 %v782_v40, %v778_v20  ;;  %v807_v20 = vor.u32 %v806_v7, %v802_v31  ;;  %v811_v40 = vrot.slane %v809_v0, 1  ;;  %v826_v31 = vshrl.u32 %v5036_v63, 16 }
  0x7d   : > { %v833_v7 = vshll.u32 %v5025_v50, 16  ;;  %v4526_v50 = vld [vmem:[%s5978_s2] ss:$0 sm:$0xff] }
  0x7e   : > { %1322 = vmatmul.mubr.bf16.gmra.mrb[32].mxu0 %v4772_v47  ;;  %4187 = vmatpush3.bf16.msra.mxu1 %v4508_v22  ;;  %v792_v22 = vshll.u32 %v4931_v15, 16  ;;  %v5177_v26 = vsel %vm644_vm3, %v783_v17, %v787_v21  ;;  %v5197_v17 = vsel %vm644_vm3, %v807_v20, %v811_v40  ;;  %v814_v21 = vshrl.u32 %v5007_v32, 16  ;;  %v4525_v20 = vld [vmem:[%s5977_s1] ss:$0 sm:$0xff] }
  0x7f   : > { %1329 = vmatprep.mubr.bf16.mxu0 %v5156_v38  ;;  %4220 = vmatprep.subr.bf16.mxu1 %v5153_v42 }
  0x80   : > { %v794_v29 = vrot.slane %v792_v22, 1  ;;  %v818_v22 = vrot.slane %v816_v12, 1 }
  0x81   : > { %1901 = vmatmul.mubr.bf16.gmra.mrb[32].mxu1 %v5067_v51 }
  0x82   : > { %1908 = vmatprep.mubr.bf16.mxu1 %v5114_v58  ;;  %v795_v44 = vor.u32 %v794_v29, %v790_v37  ;;  %v3700_v37 = vld [vmem:[%s4676_s20 + $0x78] sm:$0xff]   ;;  %v828_v29 = vshll.u32 %v5036_v63, 16  ;;  %v819_v57 = vor.u32 %v818_v22, %v814_v21  ;;  %v835_v22 = vrot.slane %v833_v7, 1 }
  0x83   : > { %v3605_v55 = vunpack.c.h.bf16 %v3700_v37 }
  0x84   : > { %v5187_v53 = vsel %vm644_vm3, %v795_v44, %v799_v56  ;;  %v823_v44 = vrot.slane %v821_v23, 1  ;;  %v3604_v56 = vunpack.c.l.bf16 %v3700_v37  ;;  %v830_v0 = vrot.slane %v828_v29, 1 }
  0x85   : > { %v366_v12 = vmul.f32 %v4525_v20, %v3605_v55  ;;  %v902_v55 = vrot.slane %v4714_v35, 1  ;;  %v908_v35 = vrot.slane %v4886_v16, 1 }
  0x86   : > { %1330 = vmatmul.mubr.bf16.gmra.mrb[36].mxu0 %v4776_v48  ;;  %v5210_v13 = vsel %vm644_vm3, %v819_v57, %v823_v44  ;;  %v365_v40 = vmul.f32 %v4525_v20, %v3604_v56  ;;  %v831_v21 = vor.u32 %v830_v0, %v826_v31  ;;  %v901_v56 = vrot.slane %v4710_v34, 1 }
  0x87   : > { %1337 = vmatprep.mubr.bf16.mxu0 %v5167_v5  ;;  %v405_v37 = vadd.f32 %v4526_v50, %v366_v12  ;;  %v905_v20 = vrot.slane %v4798_v2, 1  ;;  %v907_v12 = vrot.slane %v4899_v41, 1  ;;  %v4501_v2 = vld [vmem:[%s5979_s3 + $0x180] sm:$0xff]  }
  0x88   : > { %v404_v23 = vadd.f32 %v4526_v50, %v365_v40  ;;  %v5223_v29 = vsel %vm644_vm3, %v831_v21, %v835_v22  ;;  %v5232_v7 = vsel %vm900_vm4, %v901_v56, %v902_v55  ;;  %v904_v40 = vrot.slane %v4806_v6, 1  ;;  %v4502_v6 = vld [vmem:[%s5979_s3 + $0x1c8] sm:$0xff]   ;;  %v4504_v56 = vld [vmem:[%s5979_s3 + $0x1d0] sm:$0xff]  }
  0x89   : > { %1909 = vmatmul.mubr.bf16.gmra.mrb[36].mxu1 %v5085_v46  ;;  %v437_v44 = vmax.f32 %v405_v37, 0.0  ;;  %v4503_v37 = vld [vmem:[%s5979_s3 + $0x188] sm:$0xff]   ;;  %v913_v55 = vrot.slane %v5040_v19, 1 }
  0x8a   : > { %1916 = vmatprep.mubr.bf16.mxu1 %v5125_v43  ;;  %v436_v57 = vmax.f32 %v404_v23, 0.0  ;;  %v5243_v50 = vsel %vm900_vm4, %v904_v40, %v905_v20  ;;  %v5252_v23 = vsel %vm900_vm4, %v907_v12, %v908_v35  ;;  %v4505_v20 = vld [vmem:[%s5979_s3 + $0x190] sm:$0xff]  }
  0x8c   : > { %v453_v31 = vpack.c.bf16 %v437_v44, %v436_v57  ;;  %v910_v57 = vrot.slane %v4990_v18, 1  ;;  %v911_v44 = vrot.slane %v4982_v3, 1 }
  0x8e   : > { %1338 = vmatmul.mubr.bf16.gmra.mrb[40].mxu0 %v4828_v10  ;;  %v567_v0 = vshrl.u32 %v453_v31, 16  ;;  %v570_v22 = vshll.u32 %v453_v31, 16  ;;  %v914_v31 = vrot.slane %v5029_v52, 1  ;;  %v5273_v3 = vsel %vm900_vm4, %v910_v57, %v911_v44  ;;  %v4506_v52 = vld [vmem:[%s5979_s3 + $0x1d8] sm:$0xff]  }
  0x8f   : > { %1345 = vmatprep.mubr.bf16.mxu0 %v5177_v26  ;;  %v919_v57 = vrot.slane %v5085_v46, 1  ;;  %v920_v44 = vrot.slane %v5078_v36, 1 }
  0x90   : > { %v569_v21 = vrot.slane %v567_v0, 7  ;;  %v5283_v12 = vsel %vm900_vm4, %v913_v55, %v914_v31 }
  0x91   : > { %1917 = vmatmul.mubr.bf16.gmra.mrb[40].mxu1 %v5104_v9  ;;  %v5315_v36 = vsel %vm900_vm4, %v919_v57, %v920_v44 }
  0x92   : > { %1924 = vmatprep.mubr.bf16.mxu1 %v5138_v11  ;;  %v572_v16 = vor.u32 %v570_v22, %v569_v21  ;;  %v5287_v35 = vsel %vm4694_vm2, %v569_v21, 0  ;;  %v916_v22 = vrot.slane %v5067_v51, 1  ;;  %v4509_v21 = vld [vmem:[%s5979_s3 + $0x1e0] sm:$0xff]  }
  0x93   : > { %v845_v27 = vshll.u32 %v5287_v35, 16 }
  0x94   : > { %v5268_v0 = vsel %vm4694_vm2, 0, %v572_v16 }
  0x95   : > { %v840_v40 = vshll.u32 %v5268_v0, 16  ;;  %v838_v16 = vshrl.u32 %v5268_v0, 16  ;;  %v847_v31 = vrot.slane %v845_v27, 1  ;;  %v4516_v27 = vld [vmem:[%s5979_s3 + $0x1b8] sm:$0xff]  }
  0x96   : > { %1346 = vmatmul.mubr.bf16.gmra.mrb[44].mxu0 %v4870_v8 }
  0x97   : > { %1353 = vmatprep.mubr.bf16.mxu0 %v5187_v53 }
  0x99   : > { %1925 = vmatmul.mubr.bf16.gmra.mrb[44].mxu1 %v4772_v47 }
  0x9a   : > { %1932 = vmatprep.mubr.bf16.mxu1 %v5156_v38 }
  0x9e   : > { %1354 = vmatmul.mubr.bf16.gmra.mrb[48].mxu0 %v4931_v15 }
  0x9f   : > { %1361 = vmatprep.mubr.bf16.mxu0 %v5197_v17 }
  0xa1   : > { %1933 = vmatmul.mubr.bf16.gmra.mrb[48].mxu1 %v4776_v48 }
  0xa2   : > { %1940 = vmatprep.mubr.bf16.mxu1 %v5167_v5 }
  0xa6   : > { %1362 = vmatmul.mubr.bf16.gmra.mrb[52].mxu0 %v4959_v1 }
  0xa7   : > { %1369 = vmatprep.mubr.bf16.mxu0 %v5210_v13 }
  0xa9   : > { %1941 = vmatmul.mubr.bf16.gmra.mrb[52].mxu1 %v4828_v10 }
  0xaa   : > { %1948 = vmatprep.mubr.bf16.mxu1 %v5177_v26 }
  0xae   : > { %1370 = vmatmul.mubr.bf16.gmra.mrb[56].mxu0 %v5007_v32 }
  0xaf   : > { %1377 = vmatprep.mubr.bf16.mxu0 %v5223_v29 }
  0xb1   : > { %1949 = vmatmul.mubr.bf16.gmra.mrb[56].mxu1 %v4870_v8 }
  0xb2   : > { %1956 = vmatprep.mubr.bf16.mxu1 %v5187_v53 }
  0xb6   : > { %1378 = vmatmul.mubr.bf16.gmra.mrb[60].mxu0 %v5036_v63 }
  0xb7   : > { %4140 = vmatprep.mubr.bf16.mxu0 %v5232_v7 }
  0xb9   : > { %1957 = vmatmul.mubr.bf16.gmra.mrb[60].mxu1 %v4931_v15 }
  0xba   : > { %1964 = vmatprep.mubr.bf16.mxu1 %v5197_v17 }
  0xbe   : > { %4141 = vmatmul.mubr.bf16.vlgmr.msra.gmra.mrb[64].mxu0 %v5243_v50 }
  0xbf   : > { %3989 = vmatpush3.bf16.msra.mxu0 %v4501_v2  ;;  %4144 = vmatprep.mubr.bf16.mxu0 %v5252_v23  ;;  %v4507_v2 = vld [vmem:[%s5979_s3 + $0x198] sm:$0xff]  }
  0xc0   : > { %3990 = vmatprep.subr.bf16.mxu0 %v4502_v6  ;;  %v917_v6 = vrot.slane %v5058_v49, 1 }
  0xc1   : > { %1965 = vmatmul.mubr.bf16.gmra.mrb[64].mxu1 %v4959_v1 }
  0xc2   : > { %1972 = vmatprep.mubr.bf16.mxu1 %v5210_v13  ;;  %v5306_v49 = vsel %vm900_vm4, %v916_v22, %v917_v6  ;;  %v922_v22 = vrot.slane %v5104_v9, 1  ;;  %v4513_v6 = vld [vmem:[%s5979_s3 + $0x1f0] sm:$0xff]  }
  0xc3   : > { %3991 = vmatpush3.bf16.msra.mxu0 %v4503_v37  ;;  %v842_v37 = vrot.slane %v840_v40, 1  ;;  %v4512_v40 = vld [vmem:[%s5979_s3 + $0x1a8] sm:$0xff]  }
  0xc4   : > { %3992 = vmatprep.subr.bf16.mxu0 %v4504_v56  ;;  %v4510_v56 = vld [vmem:[%s5979_s3 + $0x1a0] sm:$0xff]  }
  0xc5   : > { %v843_v55 = vor.u32 %v842_v37, %v838_v16  ;;  %v4514_v37 = vld [vmem:[%s5979_s3 + $0x1b0] sm:$0xff]  }
  0xc6   : > { %4145 = vmatmul.mubr.bf16.gmra.mrb[68].mxu0 %v5273_v3 }
  0xc7   : > { %3993 = vmatpush3.bf16.msra.mxu0 %v4505_v20  ;;  %4148 = vmatprep.mubr.bf16.mxu0 %v5283_v12  ;;  %v4511_v20 = vld [vmem:[%s5979_s3 + $0x1e8] sm:$0xff]  }
  0xc8   : > { %3994 = vmatprep.subr.bf16.mxu0 %v4506_v52  ;;  %v5323_v52 = vsel %vm644_vm3, %v843_v55, %v847_v31 }
  0xc9   : > { %1973 = vmatmul.mubr.bf16.gmra.mrb[68].mxu1 %v5007_v32 }
  0xca   : > { %1980 = vmatprep.mubr.bf16.mxu1 %v5223_v29 }
  0xcb   : > { %3995 = vmatpush3.bf16.msra.mxu0 %v4507_v2  ;;  %v923_v2 = vrot.slane %v5098_v4, 1  ;;  %v4515_v4 = vld [vmem:[%s5979_s3 + $0x1f8] sm:$0xff]  }
  0xcc   : > { %3996 = vmatprep.subr.bf16.mxu0 %v4509_v21  ;;  %v4518_v21 = vld [vmem:[%s5979_s3 + $0x208] sm:$0xff]  }
  0xcd   : > { %v5333_v16 = vsel %vm900_vm4, %v922_v22, %v923_v2 }
  0xce   : > { %4149 = vmatmul.mubr.bf16.gmra.mrb[72].mxu0 %v5306_v49 }
  0xcf   : > { %3997 = vmatpush3.bf16.msra.mxu0 %v4510_v56  ;;  %4152 = vmatprep.mubr.bf16.mxu0 %v5315_v36  ;;  %v4524_v56 = vld [vmem:[%s5979_s3 + $0x238] sm:$0xff]  }
  0xd0   : > { %3998 = vmatprep.subr.bf16.mxu0 %v4511_v20 }
  0xd1   : > { %1981 = vmatmul.mubr.bf16.gmra.mrb[72].mxu1 %v5036_v63 }
  0xd2   : > { %1988 = vmatprep.mubr.bf16.mxu1 %v5323_v52 }
  0xd3   : > { %3999 = vmatpush3.bf16.msra.mxu0 %v4512_v40 }
  0xd4   : > { %4000 = vmatprep.subr.bf16.mxu0 %v4513_v6 }
  0xd6   : > { %4153 = vmatmul.mubr.bf16.gmra.mrb[76].mxu0 %v5333_v16 }
  0xd7   : > { %4001 = vmatpush3.bf16.msra.mxu0 %v4514_v37  ;;  %2479 = vmatprep.mubr.bf16.mxu0 %v4949_v33  ;;  %v4519_v33 = vld [vmem:[%s5979_s3 + $0x210] sm:$0xff]  }
  0xd8   : > { %4002 = vmatprep.subr.bf16.mxu0 %v4515_v4 }
  0xd9   : > { %1989 = vmatmul.mubr.bf16.gmra.mrb[76].mxu1 %v5268_v0 }
  0xda   : > { %4188 = vmatprep.mubr.bf16.mxu1 %v5243_v50 }
  0xdb   : > { %4003 = vmatpush3.bf16.msra.mxu0 %v4516_v27 }
  0xde   : > { %2480 = vmatmul.mubr.bf16.vlgmr.msra.gmra.mrb[80].mxu0 %v4899_v41  ;;  %v4520_v41 = vld [vmem:[%s5979_s3 + $0x218] sm:$0xff]  }
  0xdf   : > { %2487 = vmatprep.mubr.bf16.mxu0 %v5013_v14  ;;  %v4521_v14 = vld [vmem:[%s5979_s3 + $0x220] sm:$0xff]  }
  0xe1   : > { %4189 = vmatmul.mubr.bf16.vlgmr.msra.gmra.mrb[80].mxu1 %v5252_v23 }
  0xe2   : > { %4221 = vmatpush3.bf16.msra.mxu1 %v5153_v42  ;;  %4192 = vmatprep.mubr.bf16.mxu1 %v5273_v3 }
  0xe3   : > { %4222 = vmatprep.subr.bf16.mxu1 %v4518_v21 }
  0xe6   : > { %2488 = vmatmul.mubr.bf16.gmra.mrb[84].mxu0 %v4990_v18  ;;  %4223 = vmatpush3.bf16.msra.mxu1 %v4518_v21  ;;  %v4522_v18 = vld [vmem:[%s5979_s3 + $0x228] sm:$0xff]  }
  0xe7   : > { %2495 = vmatprep.mubr.bf16.mxu0 %v5061_v30  ;;  %4224 = vmatprep.subr.bf16.mxu1 %v4519_v33  ;;  %v4523_v30 = vld [vmem:[%s5979_s3 + $0x230] sm:$0xff]  }
  0xe9   : > { %4193 = vmatmul.mubr.bf16.gmra.mrb[84].mxu1 %v5283_v12 }
  0xea   : > { %4196 = vmatprep.mubr.bf16.mxu1 %v5306_v49  ;;  %4225 = vmatpush3.bf16.msra.mxu1 %v4519_v33 }
  0xeb   : > { %4226 = vmatprep.subr.bf16.mxu1 %v4520_v41 }
  0xee   : > { %2496 = vmatmul.mubr.bf16.gmra.mrb[88].mxu0 %v5040_v19  ;;  %4227 = vmatpush3.bf16.msra.mxu1 %v4520_v41 }
  0xef   : > { %2503 = vmatprep.mubr.bf16.mxu0 %v5091_v54  ;;  %4228 = vmatprep.subr.bf16.mxu1 %v4521_v14 }
  0xf1   : > { %4197 = vmatmul.mubr.bf16.gmra.mrb[88].mxu1 %v5315_v36 }
  0xf2   : > { %4200 = vmatprep.mubr.bf16.mxu1 %v5333_v16  ;;  %4229 = vmatpush3.bf16.msra.mxu1 %v4521_v14 }
  0xf3   : > { %4230 = vmatprep.subr.bf16.mxu1 %v4522_v18 }
  0xf6   : > { %2504 = vmatmul.mubr.bf16.gmra.mrb[92].mxu0 %v5067_v51  ;;  %4231 = vmatpush3.bf16.msra.mxu1 %v4522_v18 }
  0xf7   : > { %2511 = vmatprep.mubr.bf16.mxu0 %v5114_v58  ;;  %4232 = vmatprep.subr.bf16.mxu1 %v4523_v30 }
  0xf9   : > { %4201 = vmatmul.mubr.bf16.gmra.mrb[92].mxu1 %v4788_v60 }
  0xfa   : > { %v3732_v42 = vpop.f32.mrb[0].mxu0  ;;  %4204 = vmatprep.mubr.bf16.mxu1 %v4791_v61  ;;  %4233 = vmatpush3.bf16.msra.mxu1 %v4523_v30 }
  0xfb   : > { %v3733_v19 = vpop.f32.mrb[1].mxu0  ;;  %4234 = vmatprep.subr.bf16.mxu1 %v4524_v56 }
  0xfc   : > { %v5379_v50 = vadd.f32 %v3733_v19, %v3732_v42  ;;  %v3735_v54 = vpop.f32.mrb[2].mxu0 }
  0xfd   : > { %v3736_v57 = vpop.f32.mrb[3].mxu0 }
  0xfe   : > { %v5383_v44 = vadd.f32 %v3736_v57, %v3735_v54  ;;  %2512 = vmatmul.mubr.bf16.gmra.mrb[96].mxu0 %v5085_v46  ;;  %4235 = vmatpush3.bf16.msra.mxu1 %v4524_v56 }
  0xff   : > { %2519 = vmatprep.mubr.bf16.mxu0 %v5125_v43  ;;  %v950_v43 = vrot.slane %v5287_v35, 1 }
 0x101   : > { %4205 = vmatmul.mubr.bf16.gmra.mrb[0].mxu1 %v4840_v45 }
 0x102   : > { %4208 = vmatprep.mubr.bf16.mxu1 %v4882_v28 }
 0x106   : > { %2520 = vmatmul.mubr.bf16.gmra.mrb[100].mxu0 %v5104_v9  ;;  %v949_v9 = vrot.slane %v5268_v0, 1 }
 0x107   : > { %2527 = vmatprep.mubr.bf16.mxu0 %v5138_v11 }
 0x108   : > { %v5409_v11 = vsel %vm900_vm4, %v949_v9, %v950_v43 }
 0x109   : > { %4209 = vmatmul.mubr.bf16.gmra.mrb[4].mxu1 %v4955_v39 }
 0x10a   : > { %v3738_v51 = vpop.f32.mrb[4].mxu0  ;;  %4212 = vmatprep.mubr.bf16.mxu1 %v4975_v59 }
 0x10b   : > { %v3739_v58 = vpop.f32.mrb[5].mxu0 }
 0x10c   : > { %v5398_v55 = vadd.f32 %v3739_v58, %v3738_v51  ;;  %v3741_v46 = vpop.f32.mrb[6].mxu0 }
 0x10d   : > { %v3742_v31 = vpop.f32.mrb[7].mxu0 }
 0x10e   : > { %v5400_v20 = vadd.f32 %v3742_v31, %v3741_v46  ;;  %2528 = vmatmul.mubr.bf16.gmra.mrb[104].mxu0 %v4772_v47 }
 0x10f   : > { %2535 = vmatprep.mubr.bf16.mxu0 %v5156_v38 }
 0x111   : > { %4213 = vmatmul.mubr.bf16.gmra.mrb[8].mxu1 %v5018_v24 }
 0x112   : > { %4216 = vmatprep.mubr.bf16.mxu1 %v5049_v25 }
 0x116   : > { %2536 = vmatmul.mubr.bf16.gmra.mrb[108].mxu0 %v4776_v48 }
 0x117   : > { %2543 = vmatprep.mubr.bf16.mxu0 %v5167_v5 }
 0x119   : > { %4217 = vmatmul.mubr.bf16.gmra.mrb[12].mxu1 %v5409_v11 }
 0x11a   : > { %v3744_v40 = vpop.f32.mrb[8].mxu0  ;;  %4236 = vmatprep.mubr.bf16.mxu1 %v5252_v23 }
 0x11b   : > { %v3745_v22 = vpop.f32.mrb[9].mxu0 }
 0x11c   : > { %v5414_v47 = vadd.f32 %v3745_v22, %v3744_v40  ;;  %v3747_v38 = vpop.f32.mrb[10].mxu0 }
 0x11d   : > { %v3748_v2 = vpop.f32.mrb[11].mxu0 }
 0x11e   : > { %v5417_v6 = vadd.f32 %v3748_v2, %v3747_v38  ;;  %2544 = vmatmul.mubr.bf16.gmra.mrb[112].mxu0 %v4828_v10 }
 0x11f   : > { %2551 = vmatprep.mubr.bf16.mxu0 %v5177_v26 }
 0x121   : > { %4237 = vmatmul.mubr.bf16.vlgmr.msra.gmra.mrb[80].mxu1 %v5273_v3 }
 0x122   : > { %4240 = vmatprep.mubr.bf16.mxu1 %v5283_v12 }
 0x126   : > { %2552 = vmatmul.mubr.bf16.gmra.mrb[116].mxu0 %v4870_v8 }
 0x127   : > { %v3750_v48 = vpop.f32.mrb[12].mxu0  ;;  %2559 = vmatprep.mubr.bf16.mxu0 %v5187_v53 }
 0x128   : > { %v3751_v5 = vpop.f32.mrb[13].mxu0 }
 0x129   : > { %v5424_v35 = vadd.f32 %v3751_v5, %v3750_v48  ;;  %v3753_v37 = vpop.f32.mrb[14].mxu0  ;;  %4241 = vmatmul.mubr.bf16.gmra.mrb[84].mxu1 %v5306_v49 }
 0x12a   : > { %v3754_v23 = vpop.f32.mrb[15].mxu0  ;;  %4244 = vmatprep.mubr.bf16.mxu1 %v5315_v36 }
 0x12b   : > { %v5428_v4 = vadd.f32 %v3754_v23, %v3753_v37 }
 0x12e   : > { %2560 = vmatmul.mubr.bf16.gmra.mrb[120].mxu0 %v4931_v15 }
 0x12f   : > { %2567 = vmatprep.mubr.bf16.mxu0 %v5197_v17 }
 0x131   : > { %4245 = vmatmul.mubr.bf16.gmra.mrb[88].mxu1 %v5333_v16  ;;  %v3756_v10 = vpop.f32.mrb[16].mxu0 }
 0x132   : > { %v3757_v8 = vpop.f32.mrb[17].mxu0  ;;  %4248 = vmatprep.mubr.bf16.mxu1 %v4788_v60 }
 0x133   : > { %v5435_v26 = vadd.f32 %v3757_v8, %v3756_v10  ;;  %v3759_v53 = vpop.f32.mrb[18].mxu0 }
 0x134   : > { %v3868_v3 = vpop.f32.mrb[16].mxu1  ;;  %v3760_v12 = vpop.f32.mrb[19].mxu0 }
 0x135   : > { %v3869_v49 = vpop.f32.mrb[17].mxu1  ;;  %v5437_v27 = vadd.f32 %v3760_v12, %v3759_v53 }
 0x136   : > { %v5439_v21 = vadd.f32 %v3869_v49, %v3868_v3  ;;  %v3871_v36 = vpop.f32.mrb[18].mxu1  ;;  %2568 = vmatmul.mubr.bf16.gmra.mrb[124].mxu0 %v4959_v1 }
 0x137   : > { %v3872_v15 = vpop.f32.mrb[19].mxu1  ;;  %2575 = vmatprep.mubr.bf16.mxu0 %v5210_v13 }
 0x138   : > { %v5443_v17 = vadd.f32 %v3872_v15, %v3871_v36 }
 0x139   : > { %4249 = vmatmul.mubr.bf16.gmra.mrb[92].mxu1 %v4791_v61  ;;  %v3762_v60 = vpop.f32.mrb[20].mxu0 }
 0x13a   : > { %v3763_v16 = vpop.f32.mrb[21].mxu0  ;;  %4252 = vmatprep.mubr.bf16.mxu1 %v4840_v45 }
 0x13b   : > { %v5447_v33 = vadd.f32 %v3763_v16, %v3762_v60  ;;  %v3765_v41 = vpop.f32.mrb[22].mxu0 }
 0x13c   : > { %v3874_v14 = vpop.f32.mrb[20].mxu1  ;;  %v3766_v18 = vpop.f32.mrb[23].mxu0 }
 0x13d   : > { %v3875_v30 = vpop.f32.mrb[21].mxu1  ;;  %v5449_v42 = vadd.f32 %v3766_v18, %v3765_v41 }
 0x13e   : > { %v5451_v1 = vadd.f32 %v3875_v30, %v3874_v14  ;;  %v3877_v19 = vpop.f32.mrb[22].mxu1  ;;  %2576 = vmatmul.mubr.bf16.gmra.mrb[128].mxu0 %v5007_v32 }
 0x13f   : > { %v3878_v13 = vpop.f32.mrb[23].mxu1  ;;  %2583 = vmatprep.mubr.bf16.mxu0 %v5223_v29 }
 0x140   : > { %v5455_v61 = vadd.f32 %v3878_v13, %v3877_v19 }
 0x141   : > { %4253 = vmatmul.mubr.bf16.gmra.mrb[0].mxu1 %v4882_v28  ;;  %v3768_v45 = vpop.f32.mrb[24].mxu0 }
 0x142   : > { %v3769_v54 = vpop.f32.mrb[25].mxu0  ;;  %4256 = vmatprep.mubr.bf16.mxu1 %v4955_v39 }
 0x143   : > { %v5459_v57 = vadd.f32 %v3769_v54, %v3768_v45  ;;  %v3771_v56 = vpop.f32.mrb[26].mxu0 }
 0x144   : > { %v3880_v51 = vpop.f32.mrb[24].mxu1  ;;  %v3772_v58 = vpop.f32.mrb[27].mxu0 }
 0x145   : > { %v3881_v46 = vpop.f32.mrb[25].mxu1  ;;  %v5461_v31 = vadd.f32 %v3772_v58, %v3771_v56 }
 0x146   : > { %v5463_v32 = vadd.f32 %v3881_v46, %v3880_v51  ;;  %v3883_v9 = vpop.f32.mrb[26].mxu1  ;;  %2584 = vmatmul.mubr.bf16.gmra.mrb[132].mxu0 %v5036_v63 }
 0x147   : > { %v3884_v29 = vpop.f32.mrb[27].mxu1  ;;  %2591 = vmatprep.mubr.bf16.mxu0 %v5323_v52 }
 0x148   : > { %v5467_v28 = vadd.f32 %v3884_v29, %v3883_v9 }
 0x149   : > { %4257 = vmatmul.mubr.bf16.gmra.mrb[4].mxu1 %v4975_v59  ;;  %v3774_v39 = vpop.f32.mrb[28].mxu0 }
 0x14a   : > { %v3775_v43 = vpop.f32.mrb[29].mxu0  ;;  %4260 = vmatprep.mubr.bf16.mxu1 %v5018_v24 }
 0x14b   : > { %v5471_v40 = vadd.f32 %v3775_v43, %v3774_v39  ;;  %v3777_v22 = vpop.f32.mrb[30].mxu0 }
 0x14c   : > { %v3886_v38 = vpop.f32.mrb[28].mxu1  ;;  %v3778_v2 = vpop.f32.mrb[31].mxu0 }
 0x14d   : > { %v3887_v48 = vpop.f32.mrb[29].mxu1  ;;  %v5473_v5 = vadd.f32 %v3778_v2, %v3777_v22 }
 0x14e   : > { %v5475_v63 = vadd.f32 %v3887_v48, %v3886_v38  ;;  %v3889_v37 = vpop.f32.mrb[30].mxu1  ;;  %2592 = vmatmul.mubr.bf16.gmra.mrb[136].mxu0 %v5268_v0 }
 0x14f   : > { %v3890_v52 = vpop.f32.mrb[31].mxu1  ;;  %2599 = vmatprep.mubr.bf16.mxu0 %v4740_v62 }
 0x150   : > { %v5479_v59 = vadd.f32 %v3890_v52, %v3889_v37 }
 0x151   : > { %4261 = vmatmul.mubr.bf16.gmra.mrb[8].mxu1 %v5049_v25  ;;  %v3780_v24 = vpop.f32.mrb[32].mxu0 }
 0x152   : > { %v3781_v23 = vpop.f32.mrb[33].mxu0  ;;  %4264 = vmatprep.mubr.bf16.mxu1 %v5409_v11 }
 0x153   : > { %v3782_v10 = vadd.f32 %v3781_v23, %v3780_v24  ;;  %v3783_v8 = vpop.f32.mrb[34].mxu0 }
 0x154   : > { %v3892_v53 = vpop.f32.mrb[32].mxu1  ;;  %v3784_v3 = vpop.f32.mrb[35].mxu0 }
 0x155   : > { %v3893_v12 = vpop.f32.mrb[33].mxu1  ;;  %v3785_v49 = vadd.f32 %v3784_v3, %v3783_v8 }
 0x156   : > { %v5483_v36 = vadd.f32 %v3893_v12, %v3892_v53  ;;  %v3895_v0 = vpop.f32.mrb[34].mxu1  ;;  %2600 = vmatmul.mubr.bf16.gmra.mrb[140].mxu0 %v4710_v34 }
 0x157   : > { %v3896_v62 = vpop.f32.mrb[35].mxu1 }
 0x158   : > { %v5486_v15 = vadd.f32 %v3896_v62, %v3895_v0 }
 0x159   : > { %4265 = vmatmul.mubr.bf16.gmra.mrb[12].mxu1 %v5232_v7  ;;  %v3786_v25 = vpop.f32.mrb[36].mxu0 }
 0x15a   : > { %v3787_v60 = vpop.f32.mrb[37].mxu0 }
 0x15b   : > { %v3788_v16 = vadd.f32 %v3787_v60, %v3786_v25  ;;  %v3789_v11 = vpop.f32.mrb[38].mxu0 }
 0x15c   : > { %v3898_v41 = vpop.f32.mrb[36].mxu1  ;;  %v3790_v14 = vpop.f32.mrb[39].mxu0 }
 0x15d   : > { %v3899_v18 = vpop.f32.mrb[37].mxu1  ;;  %v3791_v30 = vadd.f32 %v3790_v14, %v3789_v11 }
 0x15e   : > { %v5489_v19 = vadd.f32 %v3899_v18, %v3898_v41  ;;  %v3901_v13 = vpop.f32.mrb[38].mxu1 }
 0x15f   : > { %v3902_v45 = vpop.f32.mrb[39].mxu1 }
 0x160   : > { %v5491_v54 = vadd.f32 %v3902_v45, %v3901_v13 }
 0x161   : > { %v3792_v34 = vpop.f32.mrb[40].mxu0 }
 0x162   : > { %v3793_v56 = vpop.f32.mrb[41].mxu0 }
 0x163   : > { %v3794_v51 = vadd.f32 %v3793_v56, %v3792_v34  ;;  %v3795_v58 = vpop.f32.mrb[42].mxu0 }
 0x164   : > { %v3904_v46 = vpop.f32.mrb[40].mxu1  ;;  %v3796_v7 = vpop.f32.mrb[43].mxu0 }
 0x165   : > { %v3905_v9 = vpop.f32.mrb[41].mxu1  ;;  %v3797_v29 = vadd.f32 %v3796_v7, %v3795_v58 }
 0x166   : > { %v5493_v39 = vadd.f32 %v3905_v9, %v3904_v46  ;;  %v3907_v43 = vpop.f32.mrb[42].mxu1 }
 0x167   : > { %v3908_v22 = vpop.f32.mrb[43].mxu1 }
 0x168   : > { %v5495_v38 = vadd.f32 %v3908_v22, %v3907_v43 }
 0x169   : > { %v3798_v2 = vpop.f32.mrb[44].mxu0 }
 0x16a   : > { %v3799_v48 = vpop.f32.mrb[45].mxu0 }
 0x16b   : > { %v5497_v37 = vadd.f32 %v3799_v48, %v3798_v2  ;;  %v3801_v52 = vpop.f32.mrb[46].mxu0 }
 0x16c   : > { %v3910_v24 = vpop.f32.mrb[44].mxu1  ;;  %v3802_v23 = vpop.f32.mrb[47].mxu0 }
 0x16d   : > { %v3911_v8 = vpop.f32.mrb[45].mxu1  ;;  %v3803_v53 = vadd.f32 %v3802_v23, %v3801_v52 }
 0x16e   : > { %v5499_v3 = vadd.f32 %v3911_v8, %v3910_v24  ;;  %v3913_v12 = vpop.f32.mrb[46].mxu1 }
 0x16f   : > { %v3914_v0 = vpop.f32.mrb[47].mxu1 }
 0x170   : > { %v5501_v62 = vadd.f32 %v3914_v0, %v3913_v12 }
 0x171   : > { %v3804_v25 = vpop.f32.mrb[48].mxu0 }
 0x172   : > { %v3805_v60 = vpop.f32.mrb[49].mxu0 }
 0x173   : > { %v5503_v11 = vadd.f32 %v3805_v60, %v3804_v25  ;;  %v3807_v41 = vpop.f32.mrb[50].mxu0 }
 0x174   : > { %v3916_v14 = vpop.f32.mrb[48].mxu1  ;;  %v3808_v18 = vpop.f32.mrb[51].mxu0 }
 0x175   : > { %v3917_v13 = vpop.f32.mrb[49].mxu1  ;;  %v5505_v45 = vadd.f32 %v3808_v18, %v3807_v41 }
 0x176   : > { %v3918_v34 = vadd.f32 %v3917_v13, %v3916_v14  ;;  %v3919_v56 = vpop.f32.mrb[50].mxu1 }
 0x177   : > { %v3920_v58 = vpop.f32.mrb[51].mxu1 }
 0x178   : > { %v5507_v46 = vadd.f32 %v3918_v34, %v3782_v10  ;;  %v3921_v7 = vadd.f32 %v3920_v58, %v3919_v56 }
 0x179   : > { %v3810_v9 = vpop.f32.mrb[52].mxu0 }
 0x17a   : > { %v5509_v43 = vadd.f32 %v3921_v7, %v3785_v49  ;;  %v3811_v22 = vpop.f32.mrb[53].mxu0 }
 0x17b   : > { %v5511_v2 = vadd.f32 %v3811_v22, %v3810_v9  ;;  %v3813_v48 = vpop.f32.mrb[54].mxu0 }
 0x17c   : > { %v3922_v52 = vpop.f32.mrb[52].mxu1  ;;  %v3814_v24 = vpop.f32.mrb[55].mxu0 }
 0x17d   : > { %v3923_v23 = vpop.f32.mrb[53].mxu1  ;;  %v5513_v8 = vadd.f32 %v3814_v24, %v3813_v48 }
 0x17e   : > { %v3924_v12 = vadd.f32 %v3923_v23, %v3922_v52  ;;  %v3925_v0 = vpop.f32.mrb[54].mxu1 }
 0x17f   : > { %v3926_v25 = vpop.f32.mrb[55].mxu1 }
 0x180   : > { %v5515_v60 = vadd.f32 %v3924_v12, %v3788_v16  ;;  %v3927_v10 = vadd.f32 %v3926_v25, %v3925_v0 }
 0x181   : > { %v3816_v41 = vpop.f32.mrb[56].mxu0 }
 0x182   : > { %v5517_v14 = vadd.f32 %v3927_v10, %v3791_v30  ;;  %v3817_v49 = vpop.f32.mrb[57].mxu0 }
 0x183   : > { %v5519_v18 = vadd.f32 %v3817_v49, %v3816_v41  ;;  %v3819_v13 = vpop.f32.mrb[58].mxu0 }
 0x184   : > { %v3928_v34 = vpop.f32.mrb[56].mxu1  ;;  %v3820_v56 = vpop.f32.mrb[59].mxu0 }
 0x185   : > { %v3929_v58 = vpop.f32.mrb[57].mxu1  ;;  %v5521_v7 = vadd.f32 %v3820_v56, %v3819_v13 }
 0x186   : > { %v3930_v9 = vadd.f32 %v3929_v58, %v3928_v34  ;;  %v3931_v22 = vpop.f32.mrb[58].mxu1 }
 0x187   : > { %v3932_v48 = vpop.f32.mrb[59].mxu1 }
 0x188   : > { %v5523_v52 = vadd.f32 %v3930_v9, %v3794_v51  ;;  %v3933_v16 = vadd.f32 %v3932_v48, %v3931_v22 }
 0x189   : > { %v3822_v24 = vpop.f32.mrb[60].mxu0 }
 0x18a   : > { %v5525_v23 = vadd.f32 %v3933_v16, %v3797_v29  ;;  %v3823_v30 = vpop.f32.mrb[61].mxu0 }
 0x18b   : > { %v5527_v12 = vadd.f32 %v3823_v30, %v3822_v24  ;;  %v3825_v0 = vpop.f32.mrb[62].mxu0 }
 0x18c   : > { %v3934_v25 = vpop.f32.mrb[60].mxu1  ;;  %v3826_v10 = vpop.f32.mrb[63].mxu0 }
 0x18d   : > { %v3935_v41 = vpop.f32.mrb[61].mxu1  ;;  %v5529_v49 = vadd.f32 %v3826_v10, %v3825_v0 }
 0x18e   : > { %v3936_v13 = vadd.f32 %v3935_v41, %v3934_v25  ;;  %v3937_v56 = vpop.f32.mrb[62].mxu1 }
 0x18f   : > { %v3938_v34 = vpop.f32.mrb[63].mxu1 }
 0x190   : > { %v5532_v58 = vadd.f32 %v3936_v13, %v5497_v37  ;;  %v3939_v51 = vadd.f32 %v3938_v34, %v3937_v56 }
 0x191   : > { %v4142_v9 = vpop.f32.mrb[64].mxu0 }
 0x192   : > { %v5534_v22 = vadd.f32 %v3939_v51, %v3803_v53  ;;  %v1429_v29 = vadd.f32 %v4142_v9, %v5398_v55  ;;  %v1420_v48 = vpop.f32.mrb[65].mxu0 }
 0x193   : > { %v1421_v16 = vadd.f32 %v5379_v50, %v1420_v48  ;;  %v4143_v24 = vpop.f32.mrb[66].mxu0 }
 0x194   : > { %v5539_v30 = vadd.f32 %v5451_v1, %v1429_v29  ;;  %v3940_v0 = vpop.f32.mrb[64].mxu1  ;;  %v1432_v25 = vadd.f32 %v4143_v24, %v5400_v20  ;;  %v1423_v10 = vpop.f32.mrb[67].mxu0 }
 0x195   : > { %v5543_v37 = vadd.f32 %v5439_v21, %v1421_v16  ;;  %v3941_v41 = vpop.f32.mrb[65].mxu1  ;;  %v1424_v53 = vadd.f32 %v5383_v44, %v1423_v10 }
 0x196   : > { %v3942_v13 = vadd.f32 %v3941_v41, %v3940_v0  ;;  %v5547_v55 = vadd.f32 %v5455_v61, %v1432_v25  ;;  %v3943_v56 = vpop.f32.mrb[66].mxu1 }
 0x197   : > { %v5550_v50 = vadd.f32 %v5443_v17, %v1424_v53  ;;  %v3944_v1 = vpop.f32.mrb[67].mxu1 }
 0x198   : > { %v5553_v34 = vadd.f32 %v3942_v13, %v5503_v11  ;;  %v3945_v20 = vadd.f32 %v3944_v1, %v3943_v56 }
 0x199   : > { %v4146_v51 = vpop.f32.mrb[68].mxu0 }
 0x19a   : > { %v5556_v21 = vadd.f32 %v3945_v20, %v5505_v45  ;;  %v1445_v9 = vadd.f32 %v4146_v51, %v5424_v35  ;;  %v1436_v44 = vpop.f32.mrb[69].mxu0 }
 0x19b   : > { %v1437_v29 = vadd.f32 %v5414_v47, %v1436_v44  ;;  %v4147_v61 = vpop.f32.mrb[70].mxu0 }
 0x19c   : > { %v5561_v48 = vadd.f32 %v5475_v63, %v1445_v9  ;;  %v3946_v17 = vpop.f32.mrb[68].mxu1  ;;  %v1448_v16 = vadd.f32 %v4147_v61, %v5428_v4  ;;  %v1439_v24 = vpop.f32.mrb[71].mxu0 }
 0x19d   : > { %v5565_v11 = vadd.f32 %v5463_v32, %v1437_v29  ;;  %v3947_v0 = vpop.f32.mrb[69].mxu1  ;;  %v1440_v45 = vadd.f32 %v5417_v6, %v1439_v24 }
 0x19e   : > { %v3948_v25 = vadd.f32 %v3947_v0, %v3946_v17  ;;  %v5569_v35 = vadd.f32 %v5479_v59, %v1448_v16  ;;  %v3949_v10 = vpop.f32.mrb[70].mxu1 }
 0x19f   : > { %v5572_v47 = vadd.f32 %v5467_v28, %v1440_v45  ;;  %v3950_v63 = vpop.f32.mrb[71].mxu1 }
 0x1a0   : > { %v5575_v41 = vadd.f32 %v3948_v25, %v5511_v2  ;;  %v3951_v4 = vadd.f32 %v3950_v63, %v3949_v10 }
 0x1a1   : > { %v4150_v53 = vpop.f32.mrb[72].mxu0 }
 0x1a2   : > { %v5578_v32 = vadd.f32 %v3951_v4, %v5513_v8  ;;  %v1461_v13 = vadd.f32 %v4150_v53, %v5447_v33  ;;  %v1452_v6 = vpop.f32.mrb[73].mxu0 }
 0x1a3   : > { %v1453_v56 = vadd.f32 %v5435_v26, %v1452_v6  ;;  %v4151_v59 = vpop.f32.mrb[74].mxu0 }
 0x1a4   : > { %v5583_v1 = vadd.f32 %v5489_v19, %v1461_v13  ;;  %v3952_v28 = vpop.f32.mrb[72].mxu1  ;;  %v1464_v20 = vadd.f32 %v4151_v59, %v5449_v42  ;;  %v1455_v51 = vpop.f32.mrb[75].mxu0 }
 0x1a5   : > { %v5587_v2 = vadd.f32 %v5483_v36, %v1453_v56  ;;  %v3953_v9 = vpop.f32.mrb[73].mxu1  ;;  %v1456_v8 = vadd.f32 %v5437_v27, %v1455_v51 }
 0x1a6   : > { %v3954_v44 = vadd.f32 %v3953_v9, %v3952_v28  ;;  %v5591_v33 = vadd.f32 %v5491_v54, %v1464_v20  ;;  %v3955_v29 = vpop.f32.mrb[74].mxu1 }
 0x1a7   : > { %v5594_v26 = vadd.f32 %v5486_v15, %v1456_v8  ;;  %v3956_v19 = vpop.f32.mrb[75].mxu1 }
 0x1a8   : > { %v5597_v61 = vadd.f32 %v3954_v44, %v5519_v18  ;;  %v3957_v42 = vadd.f32 %v3956_v19, %v3955_v29 }
 0x1a9   : > { %v4154_v17 = vpop.f32.mrb[76].mxu0 }
 0x1aa   : > { %v5600_v36 = vadd.f32 %v3957_v42, %v5521_v7  ;;  %v1477_v16 = vadd.f32 %v4154_v17, %v5471_v40  ;;  %v1468_v27 = vpop.f32.mrb[77].mxu0 }
 0x1ab   : > { %v1469_v24 = vadd.f32 %v5459_v57, %v1468_v27  ;;  %v4155_v54 = vpop.f32.mrb[78].mxu0 }
 0x1ac   : > { %v5605_v0 = vadd.f32 %v5499_v3, %v1477_v16  ;;  %v3958_v15 = vpop.f32.mrb[76].mxu1  ;;  %v1480_v45 = vadd.f32 %v4155_v54, %v5473_v5  ;;  %v1471_v25 = vpop.f32.mrb[79].mxu0 }
 0x1ad   : > { %v5609_v18 = vadd.f32 %v5493_v39, %v1469_v24  ;;  %v3959_v10 = vpop.f32.mrb[77].mxu1  ;;  %v1472_v7 = vadd.f32 %v5461_v31, %v1471_v25 }
 0x1ae   : > { %v3960_v63 = vadd.f32 %v3959_v10, %v3958_v15  ;;  %v5613_v40 = vadd.f32 %v5501_v62, %v1480_v45  ;;  %v3961_v4 = vpop.f32.mrb[78].mxu1 }
 0x1af   : > { %v4345_v57 = vadd.f32 %v5495_v38, %v1472_v7  ;;  %v3962_v53 = vpop.f32.mrb[79].mxu1 }
 0x1b0   : > { %v5617_v3 = vadd.f32 %v3960_v63, %v5527_v12  ;;  %v3963_v13 = vadd.f32 %v3962_v53, %v3961_v4 }
 0x1b1   : > { %v4004_v5 = vpop.f32.mrb[80].mxu0 }
 0x1b2   : > { %v5620_v6 = vadd.f32 %v3963_v13, %v5529_v49  ;;  %v4005_v39 = vpop.f32.mrb[81].mxu0 }
 0x1b3   : > { %v4006_v56 = vadd.f32 %v4005_v39, %v4004_v5  ;;  %v4007_v59 = vpop.f32.mrb[82].mxu0 }
 0x1b4   : > { %v4008_v31 = vpop.f32.mrb[83].mxu0 }
 0x1b5   : > { %v4009_v28 = vadd.f32 %v4008_v31, %v4007_v59  ;;  %v5623_v62 = vadd.f32 %v5543_v37, %v4006_v56 }
 0x1b7   : > { %v5626_v20 = vadd.f32 %v5550_v50, %v4009_v28 }
 0x1b9   : > { %v4010_v38 = vpop.f32.mrb[84].mxu0 }
 0x1ba   : > { %v4011_v51 = vpop.f32.mrb[85].mxu0 }
 0x1bb   : > { %v4012_v12 = vadd.f32 %v4011_v51, %v4010_v38  ;;  %v4013_v9 = vpop.f32.mrb[86].mxu0 }
 0x1bc   : > { %v4014_v8 = vpop.f32.mrb[87].mxu0 }
 0x1bd   : > { %v4015_v44 = vadd.f32 %v4014_v8, %v4013_v9  ;;  %v4286_v49 = vadd.f32 %v5539_v30, %v4012_v12 }
 0x1bf   : > { %v4294_v29 = vadd.f32 %v5547_v55, %v4015_v44 }
 0x1c1   : > { %v4016_v19 = vpop.f32.mrb[88].mxu0 }
 0x1c2   : > { %v4017_v42 = vpop.f32.mrb[89].mxu0 }
 0x1c3   : > { %v4018_v17 = vadd.f32 %v4017_v42, %v4016_v19  ;;  %v4019_v16 = vpop.f32.mrb[90].mxu0 }
 0x1c4   : > { %v4020_v27 = vpop.f32.mrb[91].mxu0 }
 0x1c5   : > { %v4021_v37 = vadd.f32 %v4020_v27, %v4019_v16  ;;  %v5631_v24 = vadd.f32 %v5565_v11, %v4018_v17 }
 0x1c7   : > { %v5634_v50 = vadd.f32 %v5572_v47, %v4021_v37 }
 0x1c9   : > { %v4022_v54 = vpop.f32.mrb[92].mxu0 }
 0x1ca   : > { %v4023_v15 = vpop.f32.mrb[93].mxu0 }
 0x1cb   : > { %v4024_v45 = vadd.f32 %v4023_v15, %v4022_v54  ;;  %v4025_v25 = vpop.f32.mrb[94].mxu0 }
 0x1cc   : > { %v4026_v10 = vpop.f32.mrb[95].mxu0 }
 0x1cd   : > { %v4027_v30 = vadd.f32 %v4026_v10, %v4025_v25  ;;  %v5637_v55 = vadd.f32 %v5561_v48, %v4024_v45 }
 0x1cf   : > { %v5640_v7 = vadd.f32 %v5569_v35, %v4027_v30 }
 0x1d1   : > { %v4028_v63 = vpop.f32.mrb[96].mxu0 }
 0x1d2   : > { %v4029_v4 = vpop.f32.mrb[97].mxu0 }
 0x1d3   : > { %v4030_v53 = vadd.f32 %v4029_v4, %v4028_v63  ;;  %v4031_v11 = vpop.f32.mrb[98].mxu0 }
 0x1d4   : > { %v4032_v13 = vpop.f32.mrb[99].mxu0 }
 0x1d5   : > { %v4033_v5 = vadd.f32 %v4032_v13, %v4031_v11  ;;  %v5643_v47 = vadd.f32 %v5587_v2, %v4030_v53 }
 0x1d7   : > { %v5646_v39 = vadd.f32 %v5594_v26, %v4033_v5 }
 0x1d9   : > { %v4034_v56 = vpop.f32.mrb[100].mxu0 }
 0x1da   : > { %v4035_v59 = vpop.f32.mrb[101].mxu0 }
 0x1db   : > { %v4036_v31 = vadd.f32 %v4035_v59, %v4034_v56  ;;  %v4037_v48 = vpop.f32.mrb[102].mxu0 }
 0x1dc   : > { %v4038_v28 = vpop.f32.mrb[103].mxu0 }
 0x1dd   : > { %v4039_v38 = vadd.f32 %v4038_v28, %v4037_v48  ;;  %v5649_v35 = vadd.f32 %v5583_v1, %v4036_v31 }
 0x1df   : > { %v5652_v51 = vadd.f32 %v5591_v33, %v4039_v38 }
 0x1e1   : > { %v4040_v12 = vpop.f32.mrb[104].mxu0 }
 0x1e2   : > { %v4041_v9 = vpop.f32.mrb[105].mxu0 }
 0x1e3   : > { %v4042_v8 = vadd.f32 %v4041_v9, %v4040_v12  ;;  %v4043_v2 = vpop.f32.mrb[106].mxu0 }
 0x1e4   : > { %v4044_v44 = vpop.f32.mrb[107].mxu0 }
 0x1e5   : > { %v4045_v19 = vadd.f32 %v4044_v44, %v4043_v2  ;;  %v5655_v26 = vadd.f32 %v5609_v18, %v4042_v8 }
 0x1e7   : > { %v5657_v42 = vadd.f32 %v4345_v57, %v4045_v19 }
 0x1e9   : > { %v4046_v17 = vpop.f32.mrb[108].mxu0 }
 0x1ea   : > { %v4047_v16 = vpop.f32.mrb[109].mxu0 }
 0x1eb   : > { %v4048_v27 = vadd.f32 %v4047_v16, %v4046_v17  ;;  %v4049_v37 = vpop.f32.mrb[110].mxu0 }
 0x1ec   : > { %v4050_v1 = vpop.f32.mrb[111].mxu0 }
 0x1ed   : > { %v4051_v54 = vadd.f32 %v4050_v1, %v4049_v37  ;;  %v5660_v33 = vadd.f32 %v5605_v0, %v4048_v27  ;;  %v5671_v0 = vld [vmem:[%s5980_s4] ss:$0 sm:$0xff] }
 0x1ef   : > { %v5663_v15 = vadd.f32 %v5613_v40, %v4051_v54 }
 0x1f1   : > { %v4052_v45 = vpop.f32.mrb[112].mxu0 }
 0x1f2   : > { %v4053_v25 = vpop.f32.mrb[113].mxu0 }
 0x1f3   : > { %v4054_v10 = vadd.f32 %v4053_v25, %v4052_v45  ;;  %v4055_v30 = vpop.f32.mrb[114].mxu0 }
 0x1f4   : > { %v4238_v18 = vpop.f32.mrb[80].mxu1  ;;  %v4056_v63 = vpop.f32.mrb[115].mxu0 }
 0x1f5   : > { %v4287_v57 = vadd.f32 %v4286_v49, %v4238_v18  ;;  %v2642_v4 = vpop.f32.mrb[81].mxu1  ;;  %v4057_v53 = vadd.f32 %v4056_v63, %v4055_v30  ;;  %v5666_v11 = vadd.f32 %v5507_v46, %v4054_v10 }
 0x1f6   : > { %v4291_v40 = vadd.f32 %v5623_v62, %v2642_v4  ;;  %v4239_v13 = vpop.f32.mrb[82].mxu1 }
 0x1f7   : > { %v4295_v5 = vadd.f32 %v4294_v29, %v4239_v13  ;;  %v2645_v56 = vpop.f32.mrb[83].mxu1  ;;  %v5675_v59 = vadd.f32 %v5509_v43, %v4057_v53  ;;  %v5679_v31 = vadd.f32 %v4287_v57, %v5671_v0 }
 0x1f8   : > { %v4299_v49 = vadd.f32 %v5626_v20, %v2645_v56  ;;  %v5685_v28 = vadd.f32 %v4291_v40, %v5671_v0 }
 0x1f9   : > { %v5682_v46 = vadd.f32 %v4295_v5, %v5671_v0  ;;  %v4058_v48 = vpop.f32.mrb[116].mxu0 }
 0x1fa   : > { %v5695_v43 = vadd.f32 %v4299_v49, %v5671_v0  ;;  %v4059_v62 = vpop.f32.mrb[117].mxu0 }
 0x1fb   : > { %v3614_v20 = vpack.c.bf16 %v5682_v46, %v5679_v31  ;;  %v4060_v29 = vadd.f32 %v4059_v62, %v4058_v48  ;;  %v4061_v38 = vpop.f32.mrb[118].mxu0 }
 0x1fc   : > { %v3609_v12 = vpack.c.bf16 %v5695_v43, %v5685_v28  ;;  %v3064_v9 = vadd.f32 %v5695_v43, %v5685_v28  ;;  %v4242_v8 = vpop.f32.mrb[84].mxu1  ;;  %v4062_v2 = vpop.f32.mrb[119].mxu0 }
 0x1fd   : > { %3701 = vst [vmem:[%s5692_s13 + $0x8] sm:$0xff] %v3614_v20   ;;  %v4303_v44 = vadd.f32 %v5637_v55, %v4242_v8  ;;  %v2658_v19 = vpop.f32.mrb[85].mxu1  ;;  %v4063_v17 = vadd.f32 %v4062_v2, %v4061_v38  ;;  %v5706_v16 = vadd.f32 %v5515_v60, %v4060_v29 }
 0x1fe   : > { %3610 = vst [vmem:[%s5692_s13] sm:$0xff] %v3609_v12   ;;  %v3065_v27 = vadd.f32 %v3064_v9, %v5679_v31  ;;  %v4307_v37 = vadd.f32 %v5631_v24, %v2658_v19  ;;  %v4243_v1 = vpop.f32.mrb[86].mxu1 }
 0x1ff   : > { %v4311_v54 = vadd.f32 %v5640_v7, %v4243_v1  ;;  %v2661_v45 = vpop.f32.mrb[87].mxu1  ;;  %v5713_v25 = vadd.f32 %v5517_v14, %v4063_v17  ;;  %v5721_v30 = vadd.f32 %v4303_v44, %v5671_v0 }
 0x200   : > { %v5716_v10 = vadd.f32 %v4307_v37, %v5671_v0  ;;  %v3066_v55 = vadd.f32 %v3065_v27, %v5682_v46  ;;  %v4315_v60 = vadd.f32 %v5634_v50, %v2661_v45 }
 0x201   : > { %v5724_v24 = vadd.f32 %v4311_v54, %v5671_v0  ;;  %v4064_v18 = vpop.f32.mrb[120].mxu0 }
 0x202   : > { %v3067_v7 = vadd.f32 %v3066_v55, %v5716_v10  ;;  %v5728_v14 = vadd.f32 %v4315_v60, %v5671_v0  ;;  %v4065_v63 = vpop.f32.mrb[121].mxu0 }
 0x203   : > { %v3624_v57 = vpack.c.bf16 %v5724_v24, %v5721_v30  ;;  %v4066_v4 = vadd.f32 %v4065_v63, %v4064_v18  ;;  %v4067_v53 = vpop.f32.mrb[122].mxu0 }
 0x204   : > { %v3619_v50 = vpack.c.bf16 %v5728_v14, %v5716_v10  ;;  %v3068_v40 = vadd.f32 %v3067_v7, %v5728_v14  ;;  %v4246_v13 = vpop.f32.mrb[88].mxu1  ;;  %v4068_v5 = vpop.f32.mrb[123].mxu0 }
 0x205   : > { %3703 = vst [vmem:[%s5692_s13 + $0x18] sm:$0xff] %v3624_v57   ;;  %v4319_v56 = vadd.f32 %v5649_v35, %v4246_v13  ;;  %v2674_v49 = vpop.f32.mrb[89].mxu1  ;;  %v4069_v48 = vadd.f32 %v4068_v5, %v4067_v53  ;;  %v5738_v62 = vadd.f32 %v5523_v52, %v4066_v4 }
 0x206   : > { %3702 = vst [vmem:[%s5692_s13 + $0x10] sm:$0xff] %v3619_v50   ;;  %v3069_v20 = vadd.f32 %v3068_v40, %v5721_v30  ;;  %v4323_v29 = vadd.f32 %v5643_v47, %v2674_v49  ;;  %v4247_v38 = vpop.f32.mrb[90].mxu1 }
 0x207   : > { %v4327_v12 = vadd.f32 %v5652_v51, %v4247_v38  ;;  %v2677_v9 = vpop.f32.mrb[91].mxu1  ;;  %v5745_v8 = vadd.f32 %v5525_v23, %v4069_v48  ;;  %v5753_v44 = vadd.f32 %v4319_v56, %v5671_v0 }
 0x208   : > { %v5748_v2 = vadd.f32 %v4323_v29, %v5671_v0  ;;  %v3070_v35 = vadd.f32 %v3069_v20, %v5724_v24  ;;  %v4331_v52 = vadd.f32 %v5646_v39, %v2677_v9 }
 0x209   : > { %v5756_v47 = vadd.f32 %v4327_v12, %v5671_v0  ;;  %v4070_v19 = vpop.f32.mrb[124].mxu0 }
 0x20a   : > { %v3071_v51 = vadd.f32 %v3070_v35, %v5748_v2  ;;  %v5760_v23 = vadd.f32 %v4331_v52, %v5671_v0  ;;  %v4071_v17 = vpop.f32.mrb[125].mxu0 }
 0x20b   : > { %v3634_v27 = vpack.c.bf16 %v5756_v47, %v5753_v44  ;;  %v4072_v37 = vadd.f32 %v4071_v17, %v4070_v19  ;;  %v4073_v1 = vpop.f32.mrb[126].mxu0 }
 0x20c   : > { %v3629_v39 = vpack.c.bf16 %v5760_v23, %v5748_v2  ;;  %v3072_v54 = vadd.f32 %v3071_v51, %v5760_v23  ;;  %v4250_v45 = vpop.f32.mrb[92].mxu1  ;;  %v4074_v55 = vpop.f32.mrb[127].mxu0 }
 0x20d   : > { %3705 = vst [vmem:[%s5692_s13 + $0x28] sm:$0xff] %v3634_v27   ;;  %v4335_v60 = vadd.f32 %v5660_v33, %v4250_v45  ;;  %v2690_v18 = vpop.f32.mrb[93].mxu1  ;;  %v4075_v7 = vadd.f32 %v4074_v55, %v4073_v1  ;;  %v4361_v63 = vadd.f32 %v5532_v58, %v4072_v37 }
 0x20e   : > { %3704 = vst [vmem:[%s5692_s13 + $0x20] sm:$0xff] %v3629_v39   ;;  %v3073_v57 = vadd.f32 %v3072_v54, %v5753_v44  ;;  %v4339_v4 = vadd.f32 %v5655_v26, %v2690_v18  ;;  %v4251_v53 = vpop.f32.mrb[94].mxu1 }
 0x20f   : > { %v4343_v50 = vadd.f32 %v5663_v15, %v4251_v53  ;;  %v2693_v40 = vpop.f32.mrb[95].mxu1  ;;  %v4367_v13 = vadd.f32 %v5534_v22, %v4075_v7  ;;  %v5781_v58 = vadd.f32 %v4335_v60, %v5671_v0 }
 0x210   : > { %v5776_v5 = vadd.f32 %v4339_v4, %v5671_v0  ;;  %v3074_v33 = vadd.f32 %v3073_v57, %v5756_v47  ;;  %v4347_v56 = vadd.f32 %v5657_v42, %v2693_v40 }
 0x211   : > { %v5784_v49 = vadd.f32 %v4343_v50, %v5671_v0  ;;  %v4076_v26 = vpop.f32.mrb[128].mxu0 }
 0x212   : > { %v3075_v15 = vadd.f32 %v3074_v33, %v5776_v5  ;;  %v5788_v22 = vadd.f32 %v4347_v56, %v5671_v0  ;;  %v4077_v48 = vpop.f32.mrb[129].mxu0 }
 0x213   : > { %v3644_v20 = vpack.c.bf16 %v5784_v49, %v5781_v58  ;;  %v4078_v29 = vadd.f32 %v4077_v48, %v4076_v26  ;;  %v4079_v38 = vpop.f32.mrb[130].mxu0 }
 0x214   : > { %v3639_v42 = vpack.c.bf16 %v5788_v22, %v5776_v5  ;;  %v3076_v12 = vadd.f32 %v3075_v15, %v5788_v22  ;;  %v4254_v9 = vpop.f32.mrb[0].mxu1  ;;  %v4080_v35 = vpop.f32.mrb[131].mxu0 }
 0x215   : > { %3707 = vst [vmem:[%s5692_s13 + $0x38] sm:$0xff] %v3644_v20   ;;  %v4350_v52 = vadd.f32 %v5706_v16, %v4254_v9  ;;  %v2706_v19 = vpop.f32.mrb[1].mxu1  ;;  %v4081_v51 = vadd.f32 %v4080_v35, %v4079_v38  ;;  %v4376_v17 = vadd.f32 %v5553_v34, %v4078_v29 }
 0x216   : > { %3706 = vst [vmem:[%s5692_s13 + $0x30] sm:$0xff] %v3639_v42   ;;  %v3077_v27 = vadd.f32 %v3076_v12, %v5781_v58  ;;  %v4353_v37 = vadd.f32 %v5666_v11, %v2706_v19  ;;  %v4255_v1 = vpop.f32.mrb[2].mxu1 }
 0x217   : > { %v4356_v39 = vadd.f32 %v5713_v25, %v4255_v1  ;;  %v2709_v54 = vpop.f32.mrb[3].mxu1  ;;  %v4382_v45 = vadd.f32 %v5556_v21, %v4081_v51  ;;  %v5809_v34 = vadd.f32 %v4350_v52, %v5671_v0 }
 0x218   : > { %v5804_v55 = vadd.f32 %v4353_v37, %v5671_v0  ;;  %v3078_v16 = vadd.f32 %v3077_v27, %v5784_v49  ;;  %v4359_v60 = vadd.f32 %v5675_v59, %v2709_v54 }
 0x219   : > { %v5812_v18 = vadd.f32 %v4356_v39, %v5671_v0  ;;  %v4082_v11 = vpop.f32.mrb[132].mxu0 }
 0x21a   : > { %v3079_v25 = vadd.f32 %v3078_v16, %v5804_v55  ;;  %v5816_v21 = vadd.f32 %v4359_v60, %v5671_v0  ;;  %v4083_v7 = vpop.f32.mrb[133].mxu0 }
 0x21b   : > { %v3654_v57 = vpack.c.bf16 %v5812_v18, %v5809_v34  ;;  %v4084_v4 = vadd.f32 %v4083_v7, %v4082_v11  ;;  %v4085_v53 = vpop.f32.mrb[134].mxu0 }
 0x21c   : > { %v3649_v59 = vpack.c.bf16 %v5816_v21, %v5804_v55  ;;  %v3080_v50 = vadd.f32 %v3079_v25, %v5816_v21  ;;  %v4258_v40 = vpop.f32.mrb[4].mxu1  ;;  %v4086_v33 = vpop.f32.mrb[135].mxu0 }
 0x21d   : > { %3709 = vst [vmem:[%s5692_s13 + $0x48] sm:$0xff] %v3654_v57   ;;  %v4362_v56 = vadd.f32 %v4361_v63, %v4258_v40  ;;  %v2722_v26 = vpop.f32.mrb[5].mxu1  ;;  %v4087_v15 = vadd.f32 %v4086_v33, %v4085_v53  ;;  %v4373_v48 = vadd.f32 %v5575_v41, %v4084_v4 }
 0x21e   : > { %3708 = vst [vmem:[%s5692_s13 + $0x40] sm:$0xff] %v3649_v59   ;;  %v3081_v20 = vadd.f32 %v3080_v50, %v5809_v34  ;;  %v4365_v29 = vadd.f32 %v5738_v62, %v2722_v26  ;;  %v4259_v38 = vpop.f32.mrb[6].mxu1 }
 0x21f   : > { %v4368_v42 = vadd.f32 %v4367_v13, %v4259_v38  ;;  %v2725_v12 = vpop.f32.mrb[7].mxu1  ;;  %v4379_v9 = vadd.f32 %v5578_v32, %v4087_v15  ;;  %v5835_v41 = vadd.f32 %v4362_v56, %v5671_v0 }
 0x220   : > { %v5830_v35 = vadd.f32 %v4365_v29, %v5671_v0  ;;  %v3082_v63 = vadd.f32 %v3081_v20, %v5812_v18  ;;  %v4371_v52 = vadd.f32 %v5745_v8, %v2725_v12 }
 0x221   : > { %v5838_v19 = vadd.f32 %v4368_v42, %v5671_v0  ;;  %v4088_v62 = vpop.f32.mrb[136].mxu0 }
 0x222   : > { %v3083_v13 = vadd.f32 %v3082_v63, %v5830_v35  ;;  %v5842_v32 = vadd.f32 %v4371_v52, %v5671_v0  ;;  %v4089_v51 = vpop.f32.mrb[137].mxu0 }
 0x223   : > { %v3664_v27 = vpack.c.bf16 %v5838_v19, %v5835_v41  ;;  %v4090_v37 = vadd.f32 %v4089_v51, %v4088_v62  ;;  %v4091_v1 = vpop.f32.mrb[138].mxu0 }
 0x224   : > { %v3659_v8 = vpack.c.bf16 %v5842_v32, %v5830_v35  ;;  %v3084_v39 = vadd.f32 %v3083_v13, %v5842_v32  ;;  %v4262_v54 = vpop.f32.mrb[8].mxu1  ;;  %v4092_v16 = vpop.f32.mrb[139].mxu0 }
 0x225   : > { %3711 = vst [vmem:[%s5692_s13 + $0x58] sm:$0xff] %v3664_v27   ;;  %v4374_v60 = vadd.f32 %v4373_v48, %v4262_v54  ;;  %v2738_v11 = vpop.f32.mrb[9].mxu1  ;;  %v4093_v25 = vadd.f32 %v4092_v16, %v4091_v1  ;;  %v4388_v7 = vadd.f32 %v5597_v61, %v4090_v37 }
 0x226   : > { %3710 = vst [vmem:[%s5692_s13 + $0x50] sm:$0xff] %v3659_v8   ;;  %v3085_v57 = vadd.f32 %v3084_v39, %v5835_v41  ;;  %v4377_v4 = vadd.f32 %v4376_v17, %v2738_v11  ;;  %v4263_v53 = vpop.f32.mrb[10].mxu1 }
 0x227   : > { %v4380_v59 = vadd.f32 %v4379_v9, %v4263_v53  ;;  %v2741_v50 = vpop.f32.mrb[11].mxu1  ;;  %v4394_v40 = vadd.f32 %v5600_v36, %v4093_v25  ;;  %v5859_v15 = vadd.f32 %v4374_v60, %v5671_v0 }
 0x228   : > { %v5855_v33 = vadd.f32 %v4377_v4, %v5671_v0  ;;  %v3086_v56 = vadd.f32 %v3085_v57, %v5838_v19  ;;  %v4383_v26 = vadd.f32 %v4382_v45, %v2741_v50 }
 0x229   : > { %v5862_v61 = vadd.f32 %v4380_v59, %v5671_v0  ;;  %v4094_v17 = vpop.f32.mrb[140].mxu0 }
 0x22a   : > { %v3087_v48 = vadd.f32 %v3086_v56, %v5855_v33  ;;  %v5866_v20 = vadd.f32 %v4383_v26, %v5671_v0  ;;  %v4095_v36 = vpop.f32.mrb[141].mxu0 }
 0x22b   : > { %v3674_v29 = vpack.c.bf16 %v5862_v61, %v5859_v15  ;;  %v4096_v38 = vadd.f32 %v4095_v36, %v4094_v17  ;;  %v4097_v42 = vpop.f32.mrb[142].mxu0 }
 0x22c   : > { %v3669_v45 = vpack.c.bf16 %v5866_v20, %v5855_v33  ;;  %v3088_v12 = vadd.f32 %v3087_v48, %v5866_v20  ;;  %v4266_v9 = vpop.f32.mrb[12].mxu1  ;;  %v4098_v63 = vpop.f32.mrb[143].mxu0 }
 0x22d   : > { %3713 = vst [vmem:[%s5692_s13 + $0x68] sm:$0xff] %v3674_v29   ;;  %v4385_v52 = vadd.f32 %v5617_v3, %v4096_v38  ;;  %v2754_v62 = vpop.f32.mrb[13].mxu1  ;;  %v4099_v13 = vadd.f32 %v4098_v63, %v4097_v42 }
 0x22e   : > { %3712 = vst [vmem:[%s5692_s13 + $0x60] sm:$0xff] %v3669_v45   ;;  %v3089_v51 = vadd.f32 %v3088_v12, %v5859_v15  ;;  %v4389_v27 = vadd.f32 %v4388_v7, %v2754_v62  ;;  %v4267_v37 = vpop.f32.mrb[14].mxu1 }
 0x22f   : > { %v4386_v1 = vadd.f32 %v4385_v52, %v4266_v9  ;;  %v4391_v8 = vadd.f32 %v5620_v6, %v4099_v13  ;;  %v2757_v39 = vpop.f32.mrb[15].mxu1 }
 0x230   : > { %v5879_v54 = vadd.f32 %v4389_v27, %v5671_v0  ;;  %v3090_v16 = vadd.f32 %v3089_v51, %v5862_v61  ;;  %v4395_v60 = vadd.f32 %v4394_v40, %v2757_v39 }
 0x231   : > { %v4392_v3 = vadd.f32 %v4391_v8, %v4267_v37  ;;  %v5883_v11 = vadd.f32 %v4386_v1, %v5671_v0 }
 0x232   : > { %v3091_v25 = vadd.f32 %v3090_v16, %v5879_v54  ;;  %v5887_v7 = vadd.f32 %v4395_v60, %v5671_v0 }
 0x233   : > { %v5890_v57 = vadd.f32 %v4392_v3, %v5671_v0 }
 0x234   : > { %v3679_v6 = vpack.c.bf16 %v5887_v7, %v5879_v54  ;;  %v3092_v4 = vadd.f32 %v3091_v25, %v5887_v7 }
 0x235   : > { %v3684_v53 = vpack.c.bf16 %v5890_v57, %v5883_v11 }
 0x236   : > { %3714 = vst [vmem:[%s5692_s13 + $0x70] sm:$0xff] %v3679_v6   ;;  %v3093_v59 = vadd.f32 %v3092_v4, %v5883_v11 }
 0x237   : > { %3715 = vst [vmem:[%s5692_s13 + $0x78] sm:$0xff] %v3684_v53  }
 0x238   : > { %v3094_v50 = vadd.f32 %v3093_v59, %v5890_v57 }
 0x23a   : > { %v3095_v40 = vrot.slane %v3094_v50, 4 }
 0x23c   : > { %v3096_v56 = vadd.f32 %v3095_v40, %v3094_v50 }
 0x23e   : > { %v3097_v26 = vrot.slane %v3096_v56, 2 }
 0x240   : > { %v3098_v17 = vadd.f32 %v3097_v26, %v3096_v56 }
 0x242   : > { %v3099_v0 = vrot.slane %v3098_v17, 1 }
 0x244   : > { %v3100_v48 = vadd.f32 %v3099_v0, %v3098_v17 }
 0x246   : > { %v5901_v36 = vmul.f32 0.00390625, %v3100_v48 }
 0x248   : > { %v3103_v29 = vsub.f32 %v5685_v28, %v5901_v36  ;;  %v3104_v38 = vsub.f32 %v5695_v43, %v5901_v36  ;;  %v3105_v42 = vsub.f32 %v5679_v31, %v5901_v36  ;;  %v3106_v9 = vsub.f32 %v5682_v46, %v5901_v36 }
 0x249   : > { %v3107_v63 = vsub.f32 %v5716_v10, %v5901_v36  ;;  %v3108_v13 = vsub.f32 %v5728_v14, %v5901_v36  ;;  %v3109_v43 = vsub.f32 %v5721_v30, %v5901_v36  ;;  %v3110_v37 = vsub.f32 %v5724_v24, %v5901_v36 }
 0x24a   : > { %v3135_v45 = vmul.f32 %v3103_v29, %v3103_v29  ;;  %v3136_v12 = vmul.f32 %v3104_v38, %v3104_v38  ;;  %v3137_v52 = vmul.f32 %v3105_v42, %v3105_v42  ;;  %v3138_v28 = vmul.f32 %v3106_v9, %v3106_v9 }
 0x24b   : > { %v3139_v27 = vmul.f32 %v3107_v63, %v3107_v63  ;;  %v3140_v1 = vmul.f32 %v3108_v13, %v3108_v13  ;;  %v3111_v10 = vsub.f32 %v5748_v2, %v5901_v36  ;;  %v3141_v8 = vmul.f32 %v3109_v43, %v3109_v43 }
 0x24c   : > { %v3167_v62 = vadd.f32 %v3136_v12, %v3135_v45  ;;  %v3112_v14 = vsub.f32 %v5760_v23, %v5901_v36  ;;  %v3142_v16 = vmul.f32 %v3110_v37, %v3110_v37  ;;  %v3113_v30 = vsub.f32 %v5753_v44, %v5901_v36 }
 0x24d   : > { %v3143_v3 = vmul.f32 %v3111_v10, %v3111_v10  ;;  %v3114_v24 = vsub.f32 %v5756_v47, %v5901_v36  ;;  %v3115_v2 = vsub.f32 %v5776_v5, %v5901_v36  ;;  %v3116_v23 = vsub.f32 %v5788_v22, %v5901_v36 }
 0x24e   : > { %v3168_v51 = vadd.f32 %v3167_v62, %v3137_v52  ;;  %v3144_v6 = vmul.f32 %v3112_v14, %v3112_v14  ;;  %v3145_v53 = vmul.f32 %v3113_v30, %v3113_v30  ;;  %v3117_v44 = vsub.f32 %v5781_v58, %v5901_v36 }
 0x24f   : > { %v3146_v50 = vmul.f32 %v3114_v24, %v3114_v24  ;;  %v3147_v56 = vmul.f32 %v3115_v2, %v3115_v2  ;;  %v3118_v47 = vsub.f32 %v5784_v49, %v5901_v36  ;;  %v3148_v17 = vmul.f32 %v3116_v23, %v3116_v23 }
 0x250   : > { %v3169_v31 = vadd.f32 %v3168_v51, %v3138_v28  ;;  %v3119_v5 = vsub.f32 %v5804_v55, %v5901_v36  ;;  %v3149_v48 = vmul.f32 %v3117_v44, %v3117_v44  ;;  %v3120_v22 = vsub.f32 %v5816_v21, %v5901_v36 }
 0x251   : > { %v3150_v38 = vmul.f32 %v3118_v47, %v3118_v47  ;;  %v3121_v58 = vsub.f32 %v5809_v34, %v5901_v36  ;;  %v3122_v49 = vsub.f32 %v5812_v18, %v5901_v36  ;;  %v3123_v55 = vsub.f32 %v5830_v35, %v5901_v36 }
 0x252   : > { %v3170_v46 = vadd.f32 %v3169_v31, %v3139_v27  ;;  %v3151_v45 = vmul.f32 %v3119_v5, %v3119_v5  ;;  %v3152_v9 = vmul.f32 %v3120_v22, %v3120_v22  ;;  %v3124_v21 = vsub.f32 %v5842_v32, %v5901_v36 }
 0x253   : > { %v3153_v52 = vmul.f32 %v3121_v58, %v3121_v58  ;;  %v3154_v13 = vmul.f32 %v3122_v49, %v3122_v49  ;;  %v3125_v34 = vsub.f32 %v5835_v41, %v5901_v36  ;;  %v3155_v51 = vmul.f32 %v3123_v55, %v3123_v55 }
 0x254   : > { %v3171_v39 = vadd.f32 %v3170_v46, %v3140_v1  ;;  %v3126_v18 = vsub.f32 %v5838_v19, %v5901_v36  ;;  %v3156_v27 = vmul.f32 %v3124_v21, %v3124_v21  ;;  %v3127_v35 = vsub.f32 %v5855_v33, %v5901_v36 }
 0x255   : > { %v3157_v37 = vmul.f32 %v3125_v34, %v3125_v34  ;;  %v3128_v32 = vsub.f32 %v5866_v20, %v5901_v36  ;;  %v3129_v41 = vsub.f32 %v5859_v15, %v5901_v36  ;;  %v3130_v19 = vsub.f32 %v5862_v61, %v5901_v36 }
 0x256   : > { %v3172_v60 = vadd.f32 %v3171_v39, %v3141_v8  ;;  %v3158_v46 = vmul.f32 %v3126_v18, %v3126_v18  ;;  %v3159_v8 = vmul.f32 %v3127_v35, %v3127_v35  ;;  %v3131_v33 = vsub.f32 %v5879_v54, %v5901_v36 }
 0x257   : > { %v3160_v14 = vmul.f32 %v3128_v32, %v3128_v32  ;;  %v3132_v20 = vsub.f32 %v5887_v7, %v5901_v36  ;;  %v3133_v15 = vsub.f32 %v5883_v11, %v5901_v36  ;;  %v3134_v61 = vsub.f32 %v5890_v57, %v5901_v36 }
 0x258   : > { %v3173_v25 = vadd.f32 %v3172_v60, %v3142_v16  ;;  %v3161_v60 = vmul.f32 %v3129_v41, %v3129_v41  ;;  %v3163_v24 = vmul.f32 %v3131_v33, %v3131_v33 }
 0x25a   : > { %v3174_v4 = vadd.f32 %v3173_v25, %v3143_v3  ;;  %v3162_v3 = vmul.f32 %v3130_v19, %v3130_v19 }
 0x25c   : > { %v3175_v59 = vadd.f32 %v3174_v4, %v3144_v6  ;;  %v3164_v4 = vmul.f32 %v3132_v20, %v3132_v20 }
 0x25e   : > { %v3176_v40 = vadd.f32 %v3175_v59, %v3145_v53  ;;  %v3165_v53 = vmul.f32 %v3133_v15, %v3133_v15  ;;  %v3166_v59 = vmul.f32 %v3134_v61, %v3134_v61 }
 0x260   : > { %v3177_v26 = vadd.f32 %v3176_v40, %v3146_v50 }
 0x262   : > { %v3178_v0 = vadd.f32 %v3177_v26, %v3147_v56 }
 0x264   : > { %v3179_v29 = vadd.f32 %v3178_v0, %v3148_v17 }
 0x266   : > { %v3180_v42 = vadd.f32 %v3179_v29, %v3149_v48 }
 0x268   : > { %v3181_v12 = vadd.f32 %v3180_v42, %v3150_v38 }
 0x26a   : > { %v3182_v63 = vadd.f32 %v3181_v12, %v3151_v45 }
 0x26c   : > { %v3183_v62 = vadd.f32 %v3182_v63, %v3152_v9 }
 0x26e   : > { %v3184_v28 = vadd.f32 %v3183_v62, %v3153_v52 }
 0x270   : > { %v3185_v43 = vadd.f32 %v3184_v28, %v3154_v13 }
 0x272   : > { %v3186_v31 = vadd.f32 %v3185_v43, %v3155_v51 }
 0x274   : > { %v3187_v1 = vadd.f32 %v3186_v31, %v3156_v27 }
 0x276   : > { %v3188_v10 = vadd.f32 %v3187_v1, %v3157_v37 }
 0x278   : > { %v3189_v39 = vadd.f32 %v3188_v10, %v3158_v46 }
 0x27a   : > { %v3190_v16 = vadd.f32 %v3189_v39, %v3159_v8 }
 0x27c   : > { %v3191_v30 = vadd.f32 %v3190_v16, %v3160_v14 }
 0x27e   : > { %v3192_v25 = vadd.f32 %v3191_v30, %v3161_v60 }
 0x280   : > { %v3193_v6 = vadd.f32 %v3192_v25, %v3162_v3 }
 0x282   : > { %v3194_v2 = vadd.f32 %v3193_v6, %v3163_v24 }
 0x284   : > { %v3195_v54 = vadd.f32 %v3194_v2, %v3164_v4 }
 0x286   : > { %v3196_v23 = vadd.f32 %v3195_v54, %v3165_v53 }
 0x288   : > { %v3197_v50 = vadd.f32 %v3196_v23, %v3166_v59 }
 0x28a   : > { %v3198_v40 = vrot.slane %v3197_v50, 4 }
 0x28c   : > { %v3199_v7 = vadd.f32 %v3198_v40, %v3197_v50 }
 0x28e   : > { %v3200_v44 = vrot.slane %v3199_v7, 2 }
 0x290   : > { %v3201_v56 = vadd.f32 %v3200_v44, %v3199_v7 }
 0x292   : > { %v3202_v26 = vrot.slane %v3201_v56, 1 }
 0x294   : > { %v3203_v11 = vadd.f32 %v3202_v26, %v3201_v56 }
 0x296   : > { %v3205_v57 = vsel %vm607_vm0, %v5901_v36, %v3203_v11 }
 0x297   : > { %3206 = vst [vmem:[%s262_s16] sm:$0x3] %v3205_v57 }
 0x298 PF: > { %s17_s21 = sadd.s32 1, %s4533_s21  }
 0x299   : > { %p14_p4 = scmp.ge.s32.totalorder %s17_s21, 4  }
 0x29b   :  { %16 = sbr.rel (!%p14_p4) target bundleno = 1 (0x1), region = 84 }

// kernel: unet_block_up.5
= control target key start
LH: loop header
LB: loop body
LE: loop exit
PB: predicated region body
PF: predicated region fallthrough
CT: control target
= control target key end

     0   :  { %s6664_s18 = smov 0   ;;  %s8807_s0 = inlined_call_operand.vmem [shape: bf16[2,16,16,128], index: 0, kind: input, shape index: {}]   ;;  %s8808_s1 = inlined_call_operand.vmem [shape: bf16[2,16,16,128], index: 1, kind: input, shape index: {}]   ;;  %s8809_s2 = inlined_call_operand.vmem [shape: bf16[3,768,128], index: 2, kind: input, shape index: {}]   ;;  %s8810_s3 = inlined_call_operand.vmem [shape: f32[1,128], index: 3, kind: input, shape index: {}]   ;;  %s8811_s4 = inlined_call_operand.vmem [shape: bf16[2,16,16,128], index: 4, kind: output, shape index: {0}]   ;;  %s8812_s5 = inlined_call_operand.vmem [shape: f32[2,1,2,128], index: 5, kind: output, shape index: {1}]  }
   0x1 LB: > { %s4871_s19 = sadd.s32 4294967295, %s6631_s18   ;;  %p4875_p0 = scmp.ge.s32.totalorder %s6631_s18, 1  ;;  %s6631_s18 = sphi %s6664_s18, %s16_s18  }
   0x2   : > { %p200_p1 = scmp.lt.s32.totalorder %s6631_s18, 3 }
   0x4   : > { %p201_p2 = pnand %p4875_p0, %p200_p1 }
   0x6   : > { %204 = sbr.rel (%p201_p2) target bundleno = 936 (0x3a8), region = 36 }
   0xd   : > { %v6449_v0 = vld [vmem:[%s8809_s2 + $0x40] sm:$0xff]   ;;  %v6451_v2 = vld [vmem:[%s8809_s2 + $0x48] sm:$0xff]   ;;  %p237_p3 = scmp.lt.s32.totalorder %s4871_s19, 1  ;;  %v6453_v4 = vld [vmem:[%s8809_s2 + $0x50] sm:$0xff]   ;;  %v6633_v9 = vmov 0   ;;  %vm522_vm0 = vcmask 1040384  }
   0xe   : > { %v6450_v1 = vld [vmem:[%s8809_s2] sm:$0xff]   ;;  %5416 = vmatprep.subr.bf16.mxu0 %v6449_v0  ;;  %6424 = vmatprep.subr.bf16.mxu1 %v6449_v0  ;;  %v6452_v3 = vld [vmem:[%s8809_s2 + $0x8] sm:$0xff]   ;;  %v6454_v5 = vld [vmem:[%s8809_s2 + $0x10] sm:$0xff]   ;;  %v372_v10 = vrot.slane %v6633_v9, 7  ;;  %vm523_vm1 = vsmask.f32 256 }
   0xf   : > { %5417 = vmatpush3.bf16.msra.mxu0 %v6450_v1  ;;  %6432 = vmatpush3.bf16.msra.mxu1 %v6450_v1  ;;  %s9260_s19 = smov (!%p237_p3, %s4871_s19), 1  ;;  %v6455_v6 = vld [vmem:[%s8809_s2 + $0x58] sm:$0xff]   ;;  %v6457_v8 = vld [vmem:[%s8809_s2 + $0x60] sm:$0xff]   ;;  %v6459_v12 = vld [vmem:[%s8809_s2 + $0x68] sm:$0xff]   ;;  %vm559_vm3 = vsmask.f32 7424 }
  0x10   : > { %5418 = vmatprep.subr.bf16.mxu0 %v6451_v2  ;;  %6425 = vmatprep.subr.bf16.mxu1 %v6451_v2  ;;  %v6456_v7 = vld [vmem:[%s8809_s2 + $0x18] sm:$0xff]   ;;  %s6699_s11 = sshll.u32 %s9260_s19, 7  ;;  %v6458_v11 = vld [vmem:[%s8809_s2 + $0x20] sm:$0xff]   ;;  %vm6717_vm2 = vmand %vm522_vm0, %vm523_vm1  ;;  %vm815_vm4 = vcmask 1046528  }
  0x11   : > { %s6708_s16 = scalar_lea.vmem %s8807_s0, %s6699_s11  ;;  %v6724_v15 = vsel %vm6717_vm2, 0, %v372_v10  ;;  %v6728_v16 = vsel %vm6717_vm2, %v372_v10, 0  ;;  %v6460_v17 = vld [vmem:[%s8809_s2 + $0x28] sm:$0xff]   ;;  %v6461_v22 = vld [vmem:[%s8809_s2 + $0x70] sm:$0xff]   ;;  %v6463_v28 = vld [vmem:[%s8809_s2 + $0x78] sm:$0xff]   ;;  %s7099_s14 = scalar_lea.vmem %s8808_s1, %s6699_s11 }
  0x12   : > { %v6465_v14 = vld [vmem:[%s6708_s16 + $0x38] sm:$0xff]   ;;  %8949 = vst [vmem:[#allocation3_spill] sm:$0xff] %v6724_v15  ;;  %v561_v18 = vshrl.u32 %v6724_v15, 16  ;;  %v563_v19 = vshll.u32 %v6724_v15, 16  ;;  %v568_v20 = vshll.u32 %v6728_v16, 16  ;;  %v6462_v24 = vld [vmem:[%s8809_s2 + $0x30] sm:$0xff]   ;;  %s8501_s26 = scalar_lea.vmem %s8811_s4, %s6699_s11 }
  0x13   : > { %5419 = vmatpush3.bf16.msra.mxu0 %v6452_v3  ;;  %6433 = vmatpush3.bf16.msra.mxu1 %v6452_v3  ;;  %v426_v21 = vshrl.u32 %v6465_v14, 16  ;;  %v429_v23 = vshll.u32 %v6465_v14, 16  ;;  %v6470_v32 = vld [vmem:[%s6708_s16] sm:$0xff]   ;;  %v6464_v35 = vld [vmem:[%s8809_s2 + $0x38] sm:$0xff]   ;;  %v6472_v58 = vld [vmem:[%s8809_s2 + $0xc8] sm:$0xff]   ;;  %s4882_s11 = sshll.u32 %s9260_s19, 1 }
  0x14   : > { %5420 = vmatprep.subr.bf16.mxu0 %v6453_v4  ;;  %6426 = vmatprep.subr.bf16.mxu1 %v6453_v4  ;;  %v565_v25 = vrot.slane %v563_v19, 1  ;;  %v570_v26 = vrot.slane %v568_v20, 1  ;;  %v6471_v34 = vld [vmem:[%s6708_s16 + $0x40] sm:$0xff]   ;;  %v377_v38 = vshrl.u32 %v6470_v32, 16  ;;  %v380_v39 = vshll.u32 %v6470_v32, 16  ;;  %v6476_v60 = vld [vmem:[%s6708_s16 + $0x8] sm:$0xff]  }
  0x15   : > { %v428_v27 = vrot.slane %v426_v21, 7  ;;  %v6466_v42 = vld [vmem:[%s8809_s2 + $0xc0] sm:$0xff]   ;;  %v433_v43 = vshrl.u32 %v6471_v34, 16  ;;  %v436_v45 = vshll.u32 %v6471_v34, 16  ;;  %v6477_v61 = vld [vmem:[%s6708_s16 + $0x48] sm:$0xff]   ;;  %v6481_v32 = vld [vmem:[%s8809_s2 + $0x110] sm:$0xff]  }
  0x16   : > { %v566_v29 = vor.u32 %v565_v25, %v561_v18  ;;  %v379_v44 = vrot.slane %v377_v38, 7  ;;  %v6468_v48 = vld [vmem:[%s8809_s2 + $0x140] sm:$0xff]   ;;  %v6474_v2 = vld [vmem:[%s8809_s2 + $0x148] sm:$0xff]   ;;  %v6479_v25 = vld [vmem:[%s8809_s2 + $0x90] sm:$0xff]  }
  0x17   : > { %5421 = vmatpush3.bf16.msra.mxu0 %v6454_v5  ;;  %6434 = vmatpush3.bf16.msra.mxu1 %v6454_v5  ;;  %v431_v30 = vor.u32 %v429_v23, %v428_v27  ;;  %v6747_v31 = vsel %vm6717_vm2, %v428_v27, 0  ;;  %v435_v49 = vrot.slane %v433_v43, 7  ;;  %v6467_v50 = vld [vmem:[%s8809_s2 + $0x80] sm:$0xff]   ;;  %v6473_v5 = vld [vmem:[%s8809_s2 + $0x88] sm:$0xff]  }
  0x18   : > { %5422 = vmatprep.subr.bf16.mxu0 %v6455_v6  ;;  %6427 = vmatprep.subr.bf16.mxu1 %v6455_v6  ;;  %v664_v33 = vshll.u32 %v6747_v31, 16  ;;  %v6756_v36 = vsel %vm559_vm3, %v566_v29, %v570_v26  ;;  %v6469_v51 = vld [vmem:[%s8809_s2 + $0x100] sm:$0xff]   ;;  %v382_v52 = vor.u32 %v380_v39, %v379_v44  ;;  %v6779_v53 = vsel %vm6717_vm2, %v379_v44, 0  ;;  %v6480_v26 = vld [vmem:[%s8809_s2 + $0x150] sm:$0xff]  }
  0x19   : > { %8950 = vst [vmem:[#allocation4_spill] sm:$0xff] %v6756_v36  ;;  %v6760_v37 = vsel %vm6717_vm2, 0, %v431_v30  ;;  %1956 = vmatprep.mubr.bf16.mxu0 %v6756_v36  ;;  %v580_v55 = vshll.u32 %v6779_v53, 16  ;;  %v438_v56 = vor.u32 %v436_v45, %v435_v49  ;;  %v6784_v57 = vsel %vm6717_vm2, %v435_v49, 0 }
  0x1a   : > { %8951 = vst [vmem:[#allocation5_spill] sm:$0xff] %v6760_v37  ;;  %v657_v40 = vshrl.u32 %v6760_v37, 16  ;;  %v659_v41 = vshll.u32 %v6760_v37, 16  ;;  %v666_v47 = vrot.slane %v664_v33, 1  ;;  %v6791_v59 = vsel %vm6717_vm2, 0, %v382_v52  ;;  %v6482_v33 = vld [vmem:[%s6708_s16 + $0x10] sm:$0xff]  }
  0x1b   : > { %5423 = vmatpush3.bf16.msra.mxu0 %v6456_v7  ;;  %6435 = vmatpush3.bf16.msra.mxu1 %v6456_v7  ;;  %v573_v63 = vshrl.u32 %v6791_v59, 16  ;;  %v575_v0 = vshll.u32 %v6791_v59, 16  ;;  %v676_v1 = vshll.u32 %v6784_v57, 16  ;;  %v582_v3 = vrot.slane %v580_v55, 1  ;;  %v6484_v55 = vld [vmem:[%s8809_s2 + $0xd8] sm:$0xff]  }
  0x1c   : > { %5424 = vmatprep.subr.bf16.mxu0 %v6457_v8  ;;  %6428 = vmatprep.subr.bf16.mxu1 %v6457_v8  ;;  %v661_v46 = vrot.slane %v659_v41, 1  ;;  %v6807_v4 = vsel %vm6717_vm2, 0, %v438_v56  ;;  %v384_v6 = vshrl.u32 %v6476_v60, 16  ;;  %v387_v7 = vshll.u32 %v6476_v60, 16 }
  0x1d   : > { %8953 = vst [vmem:[#allocation7_spill] sm:$0xff] %v6807_v4  ;;  %v577_v8 = vrot.slane %v575_v0, 1  ;;  %v669_v9 = vshrl.u32 %v6807_v4, 16  ;;  %v671_v10 = vshll.u32 %v6807_v4, 16  ;;  %v678_v20 = vrot.slane %v676_v1, 1  ;;  %v6485_v0 = vld [vmem:[%s8809_s2 + $0x98] sm:$0xff]  }
  0x1e   : > { %v662_v54 = vor.u32 %v661_v46, %v657_v40  ;;  %v386_v14 = vrot.slane %v384_v6, 7  ;;  %v391_v45 = vshrl.u32 %v6482_v33, 16  ;;  %v394_v46 = vshll.u32 %v6482_v33, 16  ;;  %v6486_v6 = vld [vmem:[%s8809_s2 + $0x158] sm:$0xff]   ;;  %v6490_v33 = vld [vmem:[%s8809_s2 + $0xe0] sm:$0xff]  }
  0x1f   : > { %5425 = vmatpush3.bf16.msra.mxu0 %v6458_v11  ;;  %6436 = vmatpush3.bf16.msra.mxu1 %v6458_v11  ;;  %v6475_v11 = vld [vmem:[%s8809_s2 + $0x108] sm:$0xff]   ;;  %v578_v18 = vor.u32 %v577_v8, %v573_v63  ;;  %v673_v19 = vrot.slane %v671_v10, 1  ;;  %v6488_v10 = vld [vmem:[%s6708_s16 + $0x18] sm:$0xff]  }
  0x20   : > { %5426 = vmatprep.subr.bf16.mxu0 %v6459_v12  ;;  %6429 = vmatprep.subr.bf16.mxu1 %v6459_v12  ;;  %v6796_v62 = vsel %vm559_vm3, %v662_v54, %v666_v47  ;;  %v440_v12 = vshrl.u32 %v6477_v61, 16  ;;  %v389_v23 = vor.u32 %v387_v7, %v386_v14  ;;  %v393_v52 = vrot.slane %v391_v45, 7  ;;  %v6491_v45 = vld [vmem:[%s8809_s2 + $0xa0] sm:$0xff]  }
  0x21   : > { %8952 = vst [vmem:[#allocation6_spill] sm:$0xff] %v6796_v62  ;;  %2020 = vmatprep.mubr.bf16.mxu1 %v6796_v62  ;;  %v6833_v27 = vsel %vm559_vm3, %v578_v18, %v582_v3  ;;  %v6489_v18 = vld [vmem:[%s6708_s16 + $0x58] sm:$0xff]  }
  0x22   : > { %v442_v21 = vrot.slane %v440_v12, 7  ;;  %v6843_v34 = vsel %vm6717_vm2, 0, %v389_v23  ;;  %v6870_v63 = vsel %vm6717_vm2, %v393_v52, 0 }
  0x23   : > { %5427 = vmatpush3.bf16.msra.mxu0 %v6460_v17  ;;  %6437 = vmatpush3.bf16.msra.mxu1 %v6460_v17  ;;  %v443_v17 = vshll.u32 %v6477_v61, 16  ;;  %v585_v39 = vshrl.u32 %v6843_v34, 16  ;;  %v587_v40 = vshll.u32 %v6843_v34, 16  ;;  %v396_v61 = vor.u32 %v394_v46, %v393_v52 }
  0x24   : > { %5428 = vmatprep.subr.bf16.mxu0 %v6461_v22  ;;  %6430 = vmatprep.subr.bf16.mxu1 %v6461_v22  ;;  %v6478_v22 = vld [vmem:[%s8809_s2 + $0xd0] sm:$0xff]   ;;  %v604_v3 = vshll.u32 %v6870_v63, 16 }
  0x25   : > { %v445_v30 = vor.u32 %v443_v17, %v442_v21  ;;  %v589_v47 = vrot.slane %v587_v40, 1  ;;  %v6885_v7 = vsel %vm6717_vm2, 0, %v396_v61 }
  0x26   : > { %v597_v12 = vshrl.u32 %v6885_v7, 16  ;;  %v606_v17 = vrot.slane %v604_v3, 1 }
  0x27   : > { %5429 = vmatpush3.bf16.msra.mxu0 %v6462_v24  ;;  %6438 = vmatpush3.bf16.msra.mxu1 %v6462_v24  ;;  %v6824_v24 = vsel %vm6717_vm2, %v386_v14, 0  ;;  %v6858_v43 = vsel %vm6717_vm2, 0, %v445_v30  ;;  %v590_v56 = vor.u32 %v589_v47, %v585_v39  ;;  %v599_v14 = vshll.u32 %v6885_v7, 16 }
  0x28   : > { %5430 = vmatprep.subr.bf16.mxu0 %v6463_v28  ;;  %6431 = vmatprep.subr.bf16.mxu1 %v6463_v28  ;;  %v674_v28 = vor.u32 %v673_v19, %v669_v9  ;;  %v592_v29 = vshll.u32 %v6824_v24, 16  ;;  %8955 = vst [vmem:[#allocation9_spill] sm:$0xff] %v6858_v43  ;;  %v683_v49 = vshll.u32 %v6858_v43, 16  ;;  %v6487_v9 = vld [vmem:[%s8809_s2 + $0x118] sm:$0xff]  }
  0x29   : > { %v601_v23 = vrot.slane %v599_v14, 1 }
  0x2a   : > { %v6850_v38 = vsel %vm559_vm3, %v674_v28, %v678_v20  ;;  %v594_v41 = vrot.slane %v592_v29, 1  ;;  %v454_v28 = vshrl.u32 %v6489_v18, 16 }
  0x2b   : > { %5431 = vmatpush3.bf16.msra.mxu0 %v6464_v35  ;;  %6439 = vmatpush3.bf16.msra.mxu1 %v6464_v35  ;;  %v6847_v35 = vsel %vm6717_vm2, %v442_v21, 0  ;;  %8954 = vst [vmem:[#allocation8_spill] sm:$0xff] %v6850_v38  ;;  %v398_v21 = vshrl.u32 %v6488_v10, 16  ;;  %v602_v39 = vor.u32 %v601_v23, %v597_v12 }
  0x2c   : > { %5528 = vmatprep.subr.bf16.mxu1 %v6466_v42  ;;  %5640 = vmatprep.subr.bf16.mxu0 %v6468_v48  ;;  %v6483_v42 = vld [vmem:[%s6708_s16 + $0x50] sm:$0xff]   ;;  %v688_v44 = vshll.u32 %v6847_v35, 16  ;;  %v681_v48 = vshrl.u32 %v6858_v43, 16  ;;  %v6876_v1 = vsel %vm559_vm3, %v590_v56, %v594_v41  ;;  %v456_v41 = vrot.slane %v454_v28, 7 }
  0x2d   : > { %v450_v54 = vshll.u32 %v6483_v42, 16  ;;  %v400_v30 = vrot.slane %v398_v21, 7  ;;  %v6922_v46 = vsel %vm559_vm3, %v602_v39, %v606_v17  ;;  %v6496_v21 = vld [vmem:[%s8809_s2 + $0xe8] sm:$0xff]  }
  0x2e   : > { %1957 = vmatmul.mubr.bf16.vlgmr.msra.gmra.mrb[0].mxu0 %v6724_v15  ;;  %2021 = vmatmul.mubr.bf16.vlgmr.msra.gmra.mrb[0].mxu1 %v6760_v37  ;;  %v6935_v52 = vsel %vm6717_vm2, %v456_v41, 0 }
  0x2f   : > { %5529 = vmatpush3.bf16.msra.mxu1 %v6467_v50  ;;  %5641 = vmatpush3.bf16.msra.mxu0 %v6469_v51  ;;  %v447_v50 = vshrl.u32 %v6483_v42, 16  ;;  %v690_v51 = vrot.slane %v688_v44, 1  ;;  %v6916_v44 = vsel %vm6717_vm2, %v400_v30, 0  ;;  %v712_v3 = vshll.u32 %v6935_v52, 16 }
  0x30   : > { %5530 = vmatprep.subr.bf16.mxu1 %v6472_v58  ;;  %5642 = vmatprep.subr.bf16.mxu0 %v6474_v2  ;;  %v685_v58 = vrot.slane %v683_v49, 1 }
  0x31   : > { %1964 = vmatprep.mubr.bf16.mxu0 %v6833_v27  ;;  %2028 = vmatprep.mubr.bf16.mxu1 %v6850_v38  ;;  %v449_v60 = vrot.slane %v447_v50, 7  ;;  %v6492_v50 = vld [vmem:[%s8809_s2 + $0x160] sm:$0xff]   ;;  %v714_v17 = vrot.slane %v712_v3, 1  ;;  %v6519_v38 = vld [vmem:[%s8809_s2 + $0x188] sm:$0xff]  }
  0x32   : > { %v686_v2 = vor.u32 %v685_v58, %v681_v48  ;;  %v616_v48 = vshll.u32 %v6916_v44, 16 }
  0x33   : > { %5531 = vmatpush3.bf16.msra.mxu1 %v6473_v5  ;;  %5643 = vmatpush3.bf16.msra.mxu0 %v6475_v11  ;;  %v452_v5 = vor.u32 %v450_v54, %v449_v60  ;;  %v6889_v8 = vsel %vm6717_vm2, %v449_v60, 0  ;;  %v6493_v54 = vld [vmem:[%s8809_s2 + $0x120] sm:$0xff]  }
  0x34   : > { %5532 = vmatprep.subr.bf16.mxu1 %v6478_v22  ;;  %5644 = vmatprep.subr.bf16.mxu0 %v6480_v26  ;;  %v6896_v11 = vsel %vm559_vm3, %v686_v2, %v690_v51  ;;  %v700_v20 = vshll.u32 %v6889_v8, 16  ;;  %v401_v22 = vshll.u32 %v6488_v10, 16  ;;  %v618_v61 = vrot.slane %v616_v48, 1 }
  0x35   : > { %8956 = vst [vmem:[#allocation10_spill] sm:$0xff] %v6896_v11  ;;  %v6904_v19 = vsel %vm6717_vm2, 0, %v452_v5 }
  0x36   : > { %1965 = vmatmul.mubr.bf16.gmra.mrb[4].mxu0 %v6791_v59  ;;  %2029 = vmatmul.mubr.bf16.gmra.mrb[4].mxu1 %v6807_v4  ;;  %8957 = vst [vmem:[#allocation11_spill] sm:$0xff] %v6904_v19  ;;  %v695_v26 = vshll.u32 %v6904_v19, 16  ;;  %v702_v29 = vrot.slane %v700_v20, 1  ;;  %v403_v42 = vor.u32 %v401_v22, %v400_v30 }
  0x37   : > { %5533 = vmatpush3.bf16.msra.mxu1 %v6479_v25  ;;  %5645 = vmatpush3.bf16.msra.mxu0 %v6481_v32  ;;  %v693_v25 = vshrl.u32 %v6904_v19, 16  ;;  %v457_v32 = vshll.u32 %v6489_v18, 16 }
  0x38   : > { %5534 = vmatprep.subr.bf16.mxu1 %v6484_v55  ;;  %1972 = vmatprep.mubr.bf16.mxu0 %v6876_v1  ;;  %v697_v40 = vrot.slane %v695_v26, 1  ;;  %v6931_v51 = vsel %vm6717_vm2, 0, %v403_v42  ;;  %v6494_v55 = vld [vmem:[%s6708_s16 + $0x20] sm:$0xff]  }
  0x39   : > { %5646 = vmatprep.subr.bf16.mxu0 %v6486_v6  ;;  %2036 = vmatprep.mubr.bf16.mxu1 %v6896_v11  ;;  %v459_v49 = vor.u32 %v457_v32, %v456_v41  ;;  %8958 = vst [vmem:[#allocation12_spill] sm:$0xff] %v6931_v51  ;;  %v609_v58 = vshrl.u32 %v6931_v51, 16  ;;  %v611_v60 = vshll.u32 %v6931_v51, 16  ;;  %v405_v5 = vshrl.u32 %v6494_v55, 16 }
  0x3a   : > { %v698_v47 = vor.u32 %v697_v40, %v693_v25  ;;  %v408_v6 = vshll.u32 %v6494_v55, 16  ;;  %v6498_v40 = vld [vmem:[%s8809_s2 + $0x168] sm:$0xff]  }
  0x3b   : > { %5535 = vmatpush3.bf16.msra.mxu1 %v6485_v0  ;;  %5647 = vmatpush3.bf16.msra.mxu0 %v6487_v9  ;;  %v6495_v0 = vld [vmem:[%s6708_s16 + $0x60] sm:$0xff]   ;;  %v6950_v2 = vsel %vm6717_vm2, 0, %v459_v49  ;;  %v613_v9 = vrot.slane %v611_v60, 1  ;;  %v407_v18 = vrot.slane %v405_v5, 7  ;;  %v6501_v60 = vld [vmem:[%s6708_s16 + $0x68] sm:$0xff]   ;;  %v6502_v5 = vld [vmem:[%s8809_s2 + $0xf0] sm:$0xff]  }
  0x3c   : > { %5536 = vmatprep.subr.bf16.mxu1 %v6490_v33  ;;  %v6942_v56 = vsel %vm559_vm3, %v698_v47, %v702_v29  ;;  %5648 = vmatprep.subr.bf16.mxu0 %v6492_v50  ;;  %8960 = vst [vmem:[#allocation14_spill] sm:$0xff] %v6950_v2  ;;  %v705_v10 = vshrl.u32 %v6950_v2, 16  ;;  %v707_v12 = vshll.u32 %v6950_v2, 16  ;;  %v461_v14 = vshrl.u32 %v6495_v0, 16  ;;  %v6497_v29 = vld [vmem:[%s8809_s2 + $0xa8] sm:$0xff]  }
  0x3d   : > { %8959 = vst [vmem:[#allocation13_spill] sm:$0xff] %v6942_v56  ;;  %v464_v20 = vshll.u32 %v6495_v0, 16  ;;  %v614_v22 = vor.u32 %v613_v9, %v609_v58  ;;  %v410_v26 = vor.u32 %v408_v6, %v407_v18  ;;  %v6962_v28 = vsel %vm6717_vm2, %v407_v18, 0  ;;  %v6499_v50 = vld [vmem:[%s8809_s2 + $0x128] sm:$0xff]  }
  0x3e   : > { %1973 = vmatmul.mubr.bf16.gmra.mrb[8].mxu0 %v6843_v34  ;;  %2037 = vmatmul.mubr.bf16.gmra.mrb[8].mxu1 %v6858_v43  ;;  %v709_v23 = vrot.slane %v707_v12, 1  ;;  %v463_v25 = vrot.slane %v461_v14, 7  ;;  %v628_v33 = vshll.u32 %v6962_v28, 16  ;;  %v6500_v58 = vld [vmem:[%s6708_s16 + $0x28] sm:$0xff]   ;;  %v468_v12 = vshrl.u32 %v6501_v60, 16 }
  0x3f   : > { %1980 = vmatprep.mubr.bf16.mxu0 %v6922_v46  ;;  %5537 = vmatpush3.bf16.msra.mxu1 %v6491_v45  ;;  %v6968_v30 = vsel %vm559_vm3, %v614_v22, %v618_v61  ;;  %v6977_v41 = vsel %vm6717_vm2, 0, %v410_v26  ;;  %v412_v9 = vshrl.u32 %v6500_v58, 16  ;;  %v471_v18 = vshll.u32 %v6501_v60, 16  ;;  %v6507_v60 = vld [vmem:[%s6708_s16 + $0x70] sm:$0xff]  }
  0x40   : > { %2044 = vmatprep.mubr.bf16.mxu1 %v6942_v56  ;;  %5649 = vmatpush3.bf16.msra.mxu0 %v6493_v54  ;;  %v710_v32 = vor.u32 %v709_v23, %v705_v10  ;;  %v466_v39 = vor.u32 %v464_v20, %v463_v25  ;;  %8961 = vst [vmem:[#allocation15_spill] sm:$0xff] %v6977_v41  ;;  %v6981_v42 = vsel %vm6717_vm2, %v463_v25, 0  ;;  %v621_v47 = vshrl.u32 %v6977_v41, 16  ;;  %v6503_v25 = vld [vmem:[%s8809_s2 + $0xb0] sm:$0xff]  }
  0x41   : > { %5538 = vmatprep.subr.bf16.mxu1 %v6496_v21  ;;  %v623_v48 = vshll.u32 %v6977_v41, 16  ;;  %v630_v49 = vrot.slane %v628_v33, 1  ;;  %5650 = vmatprep.subr.bf16.mxu0 %v6498_v40  ;;  %v724_v55 = vshll.u32 %v6981_v42, 16  ;;  %v415_v10 = vshll.u32 %v6500_v58, 16  ;;  %v6505_v40 = vld [vmem:[%s8809_s2 + $0x130] sm:$0xff]  }
  0x42   : > { %v6984_v45 = vsel %vm559_vm3, %v710_v32, %v714_v17  ;;  %v6994_v54 = vsel %vm6717_vm2, 0, %v466_v39  ;;  %v414_v20 = vrot.slane %v412_v9, 7  ;;  %v470_v21 = vrot.slane %v468_v12, 7  ;;  %v6504_v39 = vld [vmem:[%s8809_s2 + $0x170] sm:$0xff]  }
  0x43   : > { %5539 = vmatpush3.bf16.msra.mxu1 %v6497_v29  ;;  %8962 = vst [vmem:[#allocation16_spill] sm:$0xff] %v6984_v45  ;;  %v625_v61 = vrot.slane %v623_v48, 1  ;;  %v717_v0 = vshrl.u32 %v6994_v54, 16  ;;  %v719_v3 = vshll.u32 %v6994_v54, 16  ;;  %v726_v6 = vrot.slane %v724_v55, 1  ;;  %v6506_v58 = vld [vmem:[%s6708_s16 + $0x30] sm:$0xff]  }
  0x44   : > { %5651 = vmatpush3.bf16.msra.mxu0 %v6499_v50  ;;  %5540 = vmatprep.subr.bf16.mxu1 %v6502_v5  ;;  %v417_v26 = vor.u32 %v415_v10, %v414_v20  ;;  %v7015_v29 = vsel %vm6717_vm2, %v414_v20, 0  ;;  %v473_v32 = vor.u32 %v471_v18, %v470_v21  ;;  %v7019_v33 = vsel %vm6717_vm2, %v470_v21, 0  ;;  %v6508_v20 = vld [vmem:[%s8809_s2 + $0xf8] sm:$0xff]  }
  0x45   : > { %v626_v14 = vor.u32 %v625_v61, %v621_v47  ;;  %v721_v17 = vrot.slane %v719_v3, 1  ;;  %v640_v48 = vshll.u32 %v7015_v29, 16  ;;  %5652 = vmatprep.subr.bf16.mxu0 %v6504_v39  ;;  %v419_v10 = vshrl.u32 %v6506_v58, 16 }
  0x46   : > { %1981 = vmatmul.mubr.bf16.gmra.mrb[12].mxu0 %v6885_v7  ;;  %2045 = vmatmul.mubr.bf16.gmra.mrb[12].mxu1 %v6904_v19  ;;  %v7035_v50 = vsel %vm6717_vm2, 0, %v417_v26  ;;  %v7039_v55 = vsel %vm6717_vm2, 0, %v473_v32  ;;  %v422_v12 = vshll.u32 %v6506_v58, 16  ;;  %v478_v18 = vshll.u32 %v6507_v60, 16  ;;  %v6509_v32 = vld [vmem:[%s8809_s2 + $0xb8] sm:$0xff]  }
  0x47   : > { %1988 = vmatprep.mubr.bf16.mxu0 %v6968_v30  ;;  %2052 = vmatprep.mubr.bf16.mxu1 %v6984_v45  ;;  %v7007_v22 = vsel %vm559_vm3, %v626_v14, %v630_v49  ;;  %v722_v23 = vor.u32 %v721_v17, %v717_v0  ;;  %v736_v49 = vshll.u32 %v7019_v33, 16  ;;  %8965 = vst [vmem:[#allocation19_spill] sm:$0xff] %v7035_v50  ;;  %v633_v61 = vshrl.u32 %v7035_v50, 16 }
  0x48   : > { %8963 = vst [vmem:[#allocation17_spill] sm:$0xff] %v7007_v22  ;;  %5541 = vmatpush3.bf16.msra.mxu1 %v6503_v25  ;;  %v635_v0 = vshll.u32 %v7035_v50, 16  ;;  %v642_v3 = vrot.slane %v640_v48, 1  ;;  %v729_v5 = vshrl.u32 %v7039_v55, 16  ;;  %5653 = vmatpush3.bf16.msra.mxu0 %v6505_v40  ;;  %v475_v17 = vshrl.u32 %v6507_v60, 16 }
  0x49   : > { %v7028_v47 = vsel %vm559_vm3, %v722_v23, %v726_v6  ;;  %v731_v6 = vshll.u32 %v7039_v55, 16  ;;  %v738_v9 = vrot.slane %v736_v49, 1  ;;  %v421_v23 = vrot.slane %v419_v10, 7  ;;  %5542 = vmatprep.subr.bf16.mxu1 %v6508_v20  ;;  %v6510_v49 = vld [vmem:[%s8809_s2 + $0x178] sm:$0xff]  }
  0x4a   : > { %8964 = vst [vmem:[#allocation18_spill] sm:$0xff] %v7028_v47  ;;  %v637_v14 = vrot.slane %v635_v0, 1  ;;  %v477_v26 = vrot.slane %v475_v17, 7  ;;  %5654 = vmatprep.subr.bf16.mxu0 %v6510_v49  ;;  %v817_v20 = vrot.slane %v6728_v16, 1 }
  0x4b   : > { %v733_v21 = vrot.slane %v731_v6, 1  ;;  %v424_v40 = vor.u32 %v422_v12, %v421_v23  ;;  %v7057_v48 = vsel %vm6717_vm2, %v421_v23, 0  ;;  %v6512_v6 = vld [vmem:[%s8809_s2 + $0x1c0] sm:$0xff]  }
  0x4c   : > { %v638_v25 = vor.u32 %v637_v14, %v633_v61  ;;  %v652_v60 = vshll.u32 %v7057_v48, 16  ;;  %v480_v61 = vor.u32 %v478_v18, %v477_v26  ;;  %v7068_v0 = vsel %vm6717_vm2, %v477_v26, 0  ;;  %5543 = vmatpush3.bf16.msra.mxu1 %v6509_v32  ;;  %v6514_v26 = vld [vmem:[%s8809_s2 + $0x240] sm:$0xff]  }
  0x4d   : > { %v734_v39 = vor.u32 %v733_v21, %v729_v5  ;;  %v6511_v5 = vld [vmem:[%s8809_s2 + $0x138] sm:$0xff]   ;;  %v7082_v10 = vsel %vm6717_vm2, 0, %v424_v40  ;;  %v748_v12 = vshll.u32 %v7068_v0, 16  ;;  %v816_v14 = vrot.slane %v6724_v15, 1  ;;  %5752 = vmatprep.subr.bf16.mxu1 %v6512_v6  ;;  %v6516_v40 = vld [vmem:[%s7099_s14] sm:$0xff]  }
  0x4e   : > { %1989 = vmatmul.mubr.bf16.gmra.mrb[16].mxu0 %v6931_v51  ;;  %2053 = vmatmul.mubr.bf16.gmra.mrb[16].mxu1 %v6950_v2  ;;  %v7063_v58 = vsel %vm559_vm3, %v638_v25, %v642_v3  ;;  %8968 = vst [vmem:[#allocation22_spill] sm:$0xff] %v7082_v10  ;;  %v645_v17 = vshrl.u32 %v7082_v10, 16  ;;  %v647_v18 = vshll.u32 %v7082_v10, 16  ;;  %v654_v21 = vrot.slane %v652_v60, 1  ;;  %v6517_v60 = vld [vmem:[%s7099_s14 + $0x8] sm:$0xff]  }
  0x4f   : > { %1996 = vmatprep.mubr.bf16.mxu0 %v7007_v22  ;;  %2060 = vmatprep.mubr.bf16.mxu1 %v7028_v47  ;;  %8966 = vst [vmem:[#allocation20_spill] sm:$0xff] %v7063_v58  ;;  %v7078_v3 = vsel %vm559_vm3, %v734_v39, %v738_v9  ;;  %v7092_v9 = vsel %vm6717_vm2, 0, %v480_v61  ;;  %v750_v32 = vrot.slane %v748_v12, 1  ;;  %v1000_v47 = vshll.u32 %v6516_v40, 16 }
  0x50   : > { %8967 = vst [vmem:[#allocation21_spill] sm:$0xff] %v7078_v3  ;;  %v741_v23 = vshrl.u32 %v7092_v9, 16  ;;  %v743_v25 = vshll.u32 %v7092_v9, 16  ;;  %5655 = vmatpush3.bf16.msra.mxu0 %v6511_v5  ;;  %v649_v16 = vrot.slane %v647_v18, 1  ;;  %v7113_v5 = vsel %vm815_vm4, %v816_v14, %v817_v20 }
  0x51   : > { %5864 = vmatprep.subr.bf16.mxu0 %v6514_v26  ;;  %8970 = vst [vmem:[#allocation24_spill] sm:$0xff] %v7113_v5  ;;  %v1004_v12 = vshrl.u32 %v6517_v60, 16  ;;  %v831_v22 = vrot.slane %v6977_v41, 1 }
  0x52   : > { %v745_v39 = vrot.slane %v743_v25, 1  ;;  %v650_v49 = vor.u32 %v649_v16, %v645_v17  ;;  %v1007_v25 = vshll.u32 %v6517_v60, 16  ;;  %v6513_v60 = vld [vmem:[%s8809_s2 + $0x180] sm:$0xff]  }
  0x53   : > { %v1006_v20 = vrot.slane %v1004_v12, 7  ;;  %v820_v12 = vrot.slane %v6779_v53, 1  ;;  %v6520_v53 = vld [vmem:[%s8809_s2 + $0x248] sm:$0xff]  }
  0x54   : > { %v746_v61 = vor.u32 %v745_v39, %v741_v23  ;;  %v7110_v45 = vsel %vm559_vm3, %v650_v49, %v654_v21  ;;  %v6522_v49 = vld [vmem:[%s7099_s14 + $0x10] sm:$0xff]  }
  0x55   : > { %8969 = vst [vmem:[#allocation23_spill] sm:$0xff] %v7110_v45  ;;  %v1009_v21 = vor.u32 %v1007_v25, %v1006_v20 }
  0x56   : > { %1997 = vmatmul.mubr.bf16.gmra.mrb[20].mxu0 %v6977_v41  ;;  %2061 = vmatmul.mubr.bf16.gmra.mrb[20].mxu1 %v6994_v54  ;;  %v7117_v18 = vsel %vm559_vm3, %v746_v61, %v750_v32  ;;  %v6523_v61 = vld [vmem:[%s7099_s14 + $0x18] sm:$0xff]  }
  0x57   : > { %2004 = vmatprep.mubr.bf16.mxu0 %v7063_v58  ;;  %2068 = vmatprep.mubr.bf16.mxu1 %v7078_v3  ;;  %v997_v3 = vshrl.u32 %v6516_v40, 16  ;;  %8971 = vst [vmem:[#allocation25_spill] sm:$0xff] %v7117_v18  ;;  %v7138_v40 = vsel %vm6717_vm2, 0, %v1009_v21  ;;  %v1011_v21 = vshrl.u32 %v6522_v49, 16 }
  0x58   : > { %8972 = vst [vmem:[#allocation26_spill] sm:$0xff] %v7138_v40  ;;  %v1187_v56 = vshll.u32 %v7138_v40, 16 }
  0x59   : > { %v999_v6 = vrot.slane %v997_v3, 7  ;;  %v1013_v11 = vrot.slane %v1011_v21, 7 }
  0x5b   : > { %v1002_v14 = vor.u32 %v1000_v47, %v999_v6  ;;  %v1156_v17 = vsel %vm6717_vm2, %v999_v6, 0  ;;  %v6515_v47 = vld [vmem:[%s8809_s2 + $0x200] sm:$0xff]   ;;  %v819_v6 = vrot.slane %v6791_v59, 1 }
  0x5c   : > { %v1413_v26 = vrot.slane %v1156_v17, 1  ;;  %v1180_v39 = vshll.u32 %v1156_v17, 16  ;;  %v6518_v17 = vld [vmem:[%s8809_s2 + $0x1c8] sm:$0xff]  }
  0x5d   : > { %v7128_v3 = vsel %vm6717_vm2, 0, %v1002_v14  ;;  %v1157_v14 = vsel %vm6717_vm2, %v1006_v20, 0 }
  0x5e   : > { %2005 = vmatmul.mubr.bf16.gmra.mrb[24].mxu0 %v7035_v50  ;;  %2069 = vmatmul.mubr.bf16.gmra.mrb[24].mxu1 %v7039_v55  ;;  %v1412_v23 = vrot.slane %v7128_v3, 1  ;;  %v1175_v16 = vshll.u32 %v7128_v3, 16  ;;  %v1173_v32 = vshrl.u32 %v7128_v3, 16  ;;  %v1192_v21 = vshll.u32 %v1157_v14, 16 }
  0x5f   : > { %2012 = vmatprep.mubr.bf16.mxu0 %v7110_v45  ;;  %2076 = vmatprep.mubr.bf16.mxu1 %v7117_v18  ;;  %v1021_v45 = vshll.u32 %v6523_v61, 16 }
  0x60   : > { %v1177_v25 = vrot.slane %v1175_v16, 1  ;;  %v7154_v18 = vsel %vm815_vm4, %v1412_v23, %v1413_v26  ;;  %v1182_v16 = vrot.slane %v1180_v39, 1  ;;  %v1415_v23 = vrot.slane %v7138_v40, 1  ;;  %v6524_v39 = vld [vmem:[%s8809_s2 + $0x1d0] sm:$0xff]  }
  0x61   : > { %8973 = vst [vmem:[#allocation27_spill] sm:$0xff] %v7154_v18  ;;  %v1416_v26 = vrot.slane %v1157_v14, 1  ;;  %v6525_v14 = vld [vmem:[%s8809_s2 + $0x190] sm:$0xff]  }
  0x62   : > { %v1178_v20 = vor.u32 %v1177_v25, %v1173_v32  ;;  %v1189_v25 = vrot.slane %v1187_v56, 1  ;;  %v1158_v56 = vsel %vm6717_vm2, %v1013_v11, 0 }
  0x66   : > { %2013 = vmatmul.mubr.bf16.gmra.mrb[28].mxu0 %v7082_v10  ;;  %2077 = vmatmul.mubr.bf16.gmra.mrb[28].mxu1 %v7092_v9 }
  0x67   : > { %2278 = vmatprep.mubr.bf16.mxu0 %v7113_v5  ;;  %2117 = vmatprep.mubr.bf16.mxu1 %v6724_v15  ;;  %v1014_v15 = vshll.u32 %v6522_v49, 16  ;;  %v6521_v49 = vld [vmem:[%s8809_s2 + $0x208] sm:$0xff]  }
  0x69   : > { %v1016_v32 = vor.u32 %v1014_v15, %v1013_v11  ;;  %v7184_v15 = vsel %vm815_vm4, %v1415_v23, %v1416_v26  ;;  %v6531_v26 = vld [vmem:[%s8809_s2 + $0x198] sm:$0xff]  }
  0x6a   : > { %8975 = vst [vmem:[#allocation29_spill] sm:$0xff] %v7184_v15 }
  0x6e   : > { %2279 = vmatmul.mubr.bf16.vlgmr.msra.gmra.mrb[32].mxu0 %v6756_v36  ;;  %2118 = vmatmul.mubr.bf16.vlgmr.msra.gmra.mrb[32].mxu1 %v7113_v5  ;;  %v1018_v36 = vshrl.u32 %v6523_v61, 16  ;;  %v7178_v5 = vsel %vm559_vm3, %v1178_v20, %v1182_v16  ;;  %v6527_v61 = vld [vmem:[%s8809_s2 + $0x210] sm:$0xff]  }
  0x6f   : > { %5865 = vmatpush3.bf16.msra.mxu0 %v6515_v47  ;;  %5753 = vmatpush3.bf16.msra.mxu1 %v6513_v60  ;;  %v6526_v47 = vld [vmem:[%s8809_s2 + $0x250] sm:$0xff]   ;;  %v1185_v60 = vshrl.u32 %v7138_v40, 16  ;;  %8974 = vst [vmem:[#allocation28_spill] sm:$0xff] %v7178_v5 }
  0x70   : > { %2125 = vmatprep.mubr.bf16.mxu1 %v7128_v3  ;;  %2286 = vmatprep.mubr.bf16.mxu0 %v7154_v18  ;;  %v1020_v62 = vrot.slane %v1018_v36, 7  ;;  %v7181_v18 = vsel %vm815_vm4, %v819_v6, %v820_v12  ;;  %v6528_v36 = vld [vmem:[%s7099_s14 + $0x20] sm:$0xff]   ;;  %v823_v6 = vrot.slane %v6824_v24, 1  ;;  %v1194_v12 = vrot.slane %v1192_v21, 1  ;;  %v6530_v24 = vld [vmem:[%s8809_s2 + $0x1d8] sm:$0xff]  }
  0x71   : > { %5754 = vmatprep.subr.bf16.mxu1 %v6518_v17  ;;  %5866 = vmatprep.subr.bf16.mxu0 %v6520_v53  ;;  %v7188_v17 = vsel %vm6717_vm2, 0, %v1016_v32  ;;  %v1190_v11 = vor.u32 %v1189_v25, %v1185_v60  ;;  %v1419_v53 = vrot.slane %v1158_v56, 1  ;;  %v1025_v23 = vshrl.u32 %v6528_v36, 16 }
  0x72   : > { %8976 = vst [vmem:[#allocation30_spill] sm:$0xff] %v7188_v17  ;;  %v1199_v20 = vshll.u32 %v7188_v17, 16  ;;  %v1418_v16 = vrot.slane %v7188_v17, 1  ;;  %v1197_v60 = vshrl.u32 %v7188_v17, 16  ;;  %v1204_v21 = vshll.u32 %v1158_v56, 16 }
  0x73   : > { %5867 = vmatpush3.bf16.msra.mxu0 %v6521_v49  ;;  %5755 = vmatpush3.bf16.msra.mxu1 %v6519_v38  ;;  %v822_v38 = vrot.slane %v6843_v34, 1  ;;  %v1023_v49 = vor.u32 %v1021_v45, %v1020_v62  ;;  %v7221_v45 = vsel %vm559_vm3, %v1190_v11, %v1194_v12  ;;  %v1159_v11 = vsel %vm6717_vm2, %v1020_v62, 0 }
  0x74   : > { %5868 = vmatprep.subr.bf16.mxu0 %v6526_v47  ;;  %5756 = vmatprep.subr.bf16.mxu1 %v6524_v39  ;;  %v6532_v47 = vld [vmem:[%s8809_s2 + $0x258] sm:$0xff]   ;;  %v6529_v39 = vld [vmem:[%s7099_s14 + $0x28] sm:$0xff]   ;;  %8978 = vst [vmem:[#allocation32_spill] sm:$0xff] %v7221_v45  ;;  %v1201_v25 = vrot.slane %v1199_v20, 1  ;;  %v825_v12 = vrot.slane %v6885_v7, 1  ;;  %v1206_v20 = vrot.slane %v1204_v21, 1 }
  0x75   : > { %v7217_v32 = vsel %vm815_vm4, %v822_v38, %v823_v6  ;;  %v7232_v38 = vsel %vm6717_vm2, 0, %v1023_v49  ;;  %v1027_v6 = vrot.slane %v1025_v23, 7  ;;  %v1032_v56 = vshrl.u32 %v6529_v39, 16 }
  0x76   : > { %2287 = vmatmul.mubr.bf16.gmra.mrb[36].mxu0 %v7178_v5  ;;  %2126 = vmatmul.mubr.bf16.gmra.mrb[36].mxu1 %v7181_v18  ;;  %8977 = vst [vmem:[#allocation31_spill] sm:$0xff] %v7217_v32  ;;  %8980 = vst [vmem:[#allocation34_spill] sm:$0xff] %v7232_v38  ;;  %v1421_v62 = vrot.slane %v7232_v38, 1  ;;  %v1422_v49 = vrot.slane %v1159_v11, 1 }
  0x77   : > { %2294 = vmatprep.mubr.bf16.mxu0 %v7184_v15  ;;  %2133 = vmatprep.mubr.bf16.mxu1 %v7138_v40 }
  0x78   : > { %5757 = vmatpush3.bf16.msra.mxu1 %v6525_v14  ;;  %5869 = vmatpush3.bf16.msra.mxu0 %v6527_v61  ;;  %v6533_v14 = vld [vmem:[%s8809_s2 + $0x218] sm:$0xff]   ;;  %v7228_v61 = vsel %vm815_vm4, %v1418_v16, %v1419_v53  ;;  %v1202_v53 = vor.u32 %v1201_v25, %v1197_v60  ;;  %v1211_v16 = vshll.u32 %v7232_v38, 16  ;;  %v1034_v60 = vrot.slane %v1032_v56, 7 }
  0x79   : > { %5758 = vmatprep.subr.bf16.mxu1 %v6530_v24  ;;  %5870 = vmatprep.subr.bf16.mxu0 %v6532_v47  ;;  %8979 = vst [vmem:[#allocation33_spill] sm:$0xff] %v7228_v61  ;;  %v1028_v24 = vshll.u32 %v6528_v36, 16  ;;  %v826_v36 = vrot.slane %v6870_v63, 1  ;;  %v6537_v47 = vld [vmem:[%s8809_s2 + $0x1a0] sm:$0xff]   ;;  %v1035_v25 = vshll.u32 %v6529_v39, 16  ;;  %v1209_v63 = vshrl.u32 %v7232_v38, 16 }
  0x7a   : > { %v7251_v21 = vsel %vm559_vm3, %v1202_v53, %v1206_v20  ;;  %v7259_v15 = vsel %vm815_vm4, %v1421_v62, %v1422_v49  ;;  %v6538_v39 = vld [vmem:[%s8809_s2 + $0x260] sm:$0xff]   ;;  %v1160_v53 = vsel %vm6717_vm2, %v1027_v6, 0  ;;  %v829_v49 = vrot.slane %v6916_v44, 1 }
  0x7b   : > { %v1030_v23 = vor.u32 %v1028_v24, %v1027_v6  ;;  %8981 = vst [vmem:[#allocation35_spill] sm:$0xff] %v7251_v21  ;;  %v7256_v24 = vsel %vm815_vm4, %v825_v12, %v826_v36  ;;  %8983 = vst [vmem:[#allocation37_spill] sm:$0xff] %v7259_v15  ;;  %v828_v12 = vrot.slane %v6931_v51, 1  ;;  %v1037_v20 = vor.u32 %v1035_v25, %v1034_v60 }
  0x7c   : > { %5759 = vmatpush3.bf16.msra.mxu1 %v6531_v26  ;;  %5871 = vmatpush3.bf16.msra.mxu0 %v6533_v14  ;;  %v6536_v26 = vld [vmem:[%s8809_s2 + $0x1e0] sm:$0xff]   ;;  %v1213_v14 = vrot.slane %v1211_v16, 1  ;;  %8982 = vst [vmem:[#allocation36_spill] sm:$0xff] %v7256_v24  ;;  %v1228_v25 = vshll.u32 %v1160_v53, 16 }
  0x7d   : > { %5760 = vmatprep.subr.bf16.mxu1 %v6536_v26  ;;  %v7263_v56 = vsel %vm6717_vm2, 0, %v1030_v23  ;;  %5872 = vmatprep.subr.bf16.mxu0 %v6538_v39  ;;  %v1425_v26 = vrot.slane %v1160_v53, 1  ;;  %v6540_v53 = vld [vmem:[%s7099_s14 + $0x40] sm:$0xff]   ;;  %v7297_v5 = vsel %vm815_vm4, %v828_v12, %v829_v49  ;;  %v6545_v49 = vld [vmem:[%s8809_s2 + $0x228] sm:$0xff]  }
  0x7e   : > { %2295 = vmatmul.mubr.bf16.gmra.mrb[40].mxu0 %v7221_v45  ;;  %2134 = vmatmul.mubr.bf16.gmra.mrb[40].mxu1 %v7217_v32  ;;  %v6534_v45 = vld [vmem:[%s7099_s14 + $0x30] sm:$0xff]   ;;  %8984 = vst [vmem:[#allocation38_spill] sm:$0xff] %v7263_v56  ;;  %v1214_v16 = vor.u32 %v1213_v14, %v1209_v63  ;;  %v1223_v62 = vshll.u32 %v7263_v56, 16  ;;  %v1424_v23 = vrot.slane %v7263_v56, 1  ;;  %v1221_v39 = vshrl.u32 %v7263_v56, 16  ;;  %v6542_v14 = vld [vmem:[%s8809_s2 + $0x1e8] sm:$0xff]  }
  0x7f   : > { %2302 = vmatprep.mubr.bf16.mxu0 %v7228_v61  ;;  %2141 = vmatprep.mubr.bf16.mxu1 %v7188_v17  ;;  %v1216_v61 = vshll.u32 %v1159_v11, 16  ;;  %v6539_v11 = vld [vmem:[%s8809_s2 + $0x220] sm:$0xff]   ;;  %v1039_v6 = vshrl.u32 %v6534_v45, 16  ;;  %v7285_v63 = vsel %vm6717_vm2, 0, %v1037_v20  ;;  %8987 = vst [vmem:[#allocation41_spill] sm:$0xff] %v7297_v5  ;;  %v1230_v12 = vrot.slane %v1228_v25, 1 }
  0x80   : > { %5761 = vmatpush3.bf16.msra.mxu1 %v6537_v47  ;;  %v6535_v47 = vld [vmem:[%s7099_s14 + $0x38] sm:$0xff]   ;;  %5873 = vmatpush3.bf16.msra.mxu0 %v6539_v11  ;;  %8985 = vst [vmem:[#allocation39_spill] sm:$0xff] %v7285_v63  ;;  %v1042_v11 = vshll.u32 %v6534_v45, 16  ;;  %v7300_v20 = vsel %vm815_vm4, %v1424_v23, %v1425_v26  ;;  %v6544_v45 = vld [vmem:[%s8809_s2 + $0x268] sm:$0xff]   ;;  %v1427_v23 = vrot.slane %v7285_v63, 1  ;;  %v1053_v41 = vshrl.u32 %v6540_v53, 16 }
  0x81   : > { %v1218_v36 = vrot.slane %v1216_v61, 1  ;;  %v1161_v61 = vsel %vm6717_vm2, %v1034_v60, 0  ;;  %8988 = vst [vmem:[#allocation42_spill] sm:$0xff] %v7300_v20  ;;  %v1046_v58 = vshrl.u32 %v6535_v47, 16  ;;  %5762 = vmatprep.subr.bf16.mxu1 %v6542_v14  ;;  %v6543_v60 = vld [vmem:[%s8809_s2 + $0x1a8] sm:$0xff]   ;;  %5874 = vmatprep.subr.bf16.mxu0 %v6544_v45 }
  0x82   : > { %v1240_v26 = vshll.u32 %v1161_v61, 16 }
  0x83   : > { %v7293_v44 = vsel %vm559_vm3, %v1214_v16, %v1218_v36  ;;  %v832_v16 = vrot.slane %v6962_v28, 1  ;;  %v1235_v36 = vshll.u32 %v7285_v63, 16  ;;  %v1048_v25 = vrot.slane %v1046_v58, 7  ;;  %v6548_v58 = vld [vmem:[%s8809_s2 + $0x1f0] sm:$0xff]  }
  0x84   : > { %8986 = vst [vmem:[#allocation40_spill] sm:$0xff] %v7293_v44  ;;  %5763 = vmatpush3.bf16.msra.mxu1 %v6543_v60  ;;  %v1233_v60 = vshrl.u32 %v7285_v63, 16  ;;  %5875 = vmatpush3.bf16.msra.mxu0 %v6545_v49 }
  0x85   : > { %v1237_v51 = vrot.slane %v1235_v36, 1  ;;  %v1056_v36 = vshll.u32 %v6540_v53, 16  ;;  %5764 = vmatprep.subr.bf16.mxu1 %v6548_v58 }
  0x86   : > { %2303 = vmatmul.mubr.bf16.gmra.mrb[44].mxu0 %v7251_v21  ;;  %2142 = vmatmul.mubr.bf16.gmra.mrb[44].mxu1 %v7256_v24  ;;  %v1041_v21 = vrot.slane %v1039_v6, 7  ;;  %v834_v6 = vrot.slane %v7035_v50, 1  ;;  %v6541_v50 = vld [vmem:[%s7099_s14 + $0x48] sm:$0xff]  }
  0x87   : > { %2310 = vmatprep.mubr.bf16.mxu0 %v7259_v15  ;;  %2149 = vmatprep.mubr.bf16.mxu1 %v7232_v38  ;;  %v1225_v15 = vrot.slane %v1223_v62, 1  ;;  %v1428_v62 = vrot.slane %v1161_v61, 1  ;;  %v1060_v45 = vshrl.u32 %v6541_v50, 16  ;;  %v1238_v49 = vor.u32 %v1237_v51, %v1233_v60 }
  0x88   : > { %v1044_v14 = vor.u32 %v1042_v11, %v1041_v21  ;;  %v1063_v60 = vshll.u32 %v6541_v50, 16 }
  0x89   : > { %v1226_v28 = vor.u32 %v1225_v15, %v1221_v39  ;;  %v835_v15 = vrot.slane %v7015_v29, 1  ;;  %v1162_v39 = vsel %vm6717_vm2, %v1041_v21, 0  ;;  %v7336_v11 = vsel %vm815_vm4, %v1427_v23, %v1428_v62 }
  0x8a   : > { %8991 = vst [vmem:[#allocation45_spill] sm:$0xff] %v7336_v11  ;;  %v1431_v61 = vrot.slane %v1162_v39, 1  ;;  %v1252_v62 = vshll.u32 %v1162_v39, 16  ;;  %v7349_v23 = vsel %vm6717_vm2, %v1048_v25, 0  ;;  %v6550_v39 = vld [vmem:[%s8809_s2 + $0x270] sm:$0xff]  }
  0x8b   : > { %5876 = vmatprep.subr.bf16.mxu0 %v6550_v39 }
  0x8e   : > { %2311 = vmatmul.mubr.bf16.gmra.mrb[48].mxu0 %v7293_v44  ;;  %2150 = vmatmul.mubr.bf16.gmra.mrb[48].mxu1 %v7297_v5  ;;  %v1049_v44 = vshll.u32 %v6535_v47, 16  ;;  %v7323_v5 = vsel %vm815_vm4, %v831_v22, %v832_v16  ;;  %v7333_v47 = vsel %vm559_vm3, %v1226_v28, %v1230_v12  ;;  %v7340_v22 = vsel %vm6717_vm2, 0, %v1044_v14  ;;  %v6549_v12 = vld [vmem:[%s8809_s2 + $0x1b0] sm:$0xff]  }
  0x8f   : > { %2318 = vmatprep.mubr.bf16.mxu0 %v7300_v20  ;;  %2157 = vmatprep.mubr.bf16.mxu1 %v7263_v56  ;;  %8989 = vst [vmem:[#allocation43_spill] sm:$0xff] %v7323_v5  ;;  %8990 = vst [vmem:[#allocation44_spill] sm:$0xff] %v7333_v47  ;;  %v1055_v16 = vrot.slane %v1053_v41, 7  ;;  %v1242_v28 = vrot.slane %v1240_v26, 1  ;;  %v6546_v14 = vld [vmem:[%s7099_s14 + $0x50] sm:$0xff]   ;;  %v7355_v41 = vsel %vm815_vm4, %v834_v6, %v835_v15  ;;  %v1430_v51 = vrot.slane %v7340_v22, 1 }
  0x90   : > { %8992 = vst [vmem:[#allocation46_spill] sm:$0xff] %v7340_v22  ;;  %v1051_v21 = vor.u32 %v1049_v44, %v1048_v25  ;;  %5765 = vmatpush3.bf16.msra.mxu1 %v6549_v12  ;;  %8993 = vst [vmem:[#allocation47_spill] sm:$0xff] %v7355_v41  ;;  %v1247_v44 = vshll.u32 %v7340_v22, 16  ;;  %v1062_v25 = vrot.slane %v1060_v45, 7  ;;  %v1264_v12 = vshll.u32 %v7349_v23, 16 }
  0x91   : > { %v1058_v26 = vor.u32 %v1056_v36, %v1055_v16  ;;  %v7368_v6 = vsel %vm559_vm3, %v1238_v49, %v1242_v28  ;;  %v1245_v36 = vshrl.u32 %v7340_v22, 16  ;;  %v1067_v29 = vshrl.u32 %v6546_v14, 16 }
  0x92   : > { %v7362_v53 = vsel %vm6717_vm2, 0, %v1051_v21  ;;  %8995 = vst [vmem:[#allocation49_spill] sm:$0xff] %v7368_v6  ;;  %v6551_v21 = vld [vmem:[%s8809_s2 + $0x230] sm:$0xff]   ;;  %v1249_v49 = vrot.slane %v1247_v44, 1  ;;  %v1254_v28 = vrot.slane %v1252_v62, 1  ;;  %v1434_v15 = vrot.slane %v7349_v23, 1 }
  0x93   : > { %8994 = vst [vmem:[#allocation48_spill] sm:$0xff] %v7362_v53  ;;  %v1259_v58 = vshll.u32 %v7362_v53, 16  ;;  %5877 = vmatpush3.bf16.msra.mxu0 %v6551_v21  ;;  %v7390_v50 = vsel %vm6717_vm2, %v1055_v16, 0  ;;  %v1065_v45 = vor.u32 %v1063_v60, %v1062_v25  ;;  %v6554_v62 = vld [vmem:[%s8809_s2 + $0x1f8] sm:$0xff]   ;;  %v1433_v23 = vrot.slane %v7362_v53, 1 }
  0x94   : > { %v1257_v44 = vshrl.u32 %v7362_v53, 16  ;;  %v7397_v39 = vrot.slane %v1264_v12, 1  ;;  %5766 = vmatprep.subr.bf16.mxu1 %v6554_v62  ;;  %v1250_v16 = vor.u32 %v1249_v49, %v1245_v36  ;;  %v1276_v20 = vshll.u32 %v7390_v50, 16 }
  0x95   : > { %v1261_v60 = vrot.slane %v1259_v58, 1  ;;  %v7408_v12 = vsel %vm6717_vm2, 0, %v1065_v45  ;;  %v6556_v58 = vld [vmem:[%s8809_s2 + $0x278] sm:$0xff]   ;;  %v8999_v36 = vrot.slane %v7057_v48, 1  ;;  %v9000_v49 = vrot.slane %v7082_v10, 1 }
  0x96   : > { %2319 = vmatmul.mubr.bf16.gmra.mrb[52].mxu0 %v7333_v47  ;;  %2158 = vmatmul.mubr.bf16.gmra.mrb[52].mxu1 %v7323_v5  ;;  %v7386_v47 = vsel %vm6717_vm2, 0, %v1058_v26  ;;  %v1070_v26 = vshll.u32 %v6546_v14, 16  ;;  %8998 = vst [vmem:[#allocation52_spill] sm:$0xff] %v7408_v12  ;;  %v6555_v14 = vld [vmem:[%s8809_s2 + $0x1b8] sm:$0xff]   ;;  %v1437_v45 = vrot.slane %v7390_v50, 1  ;;  %v7435_v10 = vsel %vm559_vm3, %v1250_v16, %v1254_v28  ;;  %v6561_v28 = vld [vmem:[%s8809_s2 + $0x340] sm:$0xff]  }
  0x97   : > { %2326 = vmatprep.mubr.bf16.mxu0 %v7336_v11  ;;  %2165 = vmatprep.mubr.bf16.mxu1 %v7285_v63  ;;  %v7382_v11 = vsel %vm815_vm4, %v1430_v51, %v1431_v61  ;;  %8997 = vst [vmem:[#allocation51_spill] sm:$0xff] %v7386_v47  ;;  %v6547_v61 = vld [vmem:[%s7099_s14 + $0x58] sm:$0xff]   ;;  %v1069_v51 = vrot.slane %v1067_v29, 7  ;;  %v1271_v21 = vshll.u32 %v7386_v47, 16  ;;  %v7412_v29 = vsel %vm6717_vm2, %v1062_v25, 0  ;;  %9002 = vst [vmem:[#allocation54_spill] sm:$0xff] %v7435_v10 }
  0x98   : > { %8996 = vst [vmem:[#allocation50_spill] sm:$0xff] %v7382_v11  ;;  %v7425_v62 = vsel %vm815_vm4, %v9000_v49, %v8999_v36  ;;  %v1436_v25 = vrot.slane %v7386_v47, 1  ;;  %5767 = vmatpush3.bf16.msra.mxu1 %v6555_v14  ;;  %5878 = vmatprep.subr.bf16.mxu0 %v6556_v58  ;;  %v6557_v48 = vld [vmem:[%s8809_s2 + $0x238] sm:$0xff]   ;;  %v7438_v36 = vsel %vm815_vm4, %v1433_v23, %v1434_v15  ;;  %v1283_v50 = vshll.u32 %v7408_v12, 16 }
  0x99   : > { %9001 = vst [vmem:[#allocation53_spill] sm:$0xff] %v7425_v62  ;;  %9003 = vst [vmem:[#allocation55_spill] sm:$0xff] %v7438_v36  ;;  %v1288_v49 = vshll.u32 %v7412_v29, 16  ;;  %v1278_v14 = vrot.slane %v1276_v20, 1  ;;  %v1440_v58 = vrot.slane %v7412_v29, 1  ;;  %5879 = vmatpush3.bf16.msra.mxu0 %v6557_v48  ;;  %v1077_v23 = vshll.u32 %v6547_v61, 16 }
  0x9a   : > { %v1262_v16 = vor.u32 %v1261_v60, %v1257_v44  ;;  %v1439_v63 = vrot.slane %v7408_v12, 1  ;;  %v6552_v20 = vld [vmem:[%s7099_s14 + $0x60] sm:$0xff]   ;;  %6088 = vmatprep.subr.bf16.mxu0 %v6561_v28 }
  0x9b   : > { %v6559_v29 = vld [vmem:[%s8809_s2 + $0x2c0] sm:$0xff]   ;;  %v7462_v44 = vrot.slane %v1288_v49, 1 }
  0x9c   : > { %5976 = vmatprep.subr.bf16.mxu1 %v6559_v29 }
  0x9e   : > { %2327 = vmatmul.mubr.bf16.gmra.mrb[56].mxu0 %v7368_v6  ;;  %2166 = vmatmul.mubr.bf16.gmra.mrb[56].mxu1 %v7355_v41  ;;  %v1072_v41 = vor.u32 %v1070_v26, %v1069_v51  ;;  %v1269_v6 = vshrl.u32 %v7386_v47, 16  ;;  %v1273_v26 = vrot.slane %v1271_v21, 1 }
  0x9f   : > { %2334 = vmatprep.mubr.bf16.mxu0 %v7382_v11  ;;  %2173 = vmatprep.mubr.bf16.mxu1 %v7340_v22  ;;  %v1074_v11 = vshrl.u32 %v6547_v61, 16  ;;  %v7446_v22 = vsel %vm6717_vm2, %v1069_v51, 0  ;;  %v1285_v61 = vrot.slane %v1283_v50, 1  ;;  %v1081_v51 = vshrl.u32 %v6552_v20, 16 }
  0xa0   : > { %v7453_v21 = vsel %vm6717_vm2, 0, %v1072_v41  ;;  %v1300_v60 = vshll.u32 %v7446_v22, 16  ;;  %v7480_v41 = vsel %vm559_vm3, %v1262_v16, %v7397_v39 }
  0xa1   : > { %v1076_v15 = vrot.slane %v1074_v11, 7  ;;  %9004 = vst [vmem:[#allocation56_spill] sm:$0xff] %v7453_v21  ;;  %v1281_v11 = vshrl.u32 %v7408_v12, 16  ;;  %9005 = vst [vmem:[#allocation57_spill] sm:$0xff] %v7480_v41  ;;  %v1442_v29 = vrot.slane %v7453_v21, 1  ;;  %v1293_v28 = vshrl.u32 %v7453_v21, 16 }
  0xa2   : > { %v1302_v5 = vrot.slane %v1300_v60, 1  ;;  %v1083_v48 = vrot.slane %v1081_v51, 7 }
  0xa3   : > { %v1079_v50 = vor.u32 %v1077_v23, %v1076_v15  ;;  %v7475_v49 = vsel %vm6717_vm2, %v1076_v15, 0  ;;  %v7492_v15 = vsel %vm815_vm4, %v1436_v25, %v1437_v45 }
  0xa4   : > { %9009 = vst [vmem:[#allocation59_spill] sm:$0xff] %v7492_v15  ;;  %v1446_v16 = vrot.slane %v7475_v49, 1  ;;  %v1312_v60 = vshll.u32 %v7475_v49, 16  ;;  %v9019_v49 = vrot.slane %v6847_v35, 1 }
  0xa5   : > { %v7497_v39 = vsel %vm6717_vm2, 0, %v1079_v50 }
  0xa6   : > { %2335 = vmatmul.mubr.bf16.gmra.mrb[60].mxu0 %v7435_v10  ;;  %2174 = vmatmul.mubr.bf16.gmra.mrb[60].mxu1 %v7425_v62  ;;  %v6553_v10 = vld [vmem:[%s7099_s14 + $0x68] sm:$0xff]   ;;  %v9007_v62 = vrot.slane %v6760_v37, 1  ;;  %9010 = vst [vmem:[#allocation60_spill] sm:$0xff] %v7497_v39  ;;  %v1084_v37 = vshll.u32 %v6552_v20, 16  ;;  %v1307_v45 = vshll.u32 %v7497_v39, 16  ;;  %v1305_v25 = vshrl.u32 %v7497_v39, 16 }
  0xa7   : > { %2342 = vmatprep.mubr.bf16.mxu0 %v7438_v36  ;;  %2181 = vmatprep.mubr.bf16.mxu1 %v7362_v53  ;;  %v1295_v36 = vshll.u32 %v7453_v21, 16  ;;  %v9006_v53 = vrot.slane %v6747_v31, 1  ;;  %v1088_v56 = vshrl.u32 %v6553_v10, 16  ;;  %v1091_v51 = vshll.u32 %v6553_v10, 16 }
  0xa8   : > { %v1086_v50 = vor.u32 %v1084_v37, %v1083_v48  ;;  %v7522_v37 = vsel %vm815_vm4, %v1439_v63, %v1440_v58  ;;  %v1309_v10 = vrot.slane %v1307_v45, 1  ;;  %v1286_v63 = vor.u32 %v1285_v61, %v1281_v11 }
  0xa9   : > { %v7489_v23 = vsel %vm815_vm4, %v9007_v62, %v9006_v53  ;;  %v1297_v31 = vrot.slane %v1295_v36, 1  ;;  %v1274_v53 = vor.u32 %v1273_v26, %v1269_v6  ;;  %v1445_v62 = vrot.slane %v7497_v39, 1  ;;  %9015 = vst [vmem:[#allocation63_spill] sm:$0xff] %v7522_v37 }
  0xaa   : > { %9008 = vst [vmem:[#allocation58_spill] sm:$0xff] %v7489_v23  ;;  %v1090_v36 = vrot.slane %v1088_v56, 7  ;;  %v9012_v26 = vrot.slane %v6784_v57, 1  ;;  %v856_v56 = vrot.slane %v6981_v42, 1  ;;  %v7546_v11 = vsel %vm559_vm3, %v1286_v63, %v7462_v44 }
  0xab   : > { %v7509_v20 = vsel %vm559_vm3, %v1274_v53, %v1278_v14  ;;  %v1314_v14 = vrot.slane %v1312_v60, 1  ;;  %9018 = vst [vmem:[#allocation66_spill] sm:$0xff] %v7546_v11  ;;  %v9020_v6 = vrot.slane %v6858_v43, 1 }
  0xac   : > { %9011 = vst [vmem:[#allocation61_spill] sm:$0xff] %v7509_v20  ;;  %v1093_v53 = vor.u32 %v1091_v51, %v1090_v36  ;;  %v1169_v45 = vsel %vm6717_vm2, %v1090_v36, 0 }
  0xad   : > { %v1452_v61 = vrot.slane %v1169_v45, 1  ;;  %v7553_v36 = vsel %vm815_vm4, %v9020_v6, %v9019_v49  ;;  %v7577_v49 = vsel %vm815_vm4, %v1445_v62, %v1446_v16 }
  0xae   : > { %2343 = vmatmul.mubr.bf16.gmra.mrb[64].mxu0 %v7480_v41  ;;  %2182 = vmatmul.mubr.bf16.gmra.mrb[64].mxu1 %v7489_v23  ;;  %v9013_v41 = vrot.slane %v6807_v4, 1  ;;  %v7542_v51 = vsel %vm6717_vm2, 0, %v1093_v53  ;;  %9021 = vst [vmem:[#allocation67_spill] sm:$0xff] %v7553_v36  ;;  %v1298_v53 = vor.u32 %v1297_v31, %v1293_v28  ;;  %v9026_v28 = vrot.slane %v6904_v19, 1  ;;  %9028 = vst [vmem:[#allocation71_spill] sm:$0xff] %v7577_v49 }
  0xaf   : > { %2350 = vmatprep.mubr.bf16.mxu0 %v7492_v15  ;;  %2189 = vmatprep.mubr.bf16.mxu1 %v7386_v47  ;;  %v1168_v15 = vsel %vm6717_vm2, %v1083_v48, 0  ;;  %v7529_v48 = vsel %vm6717_vm2, 0, %v1086_v50  ;;  %9017 = vst [vmem:[#allocation65_spill] sm:$0xff] %v7542_v51  ;;  %v1451_v35 = vrot.slane %v7542_v51, 1  ;;  %v1331_v63 = vshll.u32 %v7542_v51, 16 }
  0xb0   : > { %v7519_v47 = vsel %vm815_vm4, %v9013_v41, %v9012_v26  ;;  %9016 = vst [vmem:[#allocation64_spill] sm:$0xff] %v7529_v48  ;;  %v1324_v57 = vshll.u32 %v1168_v15, 16  ;;  %v1449_v58 = vrot.slane %v1168_v15, 1  ;;  %v6558_v41 = vld [vmem:[%s7099_s14 + $0x70] sm:$0xff]   ;;  %v1448_v42 = vrot.slane %v7529_v48, 1 }
  0xb1   : > { %9014 = vst [vmem:[#allocation62_spill] sm:$0xff] %v7519_v47  ;;  %v1317_v60 = vshrl.u32 %v7529_v48, 16  ;;  %v1319_v50 = vshll.u32 %v7529_v48, 16  ;;  %v1095_v15 = vshrl.u32 %v6558_v41, 16 }
  0xb2   : > { %v1326_v26 = vrot.slane %v1324_v57, 1  ;;  %v7594_v16 = vsel %vm815_vm4, %v1448_v42, %v1449_v58 }
  0xb3   : > { %v1321_v44 = vrot.slane %v1319_v50, 1  ;;  %v1097_v6 = vrot.slane %v1095_v15, 7  ;;  %9033 = vst [vmem:[#allocation74_spill] sm:$0xff] %v7594_v16 }
  0xb5   : > { %v1322_v62 = vor.u32 %v1321_v44, %v1317_v60  ;;  %v1170_v42 = vsel %vm6717_vm2, %v1097_v6, 0  ;;  %v9036_v60 = vrot.slane %v6994_v54, 1 }
  0xb6   : > { %2351 = vmatmul.mubr.bf16.gmra.mrb[68].mxu0 %v7509_v20  ;;  %2190 = vmatmul.mubr.bf16.gmra.mrb[68].mxu1 %v7519_v47  ;;  %v1336_v20 = vshll.u32 %v1169_v45, 16  ;;  %v9031_v45 = vrot.slane %v6950_v2, 1 }
  0xb7   : > { %2358 = vmatprep.mubr.bf16.mxu0 %v7522_v37  ;;  %2197 = vmatprep.mubr.bf16.mxu1 %v7408_v12  ;;  %v9022_v37 = vrot.slane %v7446_v22, 1  ;;  %v1098_v22 = vshll.u32 %v6558_v41, 16  ;;  %v1310_v41 = vor.u32 %v1309_v10, %v1305_v25  ;;  %v1329_v10 = vshrl.u32 %v7542_v51, 16 }
  0xb8   : > { %v1338_v15 = vrot.slane %v1336_v20, 1  ;;  %v7614_v44 = vsel %vm815_vm4, %v9036_v60, %v856_v56  ;;  %v1455_v20 = vrot.slane %v1170_v42, 1  ;;  %v6568_v60 = vld [vmem:[%s8809_s2 + $0x290] sm:$0xff]  }
  0xb9   : > { %v7558_v57 = vsel %vm815_vm4, %v1442_v29, %v9022_v37  ;;  %v7567_v29 = vsel %vm559_vm3, %v1298_v53, %v1302_v5  ;;  %v9025_v37 = vrot.slane %v6889_v8, 1  ;;  %v7584_v5 = vsel %vm559_vm3, %v1310_v41, %v1314_v14 }
  0xba   : > { %9023 = vst [vmem:[#allocation68_spill] sm:$0xff] %v7558_v57  ;;  %9024 = vst [vmem:[#allocation69_spill] sm:$0xff] %v7567_v29  ;;  %v9030_v8 = vrot.slane %v6935_v52, 1  ;;  %v1100_v25 = vor.u32 %v1098_v22, %v1097_v6  ;;  %v859_v52 = vrot.slane %v7019_v33, 1  ;;  %v1333_v14 = vrot.slane %v1331_v63, 1 }
  0xbb   : > { %v7574_v31 = vsel %vm815_vm4, %v9026_v28, %v9025_v37  ;;  %9029 = vst [vmem:[#allocation72_spill] sm:$0xff] %v7584_v5  ;;  %v7603_v53 = vsel %vm559_vm3, %v1322_v62, %v1326_v26  ;;  %v7617_v33 = vsel %vm815_vm4, %v1451_v35, %v1452_v61  ;;  %v1348_v22 = vshll.u32 %v1170_v42, 16  ;;  %v6564_v42 = vld [vmem:[%s8809_s2 + $0x288] sm:$0xff]  }
  0xbc   : > { %9027 = vst [vmem:[#allocation70_spill] sm:$0xff] %v7574_v31  ;;  %v7591_v50 = vsel %vm815_vm4, %v9031_v45, %v9030_v8  ;;  %9034 = vst [vmem:[#allocation75_spill] sm:$0xff] %v7603_v53  ;;  %v7607_v58 = vsel %vm6717_vm2, 0, %v1100_v25  ;;  %v1334_v63 = vor.u32 %v1333_v14, %v1329_v10  ;;  %v9039_v35 = vrot.slane %v7039_v55, 1  ;;  %v6562_v14 = vld [vmem:[%s8809_s2 + $0x300] sm:$0xff]  }
  0xbd   : > { %9032 = vst [vmem:[#allocation73_spill] sm:$0xff] %v7591_v50  ;;  %9035 = vst [vmem:[#allocation76_spill] sm:$0xff] %v7607_v58  ;;  %v1343_v26 = vshll.u32 %v7607_v58, 16  ;;  %v1454_v6 = vrot.slane %v7607_v58, 1  ;;  %v1341_v56 = vshrl.u32 %v7607_v58, 16  ;;  %v1350_v45 = vrot.slane %v1348_v22, 1 }
  0xbe   : > { %2359 = vmatmul.mubr.bf16.gmra.mrb[72].mxu0 %v7546_v11  ;;  %2198 = vmatmul.mubr.bf16.gmra.mrb[72].mxu1 %v7553_v36  ;;  %9037 = vst [vmem:[#allocation77_spill] sm:$0xff] %v7617_v33  ;;  %v7627_v61 = vsel %vm559_vm3, %v1334_v63, %v1338_v15  ;;  %v7632_v28 = vsel %vm815_vm4, %v9039_v35, %v859_v52  ;;  %v861_v62 = vrot.slane %v7092_v9, 1  ;;  %v862_v25 = vrot.slane %v7068_v0, 1  ;;  %v6560_v0 = vld [vmem:[%s8809_s2 + $0x280] sm:$0xff]   ;;  %v6563_v15 = vld [vmem:[%s8809_s2 + $0x2c8] sm:$0xff]   ;;  %v6573_v63 = vld [vmem:[%s8809_s2 + $0x358] sm:$0xff]  }
  0xbf   : > { %2366 = vmatprep.mubr.bf16.mxu0 %v7558_v57  ;;  %2205 = vmatprep.mubr.bf16.mxu1 %v7453_v21  ;;  %v1345_v37 = vrot.slane %v1343_v26, 1  ;;  %9038 = vst [vmem:[#allocation78_spill] sm:$0xff] %v7627_v61  ;;  %v7635_v41 = vsel %vm815_vm4, %v1454_v6, %v1455_v20  ;;  %v6570_v20 = vld [vmem:[%s8809_s2 + $0x310] sm:$0xff]   ;;  %v6571_v26 = vld [vmem:[%s8809_s2 + $0x2d8] sm:$0xff]   ;;  %v6576_v35 = vld [vmem:[%s8809_s2 + $0x2a0] sm:$0xff]  }
  0xc0   : > { %9040 = vst [vmem:[#allocation79_spill] sm:$0xff] %v7635_v41  ;;  %v7647_v10 = vsel %vm815_vm4, %v861_v62, %v862_v25  ;;  %v6572_v6 = vld [vmem:[%s8809_s2 + $0x298] sm:$0xff]   ;;  %v6581_v62 = vld [vmem:[%s8809_s2 + $0x368] sm:$0xff]  }
  0xc1   : > { %v1346_v8 = vor.u32 %v1345_v37, %v1341_v56  ;;  %v6574_v22 = vld [vmem:[%s8809_s2 + $0x318] sm:$0xff]   ;;  %v6575_v56 = vld [vmem:[%s8809_s2 + $0x2e0] sm:$0xff]   ;;  %v6580_v25 = vld [vmem:[%s8809_s2 + $0x2a8] sm:$0xff]  }
  0xc2   : > { %v6577_v37 = vld [vmem:[%s8809_s2 + $0x360] sm:$0xff]  }
  0xc3   : > { %v7644_v52 = vsel %vm559_vm3, %v1346_v8, %v1350_v45  ;;  %v6578_v8 = vld [vmem:[%s8809_s2 + $0x320] sm:$0xff]   ;;  %v6579_v45 = vld [vmem:[%s8809_s2 + $0x2e8] sm:$0xff]  }
  0xc4   : > { %9041 = vst [vmem:[#allocation80_spill] sm:$0xff] %v7644_v52 }
  0xc6   : > { %2367 = vmatmul.mubr.bf16.gmra.mrb[76].mxu0 %v7567_v29  ;;  %2206 = vmatmul.mubr.bf16.gmra.mrb[76].mxu1 %v7574_v31 }
  0xc7   : > { %2374 = vmatprep.mubr.bf16.mxu0 %v7577_v49  ;;  %2213 = vmatprep.mubr.bf16.mxu1 %v7497_v39  ;;  %v9060_v49 = vld [vmem:[#allocation6_spill] sm:$0xff] }
  0xce   : > { %2375 = vmatmul.mubr.bf16.gmra.mrb[80].mxu0 %v7584_v5  ;;  %2214 = vmatmul.mubr.bf16.gmra.mrb[80].mxu1 %v7591_v50  ;;  %v9059_v5 = vld [vmem:[#allocation48_spill] sm:$0xff] }
  0xcf   : > { %2382 = vmatprep.mubr.bf16.mxu0 %v7594_v16  ;;  %2221 = vmatprep.mubr.bf16.mxu1 %v7529_v48  ;;  %v9057_v16 = vld [vmem:[#allocation53_spill] sm:$0xff] }
  0xd6   : > { %2383 = vmatmul.mubr.bf16.gmra.mrb[84].mxu0 %v7603_v53  ;;  %2222 = vmatmul.mubr.bf16.gmra.mrb[84].mxu1 %v7614_v44 }
  0xd7   : > { %2390 = vmatprep.mubr.bf16.mxu0 %v7617_v33  ;;  %2229 = vmatprep.mubr.bf16.mxu1 %v7542_v51 }
  0xde   : > { %2391 = vmatmul.mubr.bf16.gmra.mrb[88].mxu0 %v7627_v61  ;;  %2230 = vmatmul.mubr.bf16.gmra.mrb[88].mxu1 %v7632_v28 }
  0xdf   : > { %2398 = vmatprep.mubr.bf16.mxu0 %v7635_v41  ;;  %2237 = vmatprep.mubr.bf16.mxu1 %v7607_v58  ;;  %v9054_v41 = vld [vmem:[#allocation23_spill] sm:$0xff] }
  0xe6   : > { %2399 = vmatmul.mubr.bf16.gmra.mrb[92].mxu0 %v7644_v52  ;;  %2238 = vmatmul.mubr.bf16.gmra.mrb[92].mxu1 %v7647_v10  ;;  %v9053_v52 = vld [vmem:[#allocation46_spill] sm:$0xff] }
  0xe7   : > { %3081 = vmatprep.mubr.bf16.mxu0 %v7128_v3  ;;  %2920 = vmatprep.mubr.bf16.mxu1 %v6833_v27  ;;  %v6565_v3 = vld [vmem:[%s8809_s2 + $0x348] sm:$0xff]  }
  0xe8   : > { %v6566_v27 = vld [vmem:[%s8809_s2 + $0x308] sm:$0xff]  }
  0xee   : > { %3082 = vmatmul.mubr.bf16.vlgmr.msra.gmra.mrb[96].mxu0 %v7181_v18  ;;  %2921 = vmatmul.mubr.bf16.vlgmr.msra.gmra.mrb[96].mxu1 %v6791_v59  ;;  %v6569_v18 = vld [vmem:[%s8809_s2 + $0x350] sm:$0xff]  }
  0xef   : > { %6089 = vmatpush3.bf16.msra.mxu0 %v6562_v14  ;;  %5977 = vmatpush3.bf16.msra.mxu1 %v6560_v0  ;;  %v6567_v59 = vld [vmem:[%s8809_s2 + $0x2d0] sm:$0xff]  }
  0xf0   : > { %2928 = vmatprep.mubr.bf16.mxu1 %v6876_v1  ;;  %3089 = vmatprep.mubr.bf16.mxu0 %v7138_v40 }
  0xf1   : > { %5978 = vmatprep.subr.bf16.mxu1 %v6563_v15  ;;  %6090 = vmatprep.subr.bf16.mxu0 %v6565_v3  ;;  %v6582_v15 = vld [vmem:[%s8809_s2 + $0x328] sm:$0xff]   ;;  %v6583_v3 = vld [vmem:[%s8809_s2 + $0x2f0] sm:$0xff]  }
  0xf3   : > { %6091 = vmatpush3.bf16.msra.mxu0 %v6566_v27  ;;  %5979 = vmatpush3.bf16.msra.mxu1 %v6564_v42 }
  0xf4   : > { %6092 = vmatprep.subr.bf16.mxu0 %v6569_v18  ;;  %5980 = vmatprep.subr.bf16.mxu1 %v6567_v59  ;;  %v6585_v18 = vld [vmem:[%s8809_s2 + $0x370] sm:$0xff]  }
  0xf6   : > { %3090 = vmatmul.mubr.bf16.gmra.mrb[100].mxu0 %v7217_v32  ;;  %2929 = vmatmul.mubr.bf16.gmra.mrb[100].mxu1 %v6843_v34 }
  0xf7   : > { %3097 = vmatprep.mubr.bf16.mxu0 %v7188_v17  ;;  %2936 = vmatprep.mubr.bf16.mxu1 %v6922_v46  ;;  %v9047_v17 = vld [vmem:[#allocation15_spill] sm:$0xff] }
  0xf8   : > { %5981 = vmatpush3.bf16.msra.mxu1 %v6568_v60  ;;  %6093 = vmatpush3.bf16.msra.mxu0 %v6570_v20 }
  0xf9   : > { %5982 = vmatprep.subr.bf16.mxu1 %v6571_v26  ;;  %6094 = vmatprep.subr.bf16.mxu0 %v6573_v63 }
  0xfc   : > { %5983 = vmatpush3.bf16.msra.mxu1 %v6572_v6  ;;  %6095 = vmatpush3.bf16.msra.mxu0 %v6574_v22  ;;  %v6584_v22 = vld [vmem:[%s8809_s2 + $0x2b0] sm:$0xff]  }
  0xfd   : > { %5984 = vmatprep.subr.bf16.mxu1 %v6575_v56  ;;  %6096 = vmatprep.subr.bf16.mxu0 %v6577_v37 }
  0xfe   : > { %3098 = vmatmul.mubr.bf16.gmra.mrb[104].mxu0 %v7256_v24  ;;  %2937 = vmatmul.mubr.bf16.gmra.mrb[104].mxu1 %v6885_v7 }
  0xff   : > { %3105 = vmatprep.mubr.bf16.mxu0 %v7232_v38  ;;  %2944 = vmatprep.mubr.bf16.mxu1 %v6968_v30 }
 0x100   : > { %5985 = vmatpush3.bf16.msra.mxu1 %v6576_v35  ;;  %6097 = vmatpush3.bf16.msra.mxu0 %v6578_v8  ;;  %v6586_v35 = vld [vmem:[%s8809_s2 + $0x330] sm:$0xff]   ;;  %v6587_v8 = vld [vmem:[%s8809_s2 + $0x2f8] sm:$0xff]  }
 0x101   : > { %v5432_v14 = vpop.f32.mrb[0].mxu0  ;;  %v5480_v0 = vpop.f32.mrb[0].mxu1  ;;  %5986 = vmatprep.subr.bf16.mxu1 %v6579_v45  ;;  %6098 = vmatprep.subr.bf16.mxu0 %v6581_v62  ;;  %v9042_v45 = vld [vmem:[#allocation41_spill] sm:$0xff]  ;;  %v6589_v62 = vld [vmem:[%s8809_s2 + $0x378] sm:$0xff]  }
 0x102   : > { %v5433_v27 = vpop.f32.mrb[1].mxu0  ;;  %v5481_v42 = vpop.f32.mrb[1].mxu1 }
 0x103   : > { %v7737_v59 = vadd.f32 %v5433_v27, %v5432_v14  ;;  %v7739_v60 = vadd.f32 %v5481_v42, %v5480_v0  ;;  %v5435_v20 = vpop.f32.mrb[2].mxu0  ;;  %v5483_v26 = vpop.f32.mrb[2].mxu1  ;;  %v9044_v14 = vld [vmem:[#allocation38_spill] sm:$0xff]  ;;  %v9045_v0 = vld [vmem:[#allocation17_spill] sm:$0xff] }
 0x104   : > { %v5436_v63 = vpop.f32.mrb[3].mxu0  ;;  %v5484_v6 = vpop.f32.mrb[3].mxu1  ;;  %5987 = vmatpush3.bf16.msra.mxu1 %v6580_v25  ;;  %6099 = vmatpush3.bf16.msra.mxu0 %v6582_v15  ;;  %v9043_v25 = vld [vmem:[#allocation12_spill] sm:$0xff]  ;;  %v6588_v15 = vld [vmem:[%s8809_s2 + $0x2b8] sm:$0xff]  }
 0x105   : > { %v7744_v56 = vadd.f32 %v5436_v63, %v5435_v20  ;;  %v7746_v37 = vadd.f32 %v5484_v6, %v5483_v26  ;;  %5988 = vmatprep.subr.bf16.mxu1 %v6583_v3  ;;  %6100 = vmatprep.subr.bf16.mxu0 %v6585_v18  ;;  %v6590_v42 = vld [vmem:[%s8809_s2 + $0x338] sm:$0xff]   ;;  %v6593_v18 = vld [vmem:[%s8809_s2 + $0x3c0] sm:$0xff]  }
 0x106   : > { %3106 = vmatmul.mubr.bf16.gmra.mrb[108].mxu0 %v9042_v45  ;;  %2945 = vmatmul.mubr.bf16.gmra.mrb[108].mxu1 %v9043_v25  ;;  %v6595_v63 = vld [vmem:[%s8809_s2 + $0x440] sm:$0xff]  }
 0x107   : > { %3113 = vmatprep.mubr.bf16.mxu0 %v9044_v14  ;;  %2952 = vmatprep.mubr.bf16.mxu1 %v9045_v0 }
 0x108   : > { %5989 = vmatpush3.bf16.msra.mxu1 %v6584_v22  ;;  %6101 = vmatpush3.bf16.msra.mxu0 %v6586_v35 }
 0x109   : > { %v5438_v3 = vpop.f32.mrb[4].mxu0  ;;  %v5486_v27 = vpop.f32.mrb[4].mxu1  ;;  %5990 = vmatprep.subr.bf16.mxu1 %v6587_v8  ;;  %6102 = vmatprep.subr.bf16.mxu0 %v6589_v62  ;;  %v9046_v62 = vld [vmem:[#allocation43_spill] sm:$0xff] }
 0x10a   : > { %v5439_v20 = vpop.f32.mrb[5].mxu0  ;;  %v5487_v26 = vpop.f32.mrb[5].mxu1 }
 0x10b   : > { %v7773_v6 = vadd.f32 %v5439_v20, %v5438_v3  ;;  %v7775_v22 = vadd.f32 %v5487_v26, %v5486_v27  ;;  %v5441_v35 = vpop.f32.mrb[6].mxu0  ;;  %v5489_v8 = vpop.f32.mrb[6].mxu1  ;;  %v9048_v3 = vld [vmem:[#allocation39_spill] sm:$0xff]  ;;  %v9049_v27 = vld [vmem:[#allocation20_spill] sm:$0xff] }
 0x10c   : > { %v5442_v14 = vpop.f32.mrb[7].mxu0  ;;  %v5490_v45 = vpop.f32.mrb[7].mxu1  ;;  %5991 = vmatpush3.bf16.msra.mxu1 %v6588_v15  ;;  %6103 = vmatpush3.bf16.msra.mxu0 %v6590_v42 }
 0x10d   : > { %v7777_v38 = vadd.f32 %v5442_v14, %v5441_v35  ;;  %v7779_v24 = vadd.f32 %v5490_v45, %v5489_v8  ;;  %6200 = vmatprep.subr.bf16.mxu1 %v6593_v18  ;;  %6312 = vmatprep.subr.bf16.mxu0 %v6595_v63 }
 0x10e   : > { %3114 = vmatmul.mubr.bf16.gmra.mrb[112].mxu0 %v9046_v62  ;;  %2953 = vmatmul.mubr.bf16.gmra.mrb[112].mxu1 %v9047_v17  ;;  %v9051_v62 = vld [vmem:[#allocation47_spill] sm:$0xff] }
 0x10f   : > { %3121 = vmatprep.mubr.bf16.mxu0 %v9048_v3  ;;  %2960 = vmatprep.mubr.bf16.mxu1 %v9049_v27  ;;  %v9052_v3 = vld [vmem:[#allocation19_spill] sm:$0xff] }
 0x111   : > { %v5444_v20 = vpop.f32.mrb[8].mxu0  ;;  %v5492_v26 = vpop.f32.mrb[8].mxu1 }
 0x112   : > { %v5445_v32 = vpop.f32.mrb[9].mxu0  ;;  %v5493_v40 = vpop.f32.mrb[9].mxu1 }
 0x113   : > { %v7785_v15 = vadd.f32 %v5445_v32, %v5444_v20  ;;  %v7787_v14 = vadd.f32 %v5493_v40, %v5492_v26  ;;  %v5447_v45 = vpop.f32.mrb[10].mxu0  ;;  %v5495_v42 = vpop.f32.mrb[10].mxu1 }
 0x114   : > { %v5448_v18 = vpop.f32.mrb[11].mxu0  ;;  %v5496_v35 = vpop.f32.mrb[11].mxu1 }
 0x115   : > { %v7789_v8 = vadd.f32 %v5448_v18, %v5447_v45  ;;  %v7791_v63 = vadd.f32 %v5496_v35, %v5495_v42 }
 0x116   : > { %3122 = vmatmul.mubr.bf16.gmra.mrb[116].mxu0 %v9051_v62  ;;  %2961 = vmatmul.mubr.bf16.gmra.mrb[116].mxu1 %v9052_v3 }
 0x117   : > { %9050 = vst [vmem:[#allocation12_spill] sm:$0xff] %v7791_v63  ;;  %3129 = vmatprep.mubr.bf16.mxu0 %v9053_v52  ;;  %2968 = vmatprep.mubr.bf16.mxu1 %v9054_v41  ;;  %v9058_v52 = vld [vmem:[#allocation22_spill] sm:$0xff] }
 0x119   : > { %v5450_v32 = vpop.f32.mrb[12].mxu0  ;;  %v5498_v20 = vpop.f32.mrb[12].mxu1 }
 0x11a   : > { %v5451_v40 = vpop.f32.mrb[13].mxu0  ;;  %v5499_v26 = vpop.f32.mrb[13].mxu1 }
 0x11b   : > { %v7797_v61 = vadd.f32 %v5451_v40, %v5450_v32  ;;  %v7799_v33 = vadd.f32 %v5499_v26, %v5498_v20  ;;  %v5453_v45 = vpop.f32.mrb[14].mxu0  ;;  %v5501_v18 = vpop.f32.mrb[14].mxu1 }
 0x11c   : > { %v5454_v42 = vpop.f32.mrb[15].mxu0  ;;  %v5502_v35 = vpop.f32.mrb[15].mxu1 }
 0x11d   : > { %9055 = vst [vmem:[#allocation17_spill] sm:$0xff] %v7799_v33  ;;  %v7801_v53 = vadd.f32 %v5454_v42, %v5453_v45  ;;  %v7803_v62 = vadd.f32 %v5502_v35, %v5501_v18  ;;  %v9065_v33 = vld [vmem:[#allocation8_spill] sm:$0xff] }
 0x11e   : > { %3130 = vmatmul.mubr.bf16.gmra.mrb[120].mxu0 %v9057_v16  ;;  %2969 = vmatmul.mubr.bf16.gmra.mrb[120].mxu1 %v9058_v52 }
 0x11f   : > { %9056 = vst [vmem:[#allocation15_spill] sm:$0xff] %v7803_v62  ;;  %3137 = vmatprep.mubr.bf16.mxu0 %v9059_v5  ;;  %2976 = vmatprep.mubr.bf16.mxu1 %v9060_v49  ;;  %v9063_v5 = vld [vmem:[#allocation5_spill] sm:$0xff]  ;;  %v9064_v62 = vld [vmem:[#allocation51_spill] sm:$0xff] }
 0x121   : > { %v5456_v32 = vpop.f32.mrb[16].mxu0  ;;  %v5504_v40 = vpop.f32.mrb[16].mxu1 }
 0x122   : > { %v5457_v20 = vpop.f32.mrb[17].mxu0  ;;  %v5505_v26 = vpop.f32.mrb[17].mxu1 }
 0x123   : > { %v7809_v29 = vadd.f32 %v5457_v20, %v5456_v32  ;;  %v7811_v57 = vadd.f32 %v5505_v26, %v5504_v40  ;;  %v5459_v45 = vpop.f32.mrb[18].mxu0  ;;  %v5507_v42 = vpop.f32.mrb[18].mxu1 }
 0x124   : > { %v5460_v18 = vpop.f32.mrb[19].mxu0  ;;  %v5508_v35 = vpop.f32.mrb[19].mxu1 }
 0x125   : > { %9061 = vst [vmem:[#allocation20_spill] sm:$0xff] %v7811_v57  ;;  %v7813_v11 = vadd.f32 %v5460_v18, %v5459_v45  ;;  %v7815_v16 = vadd.f32 %v5508_v35, %v5507_v42 }
 0x126   : > { %3138 = vmatmul.mubr.bf16.gmra.mrb[124].mxu0 %v7489_v23  ;;  %2977 = vmatmul.mubr.bf16.gmra.mrb[124].mxu1 %v9063_v5 }
 0x127   : > { %9062 = vst [vmem:[#allocation19_spill] sm:$0xff] %v7815_v16  ;;  %3145 = vmatprep.mubr.bf16.mxu0 %v9064_v62  ;;  %2984 = vmatprep.mubr.bf16.mxu1 %v9065_v33  ;;  %v9068_v62 = vld [vmem:[#allocation10_spill] sm:$0xff] }
 0x129   : > { %v5462_v32 = vpop.f32.mrb[20].mxu0  ;;  %v5510_v20 = vpop.f32.mrb[20].mxu1 }
 0x12a   : > { %v5463_v40 = vpop.f32.mrb[21].mxu0  ;;  %v5511_v26 = vpop.f32.mrb[21].mxu1 }
 0x12b   : > { %v7821_v57 = vadd.f32 %v5463_v40, %v5462_v32  ;;  %v7823_v63 = vadd.f32 %v5511_v26, %v5510_v20  ;;  %v5465_v45 = vpop.f32.mrb[22].mxu0  ;;  %v5513_v18 = vpop.f32.mrb[22].mxu1 }
 0x12c   : > { %v5466_v42 = vpop.f32.mrb[23].mxu0  ;;  %v5514_v35 = vpop.f32.mrb[23].mxu1 }
 0x12d   : > { %9066 = vst [vmem:[#allocation23_spill] sm:$0xff] %v7823_v63  ;;  %v7825_v16 = vadd.f32 %v5466_v42, %v5465_v45  ;;  %v7827_v23 = vadd.f32 %v5514_v35, %v5513_v18 }
 0x12e   : > { %3146 = vmatmul.mubr.bf16.gmra.mrb[128].mxu0 %v7519_v47  ;;  %2985 = vmatmul.mubr.bf16.gmra.mrb[128].mxu1 %v6807_v4 }
 0x12f   : > { %9067 = vst [vmem:[#allocation22_spill] sm:$0xff] %v7827_v23  ;;  %3153 = vmatprep.mubr.bf16.mxu0 %v7408_v12  ;;  %2992 = vmatprep.mubr.bf16.mxu1 %v9068_v62 }
 0x131   : > { %v5468_v32 = vpop.f32.mrb[24].mxu0  ;;  %v5516_v40 = vpop.f32.mrb[24].mxu1 }
 0x132   : > { %v5469_v20 = vpop.f32.mrb[25].mxu0  ;;  %v5517_v63 = vpop.f32.mrb[25].mxu1 }
 0x133   : > { %v7833_v26 = vadd.f32 %v5469_v20, %v5468_v32  ;;  %v5471_v33 = vpop.f32.mrb[26].mxu0  ;;  %v7835_v5 = vadd.f32 %v5517_v63, %v5516_v40  ;;  %v5519_v45 = vpop.f32.mrb[26].mxu1  ;;  %v9071_v32 = vld [vmem:[#allocation13_spill] sm:$0xff] }
 0x134   : > { %v5472_v18 = vpop.f32.mrb[27].mxu0  ;;  %v5520_v35 = vpop.f32.mrb[27].mxu1 }
 0x135   : > { %9069 = vst [vmem:[#allocation6_spill] sm:$0xff] %v7835_v5  ;;  %v7837_v42 = vadd.f32 %v5472_v18, %v5471_v33  ;;  %v7839_v47 = vadd.f32 %v5520_v35, %v5519_v45 }
 0x136   : > { %3154 = vmatmul.mubr.bf16.gmra.mrb[132].mxu0 %v7553_v36  ;;  %2993 = vmatmul.mubr.bf16.gmra.mrb[132].mxu1 %v6858_v43 }
 0x137   : > { %9070 = vst [vmem:[#allocation81_spill] sm:$0xff] %v7839_v47  ;;  %3161 = vmatprep.mubr.bf16.mxu0 %v7453_v21  ;;  %3000 = vmatprep.mubr.bf16.mxu1 %v9071_v32  ;;  %v6591_v21 = vld [vmem:[%s6708_s16 + $0x78] sm:$0xff]  }
 0x139   : > { %v5474_v20 = vpop.f32.mrb[28].mxu0  ;;  %v5522_v12 = vpop.f32.mrb[28].mxu1 }
 0x13a   : > { %v5475_v63 = vpop.f32.mrb[29].mxu0  ;;  %v5523_v5 = vpop.f32.mrb[29].mxu1 }
 0x13b   : > { %v7845_v40 = vadd.f32 %v5475_v63, %v5474_v20  ;;  %v5477_v33 = vpop.f32.mrb[30].mxu0  ;;  %v7847_v18 = vadd.f32 %v5523_v5, %v5522_v12  ;;  %v5525_v45 = vpop.f32.mrb[30].mxu1  ;;  %v9074_v20 = vld [vmem:[#allocation16_spill] sm:$0xff]  ;;  %v482_v5 = vshrl.u32 %v6591_v21, 16 }
 0x13c   : > { %v5478_v35 = vpop.f32.mrb[31].mxu0  ;;  %v5526_v36 = vpop.f32.mrb[31].mxu1 }
 0x13d   : > { %9072 = vst [vmem:[#allocation82_spill] sm:$0xff] %v7847_v18  ;;  %v7849_v47 = vadd.f32 %v5478_v35, %v5477_v33  ;;  %v7851_v23 = vadd.f32 %v5526_v36, %v5525_v45 }
 0x13e   : > { %3162 = vmatmul.mubr.bf16.gmra.mrb[136].mxu0 %v7574_v31  ;;  %3001 = vmatmul.mubr.bf16.gmra.mrb[136].mxu1 %v6904_v19  ;;  %v485_v19 = vshll.u32 %v6591_v21, 16 }
 0x13f   : > { %9073 = vst [vmem:[#allocation83_spill] sm:$0xff] %v7851_v23  ;;  %3169 = vmatprep.mubr.bf16.mxu0 %v7497_v39  ;;  %3008 = vmatprep.mubr.bf16.mxu1 %v9074_v20  ;;  %v484_v39 = vrot.slane %v482_v5, 7 }
 0x141   : > { %v5656_v63 = vpop.f32.mrb[32].mxu0  ;;  %v5544_v32 = vpop.f32.mrb[32].mxu1 }
 0x142   : > { %v5657_v12 = vpop.f32.mrb[33].mxu0  ;;  %v5545_v18 = vpop.f32.mrb[33].mxu1 }
 0x143   : > { %v5658_v43 = vadd.f32 %v5657_v12, %v5656_v63  ;;  %v5659_v33 = vpop.f32.mrb[34].mxu0  ;;  %v5546_v35 = vadd.f32 %v5545_v18, %v5544_v32  ;;  %v5547_v62 = vpop.f32.mrb[34].mxu1  ;;  %v9076_v18 = vld [vmem:[#allocation18_spill] sm:$0xff] }
 0x144   : > { %v5660_v36 = vpop.f32.mrb[35].mxu0  ;;  %v5548_v45 = vpop.f32.mrb[35].mxu1 }
 0x145   : > { %v5661_v23 = vadd.f32 %v5660_v36, %v5659_v33  ;;  %v2120_v31 = vadd.f32 %v5546_v35, %v7737_v59  ;;  %v5549_v4 = vadd.f32 %v5548_v45, %v5547_v62  ;;  %v487_v33 = vor.u32 %v485_v19, %v484_v39 }
 0x146   : > { %3170 = vmatmul.mubr.bf16.gmra.mrb[140].mxu0 %v7591_v50  ;;  %3009 = vmatmul.mubr.bf16.gmra.mrb[140].mxu1 %v6950_v2  ;;  %v6592_v2 = vld [vmem:[%s7099_s14 + $0x78] sm:$0xff]   ;;  %s255_s14 = scalar_lea.vmem %s8812_s5, %s4882_s11 }
 0x147   : > { %3177 = vmatprep.mubr.bf16.mxu0 %v7529_v48  ;;  %v7862_v20 = vadd.f32 %v5658_v43, %v2120_v31  ;;  %v2123_v32 = vadd.f32 %v5549_v4, %v7744_v56  ;;  %3016 = vmatprep.mubr.bf16.mxu1 %v9076_v18 }
 0x149   : > { %9075 = vst [vmem:[#allocation84_spill] sm:$0xff] %v7862_v20  ;;  %v5662_v63 = vpop.f32.mrb[36].mxu0  ;;  %v7866_v12 = vadd.f32 %v5661_v23, %v2123_v32  ;;  %v5550_v59 = vpop.f32.mrb[36].mxu1  ;;  %v7873_v23 = vsel %vm6717_vm2, 0, %v487_v33  ;;  %v9079_v32 = vld [vmem:[#allocation21_spill] sm:$0xff]  ;;  %v558_v33 = vsel %vm6717_vm2, %v484_v39, 0 }
 0x14a   : > { %v5663_v62 = vpop.f32.mrb[37].mxu0  ;;  %v5551_v35 = vpop.f32.mrb[37].mxu1 }
 0x14b   : > { %9077 = vst [vmem:[#allocation18_spill] sm:$0xff] %v7866_v12  ;;  %v5664_v5 = vadd.f32 %v5663_v62, %v5662_v63  ;;  %v5665_v21 = vpop.f32.mrb[38].mxu0  ;;  %v5552_v36 = vadd.f32 %v5551_v35, %v5550_v59  ;;  %v5553_v45 = vpop.f32.mrb[38].mxu1 }
 0x14c   : > { %v5666_v50 = vpop.f32.mrb[39].mxu0  ;;  %v5554_v48 = vpop.f32.mrb[39].mxu1 }
 0x14d   : > { %v5667_v43 = vadd.f32 %v5666_v50, %v5665_v21  ;;  %v2128_v31 = vadd.f32 %v5552_v36, %v7773_v6  ;;  %v5555_v4 = vadd.f32 %v5554_v48, %v5553_v45  ;;  %v1102_v50 = vshrl.u32 %v6592_v2, 16 }
 0x14e   : > { %3178 = vmatmul.mubr.bf16.gmra.mrb[144].mxu0 %v7614_v44  ;;  %3017 = vmatmul.mubr.bf16.gmra.mrb[144].mxu1 %v6994_v54  ;;  %v755_v48 = vshll.u32 %v7873_v23, 16 }
 0x14f   : > { %3185 = vmatprep.mubr.bf16.mxu0 %v7542_v51  ;;  %v7877_v19 = vadd.f32 %v5664_v5, %v2128_v31  ;;  %v2131_v56 = vadd.f32 %v5555_v4, %v7777_v38  ;;  %3024 = vmatprep.mubr.bf16.mxu1 %v9079_v32  ;;  %v7886_v38 = vrot.slane %v1102_v50, 7  ;;  %v1105_v4 = vshll.u32 %v6592_v2, 16  ;;  %v9081_v2 = vld [vmem:[#allocation25_spill] sm:$0xff] }
 0x150   : > { %v753_v51 = vshrl.u32 %v7873_v23, 16 }
 0x151   : > { %9078 = vst [vmem:[#allocation85_spill] sm:$0xff] %v7877_v19  ;;  %v5668_v63 = vpop.f32.mrb[40].mxu0  ;;  %v7882_v6 = vadd.f32 %v5667_v43, %v2131_v56  ;;  %v5556_v59 = vpop.f32.mrb[40].mxu1  ;;  %v757_v43 = vrot.slane %v755_v48, 1  ;;  %v760_v56 = vshll.u32 %v558_v33, 16 }
 0x152   : > { %v5669_v62 = vpop.f32.mrb[41].mxu0  ;;  %v5557_v35 = vpop.f32.mrb[41].mxu1 }
 0x153   : > { %9080 = vst [vmem:[#allocation21_spill] sm:$0xff] %v7882_v6  ;;  %v5670_v21 = vadd.f32 %v5669_v62, %v5668_v63  ;;  %v5671_v36 = vpop.f32.mrb[42].mxu0  ;;  %v5558_v5 = vadd.f32 %v5557_v35, %v5556_v59  ;;  %v5559_v45 = vpop.f32.mrb[42].mxu1  ;;  %v1107_v63 = vor.u32 %v1105_v4, %v7886_v38  ;;  %v758_v48 = vor.u32 %v757_v43, %v753_v51 }
 0x154   : > { %v5672_v31 = vpop.f32.mrb[43].mxu0  ;;  %v5560_v19 = vpop.f32.mrb[43].mxu1  ;;  %v762_v62 = vrot.slane %v760_v56, 1  ;;  %v864_v43 = vrot.slane %v7873_v23, 1  ;;  %v865_v56 = vrot.slane %v558_v33, 1 }
 0x155   : > { %v5673_v12 = vadd.f32 %v5672_v31, %v5671_v36  ;;  %v2136_v6 = vadd.f32 %v5558_v5, %v7785_v15  ;;  %v5561_v20 = vadd.f32 %v5560_v19, %v5559_v45 }
 0x156   : > { %3186 = vmatmul.mubr.bf16.gmra.mrb[148].mxu0 %v7632_v28  ;;  %3025 = vmatmul.mubr.bf16.gmra.mrb[148].mxu1 %v7039_v55  ;;  %v7905_v4 = vsel %vm559_vm3, %v758_v48, %v762_v62 }
 0x157   : > { %3193 = vmatprep.mubr.bf16.mxu0 %v7607_v58  ;;  %v7893_v39 = vadd.f32 %v5670_v21, %v2136_v6  ;;  %v2139_v50 = vadd.f32 %v5561_v20, %v7789_v8  ;;  %3032 = vmatprep.mubr.bf16.mxu1 %v9081_v2  ;;  %v7902_v8 = vsel %vm6717_vm2, 0, %v1107_v63 }
 0x159   : > { %v5674_v59 = vpop.f32.mrb[44].mxu0  ;;  %v7898_v35 = vadd.f32 %v5673_v12, %v2139_v50  ;;  %v5562_v15 = vpop.f32.mrb[44].mxu1 }
 0x15a   : > { %v5675_v19 = vpop.f32.mrb[45].mxu0  ;;  %v5563_v36 = vpop.f32.mrb[45].mxu1 }
 0x15b   : > { %v5676_v5 = vadd.f32 %v5675_v19, %v5674_v59  ;;  %v5677_v45 = vpop.f32.mrb[46].mxu0  ;;  %v5564_v31 = vadd.f32 %v5563_v36, %v5562_v15  ;;  %v5565_v58 = vpop.f32.mrb[46].mxu1  ;;  %v7919_v36 = vsel %vm815_vm4, %v864_v43, %v865_v56 }
 0x15c   : > { %v5678_v6 = vpop.f32.mrb[47].mxu0  ;;  %v5566_v20 = vpop.f32.mrb[47].mxu1 }
 0x15d   : > { %v5679_v21 = vadd.f32 %v5678_v6, %v5677_v45  ;;  %v2144_v51 = vadd.f32 %v5564_v31, %v7797_v61  ;;  %v5567_v12 = vadd.f32 %v5566_v20, %v5565_v58 }
 0x15e   : > { %3194 = vmatmul.mubr.bf16.gmra.mrb[152].mxu0 %v7647_v10  ;;  %3033 = vmatmul.mubr.bf16.gmra.mrb[152].mxu1 %v7092_v9 }
 0x15f   : > { %3201 = vmatprep.mubr.bf16.mxu0 %v7902_v8  ;;  %v7912_v50 = vadd.f32 %v5676_v5, %v2144_v51  ;;  %v2147_v63 = vadd.f32 %v5567_v12, %v7801_v53  ;;  %3040 = vmatprep.mubr.bf16.mxu1 %v7905_v4  ;;  %v9084_v12 = vld [vmem:[#allocation27_spill] sm:$0xff] }
 0x161   : > { %v5680_v59 = vpop.f32.mrb[48].mxu0  ;;  %v7916_v48 = vadd.f32 %v5679_v21, %v2147_v63  ;;  %v5568_v61 = vpop.f32.mrb[48].mxu1 }
 0x162   : > { %v5681_v58 = vpop.f32.mrb[49].mxu0  ;;  %v5569_v62 = vpop.f32.mrb[49].mxu1 }
 0x163   : > { %9082 = vst [vmem:[#allocation25_spill] sm:$0xff] %v7916_v48  ;;  %v5682_v15 = vadd.f32 %v5681_v58, %v5680_v59  ;;  %v5683_v19 = vpop.f32.mrb[50].mxu0  ;;  %v5570_v45 = vadd.f32 %v5569_v62, %v5568_v61  ;;  %v5571_v31 = vpop.f32.mrb[50].mxu1  ;;  %v6596_v62 = vld [vmem:[%s8809_s2 + $0x400] sm:$0xff]   ;;  %v9156_v48 = vld [vmem:[#allocation80_spill] sm:$0xff] }
 0x164   : > { %v5684_v33 = vpop.f32.mrb[51].mxu0  ;;  %v5572_v5 = vpop.f32.mrb[51].mxu1 }
 0x165   : > { %v5685_v6 = vadd.f32 %v5684_v33, %v5683_v19  ;;  %v2152_v53 = vadd.f32 %v5570_v45, %v7809_v29  ;;  %v5573_v20 = vadd.f32 %v5572_v5, %v5571_v31  ;;  %v6597_v33 = vld [vmem:[%s8809_s2 + $0x3c8] sm:$0xff]  }
 0x166   : > { %3202 = vmatmul.mubr.bf16.gmra.mrb[156].mxu0 %v7919_v36  ;;  %3041 = vmatmul.mubr.bf16.gmra.mrb[156].mxu1 %v7873_v23 }
 0x167   : > { %3884 = vmatprep.mubr.bf16.mxu0 %v6876_v1  ;;  %v7925_v21 = vadd.f32 %v5682_v15, %v2152_v53  ;;  %v2155_v51 = vadd.f32 %v5573_v20, %v7813_v11  ;;  %3242 = vmatprep.mubr.bf16.mxu1 %v9084_v12  ;;  %v6594_v11 = vld [vmem:[%s8809_s2 + $0x380] sm:$0xff]   ;;  %v6599_v53 = vld [vmem:[%s8809_s2 + $0x448] sm:$0xff]  }
 0x168   : > { %v9086_v20 = vld [vmem:[#allocation28_spill] sm:$0xff] }
 0x169   : > { %9083 = vst [vmem:[#allocation86_spill] sm:$0xff] %v7925_v21  ;;  %v5686_v43 = vpop.f32.mrb[52].mxu0  ;;  %v7929_v56 = vadd.f32 %v5685_v6, %v2155_v51  ;;  %v5574_v63 = vpop.f32.mrb[52].mxu1  ;;  %v6600_v51 = vld [vmem:[%s8809_s2 + $0x408] sm:$0xff]  }
 0x16a   : > { %v5687_v59 = vpop.f32.mrb[53].mxu0  ;;  %v5575_v61 = vpop.f32.mrb[53].mxu1 }
 0x16b   : > { %9085 = vst [vmem:[#allocation27_spill] sm:$0xff] %v7929_v56  ;;  %v5688_v29 = vadd.f32 %v5687_v59, %v5686_v43  ;;  %v5689_v58 = vpop.f32.mrb[54].mxu0  ;;  %v5576_v19 = vadd.f32 %v5575_v61, %v5574_v63  ;;  %v5577_v1 = vpop.f32.mrb[54].mxu1  ;;  %v6603_v63 = vld [vmem:[%s8809_s2 + $0x450] sm:$0xff]  }
 0x16c   : > { %v5690_v15 = vpop.f32.mrb[55].mxu0  ;;  %v5578_v45 = vpop.f32.mrb[55].mxu1  ;;  %v6601_v61 = vld [vmem:[%s8809_s2 + $0x3d0] sm:$0xff]  }
 0x16d   : > { %v5691_v31 = vadd.f32 %v5690_v15, %v5689_v58  ;;  %v2160_v5 = vadd.f32 %v5576_v19, %v7821_v57  ;;  %v5579_v6 = vadd.f32 %v5578_v45, %v5577_v1  ;;  %v9088_v57 = vld [vmem:[#allocation29_spill] sm:$0xff] }
 0x16e   : > { %3885 = vmatmul.mubr.bf16.vlgmr.msra.gmra.mrb[160].mxu0 %v6843_v34  ;;  %3243 = vmatmul.mubr.bf16.vlgmr.msra.gmra.mrb[160].mxu1 %v9086_v20  ;;  %v6598_v34 = vld [vmem:[%s8809_s2 + $0x388] sm:$0xff]  }
 0x16f   : > { %6313 = vmatpush3.bf16.msra.mxu0 %v6596_v62  ;;  %v7949_v12 = vadd.f32 %v5688_v29, %v2160_v5  ;;  %v2163_v43 = vadd.f32 %v5579_v6, %v7825_v16  ;;  %6201 = vmatpush3.bf16.msra.mxu1 %v6594_v11  ;;  %v6605_v6 = vld [vmem:[%s8809_s2 + $0x3d8] sm:$0xff]  }
 0x170   : > { %3250 = vmatprep.mubr.bf16.mxu1 %v9088_v57  ;;  %3892 = vmatprep.mubr.bf16.mxu0 %v6922_v46  ;;  %v6602_v46 = vld [vmem:[%s8809_s2 + $0x390] sm:$0xff]  }
 0x171   : > { %9087 = vst [vmem:[#allocation28_spill] sm:$0xff] %v7949_v12  ;;  %v5692_v59 = vpop.f32.mrb[56].mxu0  ;;  %6202 = vmatprep.subr.bf16.mxu1 %v6597_v33  ;;  %v7963_v16 = vadd.f32 %v5691_v31, %v2163_v43  ;;  %v5580_v29 = vpop.f32.mrb[56].mxu1  ;;  %6314 = vmatprep.subr.bf16.mxu0 %v6599_v53  ;;  %v6604_v31 = vld [vmem:[%s8809_s2 + $0x410] sm:$0xff]   ;;  %v9090_v43 = vld [vmem:[#allocation32_spill] sm:$0xff] }
 0x172   : > { %v5693_v58 = vpop.f32.mrb[57].mxu0  ;;  %v5581_v62 = vpop.f32.mrb[57].mxu1 }
 0x173   : > { %9089 = vst [vmem:[#allocation29_spill] sm:$0xff] %v7963_v16  ;;  %v5694_v19 = vadd.f32 %v5693_v58, %v5692_v59  ;;  %v5695_v1 = vpop.f32.mrb[58].mxu0  ;;  %6315 = vmatpush3.bf16.msra.mxu0 %v6600_v51  ;;  %v5582_v15 = vadd.f32 %v5581_v62, %v5580_v29  ;;  %v5583_v11 = vpop.f32.mrb[58].mxu1  ;;  %6203 = vmatpush3.bf16.msra.mxu1 %v6598_v34  ;;  %v6607_v51 = vld [vmem:[%s8809_s2 + $0x458] sm:$0xff]   ;;  %v9092_v59 = vld [vmem:[#allocation33_spill] sm:$0xff]  ;;  %v6611_v62 = vld [vmem:[%s8809_s2 + $0x460] sm:$0xff]  }
 0x174   : > { %v5696_v45 = vpop.f32.mrb[59].mxu0  ;;  %6316 = vmatprep.subr.bf16.mxu0 %v6603_v63  ;;  %v5584_v33 = vpop.f32.mrb[59].mxu1  ;;  %6204 = vmatprep.subr.bf16.mxu1 %v6601_v61  ;;  %v6608_v61 = vld [vmem:[%s8809_s2 + $0x418] sm:$0xff]  }
 0x175   : > { %v5697_v5 = vadd.f32 %v5696_v45, %v5695_v1  ;;  %v2168_v53 = vadd.f32 %v5582_v15, %v7833_v26  ;;  %v5585_v20 = vadd.f32 %v5584_v33, %v5583_v11  ;;  %v6606_v26 = vld [vmem:[%s8809_s2 + $0x398] sm:$0xff]   ;;  %v6610_v33 = vld [vmem:[%s8809_s2 + $0x3a0] sm:$0xff]  }
 0x176   : > { %3893 = vmatmul.mubr.bf16.gmra.mrb[164].mxu0 %v6885_v7  ;;  %3251 = vmatmul.mubr.bf16.gmra.mrb[164].mxu1 %v9090_v43 }
 0x177   : > { %3900 = vmatprep.mubr.bf16.mxu0 %v6968_v30  ;;  %v7981_v34 = vadd.f32 %v5694_v19, %v2168_v53  ;;  %v2171_v63 = vadd.f32 %v5585_v20, %v7837_v42  ;;  %3258 = vmatprep.mubr.bf16.mxu1 %v9092_v59  ;;  %v6609_v30 = vld [vmem:[%s8809_s2 + $0x3e0] sm:$0xff]   ;;  %v6613_v53 = vld [vmem:[%s8809_s2 + $0x3e8] sm:$0xff]  }
 0x178   : > { %6205 = vmatpush3.bf16.msra.mxu1 %v6602_v46  ;;  %6317 = vmatpush3.bf16.msra.mxu0 %v6604_v31 }
 0x179   : > { %9091 = vst [vmem:[#allocation32_spill] sm:$0xff] %v7981_v34  ;;  %v5698_v7 = vpop.f32.mrb[60].mxu0  ;;  %6206 = vmatprep.subr.bf16.mxu1 %v6605_v6  ;;  %v7994_v29 = vadd.f32 %v5697_v5, %v2171_v63  ;;  %v5586_v42 = vpop.f32.mrb[60].mxu1  ;;  %6318 = vmatprep.subr.bf16.mxu0 %v6607_v51  ;;  %v6612_v6 = vld [vmem:[%s8809_s2 + $0x420] sm:$0xff]   ;;  %v6615_v63 = vld [vmem:[%s8809_s2 + $0x468] sm:$0xff]  }
 0x17a   : > { %v5699_v58 = vpop.f32.mrb[61].mxu0  ;;  %v5587_v19 = vpop.f32.mrb[61].mxu1 }
 0x17b   : > { %9093 = vst [vmem:[#allocation33_spill] sm:$0xff] %v7994_v29  ;;  %v5700_v1 = vadd.f32 %v5699_v58, %v5698_v7  ;;  %v5701_v15 = vpop.f32.mrb[62].mxu0  ;;  %v5588_v11 = vadd.f32 %v5587_v19, %v5586_v42  ;;  %v5589_v45 = vpop.f32.mrb[62].mxu1  ;;  %v6616_v42 = vld [vmem:[%s8809_s2 + $0x428] sm:$0xff]   ;;  %v6619_v19 = vld [vmem:[%s8809_s2 + $0x470] sm:$0xff]  }
 0x17c   : > { %v5702_v46 = vpop.f32.mrb[63].mxu0  ;;  %6207 = vmatpush3.bf16.msra.mxu1 %v6606_v26  ;;  %v5590_v5 = vpop.f32.mrb[63].mxu1  ;;  %6319 = vmatpush3.bf16.msra.mxu0 %v6608_v61  ;;  %v9094_v26 = vld [vmem:[#allocation35_spill] sm:$0xff] }
 0x17d   : > { %v5703_v31 = vadd.f32 %v5702_v46, %v5701_v15  ;;  %6208 = vmatprep.subr.bf16.mxu1 %v6609_v30  ;;  %v2176_v20 = vadd.f32 %v5588_v11, %v7845_v40  ;;  %v5591_v51 = vadd.f32 %v5590_v5, %v5589_v45  ;;  %6320 = vmatprep.subr.bf16.mxu0 %v6611_v62  ;;  %v9096_v30 = vld [vmem:[#allocation37_spill] sm:$0xff] }
 0x17e   : > { %3901 = vmatmul.mubr.bf16.gmra.mrb[168].mxu0 %v9043_v25  ;;  %3259 = vmatmul.mubr.bf16.gmra.mrb[168].mxu1 %v9094_v26  ;;  %v6614_v25 = vld [vmem:[%s8809_s2 + $0x3a8] sm:$0xff]   ;;  %v6618_v5 = vld [vmem:[%s8809_s2 + $0x3b0] sm:$0xff]  }
 0x17f   : > { %3908 = vmatprep.mubr.bf16.mxu0 %v9045_v0  ;;  %v8015_v7 = vadd.f32 %v5700_v1, %v2176_v20  ;;  %v2179_v61 = vadd.f32 %v5591_v51, %v7849_v47  ;;  %3266 = vmatprep.mubr.bf16.mxu1 %v9096_v30  ;;  %v6617_v0 = vld [vmem:[%s8809_s2 + $0x3f0] sm:$0xff]   ;;  %v6621_v20 = vld [vmem:[%s8809_s2 + $0x3f8] sm:$0xff]  }
 0x180   : > { %6209 = vmatpush3.bf16.msra.mxu1 %v6610_v33  ;;  %6321 = vmatpush3.bf16.msra.mxu0 %v6612_v6 }
 0x181   : > { %9095 = vst [vmem:[#allocation35_spill] sm:$0xff] %v8015_v7  ;;  %v5704_v40 = vpop.f32.mrb[64].mxu0  ;;  %6210 = vmatprep.subr.bf16.mxu1 %v6613_v53  ;;  %v8028_v58 = vadd.f32 %v5703_v31, %v2179_v61  ;;  %v5592_v47 = vpop.f32.mrb[64].mxu1  ;;  %6322 = vmatprep.subr.bf16.mxu0 %v6615_v63  ;;  %v6620_v53 = vld [vmem:[%s8809_s2 + $0x430] sm:$0xff]   ;;  %v6623_v61 = vld [vmem:[%s8809_s2 + $0x478] sm:$0xff]  }
 0x182   : > { %v5705_v62 = vpop.f32.mrb[65].mxu0  ;;  %v5593_v1 = vpop.f32.mrb[65].mxu1 }
 0x183   : > { %9097 = vst [vmem:[#allocation37_spill] sm:$0xff] %v8028_v58  ;;  %v5706_v15 = vadd.f32 %v5705_v62, %v5704_v40  ;;  %v5707_v11 = vpop.f32.mrb[66].mxu0  ;;  %v5594_v45 = vadd.f32 %v5593_v1, %v5592_v47  ;;  %v5595_v46 = vpop.f32.mrb[66].mxu1  ;;  %v6624_v47 = vld [vmem:[%s8809_s2 + $0x438] sm:$0xff]  }
 0x184   : > { %v5708_v33 = vpop.f32.mrb[67].mxu0  ;;  %6211 = vmatpush3.bf16.msra.mxu1 %v6614_v25  ;;  %v5596_v31 = vpop.f32.mrb[67].mxu1  ;;  %6323 = vmatpush3.bf16.msra.mxu0 %v6616_v42  ;;  %v9098_v25 = vld [vmem:[#allocation40_spill] sm:$0xff] }
 0x185   : > { %v5709_v6 = vadd.f32 %v5708_v33, %v5707_v11  ;;  %6212 = vmatprep.subr.bf16.mxu1 %v6617_v0  ;;  %v2184_v51 = vadd.f32 %v5594_v45, %v7739_v60  ;;  %v5597_v63 = vadd.f32 %v5596_v31, %v5595_v46  ;;  %6324 = vmatprep.subr.bf16.mxu0 %v6619_v19  ;;  %v9100_v0 = vld [vmem:[#allocation42_spill] sm:$0xff] }
 0x186   : > { %3909 = vmatmul.mubr.bf16.gmra.mrb[172].mxu0 %v9047_v17  ;;  %3267 = vmatmul.mubr.bf16.gmra.mrb[172].mxu1 %v9098_v25  ;;  %v6622_v17 = vld [vmem:[%s8809_s2 + $0x3b8] sm:$0xff]  }
 0x187   : > { %3916 = vmatprep.mubr.bf16.mxu0 %v9049_v27  ;;  %v8049_v40 = vadd.f32 %v5706_v15, %v2184_v51  ;;  %v2187_v42 = vadd.f32 %v5597_v63, %v7746_v37  ;;  %3274 = vmatprep.mubr.bf16.mxu1 %v9100_v0  ;;  %v9104_v63 = vld [vmem:[#allocation45_spill] sm:$0xff] }
 0x188   : > { %6213 = vmatpush3.bf16.msra.mxu1 %v6618_v5  ;;  %6325 = vmatpush3.bf16.msra.mxu0 %v6620_v53 }
 0x189   : > { %9099 = vst [vmem:[#allocation40_spill] sm:$0xff] %v8049_v40  ;;  %v5710_v60 = vpop.f32.mrb[68].mxu0  ;;  %6214 = vmatprep.subr.bf16.mxu1 %v6621_v20  ;;  %v8059_v62 = vadd.f32 %v5709_v6, %v2187_v42  ;;  %v5598_v27 = vpop.f32.mrb[68].mxu1  ;;  %6326 = vmatprep.subr.bf16.mxu0 %v6623_v61  ;;  %v9102_v6 = vld [vmem:[#allocation44_spill] sm:$0xff] }
 0x18a   : > { %v5711_v19 = vpop.f32.mrb[69].mxu0  ;;  %v5599_v37 = vpop.f32.mrb[69].mxu1 }
 0x18b   : > { %9101 = vst [vmem:[#allocation42_spill] sm:$0xff] %v8059_v62  ;;  %v5712_v1 = vadd.f32 %v5711_v19, %v5710_v60  ;;  %v5713_v15 = vpop.f32.mrb[70].mxu0  ;;  %v5600_v11 = vadd.f32 %v5599_v37, %v5598_v27  ;;  %v5601_v45 = vpop.f32.mrb[70].mxu1 }
 0x18c   : > { %v5714_v46 = vpop.f32.mrb[71].mxu0  ;;  %6215 = vmatpush3.bf16.msra.mxu1 %v6622_v17  ;;  %v5602_v33 = vpop.f32.mrb[71].mxu1  ;;  %6327 = vmatpush3.bf16.msra.mxu0 %v6624_v47 }
 0x18d   : > { %v5715_v5 = vadd.f32 %v5714_v46, %v5713_v15  ;;  %v2192_v31 = vadd.f32 %v5600_v11, %v7775_v22  ;;  %v5603_v53 = vadd.f32 %v5602_v33, %v5601_v45  ;;  %v9108_v46 = vld [vmem:[#allocation12_spill] sm:$0xff] }
 0x18e   : > { %3917 = vmatmul.mubr.bf16.gmra.mrb[176].mxu0 %v9052_v3  ;;  %3275 = vmatmul.mubr.bf16.gmra.mrb[176].mxu1 %v9102_v6 }
 0x18f   : > { %3924 = vmatprep.mubr.bf16.mxu0 %v9054_v41  ;;  %v8065_v20 = vadd.f32 %v5712_v1, %v2192_v31  ;;  %v2195_v51 = vadd.f32 %v5603_v53, %v7779_v24  ;;  %3282 = vmatprep.mubr.bf16.mxu1 %v9104_v63  ;;  %v9106_v24 = vld [vmem:[#allocation49_spill] sm:$0xff] }
 0x191   : > { %9103 = vst [vmem:[#allocation44_spill] sm:$0xff] %v8065_v20  ;;  %v5716_v61 = vpop.f32.mrb[72].mxu0  ;;  %v8069_v42 = vadd.f32 %v5715_v5, %v2195_v51  ;;  %v5604_v17 = vpop.f32.mrb[72].mxu1  ;;  %v9109_v5 = vld [vmem:[#allocation50_spill] sm:$0xff] }
 0x192   : > { %v5717_v60 = vpop.f32.mrb[73].mxu0  ;;  %v5605_v47 = vpop.f32.mrb[73].mxu1 }
 0x193   : > { %9105 = vst [vmem:[#allocation45_spill] sm:$0xff] %v8069_v42  ;;  %v5718_v22 = vadd.f32 %v5717_v60, %v5716_v61  ;;  %v5719_v27 = vpop.f32.mrb[74].mxu0  ;;  %v5606_v19 = vadd.f32 %v5605_v47, %v5604_v17  ;;  %v5607_v3 = vpop.f32.mrb[74].mxu1 }
 0x194   : > { %v5720_v37 = vpop.f32.mrb[75].mxu0  ;;  %v5608_v15 = vpop.f32.mrb[75].mxu1 }
 0x195   : > { %v5721_v11 = vadd.f32 %v5720_v37, %v5719_v27  ;;  %v2200_v41 = vadd.f32 %v5606_v19, %v7787_v14  ;;  %v5609_v1 = vadd.f32 %v5608_v15, %v5607_v3  ;;  %v9112_v15 = vld [vmem:[#allocation5_spill] sm:$0xff] }
 0x196   : > { %3925 = vmatmul.mubr.bf16.gmra.mrb[180].mxu0 %v9058_v52  ;;  %3283 = vmatmul.mubr.bf16.gmra.mrb[180].mxu1 %v9106_v24 }
 0x197   : > { %3932 = vmatprep.mubr.bf16.mxu0 %v9060_v49  ;;  %v8075_v45 = vadd.f32 %v5718_v22, %v2200_v41  ;;  %v2203_v33 = vadd.f32 %v5609_v1, %v9108_v46  ;;  %3290 = vmatprep.mubr.bf16.mxu1 %v9109_v5  ;;  %v9111_v49 = vld [vmem:[#allocation17_spill] sm:$0xff]  ;;  %v9113_v41 = vld [vmem:[#allocation54_spill] sm:$0xff]  ;;  %v9114_v1 = vld [vmem:[#allocation8_spill] sm:$0xff] }
 0x198   : > { %v9116_v46 = vld [vmem:[#allocation15_spill] sm:$0xff] }
 0x199   : > { %9107 = vst [vmem:[#allocation49_spill] sm:$0xff] %v8075_v45  ;;  %v5722_v31 = vpop.f32.mrb[76].mxu0  ;;  %v8079_v53 = vadd.f32 %v5721_v11, %v2203_v33  ;;  %v5610_v51 = vpop.f32.mrb[76].mxu1 }
 0x19a   : > { %v5723_v61 = vpop.f32.mrb[77].mxu0  ;;  %v5611_v17 = vpop.f32.mrb[77].mxu1 }
 0x19b   : > { %9110 = vst [vmem:[#allocation12_spill] sm:$0xff] %v8079_v53  ;;  %v5724_v14 = vadd.f32 %v5723_v61, %v5722_v31  ;;  %v5725_v60 = vpop.f32.mrb[78].mxu0  ;;  %v5612_v47 = vadd.f32 %v5611_v17, %v5610_v51  ;;  %v5613_v52 = vpop.f32.mrb[78].mxu1  ;;  %v9117_v31 = vld [vmem:[#allocation55_spill] sm:$0xff] }
 0x19c   : > { %v5726_v27 = vpop.f32.mrb[79].mxu0  ;;  %v5614_v19 = vpop.f32.mrb[79].mxu1 }
 0x19d   : > { %v5727_v3 = vadd.f32 %v5726_v27, %v5725_v60  ;;  %v2208_v22 = vadd.f32 %v5612_v47, %v9111_v49  ;;  %v5615_v37 = vadd.f32 %v5614_v19, %v5613_v52 }
 0x19e   : > { %3933 = vmatmul.mubr.bf16.gmra.mrb[184].mxu0 %v9112_v15  ;;  %3291 = vmatmul.mubr.bf16.gmra.mrb[184].mxu1 %v9113_v41 }
 0x19f   : > { %3940 = vmatprep.mubr.bf16.mxu0 %v9114_v1  ;;  %v8085_v11 = vadd.f32 %v5724_v14, %v2208_v22  ;;  %v2211_v33 = vadd.f32 %v5615_v37, %v9116_v46  ;;  %3298 = vmatprep.mubr.bf16.mxu1 %v9117_v31  ;;  %v9119_v1 = vld [vmem:[#allocation20_spill] sm:$0xff]  ;;  %v9121_v37 = vld [vmem:[#allocation57_spill] sm:$0xff]  ;;  %v9122_v46 = vld [vmem:[#allocation10_spill] sm:$0xff] }
 0x1a1   : > { %9115 = vst [vmem:[#allocation50_spill] sm:$0xff] %v8085_v11  ;;  %v5728_v51 = vpop.f32.mrb[80].mxu0  ;;  %v8089_v61 = vadd.f32 %v5727_v3, %v2211_v33  ;;  %v5616_v17 = vpop.f32.mrb[80].mxu1  ;;  %v9120_v11 = vld [vmem:[#allocation7_spill] sm:$0xff] }
 0x1a2   : > { %v5729_v60 = vpop.f32.mrb[81].mxu0  ;;  %v5617_v27 = vpop.f32.mrb[81].mxu1  ;;  %v9124_v33 = vld [vmem:[#allocation19_spill] sm:$0xff] }
 0x1a3   : > { %9118 = vst [vmem:[#allocation17_spill] sm:$0xff] %v8089_v61  ;;  %v5730_v47 = vadd.f32 %v5729_v60, %v5728_v51  ;;  %v5731_v52 = vpop.f32.mrb[82].mxu0  ;;  %v5618_v19 = vadd.f32 %v5617_v27, %v5616_v17  ;;  %v5619_v49 = vpop.f32.mrb[82].mxu1  ;;  %v9125_v51 = vld [vmem:[#allocation59_spill] sm:$0xff] }
 0x1a4   : > { %v5732_v15 = vpop.f32.mrb[83].mxu0  ;;  %v5620_v53 = vpop.f32.mrb[83].mxu1 }
 0x1a5   : > { %v5733_v45 = vadd.f32 %v5732_v15, %v5731_v52  ;;  %v2216_v14 = vadd.f32 %v5618_v19, %v9119_v1  ;;  %v5621_v22 = vadd.f32 %v5620_v53, %v5619_v49 }
 0x1a6   : > { %3941 = vmatmul.mubr.bf16.gmra.mrb[188].mxu0 %v9120_v11  ;;  %3299 = vmatmul.mubr.bf16.gmra.mrb[188].mxu1 %v9121_v37 }
 0x1a7   : > { %3948 = vmatprep.mubr.bf16.mxu0 %v9122_v46  ;;  %v8095_v3 = vadd.f32 %v5730_v47, %v2216_v14  ;;  %v2219_v61 = vadd.f32 %v5621_v22, %v9124_v33  ;;  %3306 = vmatprep.mubr.bf16.mxu1 %v9125_v51  ;;  %v9127_v46 = vld [vmem:[#allocation23_spill] sm:$0xff]  ;;  %v9129_v22 = vld [vmem:[#allocation61_spill] sm:$0xff] }
 0x1a8   : > { %v9130_v33 = vld [vmem:[#allocation13_spill] sm:$0xff] }
 0x1a9   : > { %9123 = vst [vmem:[#allocation5_spill] sm:$0xff] %v8095_v3  ;;  %v5734_v17 = vpop.f32.mrb[84].mxu0  ;;  %v8099_v60 = vadd.f32 %v5733_v45, %v2219_v61  ;;  %v5622_v27 = vpop.f32.mrb[84].mxu1  ;;  %v9128_v3 = vld [vmem:[#allocation9_spill] sm:$0xff]  ;;  %v9132_v61 = vld [vmem:[#allocation22_spill] sm:$0xff] }
 0x1aa   : > { %v5735_v52 = vpop.f32.mrb[85].mxu0  ;;  %v5623_v15 = vpop.f32.mrb[85].mxu1 }
 0x1ab   : > { %9126 = vst [vmem:[#allocation54_spill] sm:$0xff] %v8099_v60  ;;  %v5736_v19 = vadd.f32 %v5735_v52, %v5734_v17  ;;  %v5737_v53 = vpop.f32.mrb[86].mxu0  ;;  %v5624_v49 = vadd.f32 %v5623_v15, %v5622_v27  ;;  %v5625_v11 = vpop.f32.mrb[86].mxu1  ;;  %v9133_v17 = vld [vmem:[#allocation63_spill] sm:$0xff] }
 0x1ac   : > { %v5738_v1 = vpop.f32.mrb[87].mxu0  ;;  %v5626_v42 = vpop.f32.mrb[87].mxu1 }
 0x1ad   : > { %v5739_v20 = vadd.f32 %v5738_v1, %v5737_v53  ;;  %v2224_v47 = vadd.f32 %v5624_v49, %v9127_v46  ;;  %v5627_v14 = vadd.f32 %v5626_v42, %v5625_v11 }
 0x1ae   : > { %3949 = vmatmul.mubr.bf16.gmra.mrb[192].mxu0 %v9128_v3  ;;  %3307 = vmatmul.mubr.bf16.gmra.mrb[192].mxu1 %v9129_v22 }
 0x1af   : > { %3956 = vmatprep.mubr.bf16.mxu0 %v9130_v33  ;;  %v8105_v45 = vadd.f32 %v5736_v19, %v2224_v47  ;;  %v2227_v60 = vadd.f32 %v5627_v14, %v9132_v61  ;;  %3314 = vmatprep.mubr.bf16.mxu1 %v9133_v17  ;;  %v9135_v33 = vld [vmem:[#allocation6_spill] sm:$0xff]  ;;  %v9138_v61 = vld [vmem:[#allocation16_spill] sm:$0xff] }
 0x1b0   : > { %v9137_v14 = vld [vmem:[#allocation66_spill] sm:$0xff] }
 0x1b1   : > { %9131 = vst [vmem:[#allocation8_spill] sm:$0xff] %v8105_v45  ;;  %v5740_v27 = vpop.f32.mrb[88].mxu0  ;;  %v8109_v52 = vadd.f32 %v5739_v20, %v2227_v60  ;;  %v5628_v15 = vpop.f32.mrb[88].mxu1  ;;  %v9136_v45 = vld [vmem:[#allocation11_spill] sm:$0xff]  ;;  %v9140_v60 = vld [vmem:[#allocation81_spill] sm:$0xff] }
 0x1b2   : > { %v5741_v53 = vpop.f32.mrb[89].mxu0  ;;  %v5629_v1 = vpop.f32.mrb[89].mxu1 }
 0x1b3   : > { %9134 = vst [vmem:[#allocation15_spill] sm:$0xff] %v8109_v52  ;;  %v5742_v49 = vadd.f32 %v5741_v53, %v5740_v27  ;;  %v5743_v42 = vpop.f32.mrb[90].mxu0  ;;  %v5630_v11 = vadd.f32 %v5629_v1, %v5628_v15  ;;  %v5631_v3 = vpop.f32.mrb[90].mxu1  ;;  %v9141_v27 = vld [vmem:[#allocation68_spill] sm:$0xff] }
 0x1b4   : > { %v5744_v46 = vpop.f32.mrb[91].mxu0  ;;  %v5632_v62 = vpop.f32.mrb[91].mxu1 }
 0x1b5   : > { %v5745_v40 = vadd.f32 %v5744_v46, %v5743_v42  ;;  %v2232_v19 = vadd.f32 %v5630_v11, %v9135_v33  ;;  %v5633_v47 = vadd.f32 %v5632_v62, %v5631_v3 }
 0x1b6   : > { %3957 = vmatmul.mubr.bf16.gmra.mrb[196].mxu0 %v9136_v45  ;;  %3315 = vmatmul.mubr.bf16.gmra.mrb[196].mxu1 %v9137_v14 }
 0x1b7   : > { %3964 = vmatprep.mubr.bf16.mxu0 %v9138_v61  ;;  %v8115_v20 = vadd.f32 %v5742_v49, %v2232_v19  ;;  %v2235_v52 = vadd.f32 %v5633_v47, %v9140_v60  ;;  %3322 = vmatprep.mubr.bf16.mxu1 %v9141_v27  ;;  %v9143_v61 = vld [vmem:[#allocation82_spill] sm:$0xff]  ;;  %v9145_v47 = vld [vmem:[#allocation69_spill] sm:$0xff] }
 0x1b9   : > { %9139 = vst [vmem:[#allocation55_spill] sm:$0xff] %v8115_v20  ;;  %v5746_v15 = vpop.f32.mrb[92].mxu0  ;;  %v8119_v53 = vadd.f32 %v5745_v40, %v2235_v52  ;;  %v5634_v1 = vpop.f32.mrb[92].mxu1  ;;  %v9144_v20 = vld [vmem:[#allocation14_spill] sm:$0xff]  ;;  %v9147_v52 = vld [vmem:[#allocation83_spill] sm:$0xff] }
 0x1ba   : > { %v5747_v42 = vpop.f32.mrb[93].mxu0  ;;  %v5635_v46 = vpop.f32.mrb[93].mxu1 }
 0x1bb   : > { %9142 = vst [vmem:[#allocation20_spill] sm:$0xff] %v8119_v53  ;;  %v5748_v11 = vadd.f32 %v5747_v42, %v5746_v15  ;;  %v5749_v62 = vpop.f32.mrb[94].mxu0  ;;  %v5636_v3 = vadd.f32 %v5635_v46, %v5634_v1  ;;  %v5637_v45 = vpop.f32.mrb[94].mxu1  ;;  %v9148_v15 = vld [vmem:[#allocation71_spill] sm:$0xff] }
 0x1bc   : > { %v5750_v33 = vpop.f32.mrb[95].mxu0  ;;  %v5638_v58 = vpop.f32.mrb[95].mxu1 }
 0x1bd   : > { %v5751_v7 = vadd.f32 %v5750_v33, %v5749_v62  ;;  %v2240_v49 = vadd.f32 %v5636_v3, %v9143_v61  ;;  %v5639_v19 = vadd.f32 %v5638_v58, %v5637_v45 }
 0x1be   : > { %3965 = vmatmul.mubr.bf16.gmra.mrb[200].mxu0 %v9144_v20  ;;  %3323 = vmatmul.mubr.bf16.gmra.mrb[200].mxu1 %v9145_v47 }
 0x1bf   : > { %3972 = vmatprep.mubr.bf16.mxu0 %v9076_v18  ;;  %v8125_v40 = vadd.f32 %v5748_v11, %v2240_v49  ;;  %v2243_v60 = vadd.f32 %v5639_v19, %v9147_v52  ;;  %3330 = vmatprep.mubr.bf16.mxu1 %v9148_v15  ;;  %v9150_v49 = vld [vmem:[#allocation72_spill] sm:$0xff]  ;;  %v9151_v19 = vld [vmem:[#allocation74_spill] sm:$0xff] }
 0x1c1   : > { %9146 = vst [vmem:[#allocation7_spill] sm:$0xff] %v8125_v40  ;;  %v5880_v1 = vpop.f32.mrb[96].mxu0  ;;  %v8129_v42 = vadd.f32 %v5751_v7, %v2243_v60  ;;  %v5768_v46 = vpop.f32.mrb[96].mxu1 }
 0x1c2   : > { %v5881_v62 = vpop.f32.mrb[97].mxu0  ;;  %v5769_v33 = vpop.f32.mrb[97].mxu1 }
 0x1c3   : > { %9149 = vst [vmem:[#allocation57_spill] sm:$0xff] %v8129_v42  ;;  %v5882_v3 = vadd.f32 %v5881_v62, %v5880_v1  ;;  %v5883_v58 = vpop.f32.mrb[98].mxu0  ;;  %v5770_v45 = vadd.f32 %v5769_v33, %v5768_v46  ;;  %v5771_v20 = vpop.f32.mrb[98].mxu1 }
 0x1c4   : > { %v5884_v61 = vpop.f32.mrb[99].mxu0  ;;  %v5772_v53 = vpop.f32.mrb[99].mxu1 }
 0x1c5   : > { %v5885_v29 = vadd.f32 %v5884_v61, %v5883_v58  ;;  %v8131_v18 = vadd.f32 %v5882_v3, %v5770_v45  ;;  %v5773_v11 = vadd.f32 %v5772_v53, %v5771_v20 }
 0x1c6   : > { %3973 = vmatmul.mubr.bf16.gmra.mrb[204].mxu0 %v6994_v54  ;;  %3331 = vmatmul.mubr.bf16.gmra.mrb[204].mxu1 %v9150_v49 }
 0x1c7   : > { %3980 = vmatprep.mubr.bf16.mxu0 %v9079_v32  ;;  %v8136_v7 = vadd.f32 %v5885_v29, %v5773_v11  ;;  %3338 = vmatprep.mubr.bf16.mxu1 %v9151_v19  ;;  %v9152_v32 = vld [vmem:[#allocation75_spill] sm:$0xff]  ;;  %v9153_v11 = vld [vmem:[#allocation77_spill] sm:$0xff] }
 0x1c9   : > { %v5886_v52 = vpop.f32.mrb[100].mxu0  ;;  %v5774_v60 = vpop.f32.mrb[100].mxu1 }
 0x1ca   : > { %v5887_v1 = vpop.f32.mrb[101].mxu0  ;;  %v5775_v46 = vpop.f32.mrb[101].mxu1 }
 0x1cb   : > { %v5888_v62 = vadd.f32 %v5887_v1, %v5886_v52  ;;  %v5889_v33 = vpop.f32.mrb[102].mxu0  ;;  %v5776_v58 = vadd.f32 %v5775_v46, %v5774_v60  ;;  %v5777_v3 = vpop.f32.mrb[102].mxu1 }
 0x1cc   : > { %v5890_v45 = vpop.f32.mrb[103].mxu0  ;;  %v5778_v53 = vpop.f32.mrb[103].mxu1 }
 0x1cd   : > { %v5891_v20 = vadd.f32 %v5890_v45, %v5889_v33  ;;  %v8139_v54 = vadd.f32 %v5888_v62, %v5776_v58  ;;  %v5779_v61 = vadd.f32 %v5778_v53, %v5777_v3 }
 0x1ce   : > { %3981 = vmatmul.mubr.bf16.gmra.mrb[208].mxu0 %v7039_v55  ;;  %3339 = vmatmul.mubr.bf16.gmra.mrb[208].mxu1 %v9152_v32 }
 0x1cf   : > { %3988 = vmatprep.mubr.bf16.mxu0 %v9081_v2  ;;  %v8144_v29 = vadd.f32 %v5891_v20, %v5779_v61  ;;  %3346 = vmatprep.mubr.bf16.mxu1 %v9153_v11  ;;  %v1171_v2 = vsel %vm6717_vm2, %v7886_v38, 0  ;;  %v9154_v20 = vld [vmem:[#allocation78_spill] sm:$0xff] }
 0x1d1   : > { %v5892_v52 = vpop.f32.mrb[104].mxu0  ;;  %v5780_v1 = vpop.f32.mrb[104].mxu1 }
 0x1d2   : > { %v5893_v60 = vpop.f32.mrb[105].mxu0  ;;  %v5781_v46 = vpop.f32.mrb[105].mxu1 }
 0x1d3   : > { %v5894_v42 = vadd.f32 %v5893_v60, %v5892_v52  ;;  %v5895_v40 = vpop.f32.mrb[106].mxu0  ;;  %v5782_v33 = vadd.f32 %v5781_v46, %v5780_v1  ;;  %v5783_v62 = vpop.f32.mrb[106].mxu1  ;;  %v9155_v52 = vld [vmem:[#allocation79_spill] sm:$0xff]  ;;  %v1355_v1 = vshll.u32 %v7902_v8, 16  ;;  %v1458_v60 = vrot.slane %v1171_v2, 1 }
 0x1d4   : > { %v5896_v58 = vpop.f32.mrb[107].mxu0  ;;  %v5784_v3 = vpop.f32.mrb[107].mxu1 }
 0x1d5   : > { %v5897_v45 = vadd.f32 %v5896_v58, %v5895_v40  ;;  %v8147_v55 = vadd.f32 %v5894_v42, %v5782_v33  ;;  %v5785_v53 = vadd.f32 %v5784_v3, %v5783_v62  ;;  %v1457_v42 = vrot.slane %v7902_v8, 1 }
 0x1d6   : > { %3989 = vmatmul.mubr.bf16.gmra.mrb[212].mxu0 %v7092_v9  ;;  %3347 = vmatmul.mubr.bf16.gmra.mrb[212].mxu1 %v9154_v20 }
 0x1d7   : > { %3996 = vmatprep.mubr.bf16.mxu0 %v7905_v4  ;;  %v8155_v61 = vadd.f32 %v5897_v45, %v5785_v53  ;;  %3354 = vmatprep.mubr.bf16.mxu1 %v9155_v52  ;;  %v1353_v4 = vshrl.u32 %v7902_v8, 16  ;;  %v1357_v45 = vrot.slane %v1355_v1, 1  ;;  %v1360_v53 = vshll.u32 %v1171_v2, 16 }
 0x1d8   : > { %v8162_v12 = vsel %vm815_vm4, %v1457_v42, %v1458_v60 }
 0x1d9   : > { %v5898_v40 = vpop.f32.mrb[108].mxu0  ;;  %v5786_v46 = vpop.f32.mrb[108].mxu1  ;;  %v1358_v1 = vor.u32 %v1357_v45, %v1353_v4  ;;  %v1362_v2 = vrot.slane %v1360_v53, 1  ;;  %v9161_v45 = vld [vmem:[#allocation26_spill] sm:$0xff] }
 0x1da   : > { %v5899_v9 = vpop.f32.mrb[109].mxu0  ;;  %v5787_v33 = vpop.f32.mrb[109].mxu1 }
 0x1db   : > { %v5900_v62 = vadd.f32 %v5899_v9, %v5898_v40  ;;  %v5901_v13 = vpop.f32.mrb[110].mxu0  ;;  %v5788_v38 = vadd.f32 %v5787_v33, %v5786_v46  ;;  %v5789_v58 = vpop.f32.mrb[110].mxu1  ;;  %v9157_v40 = vld [vmem:[#allocation4_spill] sm:$0xff] }
 0x1dc   : > { %v5902_v3 = vpop.f32.mrb[111].mxu0  ;;  %v5790_v34 = vpop.f32.mrb[111].mxu1 }
 0x1dd   : > { %v5903_v16 = vadd.f32 %v5902_v3, %v5901_v13  ;;  %v8164_v56 = vadd.f32 %v5900_v62, %v5788_v38  ;;  %v5791_v21 = vadd.f32 %v5790_v34, %v5789_v58 }
 0x1de   : > { %3997 = vmatmul.mubr.bf16.gmra.mrb[216].mxu0 %v7873_v23  ;;  %3355 = vmatmul.mubr.bf16.gmra.mrb[216].mxu1 %v9156_v48  ;;  %v8173_v23 = vsel %vm559_vm3, %v1358_v1, %v1362_v2 }
 0x1df   : > { %4004 = vmatprep.mubr.bf16.mxu0 %v9157_v40  ;;  %v8169_v46 = vadd.f32 %v5903_v16, %v5791_v21  ;;  %3362 = vmatprep.mubr.bf16.mxu1 %v8162_v12 }
 0x1e1   : > { %9158 = vst [vmem:[#allocation10_spill] sm:$0xff] %v8169_v46  ;;  %v5904_v9 = vpop.f32.mrb[112].mxu0  ;;  %v5792_v33 = vpop.f32.mrb[112].mxu1  ;;  %v9159_v46 = vld [vmem:[#allocation3_spill] sm:$0xff] }
 0x1e2   : > { %v5905_v13 = vpop.f32.mrb[113].mxu0  ;;  %v5793_v42 = vpop.f32.mrb[113].mxu1 }
 0x1e3   : > { %v5906_v60 = vadd.f32 %v5905_v13, %v5904_v9  ;;  %v5907_v62 = vpop.f32.mrb[114].mxu0  ;;  %v5794_v38 = vadd.f32 %v5793_v42, %v5792_v33  ;;  %v5795_v34 = vpop.f32.mrb[114].mxu1 }
 0x1e4   : > { %v5908_v58 = vpop.f32.mrb[115].mxu0  ;;  %v5796_v3 = vpop.f32.mrb[115].mxu1 }
 0x1e5   : > { %v5909_v40 = vadd.f32 %v5908_v58, %v5907_v62  ;;  %v8175_v21 = vadd.f32 %v5906_v60, %v5794_v38  ;;  %v5797_v16 = vadd.f32 %v5796_v3, %v5795_v34 }
 0x1e6   : > { %4005 = vmatmul.mubr.bf16.gmra.mrb[220].mxu0 %v9159_v46  ;;  %3363 = vmatmul.mubr.bf16.gmra.mrb[220].mxu1 %v8173_v23 }
 0x1e7   : > { %4206 = vmatprep.mubr.bf16.mxu0 %v9088_v57  ;;  %v8180_v4 = vadd.f32 %v5909_v40, %v5797_v16  ;;  %4045 = vmatprep.mubr.bf16.mxu1 %v9161_v45  ;;  %v9162_v57 = vld [vmem:[#allocation31_spill] sm:$0xff]  ;;  %v9163_v16 = vld [vmem:[#allocation30_spill] sm:$0xff] }
 0x1e9   : > { %9160 = vst [vmem:[#allocation19_spill] sm:$0xff] %v8180_v4  ;;  %v5910_v53 = vpop.f32.mrb[116].mxu0  ;;  %v5798_v9 = vpop.f32.mrb[116].mxu1 }
 0x1ea   : > { %v5911_v33 = vpop.f32.mrb[117].mxu0  ;;  %v5799_v1 = vpop.f32.mrb[117].mxu1 }
 0x1eb   : > { %v5912_v2 = vadd.f32 %v5911_v33, %v5910_v53  ;;  %v5913_v13 = vpop.f32.mrb[118].mxu0  ;;  %v5800_v42 = vadd.f32 %v5799_v1, %v5798_v9  ;;  %v5801_v60 = vpop.f32.mrb[118].mxu1 }
 0x1ec   : > { %v5914_v62 = vpop.f32.mrb[119].mxu0  ;;  %v5802_v38 = vpop.f32.mrb[119].mxu1 }
 0x1ed   : > { %v5915_v34 = vadd.f32 %v5914_v62, %v5913_v13  ;;  %v8183_v58 = vadd.f32 %v5912_v2, %v5800_v42  ;;  %v5803_v3 = vadd.f32 %v5802_v38, %v5801_v60 }
 0x1ee   : > { %4207 = vmatmul.mubr.bf16.vlgmr.msra.gmra.mrb[224].mxu0 %v9090_v43  ;;  %4046 = vmatmul.mubr.bf16.vlgmr.msra.gmra.mrb[224].mxu1 %v9162_v57 }
 0x1ef   : > { %4214 = vmatprep.mubr.bf16.mxu0 %v9092_v59  ;;  %v8188_v40 = vadd.f32 %v5915_v34, %v5803_v3  ;;  %4053 = vmatprep.mubr.bf16.mxu1 %v9163_v16  ;;  %v9164_v59 = vld [vmem:[#allocation36_spill] sm:$0xff]  ;;  %v9165_v3 = vld [vmem:[#allocation34_spill] sm:$0xff] }
 0x1f1   : > { %v5916_v45 = vpop.f32.mrb[120].mxu0  ;;  %v5804_v53 = vpop.f32.mrb[120].mxu1 }
 0x1f2   : > { %v5917_v9 = vpop.f32.mrb[121].mxu0  ;;  %v5805_v33 = vpop.f32.mrb[121].mxu1 }
 0x1f3   : > { %v5918_v1 = vadd.f32 %v5917_v9, %v5916_v45  ;;  %v5919_v4 = vpop.f32.mrb[122].mxu0  ;;  %v5806_v13 = vadd.f32 %v5805_v33, %v5804_v53  ;;  %v5807_v2 = vpop.f32.mrb[122].mxu1 }
 0x1f4   : > { %v5920_v42 = vpop.f32.mrb[123].mxu0  ;;  %v5808_v60 = vpop.f32.mrb[123].mxu1 }
 0x1f5   : > { %v5921_v62 = vadd.f32 %v5920_v42, %v5919_v4  ;;  %v8191_v43 = vadd.f32 %v5918_v1, %v5806_v13  ;;  %v5809_v38 = vadd.f32 %v5808_v60, %v5807_v2 }
 0x1f6   : > { %4215 = vmatmul.mubr.bf16.gmra.mrb[228].mxu0 %v9094_v26  ;;  %4054 = vmatmul.mubr.bf16.gmra.mrb[228].mxu1 %v9164_v59 }
 0x1f7   : > { %4222 = vmatprep.mubr.bf16.mxu0 %v9096_v30  ;;  %v8196_v34 = vadd.f32 %v5921_v62, %v5809_v38  ;;  %4061 = vmatprep.mubr.bf16.mxu1 %v9165_v3  ;;  %v9166_v30 = vld [vmem:[#allocation41_spill] sm:$0xff]  ;;  %v9167_v38 = vld [vmem:[#allocation38_spill] sm:$0xff] }
 0x1f9   : > { %v5922_v57 = vpop.f32.mrb[124].mxu0  ;;  %v5810_v16 = vpop.f32.mrb[124].mxu1 }
 0x1fa   : > { %v5923_v45 = vpop.f32.mrb[125].mxu0  ;;  %v5811_v53 = vpop.f32.mrb[125].mxu1 }
 0x1fb   : > { %v5924_v9 = vadd.f32 %v5923_v45, %v5922_v57  ;;  %v5925_v33 = vpop.f32.mrb[126].mxu0  ;;  %v5812_v4 = vadd.f32 %v5811_v53, %v5810_v16  ;;  %v5813_v1 = vpop.f32.mrb[126].mxu1 }
 0x1fc   : > { %v5926_v13 = vpop.f32.mrb[127].mxu0  ;;  %v5814_v2 = vpop.f32.mrb[127].mxu1 }
 0x1fd   : > { %v5927_v42 = vadd.f32 %v5926_v13, %v5925_v33  ;;  %v8199_v26 = vadd.f32 %v5924_v9, %v5812_v4  ;;  %v5815_v60 = vadd.f32 %v5814_v2, %v5813_v1 }
 0x1fe   : > { %4223 = vmatmul.mubr.bf16.gmra.mrb[232].mxu0 %v9098_v25  ;;  %4062 = vmatmul.mubr.bf16.gmra.mrb[232].mxu1 %v9166_v30 }
 0x1ff   : > { %4230 = vmatprep.mubr.bf16.mxu0 %v9100_v0  ;;  %v8204_v62 = vadd.f32 %v5927_v42, %v5815_v60  ;;  %4069 = vmatprep.mubr.bf16.mxu1 %v9167_v38  ;;  %v9168_v0 = vld [vmem:[#allocation43_spill] sm:$0xff] }
 0x200   : > { %v9169_v60 = vld [vmem:[#allocation39_spill] sm:$0xff] }
 0x201   : > { %v5928_v59 = vpop.f32.mrb[128].mxu0  ;;  %v5816_v3 = vpop.f32.mrb[128].mxu1 }
 0x202   : > { %v5929_v57 = vpop.f32.mrb[129].mxu0  ;;  %v5817_v16 = vpop.f32.mrb[129].mxu1 }
 0x203   : > { %v5930_v45 = vadd.f32 %v5929_v57, %v5928_v59  ;;  %v5931_v53 = vpop.f32.mrb[130].mxu0  ;;  %v5818_v33 = vadd.f32 %v5817_v16, %v5816_v3  ;;  %v5819_v9 = vpop.f32.mrb[130].mxu1 }
 0x204   : > { %v5932_v4 = vpop.f32.mrb[131].mxu0  ;;  %v5820_v1 = vpop.f32.mrb[131].mxu1 }
 0x205   : > { %v5933_v13 = vadd.f32 %v5932_v4, %v5931_v53  ;;  %v8207_v25 = vadd.f32 %v5930_v45, %v5818_v33  ;;  %v5821_v2 = vadd.f32 %v5820_v1, %v5819_v9 }
 0x206   : > { %4231 = vmatmul.mubr.bf16.gmra.mrb[236].mxu0 %v9102_v6  ;;  %4070 = vmatmul.mubr.bf16.gmra.mrb[236].mxu1 %v9168_v0 }
 0x207   : > { %4238 = vmatprep.mubr.bf16.mxu0 %v9104_v63  ;;  %v8212_v42 = vadd.f32 %v5933_v13, %v5821_v2  ;;  %4077 = vmatprep.mubr.bf16.mxu1 %v9169_v60  ;;  %v9170_v63 = vld [vmem:[#allocation47_spill] sm:$0xff]  ;;  %v9171_v2 = vld [vmem:[#allocation46_spill] sm:$0xff] }
 0x209   : > { %v5934_v30 = vpop.f32.mrb[132].mxu0  ;;  %v5822_v38 = vpop.f32.mrb[132].mxu1 }
 0x20a   : > { %v5935_v59 = vpop.f32.mrb[133].mxu0  ;;  %v5823_v3 = vpop.f32.mrb[133].mxu1 }
 0x20b   : > { %v5936_v57 = vadd.f32 %v5935_v59, %v5934_v30  ;;  %v5937_v16 = vpop.f32.mrb[134].mxu0  ;;  %v5824_v53 = vadd.f32 %v5823_v3, %v5822_v38  ;;  %v5825_v45 = vpop.f32.mrb[134].mxu1 }
 0x20c   : > { %v5938_v33 = vpop.f32.mrb[135].mxu0  ;;  %v5826_v9 = vpop.f32.mrb[135].mxu1 }
 0x20d   : > { %v5939_v4 = vadd.f32 %v5938_v33, %v5937_v16  ;;  %v8215_v6 = vadd.f32 %v5936_v57, %v5824_v53  ;;  %v5827_v1 = vadd.f32 %v5826_v9, %v5825_v45 }
 0x20e   : > { %4239 = vmatmul.mubr.bf16.gmra.mrb[240].mxu0 %v9106_v24  ;;  %4078 = vmatmul.mubr.bf16.gmra.mrb[240].mxu1 %v9170_v63 }
 0x20f   : > { %4246 = vmatprep.mubr.bf16.mxu0 %v9109_v5  ;;  %v8220_v13 = vadd.f32 %v5939_v4, %v5827_v1  ;;  %4085 = vmatprep.mubr.bf16.mxu1 %v9171_v2  ;;  %v9172_v5 = vld [vmem:[#allocation53_spill] sm:$0xff]  ;;  %v9173_v1 = vld [vmem:[#allocation48_spill] sm:$0xff] }
 0x211   : > { %v5940_v0 = vpop.f32.mrb[136].mxu0  ;;  %v5828_v60 = vpop.f32.mrb[136].mxu1 }
 0x212   : > { %v5941_v30 = vpop.f32.mrb[137].mxu0  ;;  %v5829_v38 = vpop.f32.mrb[137].mxu1 }
 0x213   : > { %v5942_v59 = vadd.f32 %v5941_v30, %v5940_v0  ;;  %v5943_v3 = vpop.f32.mrb[138].mxu0  ;;  %v5830_v16 = vadd.f32 %v5829_v38, %v5828_v60  ;;  %v5831_v57 = vpop.f32.mrb[138].mxu1 }
 0x214   : > { %v5944_v53 = vpop.f32.mrb[139].mxu0  ;;  %v5832_v45 = vpop.f32.mrb[139].mxu1 }
 0x215   : > { %v5945_v33 = vadd.f32 %v5944_v53, %v5943_v3  ;;  %v8223_v24 = vadd.f32 %v5942_v59, %v5830_v16  ;;  %v5833_v9 = vadd.f32 %v5832_v45, %v5831_v57 }
 0x216   : > { %4247 = vmatmul.mubr.bf16.gmra.mrb[244].mxu0 %v9113_v41  ;;  %4086 = vmatmul.mubr.bf16.gmra.mrb[244].mxu1 %v9172_v5 }
 0x217   : > { %4254 = vmatprep.mubr.bf16.mxu0 %v9117_v31  ;;  %v8228_v4 = vadd.f32 %v5945_v33, %v5833_v9  ;;  %4093 = vmatprep.mubr.bf16.mxu1 %v9173_v1  ;;  %v9174_v31 = vld [vmem:[#allocation58_spill] sm:$0xff]  ;;  %v9175_v9 = vld [vmem:[#allocation51_spill] sm:$0xff] }
 0x219   : > { %v5946_v63 = vpop.f32.mrb[140].mxu0  ;;  %v5834_v2 = vpop.f32.mrb[140].mxu1 }
 0x21a   : > { %v5947_v0 = vpop.f32.mrb[141].mxu0  ;;  %v5835_v60 = vpop.f32.mrb[141].mxu1 }
 0x21b   : > { %v5948_v30 = vadd.f32 %v5947_v0, %v5946_v63  ;;  %v5949_v38 = vpop.f32.mrb[142].mxu0  ;;  %v5836_v3 = vadd.f32 %v5835_v60, %v5834_v2  ;;  %v5837_v59 = vpop.f32.mrb[142].mxu1 }
 0x21c   : > { %v5950_v16 = vpop.f32.mrb[143].mxu0  ;;  %v5838_v57 = vpop.f32.mrb[143].mxu1 }
 0x21d   : > { %v5951_v53 = vadd.f32 %v5950_v16, %v5949_v38  ;;  %v8231_v41 = vadd.f32 %v5948_v30, %v5836_v3  ;;  %v5839_v45 = vadd.f32 %v5838_v57, %v5837_v59 }
 0x21e   : > { %4255 = vmatmul.mubr.bf16.gmra.mrb[248].mxu0 %v9121_v37  ;;  %4094 = vmatmul.mubr.bf16.gmra.mrb[248].mxu1 %v9174_v31 }
 0x21f   : > { %4262 = vmatprep.mubr.bf16.mxu0 %v9125_v51  ;;  %v8236_v33 = vadd.f32 %v5951_v53, %v5839_v45  ;;  %4101 = vmatprep.mubr.bf16.mxu1 %v9175_v9  ;;  %v9176_v51 = vld [vmem:[#allocation62_spill] sm:$0xff]  ;;  %v9177_v45 = vld [vmem:[#allocation52_spill] sm:$0xff] }
 0x221   : > { %v5952_v5 = vpop.f32.mrb[144].mxu0  ;;  %v5840_v1 = vpop.f32.mrb[144].mxu1 }
 0x222   : > { %v5953_v63 = vpop.f32.mrb[145].mxu0  ;;  %v5841_v2 = vpop.f32.mrb[145].mxu1 }
 0x223   : > { %v5954_v0 = vadd.f32 %v5953_v63, %v5952_v5  ;;  %v5955_v60 = vpop.f32.mrb[146].mxu0  ;;  %v5842_v38 = vadd.f32 %v5841_v2, %v5840_v1  ;;  %v5843_v30 = vpop.f32.mrb[146].mxu1 }
 0x224   : > { %v5956_v3 = vpop.f32.mrb[147].mxu0  ;;  %v5844_v59 = vpop.f32.mrb[147].mxu1 }
 0x225   : > { %v5957_v16 = vadd.f32 %v5956_v3, %v5955_v60  ;;  %v8239_v37 = vadd.f32 %v5954_v0, %v5842_v38  ;;  %v5845_v57 = vadd.f32 %v5844_v59, %v5843_v30 }
 0x226   : > { %4263 = vmatmul.mubr.bf16.gmra.mrb[252].mxu0 %v9129_v22  ;;  %4102 = vmatmul.mubr.bf16.gmra.mrb[252].mxu1 %v9176_v51 }
 0x227   : > { %4270 = vmatprep.mubr.bf16.mxu0 %v9133_v17  ;;  %v8244_v53 = vadd.f32 %v5957_v16, %v5845_v57  ;;  %4109 = vmatprep.mubr.bf16.mxu1 %v9177_v45  ;;  %v9178_v17 = vld [vmem:[#allocation67_spill] sm:$0xff]  ;;  %v9179_v57 = vld [vmem:[#allocation56_spill] sm:$0xff] }
 0x229   : > { %v5958_v31 = vpop.f32.mrb[148].mxu0  ;;  %v5846_v9 = vpop.f32.mrb[148].mxu1 }
 0x22a   : > { %v5959_v5 = vpop.f32.mrb[149].mxu0  ;;  %v5847_v1 = vpop.f32.mrb[149].mxu1 }
 0x22b   : > { %v5960_v63 = vadd.f32 %v5959_v5, %v5958_v31  ;;  %v5961_v2 = vpop.f32.mrb[150].mxu0  ;;  %v5848_v60 = vadd.f32 %v5847_v1, %v5846_v9  ;;  %v5849_v0 = vpop.f32.mrb[150].mxu1 }
 0x22c   : > { %v5962_v38 = vpop.f32.mrb[151].mxu0  ;;  %v5850_v30 = vpop.f32.mrb[151].mxu1 }
 0x22d   : > { %v5963_v3 = vadd.f32 %v5962_v38, %v5961_v2  ;;  %v8247_v22 = vadd.f32 %v5960_v63, %v5848_v60  ;;  %v5851_v59 = vadd.f32 %v5850_v30, %v5849_v0 }
 0x22e   : > { %4271 = vmatmul.mubr.bf16.gmra.mrb[0].mxu0 %v9137_v14  ;;  %4110 = vmatmul.mubr.bf16.gmra.mrb[0].mxu1 %v9178_v17 }
 0x22f   : > { %4278 = vmatprep.mubr.bf16.mxu0 %v9141_v27  ;;  %v8252_v16 = vadd.f32 %v5963_v3, %v5851_v59  ;;  %4117 = vmatprep.mubr.bf16.mxu1 %v9179_v57  ;;  %v9180_v27 = vld [vmem:[#allocation70_spill] sm:$0xff]  ;;  %v9181_v59 = vld [vmem:[#allocation60_spill] sm:$0xff] }
 0x231   : > { %v5964_v51 = vpop.f32.mrb[152].mxu0  ;;  %v5852_v45 = vpop.f32.mrb[152].mxu1 }
 0x232   : > { %v5965_v31 = vpop.f32.mrb[153].mxu0  ;;  %v5853_v9 = vpop.f32.mrb[153].mxu1 }
 0x233   : > { %v5966_v5 = vadd.f32 %v5965_v31, %v5964_v51  ;;  %v5967_v1 = vpop.f32.mrb[154].mxu0  ;;  %v5854_v2 = vadd.f32 %v5853_v9, %v5852_v45  ;;  %v5855_v63 = vpop.f32.mrb[154].mxu1 }
 0x234   : > { %v5968_v60 = vpop.f32.mrb[155].mxu0  ;;  %v5856_v0 = vpop.f32.mrb[155].mxu1 }
 0x235   : > { %v5969_v38 = vadd.f32 %v5968_v60, %v5967_v1  ;;  %v8255_v14 = vadd.f32 %v5966_v5, %v5854_v2  ;;  %v5857_v30 = vadd.f32 %v5856_v0, %v5855_v63 }
 0x236   : > { %4279 = vmatmul.mubr.bf16.gmra.mrb[4].mxu0 %v9145_v47  ;;  %4118 = vmatmul.mubr.bf16.gmra.mrb[4].mxu1 %v9180_v27 }
 0x237   : > { %4286 = vmatprep.mubr.bf16.mxu0 %v9148_v15  ;;  %v8260_v3 = vadd.f32 %v5969_v38, %v5857_v30  ;;  %4125 = vmatprep.mubr.bf16.mxu1 %v9181_v59  ;;  %v9182_v15 = vld [vmem:[#allocation73_spill] sm:$0xff]  ;;  %v9183_v30 = vld [vmem:[#allocation64_spill] sm:$0xff] }
 0x239   : > { %v5970_v17 = vpop.f32.mrb[156].mxu0  ;;  %v5858_v57 = vpop.f32.mrb[156].mxu1 }
 0x23a   : > { %v5971_v51 = vpop.f32.mrb[157].mxu0  ;;  %v5859_v45 = vpop.f32.mrb[157].mxu1 }
 0x23b   : > { %v5972_v31 = vadd.f32 %v5971_v51, %v5970_v17  ;;  %v5973_v9 = vpop.f32.mrb[158].mxu0  ;;  %v5860_v1 = vadd.f32 %v5859_v45, %v5858_v57  ;;  %v5861_v5 = vpop.f32.mrb[158].mxu1 }
 0x23c   : > { %v5974_v2 = vpop.f32.mrb[159].mxu0  ;;  %v5862_v63 = vpop.f32.mrb[159].mxu1 }
 0x23d   : > { %v5975_v60 = vadd.f32 %v5974_v2, %v5973_v9  ;;  %v8263_v47 = vadd.f32 %v5972_v31, %v5860_v1  ;;  %v5863_v0 = vadd.f32 %v5862_v63, %v5861_v5  ;;  %v9184_v63 = vld [vmem:[#allocation84_spill] sm:$0xff] }
 0x23e   : > { %4287 = vmatmul.mubr.bf16.gmra.mrb[8].mxu0 %v9150_v49  ;;  %4126 = vmatmul.mubr.bf16.gmra.mrb[8].mxu1 %v9182_v15  ;;  %v9185_v15 = vld [vmem:[#allocation65_spill] sm:$0xff] }
 0x23f   : > { %4294 = vmatprep.mubr.bf16.mxu0 %v9151_v19  ;;  %v8268_v38 = vadd.f32 %v5975_v60, %v5863_v0  ;;  %4133 = vmatprep.mubr.bf16.mxu1 %v9183_v30 }
 0x241   : > { %v6104_v27 = vpop.f32.mrb[160].mxu0  ;;  %v5992_v59 = vpop.f32.mrb[160].mxu1 }
 0x242   : > { %v6105_v17 = vpop.f32.mrb[161].mxu0  ;;  %v5993_v57 = vpop.f32.mrb[161].mxu1 }
 0x243   : > { %v8271_v51 = vadd.f32 %v6105_v17, %v6104_v27  ;;  %v6107_v45 = vpop.f32.mrb[162].mxu0  ;;  %v5994_v31 = vadd.f32 %v5993_v57, %v5992_v59  ;;  %v5995_v9 = vpop.f32.mrb[162].mxu1  ;;  %v9186_v27 = vld [vmem:[#allocation18_spill] sm:$0xff] }
 0x244   : > { %v6108_v1 = vpop.f32.mrb[163].mxu0  ;;  %v5996_v5 = vpop.f32.mrb[163].mxu1 }
 0x245   : > { %v8273_v49 = vadd.f32 %v6108_v1, %v6107_v45  ;;  %v3245_v2 = vadd.f32 %v5994_v31, %v8131_v18  ;;  %v5997_v19 = vadd.f32 %v5996_v5, %v5995_v9 }
 0x246   : > { %4295 = vmatmul.mubr.bf16.gmra.mrb[12].mxu0 %v9152_v32  ;;  %4134 = vmatmul.mubr.bf16.gmra.mrb[12].mxu1 %v7614_v44 }
 0x247   : > { %4302 = vmatprep.mubr.bf16.mxu0 %v9153_v11  ;;  %v8280_v60 = vadd.f32 %v3245_v2, %v9184_v63  ;;  %v3248_v0 = vadd.f32 %v5997_v19, %v8136_v7  ;;  %4141 = vmatprep.mubr.bf16.mxu1 %v9185_v15  ;;  %v9187_v2 = vld [vmem:[#allocation85_spill] sm:$0xff] }
 0x249   : > { %v6110_v30 = vpop.f32.mrb[164].mxu0  ;;  %v8285_v59 = vadd.f32 %v3248_v0, %v9186_v27  ;;  %v5998_v17 = vpop.f32.mrb[164].mxu1  ;;  %v9188_v0 = vld [vmem:[#allocation76_spill] sm:$0xff] }
 0x24a   : > { %v6111_v18 = vpop.f32.mrb[165].mxu0  ;;  %v5999_v57 = vpop.f32.mrb[165].mxu1 }
 0x24b   : > { %v8287_v45 = vadd.f32 %v6111_v18, %v6110_v30  ;;  %v6113_v32 = vpop.f32.mrb[166].mxu0  ;;  %v6000_v44 = vadd.f32 %v5999_v57, %v5998_v17  ;;  %v6001_v31 = vpop.f32.mrb[166].mxu1  ;;  %v9189_v30 = vld [vmem:[#allocation21_spill] sm:$0xff] }
 0x24c   : > { %v6114_v11 = vpop.f32.mrb[167].mxu0  ;;  %v6002_v9 = vpop.f32.mrb[167].mxu1 }
 0x24d   : > { %v8289_v1 = vadd.f32 %v6114_v11, %v6113_v32  ;;  %v3253_v7 = vadd.f32 %v6000_v44, %v8139_v54  ;;  %v6003_v5 = vadd.f32 %v6002_v9, %v6001_v31 }
 0x24e   : > { %4303 = vmatmul.mubr.bf16.gmra.mrb[16].mxu0 %v9154_v20  ;;  %4142 = vmatmul.mubr.bf16.gmra.mrb[16].mxu1 %v7632_v28 }
 0x24f   : > { %4310 = vmatprep.mubr.bf16.mxu0 %v9155_v52  ;;  %v8296_v19 = vadd.f32 %v3253_v7, %v9187_v2  ;;  %v3256_v63 = vadd.f32 %v6003_v5, %v8144_v29  ;;  %4149 = vmatprep.mubr.bf16.mxu1 %v9188_v0 }
 0x251   : > { %v6116_v15 = vpop.f32.mrb[168].mxu0  ;;  %v8301_v27 = vadd.f32 %v3256_v63, %v9189_v30  ;;  %v6004_v17 = vpop.f32.mrb[168].mxu1 }
 0x252   : > { %v6117_v54 = vpop.f32.mrb[169].mxu0  ;;  %v6005_v18 = vpop.f32.mrb[169].mxu1 }
 0x253   : > { %v8303_v57 = vadd.f32 %v6117_v54, %v6116_v15  ;;  %v6119_v20 = vpop.f32.mrb[170].mxu0  ;;  %v6006_v28 = vadd.f32 %v6005_v18, %v6004_v17  ;;  %v6007_v32 = vpop.f32.mrb[170].mxu1  ;;  %v9191_v18 = vld [vmem:[#allocation10_spill] sm:$0xff] }
 0x254   : > { %v6120_v52 = vpop.f32.mrb[171].mxu0  ;;  %v6008_v44 = vpop.f32.mrb[171].mxu1 }
 0x255   : > { %v8305_v31 = vadd.f32 %v6120_v52, %v6119_v20  ;;  %v3261_v29 = vadd.f32 %v6006_v28, %v8147_v55  ;;  %v6009_v11 = vadd.f32 %v6008_v44, %v6007_v32  ;;  %v9192_v32 = vld [vmem:[#allocation25_spill] sm:$0xff] }
 0x256   : > { %4311 = vmatmul.mubr.bf16.gmra.mrb[20].mxu0 %v9156_v48  ;;  %4150 = vmatmul.mubr.bf16.gmra.mrb[20].mxu1 %v7647_v10 }
 0x257   : > { %4318 = vmatprep.mubr.bf16.mxu0 %v8162_v12  ;;  %v8312_v9 = vadd.f32 %v3261_v29, %v7893_v39  ;;  %v3264_v7 = vadd.f32 %v6009_v11, %v8155_v61  ;;  %4157 = vmatprep.mubr.bf16.mxu1 %v7902_v8 }
 0x259   : > { %v6122_v5 = vpop.f32.mrb[172].mxu0  ;;  %v8317_v2 = vadd.f32 %v3264_v7, %v7898_v35  ;;  %v6010_v63 = vpop.f32.mrb[172].mxu1  ;;  %v9190_v35 = vld [vmem:[#allocation24_spill] sm:$0xff] }
 0x25a   : > { %v6123_v55 = vpop.f32.mrb[173].mxu0  ;;  %v6011_v0 = vpop.f32.mrb[173].mxu1 }
 0x25b   : > { %v8319_v15 = vadd.f32 %v6123_v55, %v6122_v5  ;;  %v6125_v48 = vpop.f32.mrb[174].mxu0  ;;  %v6012_v10 = vadd.f32 %v6011_v0, %v6010_v63  ;;  %v6013_v30 = vpop.f32.mrb[174].mxu1 }
 0x25c   : > { %v6126_v12 = vpop.f32.mrb[175].mxu0  ;;  %v6014_v17 = vpop.f32.mrb[175].mxu1 }
 0x25d   : > { %v8321_v39 = vadd.f32 %v6126_v12, %v6125_v48  ;;  %v3269_v61 = vadd.f32 %v6012_v10, %v8164_v56  ;;  %v6015_v54 = vadd.f32 %v6014_v17, %v6013_v30  ;;  %v9194_v48 = vld [vmem:[#allocation86_spill] sm:$0xff]  ;;  %v9195_v30 = vld [vmem:[#allocation19_spill] sm:$0xff] }
 0x25e   : > { %4319 = vmatmul.mubr.bf16.gmra.mrb[24].mxu0 %v8173_v23  ;;  %4158 = vmatmul.mubr.bf16.gmra.mrb[24].mxu1 %v7919_v36 }
 0x25f   : > { %4326 = vmatprep.mubr.bf16.mxu0 %v9190_v35  ;;  %v8328_v8 = vadd.f32 %v3269_v61, %v7912_v50  ;;  %v3272_v20 = vadd.f32 %v6015_v54, %v9191_v18  ;;  %4165 = vmatprep.mubr.bf16.mxu1 %v9159_v46  ;;  %v9193_v46 = vld [vmem:[#allocation4_spill] sm:$0xff]  ;;  %v9196_v61 = vld [vmem:[#allocation27_spill] sm:$0xff] }
 0x261   : > { %v6128_v28 = vpop.f32.mrb[176].mxu0  ;;  %v8333_v52 = vadd.f32 %v3272_v20, %v9192_v32  ;;  %v6016_v44 = vpop.f32.mrb[176].mxu1 }
 0x262   : > { %v6129_v56 = vpop.f32.mrb[177].mxu0  ;;  %v6017_v29 = vpop.f32.mrb[177].mxu1 }
 0x263   : > { %v8335_v11 = vadd.f32 %v6129_v56, %v6128_v28  ;;  %v6131_v23 = vpop.f32.mrb[178].mxu0  ;;  %v6018_v36 = vadd.f32 %v6017_v29, %v6016_v44  ;;  %v6019_v7 = vpop.f32.mrb[178].mxu1 }
 0x264   : > { %v6132_v5 = vpop.f32.mrb[179].mxu0  ;;  %v6020_v63 = vpop.f32.mrb[179].mxu1 }
 0x265   : > { %v8337_v50 = vadd.f32 %v6132_v5, %v6131_v23  ;;  %v3277_v55 = vadd.f32 %v6018_v36, %v8175_v21  ;;  %v6021_v0 = vadd.f32 %v6020_v63, %v6019_v7  ;;  %v9197_v5 = vld [vmem:[#allocation28_spill] sm:$0xff] }
 0x266   : > { %4327 = vmatmul.mubr.bf16.gmra.mrb[28].mxu0 %v9193_v46  ;;  %4166 = vmatmul.mubr.bf16.gmra.mrb[28].mxu1 %v9190_v35  ;;  %v9198_v46 = vld [vmem:[#allocation29_spill] sm:$0xff] }
 0x267   : > { %v8343_v10 = vadd.f32 %v3277_v55, %v9194_v48  ;;  %v3280_v12 = vadd.f32 %v6021_v0, %v9195_v30 }
 0x269   : > { %v6134_v17 = vpop.f32.mrb[180].mxu0  ;;  %v8347_v54 = vadd.f32 %v3280_v12, %v9196_v61  ;;  %v6022_v18 = vpop.f32.mrb[180].mxu1 }
 0x26a   : > { %v6135_v20 = vpop.f32.mrb[181].mxu0  ;;  %v6023_v28 = vpop.f32.mrb[181].mxu1 }
 0x26b   : > { %v8349_v32 = vadd.f32 %v6135_v20, %v6134_v17  ;;  %v6137_v21 = vpop.f32.mrb[182].mxu0  ;;  %v6024_v44 = vadd.f32 %v6023_v28, %v6022_v18  ;;  %v6025_v56 = vpop.f32.mrb[182].mxu1 }
 0x26c   : > { %v6138_v29 = vpop.f32.mrb[183].mxu0  ;;  %v6026_v23 = vpop.f32.mrb[183].mxu1 }
 0x26d   : > { %v8351_v35 = vadd.f32 %v6138_v29, %v6137_v21  ;;  %v3285_v36 = vadd.f32 %v6024_v44, %v8183_v58  ;;  %v6027_v7 = vadd.f32 %v6026_v23, %v6025_v56 }
 0x26f   : > { %v8355_v63 = vadd.f32 %v3285_v36, %v9197_v5  ;;  %v3288_v55 = vadd.f32 %v6027_v7, %v8188_v40  ;;  %v9200_v40 = vld [vmem:[#allocation32_spill] sm:$0xff]  ;;  %v9201_v5 = vld [vmem:[#allocation33_spill] sm:$0xff] }
 0x271   : > { %v6140_v0 = vpop.f32.mrb[184].mxu0  ;;  %v8359_v48 = vadd.f32 %v3288_v55, %v9198_v46  ;;  %v6028_v30 = vpop.f32.mrb[184].mxu1 }
 0x272   : > { %v6141_v12 = vpop.f32.mrb[185].mxu0  ;;  %v6029_v17 = vpop.f32.mrb[185].mxu1 }
 0x273   : > { %v8361_v61 = vadd.f32 %v6141_v12, %v6140_v0  ;;  %v6143_v18 = vpop.f32.mrb[186].mxu0  ;;  %v6030_v20 = vadd.f32 %v6029_v17, %v6028_v30  ;;  %v6031_v28 = vpop.f32.mrb[186].mxu1 }
 0x274   : > { %v6144_v21 = vpop.f32.mrb[187].mxu0  ;;  %v6032_v58 = vpop.f32.mrb[187].mxu1 }
 0x275   : > { %v8363_v44 = vadd.f32 %v6144_v21, %v6143_v18  ;;  %v3293_v56 = vadd.f32 %v6030_v20, %v8191_v43  ;;  %v6033_v29 = vadd.f32 %v6032_v58, %v6031_v28 }
 0x277   : > { %9199 = vst [vmem:[#allocation59_spill] sm:$0xff] %v8363_v44  ;;  %v8367_v23 = vadd.f32 %v3293_v56, %v9200_v40  ;;  %v3296_v36 = vadd.f32 %v6033_v29, %v8196_v34  ;;  %v9204_v34 = vld [vmem:[#allocation35_spill] sm:$0xff] }
 0x279   : > { %v6146_v7 = vpop.f32.mrb[188].mxu0  ;;  %v8371_v55 = vadd.f32 %v3296_v36, %v9201_v5  ;;  %v6034_v0 = vpop.f32.mrb[188].mxu1  ;;  %v9205_v36 = vld [vmem:[#allocation37_spill] sm:$0xff] }
 0x27a   : > { %v6147_v46 = vpop.f32.mrb[189].mxu0  ;;  %v6035_v30 = vpop.f32.mrb[189].mxu1 }
 0x27b   : > { %v8373_v12 = vadd.f32 %v6147_v46, %v6146_v7  ;;  %v6149_v17 = vpop.f32.mrb[190].mxu0  ;;  %v6036_v18 = vadd.f32 %v6035_v30, %v6034_v0  ;;  %v6037_v21 = vpop.f32.mrb[190].mxu1 }
 0x27c   : > { %v6150_v44 = vpop.f32.mrb[191].mxu0  ;;  %v6038_v43 = vpop.f32.mrb[191].mxu1 }
 0x27d   : > { %9202 = vst [vmem:[#allocation23_spill] sm:$0xff] %v8373_v12  ;;  %v8375_v20 = vadd.f32 %v6150_v44, %v6149_v17  ;;  %v3301_v28 = vadd.f32 %v6036_v18, %v8199_v26  ;;  %v6039_v58 = vadd.f32 %v6038_v43, %v6037_v21 }
 0x27f   : > { %9203 = vst [vmem:[#allocation9_spill] sm:$0xff] %v8375_v20  ;;  %v8379_v56 = vadd.f32 %v3301_v28, %v9204_v34  ;;  %v3304_v29 = vadd.f32 %v6039_v58, %v8204_v62  ;;  %v9208_v62 = vld [vmem:[#allocation40_spill] sm:$0xff] }
 0x281   : > { %v6152_v40 = vpop.f32.mrb[192].mxu0  ;;  %v8383_v5 = vadd.f32 %v3304_v29, %v9205_v36  ;;  %v6040_v7 = vpop.f32.mrb[192].mxu1  ;;  %v9209_v29 = vld [vmem:[#allocation42_spill] sm:$0xff] }
 0x282   : > { %v6153_v46 = vpop.f32.mrb[193].mxu0  ;;  %v6041_v0 = vpop.f32.mrb[193].mxu1 }
 0x283   : > { %v8385_v30 = vadd.f32 %v6153_v46, %v6152_v40  ;;  %v6155_v12 = vpop.f32.mrb[194].mxu0  ;;  %v6042_v44 = vadd.f32 %v6041_v0, %v6040_v7  ;;  %v6043_v17 = vpop.f32.mrb[194].mxu1 }
 0x284   : > { %v6156_v20 = vpop.f32.mrb[195].mxu0  ;;  %v6044_v26 = vpop.f32.mrb[195].mxu1 }
 0x285   : > { %9206 = vst [vmem:[#allocation61_spill] sm:$0xff] %v8385_v30  ;;  %v8387_v18 = vadd.f32 %v6156_v20, %v6155_v12  ;;  %v3309_v21 = vadd.f32 %v6042_v44, %v8207_v25  ;;  %v6045_v43 = vadd.f32 %v6044_v26, %v6043_v17 }
 0x287   : > { %9207 = vst [vmem:[#allocation13_spill] sm:$0xff] %v8387_v18  ;;  %v8391_v28 = vadd.f32 %v3309_v21, %v9208_v62  ;;  %v3312_v58 = vadd.f32 %v6045_v43, %v8212_v42  ;;  %v9212_v42 = vld [vmem:[#allocation44_spill] sm:$0xff] }
 0x289   : > { %v6158_v34 = vpop.f32.mrb[196].mxu0  ;;  %v8395_v36 = vadd.f32 %v3312_v58, %v9209_v29  ;;  %v6046_v40 = vpop.f32.mrb[196].mxu1  ;;  %v9213_v58 = vld [vmem:[#allocation45_spill] sm:$0xff] }
 0x28a   : > { %v6159_v46 = vpop.f32.mrb[197].mxu0  ;;  %v6047_v7 = vpop.f32.mrb[197].mxu1 }
 0x28b   : > { %v8397_v0 = vadd.f32 %v6159_v46, %v6158_v34  ;;  %v6161_v30 = vpop.f32.mrb[198].mxu0  ;;  %v6048_v12 = vadd.f32 %v6047_v7, %v6046_v40  ;;  %v6049_v20 = vpop.f32.mrb[198].mxu1 }
 0x28c   : > { %v6162_v18 = vpop.f32.mrb[199].mxu0  ;;  %v6050_v25 = vpop.f32.mrb[199].mxu1 }
 0x28d   : > { %9210 = vst [vmem:[#allocation22_spill] sm:$0xff] %v8397_v0  ;;  %v8399_v44 = vadd.f32 %v6162_v18, %v6161_v30  ;;  %v3317_v17 = vadd.f32 %v6048_v12, %v8215_v6  ;;  %v6051_v26 = vadd.f32 %v6050_v25, %v6049_v20 }
 0x28f   : > { %9211 = vst [vmem:[#allocation63_spill] sm:$0xff] %v8399_v44  ;;  %v8403_v21 = vadd.f32 %v3317_v17, %v9212_v42  ;;  %v3320_v43 = vadd.f32 %v6051_v26, %v8220_v13  ;;  %v9216_v13 = vld [vmem:[#allocation49_spill] sm:$0xff] }
 0x291   : > { %v6164_v62 = vpop.f32.mrb[200].mxu0  ;;  %v8407_v29 = vadd.f32 %v3320_v43, %v9213_v58  ;;  %v6052_v34 = vpop.f32.mrb[200].mxu1  ;;  %v9217_v43 = vld [vmem:[#allocation12_spill] sm:$0xff] }
 0x292   : > { %v6165_v46 = vpop.f32.mrb[201].mxu0  ;;  %v6053_v40 = vpop.f32.mrb[201].mxu1 }
 0x293   : > { %v8409_v7 = vadd.f32 %v6165_v46, %v6164_v62  ;;  %v6167_v0 = vpop.f32.mrb[202].mxu0  ;;  %v6054_v30 = vadd.f32 %v6053_v40, %v6052_v34  ;;  %v6055_v18 = vpop.f32.mrb[202].mxu1 }
 0x294   : > { %v6168_v44 = vpop.f32.mrb[203].mxu0  ;;  %v6056_v6 = vpop.f32.mrb[203].mxu1 }
 0x295   : > { %9214 = vst [vmem:[#allocation6_spill] sm:$0xff] %v8409_v7  ;;  %v8411_v12 = vadd.f32 %v6168_v44, %v6167_v0  ;;  %v3325_v20 = vadd.f32 %v6054_v30, %v8223_v24  ;;  %v6057_v25 = vadd.f32 %v6056_v6, %v6055_v18 }
 0x297   : > { %9215 = vst [vmem:[#allocation11_spill] sm:$0xff] %v8411_v12  ;;  %v8415_v17 = vadd.f32 %v3325_v20, %v9216_v13  ;;  %v3328_v26 = vadd.f32 %v6057_v25, %v8228_v4  ;;  %v9220_v4 = vld [vmem:[#allocation50_spill] sm:$0xff] }
 0x299   : > { %v6170_v42 = vpop.f32.mrb[204].mxu0  ;;  %v8419_v58 = vadd.f32 %v3328_v26, %v9217_v43  ;;  %v6058_v62 = vpop.f32.mrb[204].mxu1  ;;  %v9221_v26 = vld [vmem:[#allocation17_spill] sm:$0xff] }
 0x29a   : > { %v6171_v46 = vpop.f32.mrb[205].mxu0  ;;  %v6059_v34 = vpop.f32.mrb[205].mxu1 }
 0x29b   : > { %v8421_v40 = vadd.f32 %v6171_v46, %v6170_v42  ;;  %v6173_v7 = vpop.f32.mrb[206].mxu0  ;;  %v6060_v0 = vadd.f32 %v6059_v34, %v6058_v62  ;;  %v6061_v44 = vpop.f32.mrb[206].mxu1 }
 0x29c   : > { %v6174_v12 = vpop.f32.mrb[207].mxu0  ;;  %v6062_v24 = vpop.f32.mrb[207].mxu1 }
 0x29d   : > { %9218 = vst [vmem:[#allocation66_spill] sm:$0xff] %v8421_v40  ;;  %v8423_v30 = vadd.f32 %v6174_v12, %v6173_v7  ;;  %v3333_v18 = vadd.f32 %v6060_v0, %v8231_v41  ;;  %v6063_v6 = vadd.f32 %v6062_v24, %v6061_v44 }
 0x29f   : > { %9219 = vst [vmem:[#allocation16_spill] sm:$0xff] %v8423_v30  ;;  %v8427_v20 = vadd.f32 %v3333_v18, %v9220_v4  ;;  %v3336_v25 = vadd.f32 %v6063_v6, %v8236_v33  ;;  %v9224_v33 = vld [vmem:[#allocation5_spill] sm:$0xff] }
 0x2a1   : > { %v6176_v13 = vpop.f32.mrb[208].mxu0  ;;  %v8431_v43 = vadd.f32 %v3336_v25, %v9221_v26  ;;  %v6064_v42 = vpop.f32.mrb[208].mxu1  ;;  %v9225_v25 = vld [vmem:[#allocation54_spill] sm:$0xff] }
 0x2a2   : > { %v6177_v46 = vpop.f32.mrb[209].mxu0  ;;  %v6065_v62 = vpop.f32.mrb[209].mxu1 }
 0x2a3   : > { %v8433_v34 = vadd.f32 %v6177_v46, %v6176_v13  ;;  %v6179_v40 = vpop.f32.mrb[210].mxu0  ;;  %v6066_v7 = vadd.f32 %v6065_v62, %v6064_v42  ;;  %v6067_v12 = vpop.f32.mrb[210].mxu1 }
 0x2a4   : > { %v6180_v30 = vpop.f32.mrb[211].mxu0  ;;  %v6068_v41 = vpop.f32.mrb[211].mxu1 }
 0x2a5   : > { %9222 = vst [vmem:[#allocation81_spill] sm:$0xff] %v8433_v34  ;;  %v8435_v0 = vadd.f32 %v6180_v30, %v6179_v40  ;;  %v3341_v44 = vadd.f32 %v6066_v7, %v8239_v37  ;;  %v6069_v24 = vadd.f32 %v6068_v41, %v6067_v12 }
 0x2a7   : > { %9223 = vst [vmem:[#allocation68_spill] sm:$0xff] %v8435_v0  ;;  %v8439_v18 = vadd.f32 %v3341_v44, %v9224_v33  ;;  %v3344_v6 = vadd.f32 %v6069_v24, %v8244_v53  ;;  %v9228_v53 = vld [vmem:[#allocation8_spill] sm:$0xff] }
 0x2a9   : > { %v6182_v4 = vpop.f32.mrb[212].mxu0  ;;  %v8443_v26 = vadd.f32 %v3344_v6, %v9225_v25  ;;  %v6070_v13 = vpop.f32.mrb[212].mxu1  ;;  %v9229_v6 = vld [vmem:[#allocation15_spill] sm:$0xff] }
 0x2aa   : > { %v6183_v46 = vpop.f32.mrb[213].mxu0  ;;  %v6071_v42 = vpop.f32.mrb[213].mxu1 }
 0x2ab   : > { %v8445_v62 = vadd.f32 %v6183_v46, %v6182_v4  ;;  %v6185_v34 = vpop.f32.mrb[214].mxu0  ;;  %v6072_v40 = vadd.f32 %v6071_v42, %v6070_v13  ;;  %v6073_v30 = vpop.f32.mrb[214].mxu1 }
 0x2ac   : > { %v6186_v0 = vpop.f32.mrb[215].mxu0  ;;  %v6074_v37 = vpop.f32.mrb[215].mxu1 }
 0x2ad   : > { %9226 = vst [vmem:[#allocation82_spill] sm:$0xff] %v8445_v62  ;;  %v8447_v7 = vadd.f32 %v6186_v0, %v6185_v34  ;;  %v3349_v12 = vadd.f32 %v6072_v40, %v8247_v22  ;;  %v6075_v41 = vadd.f32 %v6074_v37, %v6073_v30 }
 0x2af   : > { %9227 = vst [vmem:[#allocation14_spill] sm:$0xff] %v8447_v7  ;;  %v8451_v44 = vadd.f32 %v3349_v12, %v9228_v53  ;;  %v3352_v24 = vadd.f32 %v6075_v41, %v8252_v16  ;;  %v9232_v16 = vld [vmem:[#allocation55_spill] sm:$0xff] }
 0x2b1   : > { %v6188_v33 = vpop.f32.mrb[216].mxu0  ;;  %v8455_v25 = vadd.f32 %v3352_v24, %v9229_v6  ;;  %v6076_v4 = vpop.f32.mrb[216].mxu1  ;;  %v9233_v24 = vld [vmem:[#allocation20_spill] sm:$0xff] }
 0x2b2   : > { %v6189_v46 = vpop.f32.mrb[217].mxu0  ;;  %v6077_v13 = vpop.f32.mrb[217].mxu1 }
 0x2b3   : > { %v8457_v42 = vadd.f32 %v6189_v46, %v6188_v33  ;;  %v6191_v62 = vpop.f32.mrb[218].mxu0  ;;  %v6078_v34 = vadd.f32 %v6077_v13, %v6076_v4  ;;  %v6079_v0 = vpop.f32.mrb[218].mxu1 }
 0x2b4   : > { %v6192_v7 = vpop.f32.mrb[219].mxu0  ;;  %v6080_v22 = vpop.f32.mrb[219].mxu1 }
 0x2b5   : > { %9230 = vst [vmem:[#allocation69_spill] sm:$0xff] %v8457_v42  ;;  %v8459_v40 = vadd.f32 %v6192_v7, %v6191_v62  ;;  %v3357_v30 = vadd.f32 %v6078_v34, %v8255_v14  ;;  %v6081_v37 = vadd.f32 %v6080_v22, %v6079_v0 }
 0x2b7   : > { %9231 = vst [vmem:[#allocation83_spill] sm:$0xff] %v8459_v40  ;;  %v8463_v12 = vadd.f32 %v3357_v30, %v9232_v16  ;;  %v3360_v41 = vadd.f32 %v6081_v37, %v8260_v3  ;;  %v9237_v3 = vld [vmem:[#allocation7_spill] sm:$0xff] }
 0x2b9   : > { %v6194_v53 = vpop.f32.mrb[220].mxu0  ;;  %v8467_v6 = vadd.f32 %v3360_v41, %v9233_v24  ;;  %v6082_v33 = vpop.f32.mrb[220].mxu1  ;;  %v9238_v41 = vld [vmem:[#allocation57_spill] sm:$0xff] }
 0x2ba   : > { %v6195_v46 = vpop.f32.mrb[221].mxu0  ;;  %v6083_v4 = vpop.f32.mrb[221].mxu1 }
 0x2bb   : > { %9234 = vst [vmem:[#allocation71_spill] sm:$0xff] %v8467_v6  ;;  %v8469_v13 = vadd.f32 %v6195_v46, %v6194_v53  ;;  %v6197_v42 = vpop.f32.mrb[222].mxu0  ;;  %v6084_v62 = vadd.f32 %v6083_v4, %v6082_v33  ;;  %v6085_v7 = vpop.f32.mrb[222].mxu1 }
 0x2bc   : > { %v6198_v40 = vpop.f32.mrb[223].mxu0  ;;  %v6086_v14 = vpop.f32.mrb[223].mxu1 }
 0x2bd   : > { %9235 = vst [vmem:[#allocation72_spill] sm:$0xff] %v8469_v13  ;;  %v8471_v34 = vadd.f32 %v6198_v40, %v6197_v42  ;;  %v3365_v0 = vadd.f32 %v6084_v62, %v8263_v47  ;;  %v6087_v22 = vadd.f32 %v6086_v14, %v6085_v7 }
 0x2bf   : > { %9236 = vst [vmem:[#allocation74_spill] sm:$0xff] %v8471_v34  ;;  %v8475_v30 = vadd.f32 %v3365_v0, %v9237_v3  ;;  %v3368_v37 = vadd.f32 %v6087_v22, %v8268_v38 }
 0x2c1   : > { %v6328_v16 = vpop.f32.mrb[224].mxu0  ;;  %v8479_v24 = vadd.f32 %v3368_v37, %v9238_v41  ;;  %v6216_v53 = vpop.f32.mrb[224].mxu1 }
 0x2c2   : > { %v6329_v46 = vpop.f32.mrb[225].mxu0  ;;  %v6217_v33 = vpop.f32.mrb[225].mxu1 }
 0x2c3   : > { %v6330_v4 = vadd.f32 %v6329_v46, %v6328_v16  ;;  %v6331_v13 = vpop.f32.mrb[226].mxu0  ;;  %v6218_v6 = vadd.f32 %v6217_v33, %v6216_v53  ;;  %v6219_v42 = vpop.f32.mrb[226].mxu1  ;;  %v8487_v16 = vld [vmem:[%s8810_s3] ss:$0 sm:$0xff] }
 0x2c4   : > { %v6332_v40 = vpop.f32.mrb[227].mxu0  ;;  %v6220_v34 = vpop.f32.mrb[227].mxu1 }
 0x2c5   : > { %v6333_v47 = vadd.f32 %v6332_v40, %v6331_v13  ;;  %v4048_v62 = vadd.f32 %v6218_v6, %v8271_v51  ;;  %v6221_v7 = vadd.f32 %v6220_v34, %v6219_v42 }
 0x2c7   : > { %v4209_v14 = vadd.f32 %v6330_v4, %v4048_v62  ;;  %v4051_v38 = vadd.f32 %v6221_v7, %v8273_v49 }
 0x2c9   : > { %v6334_v0 = vpop.f32.mrb[228].mxu0  ;;  %v4335_v22 = vadd.f32 %v4209_v14, %v8280_v60  ;;  %v4212_v3 = vadd.f32 %v6333_v47, %v4051_v38  ;;  %v6222_v37 = vpop.f32.mrb[228].mxu1 }
 0x2ca   : > { %v6335_v41 = vpop.f32.mrb[229].mxu0  ;;  %v6223_v53 = vpop.f32.mrb[229].mxu1 }
 0x2cb   : > { %v6336_v13 = vadd.f32 %v6335_v41, %v6334_v0  ;;  %v6337_v46 = vpop.f32.mrb[230].mxu0  ;;  %v4336_v51 = vadd.f32 %v4212_v3, %v8285_v59  ;;  %v6224_v6 = vadd.f32 %v6223_v53, %v6222_v37  ;;  %v6225_v34 = vpop.f32.mrb[230].mxu1  ;;  %v8491_v60 = vadd.f32 %v8487_v16, %v4335_v22 }
 0x2cc   : > { %v6338_v49 = vpop.f32.mrb[231].mxu0  ;;  %v6226_v33 = vpop.f32.mrb[231].mxu1 }
 0x2cd   : > { %v6339_v4 = vadd.f32 %v6338_v49, %v6337_v46  ;;  %v8494_v42 = vadd.f32 %v8487_v16, %v4336_v51  ;;  %v4056_v40 = vadd.f32 %v6224_v6, %v8287_v45  ;;  %v6227_v47 = vadd.f32 %v6226_v33, %v6225_v34 }
 0x2cf   : > { %v5324_v59 = vpack.c.bf16 %v8494_v42, %v8491_v60  ;;  %v4217_v62 = vadd.f32 %v6336_v13, %v4056_v40  ;;  %v4059_v7 = vadd.f32 %v6227_v47, %v8289_v1 }
 0x2d1   : > { %v6340_v14 = vpop.f32.mrb[232].mxu0  ;;  %5325 = vst [vmem:[%s8501_s26] sm:$0xff] %v5324_v59   ;;  %v4337_v38 = vadd.f32 %v4217_v62, %v8296_v19  ;;  %v4220_v0 = vadd.f32 %v6339_v4, %v4059_v7  ;;  %v6228_v22 = vpop.f32.mrb[232].mxu1 }
 0x2d2   : > { %v6341_v45 = vpop.f32.mrb[233].mxu0  ;;  %v6229_v3 = vpop.f32.mrb[233].mxu1 }
 0x2d3   : > { %v6342_v37 = vadd.f32 %v6341_v45, %v6340_v14  ;;  %v6343_v41 = vpop.f32.mrb[234].mxu0  ;;  %v4338_v53 = vadd.f32 %v4220_v0, %v8301_v27  ;;  %v6230_v46 = vadd.f32 %v6229_v3, %v6228_v22  ;;  %v6231_v51 = vpop.f32.mrb[234].mxu1  ;;  %v8510_v1 = vadd.f32 %v8487_v16, %v4337_v38 }
 0x2d4   : > { %v6344_v6 = vpop.f32.mrb[235].mxu0  ;;  %v6232_v34 = vpop.f32.mrb[235].mxu1 }
 0x2d5   : > { %v6345_v13 = vadd.f32 %v6344_v6, %v6343_v41  ;;  %v8513_v49 = vadd.f32 %v8487_v16, %v4338_v53  ;;  %v4064_v19 = vadd.f32 %v6230_v46, %v8303_v57  ;;  %v6233_v33 = vadd.f32 %v6232_v34, %v6231_v51 }
 0x2d7   : > { %v5329_v4 = vpack.c.bf16 %v8513_v49, %v8510_v1  ;;  %v4225_v40 = vadd.f32 %v6342_v37, %v4064_v19  ;;  %v4067_v27 = vadd.f32 %v6233_v33, %v8305_v31 }
 0x2d9   : > { %v6346_v47 = vpop.f32.mrb[236].mxu0  ;;  %5401 = vst [vmem:[%s8501_s26 + $0x8] sm:$0xff] %v5329_v4   ;;  %v4339_v59 = vadd.f32 %v4225_v40, %v8312_v9  ;;  %v4228_v62 = vadd.f32 %v6345_v13, %v4067_v27  ;;  %v6234_v7 = vpop.f32.mrb[236].mxu1 }
 0x2da   : > { %v6347_v14 = vpop.f32.mrb[237].mxu0  ;;  %v6235_v38 = vpop.f32.mrb[237].mxu1 }
 0x2db   : > { %v6348_v0 = vadd.f32 %v6347_v14, %v6346_v47  ;;  %v6349_v22 = vpop.f32.mrb[238].mxu0  ;;  %v4340_v57 = vadd.f32 %v4228_v62, %v8317_v2  ;;  %v6236_v45 = vadd.f32 %v6235_v38, %v6234_v7  ;;  %v6237_v3 = vpop.f32.mrb[238].mxu1  ;;  %v8523_v31 = vadd.f32 %v8487_v16, %v4339_v59 }
 0x2dc   : > { %v6350_v41 = vpop.f32.mrb[239].mxu0  ;;  %v6238_v53 = vpop.f32.mrb[239].mxu1  ;;  %v4630_v38 = vadd.f32 %v8494_v42, %v8491_v60 }
 0x2dd   : > { %v6351_v37 = vadd.f32 %v6350_v41, %v6349_v22  ;;  %v8526_v46 = vadd.f32 %v8487_v16, %v4340_v57  ;;  %v4072_v9 = vadd.f32 %v6236_v45, %v8319_v15  ;;  %v6239_v51 = vadd.f32 %v6238_v53, %v6237_v3 }
 0x2df   : > { %v5334_v6 = vpack.c.bf16 %v8526_v46, %v8523_v31  ;;  %v4233_v34 = vadd.f32 %v6348_v0, %v4072_v9  ;;  %v4075_v2 = vadd.f32 %v6239_v51, %v8321_v39 }
 0x2e1   : > { %v6352_v13 = vpop.f32.mrb[240].mxu0  ;;  %5402 = vst [vmem:[%s8501_s26 + $0x10] sm:$0xff] %v5334_v6   ;;  %v4341_v19 = vadd.f32 %v4233_v34, %v8328_v8  ;;  %v4236_v33 = vadd.f32 %v6351_v37, %v4075_v2  ;;  %v6240_v4 = vpop.f32.mrb[240].mxu1 }
 0x2e2   : > { %v6353_v40 = vpop.f32.mrb[241].mxu0  ;;  %v6241_v27 = vpop.f32.mrb[241].mxu1 }
 0x2e3   : > { %v6354_v47 = vadd.f32 %v6353_v40, %v6352_v13  ;;  %v6355_v59 = vpop.f32.mrb[242].mxu0  ;;  %v4342_v62 = vadd.f32 %v4236_v33, %v8333_v52  ;;  %v6242_v15 = vadd.f32 %v6241_v27, %v6240_v4  ;;  %v6243_v7 = vpop.f32.mrb[242].mxu1  ;;  %v8538_v22 = vadd.f32 %v8487_v16, %v4341_v19 }
 0x2e4   : > { %v6356_v14 = vpop.f32.mrb[243].mxu0  ;;  %v6244_v39 = vpop.f32.mrb[243].mxu1  ;;  %v4631_v52 = vadd.f32 %v4630_v38, %v8510_v1 }
 0x2e5   : > { %v6357_v0 = vadd.f32 %v6356_v14, %v6355_v59  ;;  %v8541_v8 = vadd.f32 %v8487_v16, %v4342_v62  ;;  %v4080_v57 = vadd.f32 %v6242_v15, %v8335_v11  ;;  %v6245_v45 = vadd.f32 %v6244_v39, %v6243_v7 }
 0x2e6   : > { %v4632_v2 = vadd.f32 %v4631_v52, %v8513_v49 }
 0x2e7   : > { %v5339_v3 = vpack.c.bf16 %v8541_v8, %v8538_v22  ;;  %v4241_v41 = vadd.f32 %v6354_v47, %v4080_v57  ;;  %v4083_v53 = vadd.f32 %v6245_v45, %v8337_v50 }
 0x2e8   : > { %v4633_v50 = vadd.f32 %v4632_v2, %v8523_v31 }
 0x2e9   : > { %v6358_v37 = vpop.f32.mrb[244].mxu0  ;;  %5403 = vst [vmem:[%s8501_s26 + $0x18] sm:$0xff] %v5339_v3   ;;  %v4343_v9 = vadd.f32 %v4241_v41, %v8343_v10  ;;  %v4244_v51 = vadd.f32 %v6357_v0, %v4083_v53  ;;  %v6246_v6 = vpop.f32.mrb[244].mxu1 }
 0x2ea   : > { %v6359_v34 = vpop.f32.mrb[245].mxu0  ;;  %v6247_v13 = vpop.f32.mrb[245].mxu1  ;;  %v4634_v39 = vadd.f32 %v4633_v50, %v8526_v46 }
 0x2eb   : > { %v6360_v11 = vadd.f32 %v6359_v34, %v6358_v37  ;;  %v6361_v19 = vpop.f32.mrb[246].mxu0  ;;  %v4344_v33 = vadd.f32 %v4244_v51, %v8347_v54  ;;  %v6248_v4 = vadd.f32 %v6247_v13, %v6246_v6  ;;  %v6249_v40 = vpop.f32.mrb[246].mxu1  ;;  %v8554_v10 = vadd.f32 %v8487_v16, %v4343_v9 }
 0x2ec   : > { %v6362_v27 = vpop.f32.mrb[247].mxu0  ;;  %v6250_v47 = vpop.f32.mrb[247].mxu1  ;;  %v4635_v41 = vadd.f32 %v4634_v39, %v8538_v22 }
 0x2ed   : > { %v6363_v59 = vadd.f32 %v6362_v27, %v6361_v19  ;;  %v8557_v62 = vadd.f32 %v8487_v16, %v4344_v33  ;;  %v4088_v15 = vadd.f32 %v6248_v4, %v8349_v32  ;;  %v6251_v7 = vadd.f32 %v6250_v47, %v6249_v40  ;;  %v9239_v40 = vld [vmem:[#allocation59_spill] sm:$0xff] }
 0x2ee   : > { %v4636_v33 = vadd.f32 %v4635_v41, %v8541_v8 }
 0x2ef   : > { %v5344_v54 = vpack.c.bf16 %v8557_v62, %v8554_v10  ;;  %v4249_v14 = vadd.f32 %v6360_v11, %v4088_v15  ;;  %v4091_v38 = vadd.f32 %v6251_v7, %v8351_v35 }
 0x2f0   : > { %v4637_v50 = vadd.f32 %v4636_v33, %v8554_v10 }
 0x2f1   : > { %v6364_v0 = vpop.f32.mrb[248].mxu0  ;;  %5404 = vst [vmem:[%s8501_s26 + $0x20] sm:$0xff] %v5344_v54   ;;  %v4345_v57 = vadd.f32 %v4249_v14, %v8355_v63  ;;  %v4252_v45 = vadd.f32 %v6363_v59, %v4091_v38  ;;  %v6252_v52 = vpop.f32.mrb[248].mxu1 }
 0x2f2   : > { %v6365_v3 = vpop.f32.mrb[249].mxu0  ;;  %v6253_v53 = vpop.f32.mrb[249].mxu1 }
 0x2f3   : > { %v6366_v32 = vadd.f32 %v6365_v3, %v6364_v0  ;;  %v6367_v37 = vpop.f32.mrb[250].mxu0  ;;  %v4346_v9 = vadd.f32 %v4252_v45, %v8359_v48  ;;  %v6254_v51 = vadd.f32 %v6253_v53, %v6252_v52  ;;  %v6255_v6 = vpop.f32.mrb[250].mxu1  ;;  %v8569_v13 = vadd.f32 %v8487_v16, %v4345_v57 }
 0x2f4   : > { %v6368_v35 = vpop.f32.mrb[251].mxu0  ;;  %v6256_v34 = vpop.f32.mrb[251].mxu1  ;;  %v4638_v52 = vadd.f32 %v4637_v50, %v8557_v62 }
 0x2f5   : > { %v6369_v2 = vadd.f32 %v6368_v35, %v6367_v37  ;;  %v8572_v63 = vadd.f32 %v8487_v16, %v4346_v9  ;;  %v4096_v11 = vadd.f32 %v6254_v51, %v8361_v61  ;;  %v6257_v19 = vadd.f32 %v6256_v34, %v6255_v6  ;;  %v9241_v35 = vld [vmem:[#allocation9_spill] sm:$0xff] }
 0x2f6   : > { %v4639_v51 = vadd.f32 %v4638_v52, %v8569_v13  ;;  %v9243_v52 = vld [vmem:[#allocation13_spill] sm:$0xff] }
 0x2f7   : > { %v5349_v48 = vpack.c.bf16 %v8572_v63, %v8569_v13  ;;  %v4257_v4 = vadd.f32 %v6366_v32, %v4096_v11  ;;  %v4099_v27 = vadd.f32 %v6257_v19, %v9239_v40  ;;  %v9240_v32 = vld [vmem:[#allocation23_spill] sm:$0xff] }
 0x2f9   : > { %v6370_v47 = vpop.f32.mrb[252].mxu0  ;;  %5405 = vst [vmem:[%s8501_s26 + $0x28] sm:$0xff] %v5349_v48   ;;  %v4347_v59 = vadd.f32 %v4257_v4, %v8367_v23  ;;  %v4260_v15 = vadd.f32 %v6369_v2, %v4099_v27  ;;  %v6258_v7 = vpop.f32.mrb[252].mxu1  ;;  %v4640_v4 = vadd.f32 %v4639_v51, %v8572_v63 }
 0x2fa   : > { %v6371_v54 = vpop.f32.mrb[253].mxu0  ;;  %v6259_v14 = vpop.f32.mrb[253].mxu1 }
 0x2fb   : > { %v6372_v61 = vadd.f32 %v6371_v54, %v6370_v47  ;;  %v6373_v38 = vpop.f32.mrb[254].mxu0  ;;  %v4348_v39 = vadd.f32 %v4260_v15, %v8371_v55  ;;  %v6260_v0 = vadd.f32 %v6259_v14, %v6258_v7  ;;  %v6261_v57 = vpop.f32.mrb[254].mxu1  ;;  %v8585_v53 = vadd.f32 %v8487_v16, %v4347_v59 }
 0x2fc   : > { %v6374_v45 = vpop.f32.mrb[255].mxu0  ;;  %v6262_v3 = vpop.f32.mrb[255].mxu1 }
 0x2fd   : > { %v6375_v41 = vadd.f32 %v6374_v45, %v6373_v38  ;;  %v8588_v23 = vadd.f32 %v8487_v16, %v4348_v39  ;;  %v4104_v37 = vadd.f32 %v6260_v0, %v9240_v32  ;;  %v6263_v9 = vadd.f32 %v6262_v3, %v6261_v57  ;;  %v9242_v39 = vld [vmem:[#allocation61_spill] sm:$0xff] }
 0x2fe   : > { %v4641_v54 = vadd.f32 %v4640_v4, %v8585_v53 }
 0x2ff   : > { %v5354_v55 = vpack.c.bf16 %v8588_v23, %v8585_v53  ;;  %v4265_v6 = vadd.f32 %v6372_v61, %v4104_v37  ;;  %v4107_v34 = vadd.f32 %v6263_v9, %v9241_v35 }
 0x300   : > { %v4642_v32 = vadd.f32 %v4641_v54, %v8588_v23  ;;  %v9245_v54 = vld [vmem:[#allocation63_spill] sm:$0xff] }
 0x301   : > { %v6376_v2 = vpop.f32.mrb[0].mxu0  ;;  %5406 = vst [vmem:[%s8501_s26 + $0x30] sm:$0xff] %v5354_v55   ;;  %v4349_v11 = vadd.f32 %v4265_v6, %v8379_v56  ;;  %v4268_v19 = vadd.f32 %v6375_v41, %v4107_v34  ;;  %v6264_v33 = vpop.f32.mrb[0].mxu1 }
 0x302   : > { %v6377_v48 = vpop.f32.mrb[1].mxu0  ;;  %v6265_v40 = vpop.f32.mrb[1].mxu1 }
 0x303   : > { %v6378_v27 = vadd.f32 %v6377_v48, %v6376_v2  ;;  %v6379_v50 = vpop.f32.mrb[2].mxu0  ;;  %v4350_v47 = vadd.f32 %v4268_v19, %v8383_v5  ;;  %v6266_v59 = vadd.f32 %v6265_v40, %v6264_v33  ;;  %v6267_v15 = vpop.f32.mrb[2].mxu1  ;;  %v8601_v56 = vadd.f32 %v8487_v16, %v4349_v11 }
 0x304   : > { %v6380_v7 = vpop.f32.mrb[3].mxu0  ;;  %v6268_v14 = vpop.f32.mrb[3].mxu1 }
 0x305   : > { %v6381_v61 = vadd.f32 %v6380_v7, %v6379_v50  ;;  %v8604_v38 = vadd.f32 %v8487_v16, %v4350_v47  ;;  %v4112_v0 = vadd.f32 %v6266_v59, %v9242_v39  ;;  %v6269_v57 = vadd.f32 %v6268_v14, %v6267_v15  ;;  %v9244_v50 = vld [vmem:[#allocation22_spill] sm:$0xff] }
 0x306   : > { %v4643_v2 = vadd.f32 %v4642_v32, %v8601_v56 }
 0x307   : > { %v5359_v5 = vpack.c.bf16 %v8604_v38, %v8601_v56  ;;  %v4273_v45 = vadd.f32 %v6378_v27, %v4112_v0  ;;  %v4115_v3 = vadd.f32 %v6269_v57, %v9243_v52 }
 0x308   : > { %v4644_v15 = vadd.f32 %v4643_v2, %v8604_v38  ;;  %v9246_v2 = vld [vmem:[#allocation6_spill] sm:$0xff] }
 0x309   : > { %v6382_v41 = vpop.f32.mrb[4].mxu0  ;;  %5407 = vst [vmem:[%s8501_s26 + $0x38] sm:$0xff] %v5359_v5   ;;  %v4351_v37 = vadd.f32 %v4273_v45, %v8391_v28  ;;  %v4276_v9 = vadd.f32 %v6381_v61, %v4115_v3  ;;  %v6270_v51 = vpop.f32.mrb[4].mxu1 }
 0x30a   : > { %v6383_v55 = vpop.f32.mrb[5].mxu0  ;;  %v6271_v6 = vpop.f32.mrb[5].mxu1 }
 0x30b   : > { %v6384_v35 = vadd.f32 %v6383_v55, %v6382_v41  ;;  %v6385_v34 = vpop.f32.mrb[6].mxu0  ;;  %v4352_v11 = vadd.f32 %v4276_v9, %v8395_v36  ;;  %v6272_v19 = vadd.f32 %v6271_v6, %v6270_v51  ;;  %v6273_v33 = vpop.f32.mrb[6].mxu1  ;;  %v8616_v27 = vadd.f32 %v8487_v16, %v4351_v37 }
 0x30c   : > { %v6386_v48 = vpop.f32.mrb[7].mxu0  ;;  %v6274_v4 = vpop.f32.mrb[7].mxu1 }
 0x30d   : > { %v6387_v40 = vadd.f32 %v6386_v48, %v6385_v34  ;;  %v8619_v28 = vadd.f32 %v8487_v16, %v4352_v11  ;;  %v4120_v47 = vadd.f32 %v6272_v19, %v9244_v50  ;;  %v6275_v59 = vadd.f32 %v6274_v4, %v6273_v33 }
 0x30e   : > { %v4645_v39 = vadd.f32 %v4644_v15, %v8616_v27 }
 0x30f   : > { %v5364_v36 = vpack.c.bf16 %v8619_v28, %v8616_v27  ;;  %v4281_v7 = vadd.f32 %v6384_v35, %v4120_v47  ;;  %v4123_v14 = vadd.f32 %v6275_v59, %v9245_v54 }
 0x310   : > { %v4646_v34 = vadd.f32 %v4645_v39, %v8619_v28 }
 0x311   : > { %v6388_v61 = vpop.f32.mrb[8].mxu0  ;;  %5408 = vst [vmem:[%s8501_s26 + $0x40] sm:$0xff] %v5364_v36   ;;  %v4353_v0 = vadd.f32 %v4281_v7, %v8403_v21  ;;  %v4284_v57 = vadd.f32 %v6387_v40, %v4123_v14  ;;  %v6276_v5 = vpop.f32.mrb[8].mxu1 }
 0x312   : > { %v6389_v45 = vpop.f32.mrb[9].mxu0  ;;  %v6277_v52 = vpop.f32.mrb[9].mxu1 }
 0x313   : > { %v6390_v3 = vadd.f32 %v6389_v45, %v6388_v61  ;;  %v6391_v41 = vpop.f32.mrb[10].mxu0  ;;  %v8630_v32 = vadd.f32 %v8487_v16, %v4353_v0  ;;  %v4354_v37 = vadd.f32 %v4284_v57, %v8407_v29  ;;  %v6278_v9 = vadd.f32 %v6277_v52, %v6276_v5  ;;  %v6279_v51 = vpop.f32.mrb[10].mxu1  ;;  %v9247_v29 = vld [vmem:[#allocation11_spill] sm:$0xff] }
 0x314   : > { %v6392_v55 = vpop.f32.mrb[11].mxu0  ;;  %v6280_v6 = vpop.f32.mrb[11].mxu1 }
 0x315   : > { %v6393_v35 = vadd.f32 %v6392_v55, %v6391_v41  ;;  %v8635_v21 = vadd.f32 %v8487_v16, %v4354_v37  ;;  %v4128_v11 = vadd.f32 %v6278_v9, %v9246_v2  ;;  %v6281_v19 = vadd.f32 %v6280_v6, %v6279_v51  ;;  %v9248_v37 = vld [vmem:[#allocation66_spill] sm:$0xff] }
 0x316   : > { %v4647_v33 = vadd.f32 %v4646_v34, %v8630_v32 }
 0x317   : > { %v5369_v48 = vpack.c.bf16 %v8635_v21, %v8630_v32  ;;  %v4289_v4 = vadd.f32 %v6390_v3, %v4128_v11  ;;  %v4131_v40 = vadd.f32 %v6281_v19, %v9247_v29 }
 0x318   : > { %v4648_v61 = vadd.f32 %v4647_v33, %v8635_v21 }
 0x319   : > { %v6394_v50 = vpop.f32.mrb[12].mxu0  ;;  %5409 = vst [vmem:[%s8501_s26 + $0x48] sm:$0xff] %v5369_v48   ;;  %v4355_v47 = vadd.f32 %v4289_v4, %v8415_v17  ;;  %v4292_v59 = vadd.f32 %v6393_v35, %v4131_v40  ;;  %v6282_v15 = vpop.f32.mrb[12].mxu1 }
 0x31a   : > { %v6395_v36 = vpop.f32.mrb[13].mxu0  ;;  %v6283_v7 = vpop.f32.mrb[13].mxu1 }
 0x31b   : > { %v6396_v54 = vadd.f32 %v6395_v36, %v6394_v50  ;;  %v6397_v14 = vpop.f32.mrb[14].mxu0  ;;  %v8646_v39 = vadd.f32 %v8487_v16, %v4355_v47  ;;  %v4356_v0 = vadd.f32 %v4292_v59, %v8419_v58  ;;  %v6284_v57 = vadd.f32 %v6283_v7, %v6282_v15  ;;  %v6285_v5 = vpop.f32.mrb[14].mxu1  ;;  %v9249_v58 = vld [vmem:[#allocation16_spill] sm:$0xff] }
 0x31c   : > { %v6398_v45 = vpop.f32.mrb[15].mxu0  ;;  %v6286_v52 = vpop.f32.mrb[15].mxu1 }
 0x31d   : > { %v6399_v3 = vadd.f32 %v6398_v45, %v6397_v14  ;;  %v4649_v17 = vadd.f32 %v4648_v61, %v8646_v39  ;;  %v8651_v41 = vadd.f32 %v8487_v16, %v4356_v0  ;;  %v4136_v9 = vadd.f32 %v6284_v57, %v9248_v37  ;;  %v9250_v61 = vld [vmem:[#allocation81_spill] sm:$0xff] }
 0x31e   : > { %v6287_v51 = vadd.f32 %v6286_v52, %v6285_v5 }
 0x31f   : > { %v5374_v55 = vpack.c.bf16 %v8651_v41, %v8646_v39  ;;  %v4650_v6 = vadd.f32 %v4649_v17, %v8651_v41  ;;  %v4297_v35 = vadd.f32 %v6396_v54, %v4136_v9 }
 0x320   : > { %v4139_v34 = vadd.f32 %v6287_v51, %v9249_v58 }
 0x321   : > { %v6400_v2 = vpop.f32.mrb[16].mxu0  ;;  %5410 = vst [vmem:[%s8501_s26 + $0x50] sm:$0xff] %v5374_v55   ;;  %v4357_v11 = vadd.f32 %v4297_v35, %v8427_v20  ;;  %v6288_v33 = vpop.f32.mrb[16].mxu1 }
 0x322   : > { %v4300_v19 = vadd.f32 %v6399_v3, %v4139_v34  ;;  %v6401_v48 = vpop.f32.mrb[17].mxu0  ;;  %v6289_v4 = vpop.f32.mrb[17].mxu1 }
 0x323   : > { %v6402_v29 = vadd.f32 %v6401_v48, %v6400_v2  ;;  %v6403_v40 = vpop.f32.mrb[18].mxu0  ;;  %v8661_v50 = vadd.f32 %v8487_v16, %v4357_v11  ;;  %v6290_v59 = vadd.f32 %v6289_v4, %v6288_v33  ;;  %v6291_v15 = vpop.f32.mrb[18].mxu1 }
 0x324   : > { %v4358_v47 = vadd.f32 %v4300_v19, %v8431_v43  ;;  %v6404_v36 = vpop.f32.mrb[19].mxu0  ;;  %v6292_v7 = vpop.f32.mrb[19].mxu1  ;;  %v9251_v43 = vld [vmem:[#allocation68_spill] sm:$0xff] }
 0x325   : > { %v6405_v54 = vadd.f32 %v6404_v36, %v6403_v40  ;;  %v4651_v14 = vadd.f32 %v4650_v6, %v8661_v50  ;;  %v4144_v0 = vadd.f32 %v6290_v59, %v9250_v61  ;;  %v6293_v57 = vadd.f32 %v6292_v7, %v6291_v15  ;;  %v9252_v40 = vld [vmem:[#allocation82_spill] sm:$0xff] }
 0x326   : > { %v8666_v20 = vadd.f32 %v8487_v16, %v4358_v47 }
 0x327   : > { %v4305_v52 = vadd.f32 %v6402_v29, %v4144_v0  ;;  %v4147_v3 = vadd.f32 %v6293_v57, %v9251_v43 }
 0x328   : > { %v5379_v5 = vpack.c.bf16 %v8666_v20, %v8661_v50  ;;  %v4652_v45 = vadd.f32 %v4651_v14, %v8666_v20 }
 0x329   : > { %v6406_v17 = vpop.f32.mrb[20].mxu0  ;;  %v4359_v37 = vadd.f32 %v4305_v52, %v8439_v18  ;;  %v4308_v9 = vadd.f32 %v6405_v54, %v4147_v3  ;;  %v6294_v51 = vpop.f32.mrb[20].mxu1 }
 0x32a   : > { %5411 = vst [vmem:[%s8501_s26 + $0x58] sm:$0xff] %v5379_v5   ;;  %v6407_v55 = vpop.f32.mrb[21].mxu0  ;;  %v6295_v6 = vpop.f32.mrb[21].mxu1 }
 0x32b   : > { %v6408_v35 = vadd.f32 %v6407_v55, %v6406_v17  ;;  %v6409_v58 = vpop.f32.mrb[22].mxu0  ;;  %v8676_v34 = vadd.f32 %v8487_v16, %v4359_v37  ;;  %v4360_v2 = vadd.f32 %v4308_v9, %v8443_v26  ;;  %v6296_v11 = vadd.f32 %v6295_v6, %v6294_v51  ;;  %v6297_v19 = vpop.f32.mrb[22].mxu1  ;;  %v9253_v26 = vld [vmem:[#allocation14_spill] sm:$0xff] }
 0x32c   : > { %v6410_v33 = vpop.f32.mrb[23].mxu0  ;;  %v6298_v48 = vpop.f32.mrb[23].mxu1 }
 0x32d   : > { %v6411_v4 = vadd.f32 %v6410_v33, %v6409_v58  ;;  %v4653_v29 = vadd.f32 %v4652_v45, %v8676_v34  ;;  %v8681_v18 = vadd.f32 %v8487_v16, %v4360_v2  ;;  %v4152_v47 = vadd.f32 %v6296_v11, %v9252_v40  ;;  %v9254_v58 = vld [vmem:[#allocation69_spill] sm:$0xff] }
 0x32e   : > { %v6299_v59 = vadd.f32 %v6298_v48, %v6297_v19 }
 0x32f   : > { %v5384_v15 = vpack.c.bf16 %v8681_v18, %v8676_v34  ;;  %v4654_v36 = vadd.f32 %v4653_v29, %v8681_v18  ;;  %v4313_v7 = vadd.f32 %v6408_v35, %v4152_v47 }
 0x330   : > { %v4155_v54 = vadd.f32 %v6299_v59, %v9253_v26 }
 0x331   : > { %v6412_v14 = vpop.f32.mrb[24].mxu0  ;;  %5412 = vst [vmem:[%s8501_s26 + $0x60] sm:$0xff] %v5384_v15   ;;  %v4361_v61 = vadd.f32 %v4313_v7, %v8451_v44  ;;  %v6300_v57 = vpop.f32.mrb[24].mxu1 }
 0x332   : > { %v4316_v0 = vadd.f32 %v6411_v4, %v4155_v54  ;;  %v6413_v5 = vpop.f32.mrb[25].mxu0  ;;  %v6301_v45 = vpop.f32.mrb[25].mxu1 }
 0x333   : > { %v6414_v52 = vadd.f32 %v6413_v5, %v6412_v14  ;;  %v6415_v43 = vpop.f32.mrb[26].mxu0  ;;  %v8691_v3 = vadd.f32 %v8487_v16, %v4361_v61  ;;  %v6302_v37 = vadd.f32 %v6301_v45, %v6300_v57  ;;  %v6303_v9 = vpop.f32.mrb[26].mxu1  ;;  %v9256_v14 = vld [vmem:[#allocation71_spill] sm:$0xff] }
 0x334   : > { %v4362_v17 = vadd.f32 %v4316_v0, %v8455_v25  ;;  %v6416_v51 = vpop.f32.mrb[27].mxu0  ;;  %v6304_v55 = vpop.f32.mrb[27].mxu1  ;;  %v9255_v25 = vld [vmem:[#allocation83_spill] sm:$0xff] }
 0x335   : > { %v6417_v6 = vadd.f32 %v6416_v51, %v6415_v43  ;;  %v4655_v35 = vadd.f32 %v4654_v36, %v8691_v3  ;;  %v4160_v2 = vadd.f32 %v6302_v37, %v9254_v58  ;;  %v6305_v11 = vadd.f32 %v6304_v55, %v6303_v9 }
 0x336   : > { %v8696_v44 = vadd.f32 %v8487_v16, %v4362_v17  ;;  %v9257_v17 = vld [vmem:[#allocation72_spill] sm:$0xff] }
 0x337   : > { %v4321_v48 = vadd.f32 %v6414_v52, %v4160_v2  ;;  %v4163_v4 = vadd.f32 %v6305_v11, %v9255_v25 }
 0x338   : > { %v5389_v19 = vpack.c.bf16 %v8696_v44, %v8691_v3  ;;  %v4656_v33 = vadd.f32 %v4655_v35, %v8696_v44  ;;  %v9258_v35 = vld [vmem:[#allocation74_spill] sm:$0xff] }
 0x339   : > { %v6418_v29 = vpop.f32.mrb[28].mxu0  ;;  %v4363_v40 = vadd.f32 %v4321_v48, %v8463_v12  ;;  %v4324_v47 = vadd.f32 %v6417_v6, %v4163_v4  ;;  %v6306_v59 = vpop.f32.mrb[28].mxu1 }
 0x33a   : > { %5413 = vst [vmem:[%s8501_s26 + $0x68] sm:$0xff] %v5389_v19   ;;  %v6419_v15 = vpop.f32.mrb[29].mxu0  ;;  %v6307_v36 = vpop.f32.mrb[29].mxu1 }
 0x33b   : > { %v6420_v7 = vadd.f32 %v6419_v15, %v6418_v29  ;;  %v6421_v26 = vpop.f32.mrb[30].mxu0  ;;  %v8706_v54 = vadd.f32 %v8487_v16, %v4363_v40  ;;  %v4364_v61 = vadd.f32 %v4324_v47, %v9256_v14  ;;  %v6308_v0 = vadd.f32 %v6307_v36, %v6306_v59  ;;  %v6309_v57 = vpop.f32.mrb[30].mxu1 }
 0x33c   : > { %v6422_v5 = vpop.f32.mrb[31].mxu0  ;;  %v6310_v45 = vpop.f32.mrb[31].mxu1 }
 0x33d   : > { %v6423_v52 = vadd.f32 %v6422_v5, %v6421_v26  ;;  %v4657_v43 = vadd.f32 %v4656_v33, %v8706_v54  ;;  %v8711_v12 = vadd.f32 %v8487_v16, %v4364_v61  ;;  %v4168_v37 = vadd.f32 %v6308_v0, %v9257_v17 }
 0x33e   : > { %v6311_v9 = vadd.f32 %v6310_v45, %v6309_v57 }
 0x33f   : > { %v5394_v51 = vpack.c.bf16 %v8711_v12, %v8706_v54  ;;  %v4658_v55 = vadd.f32 %v4657_v43, %v8711_v12  ;;  %v4329_v6 = vadd.f32 %v6420_v7, %v4168_v37 }
 0x340   : > { %v4171_v58 = vadd.f32 %v6311_v9, %v9258_v35 }
 0x341   : > { %5414 = vst [vmem:[%s8501_s26 + $0x70] sm:$0xff] %v5394_v51   ;;  %v4365_v2 = vadd.f32 %v4329_v6, %v8475_v30 }
 0x342   : > { %v4332_v11 = vadd.f32 %v6423_v52, %v4171_v58 }
 0x343   : > { %v8721_v19 = vadd.f32 %v8487_v16, %v4365_v2 }
 0x344   : > { %v4366_v33 = vadd.f32 %v4332_v11, %v8479_v24 }
 0x345   : > { %v4659_v48 = vadd.f32 %v4658_v55, %v8721_v19 }
 0x346   : > { %v8726_v25 = vadd.f32 %v8487_v16, %v4366_v33 }
 0x348   : > { %v5399_v4 = vpack.c.bf16 %v8726_v25, %v8721_v19  ;;  %v4660_v29 = vadd.f32 %v4659_v48, %v8726_v25 }
 0x34a   : > { %5415 = vst [vmem:[%s8501_s26 + $0x78] sm:$0xff] %v5399_v4   ;;  %v4661_v40 = vrot.slane %v4660_v29, 4 }
 0x34c   : > { %v4662_v47 = vadd.f32 %v4661_v40, %v4660_v29 }
 0x34e   : > { %v4663_v30 = vrot.slane %v4662_v47, 2 }
 0x350   : > { %v4664_v59 = vadd.f32 %v4663_v30, %v4662_v47 }
 0x352   : > { %v4665_v15 = vrot.slane %v4664_v59, 1 }
 0x354   : > { %v4666_v36 = vadd.f32 %v4665_v15, %v4664_v59 }
 0x356   : > { %v8732_v7 = vmul.f32 0.00390625, %v4666_v36 }
 0x358   : > { %v4669_v24 = vsub.f32 %v8491_v60, %v8732_v7  ;;  %v4670_v16 = vsub.f32 %v8494_v42, %v8732_v7  ;;  %v4671_v26 = vsub.f32 %v8510_v1, %v8732_v7  ;;  %v4672_v0 = vsub.f32 %v8513_v49, %v8732_v7 }
 0x359   : > { %v4673_v57 = vsub.f32 %v8523_v31, %v8732_v7  ;;  %v4674_v52 = vsub.f32 %v8526_v46, %v8732_v7  ;;  %v4675_v42 = vsub.f32 %v8538_v22, %v8732_v7  ;;  %v4676_v37 = vsub.f32 %v8541_v8, %v8732_v7 }
 0x35a   : > { %v4701_v14 = vmul.f32 %v4669_v24, %v4669_v24  ;;  %v4702_v61 = vmul.f32 %v4670_v16, %v4670_v16  ;;  %v4703_v5 = vmul.f32 %v4671_v26, %v4671_v26  ;;  %v4704_v60 = vmul.f32 %v4672_v0, %v4672_v0 }
 0x35b   : > { %v4705_v17 = vmul.f32 %v4673_v57, %v4673_v57  ;;  %v4706_v9 = vmul.f32 %v4674_v52, %v4674_v52  ;;  %v4677_v31 = vsub.f32 %v8554_v10, %v8732_v7  ;;  %v4707_v51 = vmul.f32 %v4675_v42, %v4675_v42 }
 0x35c   : > { %v4733_v45 = vadd.f32 %v4702_v61, %v4701_v14  ;;  %v4678_v46 = vsub.f32 %v8557_v62, %v8732_v7  ;;  %v4708_v6 = vmul.f32 %v4676_v37, %v4676_v37  ;;  %v4679_v22 = vsub.f32 %v8569_v13, %v8732_v7 }
 0x35d   : > { %v4709_v58 = vmul.f32 %v4677_v31, %v4677_v31  ;;  %v4680_v8 = vsub.f32 %v8572_v63, %v8732_v7  ;;  %v4681_v10 = vsub.f32 %v8585_v53, %v8732_v7  ;;  %v4682_v62 = vsub.f32 %v8588_v23, %v8732_v7 }
 0x35e   : > { %v4734_v43 = vadd.f32 %v4733_v45, %v4703_v5  ;;  %v4710_v11 = vmul.f32 %v4678_v46, %v4678_v46  ;;  %v4711_v48 = vmul.f32 %v4679_v22, %v4679_v22  ;;  %v4683_v13 = vsub.f32 %v8601_v56, %v8732_v7 }
 0x35f   : > { %v4712_v29 = vmul.f32 %v4680_v8, %v4680_v8  ;;  %v4713_v47 = vmul.f32 %v4681_v10, %v4681_v10  ;;  %v4684_v63 = vsub.f32 %v8604_v38, %v8732_v7  ;;  %v4714_v59 = vmul.f32 %v4682_v62, %v4682_v62 }
 0x360   : > { %v4735_v1 = vadd.f32 %v4734_v43, %v4704_v60  ;;  %v4685_v53 = vsub.f32 %v8616_v27, %v8732_v7  ;;  %v4715_v36 = vmul.f32 %v4683_v13, %v4683_v13  ;;  %v4686_v23 = vsub.f32 %v8619_v28, %v8732_v7 }
 0x361   : > { %v4716_v16 = vmul.f32 %v4684_v63, %v4684_v63  ;;  %v4687_v56 = vsub.f32 %v8630_v32, %v8732_v7  ;;  %v4688_v38 = vsub.f32 %v8635_v21, %v8732_v7  ;;  %v4689_v27 = vsub.f32 %v8646_v39, %v8732_v7 }
 0x362   : > { %v4736_v49 = vadd.f32 %v4735_v1, %v4705_v17  ;;  %v4717_v14 = vmul.f32 %v4685_v53, %v4685_v53  ;;  %v4718_v0 = vmul.f32 %v4686_v23, %v4686_v23  ;;  %v4690_v28 = vsub.f32 %v8651_v41, %v8732_v7 }
 0x363   : > { %v4719_v5 = vmul.f32 %v4687_v56, %v4687_v56  ;;  %v4720_v52 = vmul.f32 %v4688_v38, %v4688_v38  ;;  %v4691_v32 = vsub.f32 %v8661_v50, %v8732_v7  ;;  %v4721_v43 = vmul.f32 %v4689_v27, %v4689_v27 }
 0x364   : > { %v4737_v55 = vadd.f32 %v4736_v49, %v4706_v9  ;;  %v4692_v21 = vsub.f32 %v8666_v20, %v8732_v7  ;;  %v4722_v17 = vmul.f32 %v4690_v28, %v4690_v28  ;;  %v4693_v39 = vsub.f32 %v8676_v34, %v8732_v7 }
 0x365   : > { %v4723_v37 = vmul.f32 %v4691_v32, %v4691_v32  ;;  %v4694_v41 = vsub.f32 %v8681_v18, %v8732_v7  ;;  %v4695_v50 = vsub.f32 %v8691_v3, %v8732_v7  ;;  %v4696_v20 = vsub.f32 %v8696_v44, %v8732_v7 }
 0x366   : > { %v4738_v35 = vadd.f32 %v4737_v55, %v4707_v51  ;;  %v4724_v49 = vmul.f32 %v4692_v21, %v4692_v21  ;;  %v4725_v51 = vmul.f32 %v4693_v39, %v4693_v39  ;;  %v4697_v34 = vsub.f32 %v8706_v54, %v8732_v7 }
 0x367   : > { %v4726_v46 = vmul.f32 %v4694_v41, %v4694_v41  ;;  %v4698_v18 = vsub.f32 %v8711_v12, %v8732_v7  ;;  %v4699_v3 = vsub.f32 %v8721_v19, %v8732_v7  ;;  %v4700_v44 = vsub.f32 %v8726_v25, %v8732_v7 }
 0x368   : > { %v4739_v2 = vadd.f32 %v4738_v35, %v4708_v6  ;;  %v4727_v35 = vmul.f32 %v4695_v50, %v4695_v50  ;;  %v4729_v8 = vmul.f32 %v4697_v34, %v4697_v34 }
 0x36a   : > { %v4740_v33 = vadd.f32 %v4739_v2, %v4709_v58  ;;  %v4728_v58 = vmul.f32 %v4696_v20, %v4696_v20 }
 0x36c   : > { %v4741_v4 = vadd.f32 %v4740_v33, %v4710_v11  ;;  %v4730_v33 = vmul.f32 %v4698_v18, %v4698_v18 }
 0x36e   : > { %v4742_v40 = vadd.f32 %v4741_v4, %v4711_v48  ;;  %v4731_v48 = vmul.f32 %v4699_v3, %v4699_v3  ;;  %v4732_v4 = vmul.f32 %v4700_v44, %v4700_v44 }
 0x370   : > { %v4743_v30 = vadd.f32 %v4742_v40, %v4712_v29 }
 0x372   : > { %v4744_v15 = vadd.f32 %v4743_v30, %v4713_v47 }
 0x374   : > { %v4745_v24 = vadd.f32 %v4744_v15, %v4714_v59 }
 0x376   : > { %v4746_v26 = vadd.f32 %v4745_v24, %v4715_v36 }
 0x378   : > { %v4747_v61 = vadd.f32 %v4746_v26, %v4716_v16 }
 0x37a   : > { %v4748_v57 = vadd.f32 %v4747_v61, %v4717_v14 }
 0x37c   : > { %v4749_v45 = vadd.f32 %v4748_v57, %v4718_v0 }
 0x37e   : > { %v4750_v60 = vadd.f32 %v4749_v45, %v4719_v5 }
 0x380   : > { %v4751_v42 = vadd.f32 %v4750_v60, %v4720_v52 }
 0x382   : > { %v4752_v1 = vadd.f32 %v4751_v42, %v4721_v43 }
 0x384   : > { %v4753_v9 = vadd.f32 %v4752_v1, %v4722_v17 }
 0x386   : > { %v4754_v31 = vadd.f32 %v4753_v9, %v4723_v37 }
 0x388   : > { %v4755_v55 = vadd.f32 %v4754_v31, %v4724_v49 }
 0x38a   : > { %v4756_v6 = vadd.f32 %v4755_v55, %v4725_v51 }
 0x38c   : > { %v4757_v22 = vadd.f32 %v4756_v6, %v4726_v46 }
 0x38e   : > { %v4758_v2 = vadd.f32 %v4757_v22, %v4727_v35 }
 0x390   : > { %v4759_v11 = vadd.f32 %v4758_v2, %v4728_v58 }
 0x392   : > { %v4760_v10 = vadd.f32 %v4759_v11, %v4729_v8 }
 0x394   : > { %v4761_v54 = vadd.f32 %v4760_v10, %v4730_v33 }
 0x396   : > { %v4762_v62 = vadd.f32 %v4761_v54, %v4731_v48 }
 0x398   : > { %v4763_v29 = vadd.f32 %v4762_v62, %v4732_v4 }
 0x39a   : > { %v4764_v40 = vrot.slane %v4763_v29, 4 }
 0x39c   : > { %v4765_v12 = vadd.f32 %v4764_v40, %v4763_v29 }
 0x39e   : > { %v4766_v13 = vrot.slane %v4765_v12, 2 }
 0x3a0   : > { %v4767_v47 = vadd.f32 %v4766_v13, %v4765_v12 }
 0x3a2   : > { %v4768_v30 = vrot.slane %v4767_v47, 1 }
 0x3a4   : > { %v4769_v19 = vadd.f32 %v4768_v30, %v4767_v47 }
 0x3a6   : > { %v4771_v25 = vsel %vm522_vm0, %v8732_v7, %v4769_v19 }
 0x3a7   : > { %4772 = vst [vmem:[%s255_s14] sm:$0x3] %v4771_v25 }
 0x3a8 PF: > { %s16_s18 = sadd.s32 1, %s6631_s18  }
 0x3a9   : > { %p13_p4 = scmp.ge.s32.totalorder %s16_s18, 4  }
 0x3ab   :  { %15 = sbr.rel (!%p13_p4) target bundleno = 1 (0x1), region = 83 }

</bundles_post_ra>
